<compile_context>
chip_gen: v6e
topology: v6e:2x2x1
jax: 0.10.0
libtpu: 0.0.40
codegen_flags: <defaults>
</compile_context>

<pallas_src>
import jax
import jax.numpy as jnp
import numpy as np
from jax.experimental import pallas as pl
from jax.experimental.pallas import tpu as pltpu


UP_FACTOR = 4                      # repeat_interleave factor along the last dim
_VMEM_LIMIT = 48 * 1024 * 1024     # safe on v7x (64 MiB physical), plenty on v5e/v6e
_STEP_BUDGET = 20 * 1024 * 1024    # target double-buffered in+out bytes per grid step


def _spherical_up_kernel(x_ref, o_ref):
    # x_ref: (R, N) block in VMEM; o_ref: (R, 4*N) block in VMEM.
    x = x_ref[...]
    if x.dtype.itemsize < 4:
        # Do the minor-dim merge in 32-bit layout (exact for bf16/int8/fp8);
        # casts are VPU work hidden under the HBM-bound DMA.
        x = x.astype(jnp.float32)
    r, n = x.shape
    # repeat-interleave along the lane axis: (R, N) -> (R, N, 4) -> (R, 4N),
    # then one lane-dense store of the whole output block.
    y = jnp.broadcast_to(x[:, :, None], (r, n, UP_FACTOR)).reshape(r, n * UP_FACTOR)
    o_ref[...] = y.astype(o_ref.dtype)


def _sublane_granule(itemsize):
    return {4: 8, 2: 16, 1: 32}.get(itemsize, 8)


def _lane_target(itemsize):
    # ~4 KiB of input per lane-row chunk: f32->1024, bf16->2048, int8->4096.
    return max(128, (4096 // itemsize) // 128 * 128)


def _pick_row_tile(rows, lane, itemsize):
    """Row tile: (granule, 128)-legal, keeps per-step VMEM footprint bounded."""
    min_sub = _sublane_granule(itemsize)
    eff = max(itemsize, 4)  # budget against the f32 compute footprint
    r_cap = _STEP_BUDGET // (2 * (1 + UP_FACTOR) * lane * eff)
    r_cap = int(min(max(r_cap, min_sub), 512))
    if rows <= r_cap:
        # Split non-trivial single blocks so v7x's two TensorCores both get work.
        if rows >= 2 * min_sub and rows * lane * itemsize > (1 << 20):
            half = ((rows // 2) + min_sub - 1) // min_sub * min_sub
            return min(rows, max(half, min_sub))
        return rows
    r_tile = (r_cap // min_sub) * min_sub
    # Prefer a divisor of rows near the cap (no ragged tail); else keep the
    # cap and let Pallas mask the trailing partial block.
    for cand in range(r_tile, max(min_sub, r_tile // 2) - 1, -min_sub):
        if rows % cand == 0:
            return cand
    return r_tile


def _flat_layout(total, dtype):
    """(rows, lane, r_tile) for the flattened view, or None if no clean chunking."""
    itemsize = jnp.dtype(dtype).itemsize
    lane = 0
    c = _lane_target(itemsize)
    while c >= 128:
        if total % c == 0:
            lane = c
            break
        c -= 128
    if lane == 0:
        return None
    rows = total // lane
    return rows, lane, _pick_row_tile(rows, lane, itemsize)


def _fallback_layout(rows, n, dtype):
    """Tiling for the raw (B*C, N) view when no 128-multiple divides B*C*N."""
    itemsize = jnp.dtype(dtype).itemsize
    target = _lane_target(itemsize)
    if n <= target:
        n_tile = n  # full-dim block: always layout-legal
    else:
        n_tile = 0
        c = target
        while c >= 128:
            if n % c == 0:
                n_tile = c
                break
            c -= 128
        if n_tile == 0:
            n_tile = target  # ragged tail; Pallas masks the partial block
    r_tile = _pick_row_tile(rows, n_tile, itemsize)
    return r_tile, n_tile


def spherical_up(x):
    """HEALPix upsample: x (B, C, N) -> (B, C, 4*N), same dtype.

    Equivalent to torch.repeat_interleave(x, 4, dim=-1).
    """
    B, C, N = x.shape
    total = B * C * N
    itemsize = jnp.dtype(x.dtype).itemsize

    flat = _flat_layout(total, x.dtype)
    if flat is not None:
        rows, lane, r_tile = flat
        x2d = x.reshape(rows, lane)
        grid = (pl.cdiv(rows, r_tile),)
        in_specs = [pl.BlockSpec((r_tile, lane), lambda i: (i, 0))]
        out_specs = pl.BlockSpec((r_tile, lane * UP_FACTOR), lambda i: (i, 0))
        out_cols = lane * UP_FACTOR
        dims = ("parallel",)
    else:
        rows = B * C
        x2d = x.reshape(rows, N)
        r_tile, n_tile = _fallback_layout(rows, N, x.dtype)
        grid = (pl.cdiv(rows, r_tile), pl.cdiv(N, n_tile))
        in_specs = [pl.BlockSpec((r_tile, n_tile), lambda i, j: (i, j))]
        out_specs = pl.BlockSpec((r_tile, n_tile * UP_FACTOR), lambda i, j: (i, j))
        out_cols = N * UP_FACTOR
        dims = ("parallel", "parallel")

    out2d = pl.pallas_call(
        _spherical_up_kernel,
        out_shape=jax.ShapeDtypeStruct((rows, out_cols), x.dtype),
        grid=grid,
        in_specs=in_specs,
        out_specs=out_specs,
        compiler_params=pltpu.CompilerParams(
            dimension_semantics=dims,
            vmem_limit_bytes=_VMEM_LIMIT,
        ),
        cost_estimate=pl.CostEstimate(
            flops=0,
            transcendentals=0,
            bytes_accessed=(1 + UP_FACTOR) * total * itemsize,
        ),
    )(x2d)

    return out2d.reshape(B, C, N * UP_FACTOR)


if __name__ == "__main__":
    base_key = jax.random.PRNGKey(0)

    def _check(shape, dtype, salt):
        key = jax.random.fold_in(base_key, salt)
        x = jax.random.normal(key, shape, dtype=jnp.float32).astype(dtype)
        out = jax.block_until_ready(spherical_up(x))
        ref = np.repeat(np.asarray(x), UP_FACTOR, axis=-1)
        assert out.shape == shape[:-1] + (shape[-1] * UP_FACTOR,), out.shape
        np.testing.assert_array_equal(np.asarray(out), ref)

    # NSIDE=4 -> Npix=192: small array, flat-chunked single-block path.
    _check((2, 4, 192), jnp.float32, 0)
    # NSIDE=16 -> Npix=3072: flat-chunked multi-row path (1024-lane chunks).
    _check((2, 4, 3072), jnp.float32, 1)
    # NSIDE=8 -> Npix=768, bf16: dtype-aware lane chunk + sub-32-bit merge path.
    _check((3, 2, 768), jnp.bfloat16, 2)
    # Non-HEALPix N with no 128-multiple divisor: exercises the fallback layout.
    _check((1, 3, 100), jnp.float32, 3)

    print("KERNEL_OK")
</pallas_src>

<mosaic_0001>
module attributes {stable_mosaic.version = 11 : i64} {
  func.func @_spherical_up_kernel(%arg0: i32, %arg1: memref<2x768xf32, #tpu.memory_space<vmem>>, %arg2: memref<2x3072xf32, #tpu.memory_space<vmem>>) attributes {dimension_semantics = [#tpu.dimension_semantics<parallel>], iteration_bounds = array<i64: 1>, scalar_prefetch = 0 : i64, scratch_operands = 0 : i64, tpu.core_type = #tpu.core_type<tc>, window_params = [{transform_indices = @transform_0, window_bounds = array<i64: 2, 768>}, {transform_indices = @transform_1, window_bounds = array<i64: 2, 3072>}]} {
    %c0 = arith.constant 0 : index
    %c0_0 = arith.constant 0 : index
    %0 = vector.load %arg1[%c0, %c0_0] : memref<2x768xf32, #tpu.memory_space<vmem>>, vector<2x768xf32>
    %1 = vector.shape_cast %0 : vector<2x768xf32> to vector<2x768x1xf32>
    %2 = vector.shape_cast %1 : vector<2x768x1xf32> to vector<2x768x1xf32>
    %3 = vector.broadcast %2 : vector<2x768x1xf32> to vector<2x768x4xf32>
    %4 = vector.shape_cast %3 : vector<2x768x4xf32> to vector<2x3072xf32>
    %c0_1 = arith.constant 0 : index
    %c0_2 = arith.constant 0 : index
    %5 = vector.load %arg2[%c0_1, %c0_2] : memref<2x3072xf32, #tpu.memory_space<vmem>>, vector<2x3072xf32>
    tpu.vector_store %arg2[%c0_1, %c0_2], %4 {strides = array<i32>} : memref<2x3072xf32, #tpu.memory_space<vmem>>, vector<2x3072xf32>,
    return
  }
  func.func @transform_0(%arg0: i32) -> (i32, i32) {
    %c0_i32 = arith.constant 0 : i32
    %c0_i32_0 = arith.constant 0 : i32
    return %arg0, %c0_i32 : i32, i32
  }
  func.func @transform_1(%arg0: i32) -> (i32, i32) {
    %c0_i32 = arith.constant 0 : i32
    %c0_i32_0 = arith.constant 0 : i32
    return %arg0, %c0_i32 : i32, i32
  }
}

</mosaic_0001>

<bundles_post_ra>
// kernel: tpu_custom_call.1
= control target key start
LH: loop header
LB: loop body
LE: loop exit
PB: predicated region body
PF: predicated region fallthrough
CT: control target
= control target key end

     0   :  { %6 = vsyncpa [#allocation3], 0  ;;  %s16424_s0 = inlined_call_operand.hbm [shape: f32[2,768], index: 0, kind: input, shape index: {}]   ;;  %s16425_s1 = inlined_call_operand.hbm [shape: f32[2,3072], index: 1, kind: output, shape index: {}]  }
   0x1   :  { %7 = vsyncpa [#allocation4], 0  ;;  %s11182_s6 = smov [#allocation2]  }
   0x2   :  { %s14_s7 = sshll.u32 %s11182_s6, 4  ;;  %s15_s7 = int_to_ptr.vmem [resolvable:$true] %s14_s7 }
   0x3   :  { %s11146_s8 = scalar_lea.vmem %s15_s7, 192  ;;  %p11151_p1 = scmp.lt.s32.totalorder %s15_s7, %s15_s7 }
   0x4   :  { %p11147_p0 = scmp.ne.s32.totalorder %s15_s7, %s11146_s8  ;;  %p11152_p2 = scmp.lt.s32.totalorder %s11146_s8, %s11146_s8 }
   0x6   :  { %p11153_p3 = por %p11152_p2, %p11151_p1 }
   0x8   :  { %p11154_p4 = pnand %p11153_p3, %p11147_p0 }
   0xa   :  { %11157 = shalt.err (!%p11154_p4)
}
   0xb   :  { %17 = dma.hbm_to_vmem [thread:$0]  %s16424_s0, 192, %s15_s7, [#allocation3]  }
   0xc   :  { %11178 = dma.done.wait [#allocation3], 192  }
   0xd   :  { %11179 = vsyncadd [#allocation3], 4294967104  ;;  %v29_v0 = vlaneseq  ;;  %v11183_v1 = vmov 1983009808   ;;  %v21_v7 = vld [vmem:[#allocation2] sm:$0xff]  ;;  %s16642_s0 = smov 8  }
   0xe   :  { %v27_v2 = vunpack.c.l.s4 %v11183_v1  ;;  %v25_v12 = vcombine.high %v21_v7, %v21_v7  ;;  %v11269_v21 = vld.sshfl [vmem:[#allocation2 + $0x8] sm:$0x33 pattern:$0x76325410]  ;;  %s11187_s11 = smov 4   ;;  %s11188_s12 = smov 16  }
   0xf   :  { %v11231_v3 = vshrl.u32 %v29_v0, 7  ;;  %v11307_v39 = vcombine.high %v11269_v21, %v11269_v21  ;;  %s16620_s13 = smov 12   ;;  %s16614_s14 = smov 24   ;;  %vm10172_vm0 = vcmask 31744   ;;  %vm10174_vm1 = vcmask 64512  }
  0x10   :  { %v28_v4 = vunpack.c.0.s8 %v27_v2  ;;  %s16640_s15 = smov 20   ;;  %s11192_s16 = smov 32   ;;  %vm10176_vm2 = vcmask 97280   ;;  %vm10178_vm3 = vcmask 130048   ;;  %vm16619_vm4 = vcmask 162816  }
  0x11   :  { %v11237_v6 = vsub.s32 0, %v11231_v3  ;;  %v11344_v57 = vsub.s32 1, %v11231_v3  ;;  %s16609_s17 = smov 28   ;;  %s16606_s18 = smov 40   ;;  %vm16618_vm5 = vcmask 195584   ;;  %vm16613_vm6 = vcmask 228352  }
  0x12   :  { %v11234_v5 = vsub.s32 %v28_v4, %v11231_v3  ;;  %s16638_s19 = smov 36   ;;  %s16636_s20 = smov 48   ;;  %vm16611_vm7 = vcmask 261120   ;;  %vm16612_vm8 = vcmask 293888   ;;  %vm16616_vm9 = vcmask 326656  }
  0x13   :  { %v327_v24 = vrot.slane %v11269_v21, %v11237_v6  ;;  %v394_v42 = vrot.slane %v11307_v39, %v11237_v6  ;;  %s11197_s21 = smov 44   ;;  %s11198_s22 = smov 56   ;;  %vm16617_vm10 = vcmask 359424   ;;  %vm16588_vm11 = vcmask 392192  }
  0x14   :  { %v11240_v8 = vrot.slane %v21_v7, %v11234_v5  ;;  %v11251_v13 = vrot.slane %v25_v12, %v11234_v5  ;;  %s16604_s23 = smov 52   ;;  %s16595_s24 = smov 64   ;;  %vm16587_vm12 = vcmask 424960   ;;  %vm16590_vm13 = vcmask 457728  }
  0x15   :  { %s16633_s25 = smov 60   ;;  %s11202_s26 = smov 72   ;;  %vm16589_vm14 = vcmask 490496   ;;  %vm16592_vm15 = vcmask 523264  }
  0x16   :  { %v59_v9 = vrot.slane %v11240_v8, %v11237_v6  ;;  %v11246_v10 = vcombine.high %v11240_v8, %v11240_v8  ;;  %v193_v14 = vrot.slane %v11251_v13, %v11237_v6  ;;  %v11257_v15 = vcombine.high %v11251_v13, %v11251_v13  ;;  %s16585_s27 = smov 68   ;;  %s16582_s28 = smov 80  }
  0x17   :  { %v461_v60 = vrot.slane %v11240_v8, %v11344_v57  ;;  %s16631_s29 = smov 76   ;;  %s16649_s30 = smov 88  }
  0x18   :  { %69 = vbcast.lane.b32.xlu1 %v59_v9, 272  ;;  %61 = vbcast.lane.b32.xlu0 %v59_v9, 256  ;;  %v126_v11 = vrot.slane %v11246_v10, %v11237_v6  ;;  %v260_v16 = vrot.slane %v11257_v15, %v11237_v6  ;;  %s11207_s2 = smov 84   ;;  %s16578_s3 = smov 96  }
  0x19   :  { %s16629_s4 = smov 92   ;;  %s16627_s5 = smov 104  }
  0x1a   :  { %s16647_s6 = smov 100   ;;  %s16624_s7 = smov 112  }
  0x1b   :  { %s16569_s8 = smov 108   ;;  %s16543_s9 = smov 120  }
  0x1c   :  { %73 = vbcast.lane.b32.xlu1 %v59_v9, 280  ;;  %65 = vbcast.lane.b32.xlu0 %v59_v9, 264  ;;  %s16644_s10 = smov 116  }
  0x20   :  { %81 = vbcast.lane.b32.xlu1 %v59_v9, 296  ;;  %77 = vbcast.lane.b32.xlu0 %v59_v9, 288 }
  0x24   :  { %89 = vbcast.lane.b32.xlu1 %v59_v9, 312  ;;  %85 = vbcast.lane.b32.xlu0 %v59_v9, 304 }
  0x28   :  { %97 = vbcast.lane.b32.xlu1 %v59_v9, 328  ;;  %93 = vbcast.lane.b32.xlu0 %v59_v9, 320 }
  0x2c   :  { %105 = vbcast.lane.b32.xlu1 %v59_v9, 344  ;;  %101 = vbcast.lane.b32.xlu0 %v59_v9, 336 }
  0x30   :  { %113 = vbcast.lane.b32.xlu1 %v59_v9, 360  ;;  %109 = vbcast.lane.b32.xlu0 %v59_v9, 352 }
  0x34   :  { %121 = vbcast.lane.b32.xlu1 %v59_v9, 376  ;;  %117 = vbcast.lane.b32.xlu0 %v59_v9, 368 }
  0x38   :  { %132 = vbcast.lane.b32.xlu1 %v126_v11, 264  ;;  %128 = vbcast.lane.b32.xlu0 %v126_v11, 256 }
  0x3c   :  { %140 = vbcast.lane.b32.xlu1 %v126_v11, 280  ;;  %136 = vbcast.lane.b32.xlu0 %v126_v11, 272 }
  0x40   :  { %148 = vbcast.lane.b32.xlu1 %v126_v11, 296  ;;  %144 = vbcast.lane.b32.xlu0 %v126_v11, 288 }
  0x44   :  { %156 = vbcast.lane.b32.xlu1 %v126_v11, 312  ;;  %152 = vbcast.lane.b32.xlu0 %v126_v11, 304 }
  0x48   :  { %164 = vbcast.lane.b32.xlu1 %v126_v11, 328  ;;  %160 = vbcast.lane.b32.xlu0 %v126_v11, 320 }
  0x4c   :  { %172 = vbcast.lane.b32.xlu1 %v126_v11, 344  ;;  %168 = vbcast.lane.b32.xlu0 %v126_v11, 336 }
  0x50   :  { %180 = vbcast.lane.b32.xlu1 %v126_v11, 360  ;;  %176 = vbcast.lane.b32.xlu0 %v126_v11, 352 }
  0x54   :  { %188 = vbcast.lane.b32.xlu1 %v126_v11, 376  ;;  %184 = vbcast.lane.b32.xlu0 %v126_v11, 368 }
  0x58   :  { %199 = vbcast.lane.b32.xlu1 %v193_v14, 264  ;;  %195 = vbcast.lane.b32.xlu0 %v193_v14, 256 }
  0x5c   :  { %207 = vbcast.lane.b32.xlu1 %v193_v14, 280  ;;  %203 = vbcast.lane.b32.xlu0 %v193_v14, 272 }
  0x60   :  { %215 = vbcast.lane.b32.xlu1 %v193_v14, 296  ;;  %211 = vbcast.lane.b32.xlu0 %v193_v14, 288 }
  0x64   :  { %223 = vbcast.lane.b32.xlu1 %v193_v14, 312  ;;  %219 = vbcast.lane.b32.xlu0 %v193_v14, 304 }
  0x68   :  { %231 = vbcast.lane.b32.xlu1 %v193_v14, 328  ;;  %227 = vbcast.lane.b32.xlu0 %v193_v14, 320 }
  0x6c   :  { %239 = vbcast.lane.b32.xlu1 %v193_v14, 344  ;;  %235 = vbcast.lane.b32.xlu0 %v193_v14, 336 }
  0x70   :  { %247 = vbcast.lane.b32.xlu1 %v193_v14, 360  ;;  %243 = vbcast.lane.b32.xlu0 %v193_v14, 352 }
  0x74   :  { %255 = vbcast.lane.b32.xlu1 %v193_v14, 376  ;;  %251 = vbcast.lane.b32.xlu0 %v193_v14, 368 }
  0x78   :  { %266 = vbcast.lane.b32.xlu1 %v260_v16, 264  ;;  %262 = vbcast.lane.b32.xlu0 %v260_v16, 256 }
  0x7c   :  { %274 = vbcast.lane.b32.xlu1 %v260_v16, 280  ;;  %270 = vbcast.lane.b32.xlu0 %v260_v16, 272 }
  0x80   :  { %282 = vbcast.lane.b32.xlu1 %v260_v16, 296  ;;  %278 = vbcast.lane.b32.xlu0 %v260_v16, 288 }
  0x84   :  { %290 = vbcast.lane.b32.xlu1 %v260_v16, 312  ;;  %286 = vbcast.lane.b32.xlu0 %v260_v16, 304 }
  0x88   :  { %298 = vbcast.lane.b32.xlu1 %v260_v16, 328  ;;  %294 = vbcast.lane.b32.xlu0 %v260_v16, 320 }
  0x8a   :  { %v11261_v17 = vpop.permute.xlu1 %69  ;;  %v11263_v18 = vpop.permute.xlu0 %61 }
  0x8c   :  { %306 = vbcast.lane.b32.xlu1 %v260_v16, 344  ;;  %302 = vbcast.lane.b32.xlu0 %v260_v16, 336 }
  0x8e   :  { %v11265_v19 = vpop.permute.xlu1 %73  ;;  %v11267_v20 = vpop.permute.xlu0 %65 }
  0x90   :  { %314 = vbcast.lane.b32.xlu1 %v260_v16, 360  ;;  %310 = vbcast.lane.b32.xlu0 %v260_v16, 352 }
  0x92   :  { %v11271_v22 = vpop.permute.xlu1 %81  ;;  %v11273_v23 = vpop.permute.xlu0 %77 }
  0x94   :  { %322 = vbcast.lane.b32.xlu1 %v260_v16, 376  ;;  %318 = vbcast.lane.b32.xlu0 %v260_v16, 368 }
  0x96   :  { %v11277_v25 = vpop.permute.xlu1 %89  ;;  %v11279_v26 = vpop.permute.xlu0 %85 }
  0x98   :  { %333 = vbcast.lane.b32.xlu1 %v327_v24, 264  ;;  %329 = vbcast.lane.b32.xlu0 %v327_v24, 256 }
  0x9a   :  { %v11281_v27 = vpop.permute.xlu1 %97  ;;  %v11283_v28 = vpop.permute.xlu0 %93 }
  0x9c   :  { %341 = vbcast.lane.b32.xlu1 %v327_v24, 280  ;;  %337 = vbcast.lane.b32.xlu0 %v327_v24, 272 }
  0x9e   :  { %v11285_v29 = vpop.permute.xlu1 %105  ;;  %v11287_v30 = vpop.permute.xlu0 %101 }
  0xa0   :  { %349 = vbcast.lane.b32.xlu1 %v327_v24, 296  ;;  %345 = vbcast.lane.b32.xlu0 %v327_v24, 288 }
  0xa2   :  { %v11289_v31 = vpop.permute.xlu1 %113  ;;  %v11291_v32 = vpop.permute.xlu0 %109 }
  0xa4   :  { %357 = vbcast.lane.b32.xlu1 %v327_v24, 312  ;;  %353 = vbcast.lane.b32.xlu0 %v327_v24, 304 }
  0xa6   :  { %v11293_v33 = vpop.permute.xlu1 %121  ;;  %v11295_v34 = vpop.permute.xlu0 %117 }
  0xa8   :  { %365 = vbcast.lane.b32.xlu1 %v327_v24, 328  ;;  %361 = vbcast.lane.b32.xlu0 %v327_v24, 320 }
  0xaa   :  { %v11297_v35 = vpop.permute.xlu1 %132  ;;  %v11299_v36 = vpop.permute.xlu0 %128 }
  0xac   :  { %373 = vbcast.lane.b32.xlu1 %v327_v24, 344  ;;  %369 = vbcast.lane.b32.xlu0 %v327_v24, 336 }
  0xae   :  { %v11301_v37 = vpop.permute.xlu1 %140  ;;  %v11303_v38 = vpop.permute.xlu0 %136 }
  0xb0   :  { %381 = vbcast.lane.b32.xlu1 %v327_v24, 360  ;;  %377 = vbcast.lane.b32.xlu0 %v327_v24, 352 }
  0xb2   :  { %v11309_v40 = vpop.permute.xlu1 %148  ;;  %v11311_v41 = vpop.permute.xlu0 %144 }
  0xb4   :  { %389 = vbcast.lane.b32.xlu1 %v327_v24, 376  ;;  %385 = vbcast.lane.b32.xlu0 %v327_v24, 368 }
  0xb6   :  { %v11315_v43 = vpop.permute.xlu1 %156  ;;  %v11317_v44 = vpop.permute.xlu0 %152 }
  0xb7   :  { %16651 = vst [vmem:[#allocation8_spill] sm:$0xff] %v11315_v43  ;;  %16652 = vst [vmem:[#allocation9_spill] sm:$0xff] %v11317_v44 }
  0xb8   :  { %400 = vbcast.lane.b32.xlu1 %v394_v42, 264  ;;  %396 = vbcast.lane.b32.xlu0 %v394_v42, 256 }
  0xba   :  { %v11319_v45 = vpop.permute.xlu1 %164  ;;  %v11321_v46 = vpop.permute.xlu0 %160 }
  0xbb   :  { %16653 = vst [vmem:[#allocation10_spill] sm:$0xff] %v11319_v45  ;;  %16654 = vst [vmem:[#allocation11_spill] sm:$0xff] %v11321_v46 }
  0xbc   :  { %408 = vbcast.lane.b32.xlu1 %v394_v42, 280  ;;  %404 = vbcast.lane.b32.xlu0 %v394_v42, 272 }
  0xbe   :  { %v11323_v47 = vpop.permute.xlu1 %172  ;;  %v11325_v48 = vpop.permute.xlu0 %168 }
  0xbf   :  { %16655 = vst [vmem:[#allocation12_spill] sm:$0xff] %v11323_v47  ;;  %16656 = vst [vmem:[#allocation13_spill] sm:$0xff] %v11325_v48 }
  0xc0   :  { %416 = vbcast.lane.b32.xlu1 %v394_v42, 296  ;;  %412 = vbcast.lane.b32.xlu0 %v394_v42, 288 }
  0xc2   :  { %v11327_v49 = vpop.permute.xlu1 %180  ;;  %v11329_v50 = vpop.permute.xlu0 %176 }
  0xc3   :  { %16657 = vst [vmem:[#allocation14_spill] sm:$0xff] %v11327_v49  ;;  %16658 = vst [vmem:[#allocation15_spill] sm:$0xff] %v11329_v50  ;;  %v11184_v50 = vmov 1934713408  }
  0xc4   :  { %424 = vbcast.lane.b32.xlu1 %v394_v42, 312  ;;  %420 = vbcast.lane.b32.xlu0 %v394_v42, 304  ;;  %v893_v47 = vunpack.c.l.s4 %v11184_v50 }
  0xc6   :  { %v11331_v51 = vpop.permute.xlu1 %188  ;;  %v11333_v52 = vpop.permute.xlu0 %184 }
  0xc7   :  { %16659 = vst [vmem:[#allocation16_spill] sm:$0xff] %v11331_v51  ;;  %16660 = vst [vmem:[#allocation17_spill] sm:$0xff] %v11333_v52 }
  0xc8   :  { %432 = vbcast.lane.b32.xlu1 %v394_v42, 328  ;;  %428 = vbcast.lane.b32.xlu0 %v394_v42, 320 }
  0xca   :  { %v11335_v53 = vpop.permute.xlu1 %199  ;;  %v11337_v54 = vpop.permute.xlu0 %195 }
  0xcb   :  { %16661 = vst [vmem:[#allocation18_spill] sm:$0xff] %v11335_v53  ;;  %16662 = vst [vmem:[#allocation19_spill] sm:$0xff] %v11337_v54 }
  0xcc   :  { %440 = vbcast.lane.b32.xlu1 %v394_v42, 344  ;;  %436 = vbcast.lane.b32.xlu0 %v394_v42, 336 }
  0xce   :  { %v11339_v55 = vpop.permute.xlu1 %207  ;;  %v11341_v56 = vpop.permute.xlu0 %203 }
  0xcf   :  { %16663 = vst [vmem:[#allocation20_spill] sm:$0xff] %v11339_v55  ;;  %16664 = vst [vmem:[#allocation21_spill] sm:$0xff] %v11341_v56 }
  0xd0   :  { %448 = vbcast.lane.b32.xlu1 %v394_v42, 360  ;;  %444 = vbcast.lane.b32.xlu0 %v394_v42, 352 }
  0xd2   :  { %v11346_v58 = vpop.permute.xlu1 %215  ;;  %v11348_v59 = vpop.permute.xlu0 %211 }
  0xd3   :  { %16665 = vst [vmem:[#allocation22_spill] sm:$0xff] %v11346_v58  ;;  %16666 = vst [vmem:[#allocation23_spill] sm:$0xff] %v11348_v59  ;;  %v796_v59 = vrot.slane %v11307_v39, %v11344_v57 }
  0xd4   :  { %456 = vbcast.lane.b32.xlu1 %v394_v42, 376  ;;  %452 = vbcast.lane.b32.xlu0 %v394_v42, 368  ;;  %v528_v42 = vrot.slane %v11246_v10, %v11344_v57 }
  0xd6   :  { %v11352_v61 = vpop.permute.xlu1 %223  ;;  %v11354_v62 = vpop.permute.xlu0 %219 }
  0xd7   :  { %16667 = vst [vmem:[#allocation24_spill] sm:$0xff] %v11352_v61  ;;  %16668 = vst [vmem:[#allocation25_spill] sm:$0xff] %v11354_v62 }
  0xd8   :  { %467 = vbcast.lane.b32.xlu1 %v461_v60, 264  ;;  %463 = vbcast.lane.b32.xlu0 %v461_v60, 256 }
  0xda   :  { %v11356_v63 = vpop.permute.xlu1 %231  ;;  %v11358_v0 = vpop.permute.xlu0 %227 }
  0xdb   :  { %16669 = vst [vmem:[#allocation26_spill] sm:$0xff] %v11356_v63  ;;  %16670 = vst [vmem:[#allocation27_spill] sm:$0xff] %v11358_v0 }
  0xdc   :  { %475 = vbcast.lane.b32.xlu1 %v461_v60, 280  ;;  %471 = vbcast.lane.b32.xlu0 %v461_v60, 272 }
  0xde   :  { %v11360_v1 = vpop.permute.xlu1 %239  ;;  %v11362_v2 = vpop.permute.xlu0 %235 }
  0xdf   :  { %16671 = vst [vmem:[#allocation28_spill] sm:$0xff] %v11360_v1  ;;  %16672 = vst [vmem:[#allocation29_spill] sm:$0xff] %v11362_v2 }
  0xe0   :  { %483 = vbcast.lane.b32.xlu1 %v461_v60, 296  ;;  %479 = vbcast.lane.b32.xlu0 %v461_v60, 288 }
  0xe2   :  { %v11364_v4 = vpop.permute.xlu1 %247  ;;  %v11366_v6 = vpop.permute.xlu0 %243 }
  0xe3   :  { %16673 = vst [vmem:[#allocation30_spill] sm:$0xff] %v11364_v4  ;;  %16674 = vst [vmem:[#allocation31_spill] sm:$0xff] %v11366_v6 }
  0xe4   :  { %491 = vbcast.lane.b32.xlu1 %v461_v60, 312  ;;  %487 = vbcast.lane.b32.xlu0 %v461_v60, 304 }
  0xe6   :  { %v11368_v7 = vpop.permute.xlu1 %255  ;;  %v11370_v8 = vpop.permute.xlu0 %251 }
  0xe7   :  { %16675 = vst [vmem:[#allocation32_spill] sm:$0xff] %v11368_v7  ;;  %16676 = vst [vmem:[#allocation33_spill] sm:$0xff] %v11370_v8 }
  0xe8   :  { %499 = vbcast.lane.b32.xlu1 %v461_v60, 328  ;;  %495 = vbcast.lane.b32.xlu0 %v461_v60, 320 }
  0xea   :  { %v11372_v9 = vpop.permute.xlu1 %266  ;;  %v11374_v11 = vpop.permute.xlu0 %262 }
  0xeb   :  { %16677 = vst [vmem:[#allocation34_spill] sm:$0xff] %v11372_v9  ;;  %16678 = vst [vmem:[#allocation35_spill] sm:$0xff] %v11374_v11 }
  0xec   :  { %507 = vbcast.lane.b32.xlu1 %v461_v60, 344  ;;  %503 = vbcast.lane.b32.xlu0 %v461_v60, 336 }
  0xee   :  { %v11376_v12 = vpop.permute.xlu1 %274  ;;  %v11378_v14 = vpop.permute.xlu0 %270 }
  0xef   :  { %16679 = vst [vmem:[#allocation36_spill] sm:$0xff] %v11376_v12  ;;  %16680 = vst [vmem:[#allocation37_spill] sm:$0xff] %v11378_v14 }
  0xf0   :  { %515 = vbcast.lane.b32.xlu1 %v461_v60, 360  ;;  %511 = vbcast.lane.b32.xlu0 %v461_v60, 352 }
  0xf2   :  { %v11380_v16 = vpop.permute.xlu1 %282  ;;  %v11382_v24 = vpop.permute.xlu0 %278 }
  0xf3   :  { %16681 = vst [vmem:[#allocation38_spill] sm:$0xff] %v11380_v16  ;;  %16682 = vst [vmem:[#allocation39_spill] sm:$0xff] %v11382_v24 }
  0xf4   :  { %523 = vbcast.lane.b32.xlu1 %v461_v60, 376  ;;  %519 = vbcast.lane.b32.xlu0 %v461_v60, 368 }
  0xf6   :  { %v11386_v9 = vpop.permute.xlu1 %290  ;;  %v11388_v11 = vpop.permute.xlu0 %286 }
  0xf7   :  { %16683 = vst [vmem:[#allocation40_spill] sm:$0xff] %v11386_v9  ;;  %16684 = vst [vmem:[#allocation41_spill] sm:$0xff] %v11388_v11 }
  0xf8   :  { %534 = vbcast.lane.b32.xlu1 %v528_v42, 264  ;;  %530 = vbcast.lane.b32.xlu0 %v528_v42, 256 }
  0xfa   :  { %v11390_v12 = vpop.permute.xlu1 %298  ;;  %v11392_v14 = vpop.permute.xlu0 %294 }
  0xfb   :  { %16685 = vst [vmem:[#allocation42_spill] sm:$0xff] %v11390_v12  ;;  %16686 = vst [vmem:[#allocation43_spill] sm:$0xff] %v11392_v14 }
  0xfc   :  { %542 = vbcast.lane.b32.xlu1 %v528_v42, 280  ;;  %538 = vbcast.lane.b32.xlu0 %v528_v42, 272 }
  0xfe   :  { %v11394_v16 = vpop.permute.xlu1 %306  ;;  %v11396_v24 = vpop.permute.xlu0 %302 }
  0xff   :  { %16687 = vst [vmem:[#allocation44_spill] sm:$0xff] %v11394_v16  ;;  %16688 = vst [vmem:[#allocation45_spill] sm:$0xff] %v11396_v24 }
 0x100   :  { %550 = vbcast.lane.b32.xlu1 %v528_v42, 296  ;;  %546 = vbcast.lane.b32.xlu0 %v528_v42, 288 }
 0x102   :  { %v11398_v60 = vpop.permute.xlu1 %314  ;;  %v11400_v10 = vpop.permute.xlu0 %310 }
 0x103   :  { %16689 = vst [vmem:[#allocation46_spill] sm:$0xff] %v11398_v60  ;;  %16690 = vst [vmem:[#allocation47_spill] sm:$0xff] %v11400_v10 }
 0x104   :  { %558 = vbcast.lane.b32.xlu1 %v528_v42, 312  ;;  %554 = vbcast.lane.b32.xlu0 %v528_v42, 304 }
 0x106   :  { %v11402_v9 = vpop.permute.xlu1 %322  ;;  %v11404_v11 = vpop.permute.xlu0 %318 }
 0x107   :  { %16691 = vst [vmem:[#allocation48_spill] sm:$0xff] %v11402_v9  ;;  %16692 = vst [vmem:[#allocation49_spill] sm:$0xff] %v11404_v11  ;;  %v595_v9 = vrot.slane %v11251_v13, %v11344_v57 }
 0x108   :  { %566 = vbcast.lane.b32.xlu1 %v528_v42, 328  ;;  %562 = vbcast.lane.b32.xlu0 %v528_v42, 320 }
 0x10a   :  { %v11406_v12 = vpop.permute.xlu1 %333  ;;  %v11408_v14 = vpop.permute.xlu0 %329 }
 0x10b   :  { %16693 = vst [vmem:[#allocation50_spill] sm:$0xff] %v11406_v12  ;;  %16694 = vst [vmem:[#allocation51_spill] sm:$0xff] %v11408_v14 }
 0x10c   :  { %574 = vbcast.lane.b32.xlu1 %v528_v42, 344  ;;  %570 = vbcast.lane.b32.xlu0 %v528_v42, 336 }
 0x10e   :  { %v11410_v16 = vpop.permute.xlu1 %341  ;;  %v11412_v24 = vpop.permute.xlu0 %337 }
 0x10f   :  { %16695 = vst [vmem:[#allocation52_spill] sm:$0xff] %v11410_v16  ;;  %16696 = vst [vmem:[#allocation53_spill] sm:$0xff] %v11412_v24 }
 0x110   :  { %582 = vbcast.lane.b32.xlu1 %v528_v42, 360  ;;  %578 = vbcast.lane.b32.xlu0 %v528_v42, 352 }
 0x112   :  { %v11414_v60 = vpop.permute.xlu1 %349  ;;  %v11416_v10 = vpop.permute.xlu0 %345 }
 0x113   :  { %16697 = vst [vmem:[#allocation54_spill] sm:$0xff] %v11414_v60  ;;  %16698 = vst [vmem:[#allocation55_spill] sm:$0xff] %v11416_v10 }
 0x114   :  { %590 = vbcast.lane.b32.xlu1 %v528_v42, 376  ;;  %586 = vbcast.lane.b32.xlu0 %v528_v42, 368 }
 0x116   :  { %v11420_v12 = vpop.permute.xlu1 %357  ;;  %v11422_v14 = vpop.permute.xlu0 %353 }
 0x117   :  { %16699 = vst [vmem:[#allocation56_spill] sm:$0xff] %v11420_v12  ;;  %16700 = vst [vmem:[#allocation57_spill] sm:$0xff] %v11422_v14 }
 0x118   :  { %601 = vbcast.lane.b32.xlu1 %v595_v9, 264  ;;  %597 = vbcast.lane.b32.xlu0 %v595_v9, 256 }
 0x11a   :  { %v11424_v16 = vpop.permute.xlu1 %365  ;;  %v11426_v24 = vpop.permute.xlu0 %361 }
 0x11b   :  { %16701 = vst [vmem:[#allocation58_spill] sm:$0xff] %v11424_v16  ;;  %16702 = vst [vmem:[#allocation59_spill] sm:$0xff] %v11426_v24 }
 0x11c   :  { %609 = vbcast.lane.b32.xlu1 %v595_v9, 280  ;;  %605 = vbcast.lane.b32.xlu0 %v595_v9, 272 }
 0x11e   :  { %v11428_v60 = vpop.permute.xlu1 %373  ;;  %v11430_v10 = vpop.permute.xlu0 %369 }
 0x11f   :  { %16703 = vst [vmem:[#allocation60_spill] sm:$0xff] %v11428_v60  ;;  %16704 = vst [vmem:[#allocation61_spill] sm:$0xff] %v11430_v10 }
 0x120   :  { %617 = vbcast.lane.b32.xlu1 %v595_v9, 296  ;;  %613 = vbcast.lane.b32.xlu0 %v595_v9, 288 }
 0x122   :  { %v11432_v42 = vpop.permute.xlu1 %381  ;;  %v11434_v13 = vpop.permute.xlu0 %377 }
 0x123   :  { %16705 = vst [vmem:[#allocation62_spill] sm:$0xff] %v11432_v42  ;;  %16706 = vst [vmem:[#allocation63_spill] sm:$0xff] %v11434_v13 }
 0x124   :  { %625 = vbcast.lane.b32.xlu1 %v595_v9, 312  ;;  %621 = vbcast.lane.b32.xlu0 %v595_v9, 304 }
 0x126   :  { %v11436_v12 = vpop.permute.xlu1 %389  ;;  %v11438_v14 = vpop.permute.xlu0 %385 }
 0x127   :  { %16707 = vst [vmem:[#allocation64_spill] sm:$0xff] %v11436_v12  ;;  %16708 = vst [vmem:[#allocation65_spill] sm:$0xff] %v11438_v14  ;;  %v662_v12 = vrot.slane %v11257_v15, %v11344_v57 }
 0x128   :  { %633 = vbcast.lane.b32.xlu1 %v595_v9, 328  ;;  %629 = vbcast.lane.b32.xlu0 %v595_v9, 320 }
 0x12a   :  { %v11440_v16 = vpop.permute.xlu1 %400  ;;  %v11442_v24 = vpop.permute.xlu0 %396 }
 0x12b   :  { %16709 = vst [vmem:[#allocation66_spill] sm:$0xff] %v11440_v16  ;;  %16710 = vst [vmem:[#allocation67_spill] sm:$0xff] %v11442_v24 }
 0x12c   :  { %641 = vbcast.lane.b32.xlu1 %v595_v9, 344  ;;  %637 = vbcast.lane.b32.xlu0 %v595_v9, 336 }
 0x12e   :  { %v11444_v60 = vpop.permute.xlu1 %408  ;;  %v11446_v10 = vpop.permute.xlu0 %404 }
 0x12f   :  { %16711 = vst [vmem:[#allocation68_spill] sm:$0xff] %v11444_v60  ;;  %16712 = vst [vmem:[#allocation69_spill] sm:$0xff] %v11446_v10 }
 0x130   :  { %649 = vbcast.lane.b32.xlu1 %v595_v9, 360  ;;  %645 = vbcast.lane.b32.xlu0 %v595_v9, 352 }
 0x132   :  { %v11448_v42 = vpop.permute.xlu1 %416  ;;  %v11450_v13 = vpop.permute.xlu0 %412 }
 0x133   :  { %16713 = vst [vmem:[#allocation70_spill] sm:$0xff] %v11448_v42  ;;  %16714 = vst [vmem:[#allocation71_spill] sm:$0xff] %v11450_v13 }
 0x134   :  { %657 = vbcast.lane.b32.xlu1 %v595_v9, 376  ;;  %653 = vbcast.lane.b32.xlu0 %v595_v9, 368 }
 0x136   :  { %v11454_v16 = vpop.permute.xlu1 %424  ;;  %v11456_v24 = vpop.permute.xlu0 %420 }
 0x137   :  { %16715 = vst [vmem:[#allocation72_spill] sm:$0xff] %v11454_v16  ;;  %16716 = vst [vmem:[#allocation73_spill] sm:$0xff] %v11456_v24 }
 0x138   :  { %668 = vbcast.lane.b32.xlu1 %v662_v12, 264  ;;  %664 = vbcast.lane.b32.xlu0 %v662_v12, 256 }
 0x13a   :  { %v11458_v60 = vpop.permute.xlu1 %432  ;;  %v11460_v10 = vpop.permute.xlu0 %428 }
 0x13b   :  { %16717 = vst [vmem:[#allocation74_spill] sm:$0xff] %v11458_v60  ;;  %16718 = vst [vmem:[#allocation75_spill] sm:$0xff] %v11460_v10 }
 0x13c   :  { %676 = vbcast.lane.b32.xlu1 %v662_v12, 280  ;;  %672 = vbcast.lane.b32.xlu0 %v662_v12, 272 }
 0x13e   :  { %v11462_v42 = vpop.permute.xlu1 %440  ;;  %v11464_v13 = vpop.permute.xlu0 %436 }
 0x13f   :  { %16719 = vst [vmem:[#allocation76_spill] sm:$0xff] %v11462_v42  ;;  %16720 = vst [vmem:[#allocation77_spill] sm:$0xff] %v11464_v13 }
 0x140   :  { %684 = vbcast.lane.b32.xlu1 %v662_v12, 296  ;;  %680 = vbcast.lane.b32.xlu0 %v662_v12, 288 }
 0x142   :  { %v11466_v9 = vpop.permute.xlu1 %448  ;;  %v11468_v15 = vpop.permute.xlu0 %444 }
 0x143   :  { %16721 = vst [vmem:[#allocation78_spill] sm:$0xff] %v11466_v9  ;;  %16722 = vst [vmem:[#allocation79_spill] sm:$0xff] %v11468_v15 }
 0x144   :  { %692 = vbcast.lane.b32.xlu1 %v662_v12, 312  ;;  %688 = vbcast.lane.b32.xlu0 %v662_v12, 304 }
 0x146   :  { %v11470_v16 = vpop.permute.xlu1 %456  ;;  %v11472_v24 = vpop.permute.xlu0 %452 }
 0x147   :  { %16723 = vst [vmem:[#allocation80_spill] sm:$0xff] %v11470_v16  ;;  %16724 = vst [vmem:[#allocation81_spill] sm:$0xff] %v11472_v24  ;;  %v729_v16 = vrot.slane %v11269_v21, %v11344_v57 }
 0x148   :  { %700 = vbcast.lane.b32.xlu1 %v662_v12, 328  ;;  %696 = vbcast.lane.b32.xlu0 %v662_v12, 320 }
 0x14a   :  { %v11474_v60 = vpop.permute.xlu1 %467  ;;  %v11476_v10 = vpop.permute.xlu0 %463 }
 0x14c   :  { %708 = vbcast.lane.b32.xlu1 %v662_v12, 344  ;;  %704 = vbcast.lane.b32.xlu0 %v662_v12, 336 }
 0x14e   :  { %v11478_v42 = vpop.permute.xlu1 %475  ;;  %v11480_v13 = vpop.permute.xlu0 %471 }
 0x150   :  { %716 = vbcast.lane.b32.xlu1 %v662_v12, 360  ;;  %712 = vbcast.lane.b32.xlu0 %v662_v12, 352 }
 0x152   :  { %v11482_v9 = vpop.permute.xlu1 %483  ;;  %v11484_v15 = vpop.permute.xlu0 %479 }
 0x154   :  { %724 = vbcast.lane.b32.xlu1 %v662_v12, 376  ;;  %720 = vbcast.lane.b32.xlu0 %v662_v12, 368 }
 0x156   :  { %v11488_v24 = vpop.permute.xlu1 %491  ;;  %v11490_v14 = vpop.permute.xlu0 %487 }
 0x158   :  { %735 = vbcast.lane.b32.xlu1 %v729_v16, 264  ;;  %731 = vbcast.lane.b32.xlu0 %v729_v16, 256 }
 0x15a   :  { %v11492_v11 = vpop.permute.xlu1 %499  ;;  %v11494_v7 = vpop.permute.xlu0 %495 }
 0x15c   :  { %743 = vbcast.lane.b32.xlu1 %v729_v16, 280  ;;  %739 = vbcast.lane.b32.xlu0 %v729_v16, 272 }
 0x15e   :  { %v11496_v8 = vpop.permute.xlu1 %507  ;;  %v11498_v4 = vpop.permute.xlu0 %503 }
 0x160   :  { %751 = vbcast.lane.b32.xlu1 %v729_v16, 296  ;;  %747 = vbcast.lane.b32.xlu0 %v729_v16, 288 }
 0x162   :  { %v11500_v21 = vpop.permute.xlu1 %515  ;;  %v11502_v12 = vpop.permute.xlu0 %511 }
 0x164   :  { %759 = vbcast.lane.b32.xlu1 %v729_v16, 312  ;;  %755 = vbcast.lane.b32.xlu0 %v729_v16, 304 }
 0x166   :  { %v11504_v6 = vpop.permute.xlu1 %523  ;;  %v11506_v1 = vpop.permute.xlu0 %519 }
 0x168   :  { %767 = vbcast.lane.b32.xlu1 %v729_v16, 328  ;;  %763 = vbcast.lane.b32.xlu0 %v729_v16, 320 }
 0x16a   :  { %v11508_v2 = vpop.permute.xlu1 %534  ;;  %v11510_v63 = vpop.permute.xlu0 %530 }
 0x16c   :  { %775 = vbcast.lane.b32.xlu1 %v729_v16, 344  ;;  %771 = vbcast.lane.b32.xlu0 %v729_v16, 336 }
 0x16e   :  { %v11512_v0 = vpop.permute.xlu1 %542  ;;  %v11514_v61 = vpop.permute.xlu0 %538 }
 0x170   :  { %783 = vbcast.lane.b32.xlu1 %v729_v16, 360  ;;  %779 = vbcast.lane.b32.xlu0 %v729_v16, 352 }
 0x172   :  { %v11516_v62 = vpop.permute.xlu1 %550  ;;  %v11518_v58 = vpop.permute.xlu0 %546 }
 0x174   :  { %791 = vbcast.lane.b32.xlu1 %v729_v16, 376  ;;  %787 = vbcast.lane.b32.xlu0 %v729_v16, 368 }
 0x176   :  { %v11522_v55 = vpop.permute.xlu1 %558  ;;  %v11524_v56 = vpop.permute.xlu0 %554 }
 0x177   :  { %16725 = vst [vmem:[#allocation82_spill] sm:$0xff] %v11522_v55  ;;  %16726 = vst [vmem:[#allocation83_spill] sm:$0xff] %v11524_v56 }
 0x178   :  { %802 = vbcast.lane.b32.xlu1 %v796_v59, 264  ;;  %798 = vbcast.lane.b32.xlu0 %v796_v59, 256 }
 0x17a   :  { %v11526_v53 = vpop.permute.xlu1 %566  ;;  %v11528_v54 = vpop.permute.xlu0 %562 }
 0x17b   :  { %16727 = vst [vmem:[#allocation84_spill] sm:$0xff] %v11526_v53  ;;  %16728 = vst [vmem:[#allocation85_spill] sm:$0xff] %v11528_v54 }
 0x17c   :  { %810 = vbcast.lane.b32.xlu1 %v796_v59, 280  ;;  %806 = vbcast.lane.b32.xlu0 %v796_v59, 272 }
 0x17e   :  { %v11530_v51 = vpop.permute.xlu1 %574  ;;  %v11532_v52 = vpop.permute.xlu0 %570 }
 0x17f   :  { %16729 = vst [vmem:[#allocation86_spill] sm:$0xff] %v11530_v51  ;;  %16730 = vst [vmem:[#allocation87_spill] sm:$0xff] %v11532_v52  ;;  %v894_v52 = vunpack.c.0.s8 %v893_v47 }
 0x180   :  { %818 = vbcast.lane.b32.xlu1 %v796_v59, 296  ;;  %814 = vbcast.lane.b32.xlu0 %v796_v59, 288 }
 0x182   :  { %v11534_v39 = vpop.permute.xlu1 %582  ;;  %v11536_v57 = vpop.permute.xlu0 %578 }
 0x183   :  { %16731 = vst [vmem:[#allocation88_spill] sm:$0xff] %v11534_v39  ;;  %16732 = vst [vmem:[#allocation89_spill] sm:$0xff] %v11536_v57  ;;  %v882_v39 = vrot.slane %v11476_v10, %v11234_v5  ;;  %v867_v57 = vrot.slane %v11263_v18, %v11234_v5 }
 0x184   :  { %826 = vbcast.lane.b32.xlu1 %v796_v59, 312  ;;  %822 = vbcast.lane.b32.xlu0 %v796_v59, 304 }
 0x185   :  { %v890_v47 = vcombine.low %v867_v57, %v882_v39  ;;  %v891_v46 = vcombine.high %v867_v57, %v882_v39 }
 0x186   :  { %v11538_v16 = vpop.permute.xlu1 %590  ;;  %v11540_v49 = vpop.permute.xlu0 %586 }
 0x187   :  { %16733 = vst [vmem:[#allocation90_spill] sm:$0xff] %v11538_v16  ;;  %16734 = vst [vmem:[#allocation91_spill] sm:$0xff] %v11540_v49  ;;  %v16510_v16 = vmov 0.0  }
 0x188   :  { %834 = vbcast.lane.b32.xlu1 %v796_v59, 328  ;;  %830 = vbcast.lane.b32.xlu0 %v796_v59, 320  ;;  %v875_v49 = vcombine.high %v11476_v10, %v16510_v16 }
 0x18a   :  { %v11542_v48 = vpop.permute.xlu1 %601  ;;  %v11544_v51 = vpop.permute.xlu0 %597  ;;  %v889_v53 = vrot.slane %v875_v49, %v11234_v5  ;;  %v16743_v49 = vmov 0.0  }
 0x18b   :  { %16735 = vst [vmem:[#allocation92_spill] sm:$0xff] %v11542_v48  ;;  %16736 = vst [vmem:[#allocation93_spill] sm:$0xff] %v11544_v51  ;;  %v11557_v48 = vsub.s32 %v894_v52, %v11231_v3  ;;  %v860_v51 = vcombine.high %v11263_v18, %v16510_v16 }
 0x18c   :  { %842 = vbcast.lane.b32.xlu1 %v796_v59, 344  ;;  %838 = vbcast.lane.b32.xlu0 %v796_v59, 336 }
 0x18d   :  { %v11567_v10 = vrot.slane %v890_v47, %v11557_v48  ;;  %v905_v16 = vrot.slane %v891_v46, %v11557_v48 }
 0x18e   :  { %v11552_v50 = vpop.permute.xlu1 %609  ;;  %v11554_v45 = vpop.permute.xlu0 %605 }
 0x18f   :  { %16737 = vst [vmem:[#allocation94_spill] sm:$0xff] %v11552_v50  ;;  %16738 = vst [vmem:[#allocation95_spill] sm:$0xff] %v11554_v45  ;;  %v874_v50 = vrot.slane %v860_v51, %v11234_v5  ;;  %v922_v39 = vcombine.high %v11567_v10, %v16743_v49  ;;  %v948_v51 = vrot.slane %v11474_v60, %v11234_v5 }
 0x190   :  { %850 = vbcast.lane.b32.xlu1 %v796_v59, 360  ;;  %846 = vbcast.lane.b32.xlu0 %v796_v59, 352  ;;  %v923_v46 = vcombine.high %v905_v16, %v16743_v49 }
 0x191   :  { %v906_v3 = vcombine.low %v874_v50, %v889_v53 }
 0x192   :  { %v11562_v54 = vpop.permute.xlu1 %617  ;;  %v11564_v55 = vpop.permute.xlu0 %613 }
 0x193   :  { %16739 = vst [vmem:[#allocation96_spill] sm:$0xff] %v11562_v54  ;;  %16740 = vst [vmem:[#allocation97_spill] sm:$0xff] %v11564_v55 }
 0x194   :  { %858 = vbcast.lane.b32.xlu1 %v796_v59, 376  ;;  %854 = vbcast.lane.b32.xlu0 %v796_v59, 368  ;;  %v907_v59 = vcombine.high %v874_v50, %v889_v53 }
 0x196   :  { %v11570_v52 = vpop.permute.xlu1 %625  ;;  %v11572_v18 = vpop.permute.xlu0 %621  ;;  %v921_v50 = vrot.slane %v907_v59, %v11557_v48 }
 0x197   :  { %16741 = vst [vmem:[#allocation98_spill] sm:$0xff] %v11570_v52  ;;  %16742 = vst [vmem:[#allocation99_spill] sm:$0xff] %v11572_v18  ;;  %v914_v52 = vrot.slane %v906_v3, %v11557_v48  ;;  %v933_v18 = vrot.slane %v11267_v20, %v11234_v5 }
 0x198   :  { %7201 = vrot.lane.b32.xlu1 %v905_v16, %s16642_s0  ;;  %7197 = vrot.lane.b32.xlu0 %v922_v39, %s11187_s11 }
 0x199   :  { %v956_v39 = vcombine.low %v933_v18, %v948_v51  ;;  %v924_v3 = vcombine.high %v914_v52, %v16743_v49  ;;  %v957_v16 = vcombine.high %v933_v18, %v948_v51 }
 0x19a   :  { %v11581_v57 = vpop.permute.xlu1 %633  ;;  %v11583_v47 = vpop.permute.xlu0 %629 }
 0x19b   :  { %16744 = vst [vmem:[#allocation100_spill] sm:$0xff] %v11581_v57  ;;  %16745 = vst [vmem:[#allocation101_spill] sm:$0xff] %v11583_v47  ;;  %v971_v51 = vrot.slane %v957_v16, %v11557_v48 }
 0x19c   :  { %7209 = vrot.lane.b32.xlu1 %v914_v52, %s11188_s12  ;;  %7205 = vrot.lane.b32.xlu0 %v923_v46, %s16620_s13  ;;  %v964_v46 = vrot.slane %v956_v39, %v11557_v48  ;;  %v941_v52 = vcombine.high %v11474_v60, %v16743_v49  ;;  %v926_v39 = vcombine.high %v11267_v20, %v16743_v49 }
 0x19e   :  { %v11591_v54 = vpop.permute.xlu1 %641  ;;  %v11593_v53 = vpop.permute.xlu0 %637 }
 0x19f   :  { %16746 = vst [vmem:[#allocation102_spill] sm:$0xff] %v11591_v54  ;;  %16747 = vst [vmem:[#allocation103_spill] sm:$0xff] %v11593_v53  ;;  %v925_v54 = vcombine.high %v921_v50, %v16743_v49 }
 0x1a0   :  { %7217 = vrot.lane.b32.xlu1 %v921_v50, %s16614_s14  ;;  %7213 = vrot.lane.b32.xlu0 %v924_v3, %s16640_s15  ;;  %v988_v50 = vcombine.high %v964_v46, %v16743_v49  ;;  %v955_v3 = vrot.slane %v941_v52, %v11234_v5  ;;  %v1014_v52 = vrot.slane %v11480_v13, %v11234_v5 }
 0x1a2   :  { %v11599_v57 = vpop.permute.xlu1 %649  ;;  %v11601_v47 = vpop.permute.xlu0 %645 }
 0x1a3   :  { %16748 = vst [vmem:[#allocation104_spill] sm:$0xff] %v11599_v57  ;;  %16749 = vst [vmem:[#allocation105_spill] sm:$0xff] %v11601_v47  ;;  %v989_v57 = vcombine.high %v971_v51, %v16743_v49 }
 0x1a4   :  { %7225 = vrot.lane.b32.xlu1 %v964_v46, %s11192_s16  ;;  %7221 = vrot.lane.b32.xlu0 %v925_v54, %s16609_s17 }
 0x1a6   :  { %v11609_v59 = vpop.permute.xlu1 %657  ;;  %v11611_v18 = vpop.permute.xlu0 %653 }
 0x1a7   :  { %16750 = vst [vmem:[#allocation106_spill] sm:$0xff] %v11609_v59  ;;  %16751 = vst [vmem:[#allocation107_spill] sm:$0xff] %v11611_v18  ;;  %v940_v59 = vrot.slane %v926_v39, %v11234_v5  ;;  %v999_v39 = vrot.slane %v11261_v17, %v11234_v5 }
 0x1a8   :  { %7233 = vrot.lane.b32.xlu1 %v971_v51, %s16606_s18  ;;  %7229 = vrot.lane.b32.xlu0 %v988_v50, %s16638_s19 }
 0x1a9   :  { %v972_v16 = vcombine.low %v940_v59, %v955_v3  ;;  %v973_v47 = vcombine.high %v940_v59, %v955_v3 }
 0x1aa   :  { %v11620_v54 = vpop.permute.xlu1 %668  ;;  %v11622_v60 = vpop.permute.xlu0 %664 }
 0x1ab   :  { %16752 = vst [vmem:[#allocation108_spill] sm:$0xff] %v11620_v54  ;;  %16753 = vst [vmem:[#allocation109_spill] sm:$0xff] %v11622_v60  ;;  %v980_v46 = vrot.slane %v972_v16, %v11557_v48  ;;  %v1022_v16 = vcombine.low %v999_v39, %v1014_v52  ;;  %v987_v51 = vrot.slane %v973_v47, %v11557_v48 }
 0x1ac   :  { %7237 = vrot.lane.b32.xlu0 %v989_v57, %s11197_s21  ;;  %v1007_v57 = vcombine.high %v11480_v13, %v16743_v49 }
 0x1ad   :  { %7241 = vrot.lane.b32.xlu1 %v980_v46, %s16636_s20  ;;  %v990_v59 = vcombine.high %v980_v46, %v16743_v49 }
 0x1ae   :  { %v11625_v18 = vpop.permute.xlu1 %676  ;;  %v11627_v20 = vpop.permute.xlu0 %672  ;;  %v1021_v13 = vrot.slane %v1007_v57, %v11234_v5 }
 0x1af   :  { %16754 = vst [vmem:[#allocation110_spill] sm:$0xff] %v11625_v18  ;;  %16755 = vst [vmem:[#allocation111_spill] sm:$0xff] %v11627_v20 }
 0x1b0   :  { %7245 = vrot.lane.b32.xlu0 %v990_v59, %s16604_s23 }
 0x1b1   :  { %7249 = vrot.lane.b32.xlu1 %v987_v51, %s11198_s22 }
 0x1b2   :  { %v11633_v50 = vpop.permute.xlu1 %684  ;;  %v11635_v54 = vpop.permute.xlu0 %680 }
 0x1b3   :  { %16756 = vst [vmem:[#allocation112_spill] sm:$0xff] %v11633_v50  ;;  %16757 = vst [vmem:[#allocation113_spill] sm:$0xff] %v11635_v54  ;;  %v1030_v50 = vrot.slane %v1022_v16, %v11557_v48  ;;  %v991_v54 = vcombine.high %v987_v51, %v16743_v49 }
 0x1b5   :  { %7257 = vrot.lane.b32.xlu1 %v1030_v50, %s16595_s24  ;;  %7253 = vrot.lane.b32.xlu0 %v991_v54, %s16633_s25 }
 0x1b6   :  { %v11643_v3 = vpop.permute.xlu1 %692  ;;  %v11645_v18 = vpop.permute.xlu0 %688 }
 0x1b7   :  { %16758 = vst [vmem:[#allocation114_spill] sm:$0xff] %v11643_v3  ;;  %16759 = vst [vmem:[#allocation115_spill] sm:$0xff] %v11645_v18  ;;  %v992_v3 = vcombine.high %v11261_v17, %v16743_v49  ;;  %v1023_v18 = vcombine.high %v999_v39, %v1014_v52  ;;  %v1080_v39 = vrot.slane %v11478_v42, %v11234_v5 }
 0x1b9   :  { %v1006_v51 = vrot.slane %v992_v3, %v11234_v5 }
 0x1ba   :  { %v11653_v47 = vpop.permute.xlu1 %700  ;;  %v11655_v46 = vpop.permute.xlu0 %696 }
 0x1bb   :  { %16760 = vst [vmem:[#allocation116_spill] sm:$0xff] %v11653_v47  ;;  %16761 = vst [vmem:[#allocation117_spill] sm:$0xff] %v11655_v46  ;;  %v1037_v47 = vrot.slane %v1023_v18, %v11557_v48  ;;  %v1054_v46 = vcombine.high %v1030_v50, %v16743_v49  ;;  %v1038_v17 = vcombine.low %v1006_v51, %v1021_v13 }
 0x1bc   :  { %v1039_v57 = vcombine.high %v1006_v51, %v1021_v13 }
 0x1bd   :  { %7265 = vrot.lane.b32.xlu1 %v1037_v47, %s11202_s26  ;;  %7261 = vrot.lane.b32.xlu0 %v1054_v46, %s16585_s27  ;;  %v1046_v3 = vrot.slane %v1038_v17, %v11557_v48  ;;  %v1055_v50 = vcombine.high %v1037_v47, %v16743_v49  ;;  %v1073_v47 = vcombine.high %v11478_v42, %v16743_v49 }
 0x1be   :  { %v11662_v59 = vpop.permute.xlu1 %708  ;;  %v11664_v16 = vpop.permute.xlu0 %704  ;;  %v1053_v13 = vrot.slane %v1039_v57, %v11557_v48  ;;  %v1058_v57 = vcombine.high %v11265_v19, %v16743_v49 }
 0x1bf   :  { %16762 = vst [vmem:[#allocation118_spill] sm:$0xff] %v11662_v59  ;;  %16763 = vst [vmem:[#allocation119_spill] sm:$0xff] %v11664_v16  ;;  %v1065_v16 = vrot.slane %v11265_v19, %v11234_v5  ;;  %v1056_v17 = vcombine.high %v1046_v3, %v16743_v49  ;;  %v1087_v42 = vrot.slane %v1073_v47, %v11234_v5 }
 0x1c1   :  { %7273 = vrot.lane.b32.xlu1 %v1046_v3, %s16582_s28  ;;  %7269 = vrot.lane.b32.xlu0 %v1055_v50, %s16631_s29  ;;  %v1088_v46 = vcombine.low %v1065_v16, %v1080_v39  ;;  %v1057_v3 = vcombine.high %v1053_v13, %v16743_v49 }
 0x1c2   :  { %v11671_v54 = vpop.permute.xlu1 %716  ;;  %v11673_v52 = vpop.permute.xlu0 %712 }
 0x1c3   :  { %16764 = vst [vmem:[#allocation120_spill] sm:$0xff] %v11671_v54  ;;  %16765 = vst [vmem:[#allocation121_spill] sm:$0xff] %v11673_v52  ;;  %v1096_v50 = vrot.slane %v1088_v46, %v11557_v48  ;;  %v1072_v46 = vrot.slane %v1058_v57, %v11234_v5  ;;  %v1131_v57 = vrot.slane %v11273_v23, %v11234_v5 }
 0x1c5   :  { %7281 = vrot.lane.b32.xlu1 %v1053_v13, %s16649_s30  ;;  %7277 = vrot.lane.b32.xlu0 %v1056_v17, %s11207_s2  ;;  %v1120_v19 = vcombine.high %v1096_v50, %v16743_v49  ;;  %v1146_v13 = vrot.slane %v11484_v15, %v11234_v5 }
 0x1c6   :  { %v11678_v18 = vpop.permute.xlu1 %724  ;;  %v11681_v59 = vpop.permute.xlu0 %720 }
 0x1c7   :  { %16766 = vst [vmem:[#allocation122_spill] sm:$0xff] %v11678_v18  ;;  %16767 = vst [vmem:[#allocation123_spill] sm:$0xff] %v11681_v59 }
 0x1c9   :  { %7289 = vrot.lane.b32.xlu1 %v1096_v50, %s16578_s3  ;;  %7285 = vrot.lane.b32.xlu0 %v1057_v3, %s16629_s4  ;;  %v1105_v50 = vcombine.high %v1072_v46, %v1087_v42  ;;  %v1154_v3 = vcombine.low %v1131_v57, %v1146_v13 }
 0x1ca   :  { %v11688_v51 = vpop.permute.xlu1 %735  ;;  %v11691_v18 = vpop.permute.xlu0 %731 }
 0x1cb   :  { %16768 = vst [vmem:[#allocation124_spill] sm:$0xff] %v11688_v51  ;;  %16769 = vst [vmem:[#allocation125_spill] sm:$0xff] %v11691_v18  ;;  %v1089_v51 = vcombine.high %v1065_v16, %v1080_v39  ;;  %v1104_v39 = vcombine.low %v1072_v46, %v1087_v42  ;;  %v11734_v54 = vrot.slane %v1154_v3, %v11557_v48 }
 0x1cc   :  { %v1119_v42 = vrot.slane %v1105_v50, %v11557_v48 }
 0x1cd   :  { %7293 = vrot.lane.b32.xlu0 %v1120_v19, %s16647_s6 }
 0x1ce   :  { %v11698_v59 = vpop.permute.xlu1 %743  ;;  %v11703_v18 = vpop.permute.xlu0 %739  ;;  %v1123_v50 = vcombine.high %v1119_v42, %v16743_v49 }
 0x1cf   :  { %16770 = vst [vmem:[#allocation126_spill] sm:$0xff] %v11698_v59  ;;  %16771 = vst [vmem:[#allocation127_spill] sm:$0xff] %v11703_v18  ;;  %v1103_v59 = vrot.slane %v1089_v51, %v11557_v48 }
 0x1d1   :  { %7297 = vrot.lane.b32.xlu1 %v1103_v59, %s16627_s5 }
 0x1d2   :  { %v11708_v17 = vpop.permute.xlu1 %751  ;;  %v11713_v16 = vpop.permute.xlu0 %747 }
 0x1d3   :  { %16772 = vst [vmem:[#allocation128_spill] sm:$0xff] %v11708_v17  ;;  %16773 = vst [vmem:[#allocation129_spill] sm:$0xff] %v11713_v16  ;;  %v1112_v17 = vrot.slane %v1104_v39, %v11557_v48  ;;  %v1121_v16 = vcombine.high %v1103_v59, %v16743_v49  ;;  %v1139_v59 = vcombine.high %v11484_v15, %v16743_v49 }
 0x1d5   :  { %7305 = vrot.lane.b32.xlu1 %v1112_v17, %s16624_s7  ;;  %7301 = vrot.lane.b32.xlu0 %v1121_v16, %s16569_s8  ;;  %v1122_v46 = vcombine.high %v1112_v17, %v16743_v49  ;;  %v1186_v17 = vcombine.high %v11734_v54, %v16743_v49  ;;  %v1153_v15 = vrot.slane %v1139_v59, %v11234_v5 }
 0x1d6   :  { %v11719_v47 = vpop.permute.xlu1 %759  ;;  %v11723_v51 = vpop.permute.xlu0 %755  ;;  %v1212_v59 = vrot.slane %v11482_v9, %v11234_v5 }
 0x1d7   :  { %16774 = vst [vmem:[#allocation130_spill] sm:$0xff] %v11719_v47  ;;  %16775 = vst [vmem:[#allocation131_spill] sm:$0xff] %v11723_v51  ;;  %v1155_v47 = vcombine.high %v1131_v57, %v1146_v13  ;;  %v1124_v13 = vcombine.high %v11273_v23, %v16743_v49 }
 0x1d9   :  { %7313 = vrot.lane.b32.xlu1 %v1119_v42, %s16543_s9  ;;  %7309 = vrot.lane.b32.xlu0 %v1122_v46, %s16644_s10  ;;  %v1169_v57 = vrot.slane %v1155_v47, %v11557_v48  ;;  %s16622_s9 = smov 124   ;;  %v1138_v23 = vrot.slane %v1124_v13, %v11234_v5  ;;  %v1197_v13 = vrot.slane %v11271_v22, %v11234_v5 }
 0x1da   :  { %v11727_v18 = vpop.permute.xlu1 %767  ;;  %v11731_v19 = vpop.permute.xlu0 %763 }
 0x1db   :  { %16776 = vst [vmem:[#allocation132_spill] sm:$0xff] %v11727_v18  ;;  %16777 = vst [vmem:[#allocation133_spill] sm:$0xff] %v11731_v19  ;;  %v1187_v47 = vcombine.high %v1169_v57, %v16743_v49  ;;  %v1410_v19 = vrot.slane %v11494_v7, %v11234_v5 }
 0x1dd   :  { %7321 = vrot.lane.b32.xlu1 %v1186_v17, %s11187_s11  ;;  %7317 = vrot.lane.b32.xlu0 %v1123_v50, %s16622_s9 }
 0x1de   :  { %v11738_v39 = vpop.permute.xlu1 %775  ;;  %v11744_v16 = vpop.permute.xlu0 %771 }
 0x1df   :  { %16778 = vst [vmem:[#allocation134_spill] sm:$0xff] %v11738_v39  ;;  %16779 = vst [vmem:[#allocation135_spill] sm:$0xff] %v11744_v16  ;;  %v1170_v16 = vcombine.low %v1138_v23, %v1153_v15 }
 0x1e1   :  { %7329 = vrot.lane.b32.xlu1 %v1187_v47, %s16620_s13  ;;  %7325 = vrot.lane.b32.xlu0 %v1169_v57, %s16642_s0  ;;  %v1178_v50 = vrot.slane %v1170_v16, %v11557_v48  ;;  %v1205_v57 = vcombine.high %v11482_v9, %v16743_v49  ;;  %v1220_v47 = vcombine.low %v1197_v13, %v1212_v59 }
 0x1e2   :  { %v11752_v3 = vpop.permute.xlu1 %783  ;;  %v11756_v39 = vpop.permute.xlu0 %779  ;;  %v1190_v16 = vcombine.high %v11271_v22, %v16743_v49 }
 0x1e3   :  { %16780 = vst [vmem:[#allocation136_spill] sm:$0xff] %v11752_v3  ;;  %16781 = vst [vmem:[#allocation137_spill] sm:$0xff] %v11756_v39  ;;  %v1188_v39 = vcombine.high %v1178_v50, %v16743_v49 }
 0x1e5   :  { %7333 = vrot.lane.b32.xlu0 %v1178_v50, %s11188_s12  ;;  %7337 = vrot.lane.b32.xlu1 %v1188_v39, %s16640_s15  ;;  %v1228_v50 = vrot.slane %v1220_v47, %v11557_v48  ;;  %v1204_v39 = vrot.slane %v1190_v16, %v11234_v5 }
 0x1e6   :  { %v11761_v46 = vpop.permute.xlu1 %791  ;;  %v11764_v42 = vpop.permute.xlu0 %787 }
 0x1e7   :  { %16782 = vst [vmem:[#allocation138_spill] sm:$0xff] %v11761_v46  ;;  %16783 = vst [vmem:[#allocation139_spill] sm:$0xff] %v11764_v42  ;;  %v1171_v46 = vcombine.high %v1138_v23, %v1153_v15  ;;  %v1219_v15 = vrot.slane %v1205_v57, %v11234_v5  ;;  %v1221_v23 = vcombine.high %v1197_v13, %v1212_v59 }
 0x1e8   :  { %v1252_v57 = vcombine.high %v1228_v50, %v16743_v49 }
 0x1e9   :  { %v1235_v22 = vrot.slane %v1221_v23, %v11557_v48  ;;  %v1237_v23 = vcombine.high %v1204_v39, %v1219_v15 }
 0x1ea   :  { %v11769_v17 = vpop.permute.xlu1 %802  ;;  %v11772_v3 = vpop.permute.xlu0 %798 }
 0x1eb   :  { %16784 = vst [vmem:[#allocation140_spill] sm:$0xff] %v11769_v17  ;;  %16785 = vst [vmem:[#allocation141_spill] sm:$0xff] %v11772_v3  ;;  %v1185_v3 = vrot.slane %v1171_v46, %v11557_v48  ;;  %v1236_v46 = vcombine.low %v1204_v39, %v1219_v15  ;;  %v1253_v47 = vcombine.high %v1235_v22, %v16743_v49 }
 0x1ec   :  { %v1271_v15 = vcombine.high %v11490_v14, %v16743_v49  ;;  %v1256_v39 = vcombine.high %v11279_v26, %v16743_v49 }
 0x1ed   :  { %v1189_v18 = vcombine.high %v1185_v3, %v16743_v49  ;;  %7341 = vrot.lane.b32.xlu0 %v1185_v3, %s16614_s14  ;;  %v1278_v3 = vrot.slane %v11490_v14, %v11234_v5 }
 0x1ee   :  { %v11780_v42 = vpop.permute.xlu1 %810  ;;  %v11783_v17 = vpop.permute.xlu0 %806  ;;  %v1270_v14 = vrot.slane %v1256_v39, %v11234_v5  ;;  %v1344_v39 = vrot.slane %v11488_v24, %v11234_v5 }
 0x1ef   :  { %16786 = vst [vmem:[#allocation142_spill] sm:$0xff] %v11780_v42  ;;  %16787 = vst [vmem:[#allocation143_spill] sm:$0xff] %v11783_v17  ;;  %7345 = vrot.lane.b32.xlu1 %v1189_v18, %s16609_s17  ;;  %v1244_v18 = vrot.slane %v1236_v46, %v11557_v48 }
 0x1f1   :  { %7349 = vrot.lane.b32.xlu0 %v1228_v50, %s11192_s16  ;;  %v1263_v50 = vrot.slane %v11279_v26, %v11234_v5 }
 0x1f2   :  { %v11792_v9 = vpop.permute.xlu1 %818  ;;  %v11794_v42 = vpop.permute.xlu0 %814 }
 0x1f3   :  { %16788 = vst [vmem:[#allocation144_spill] sm:$0xff] %v11792_v9  ;;  %16789 = vst [vmem:[#allocation145_spill] sm:$0xff] %v11794_v42  ;;  %7353 = vrot.lane.b32.xlu1 %v1252_v57, %s16638_s19  ;;  %v1286_v57 = vcombine.low %v1263_v50, %v1278_v3 }
 0x1f5   :  { %7357 = vrot.lane.b32.xlu0 %v1235_v22, %s16606_s18  ;;  %v1251_v22 = vrot.slane %v1237_v23, %v11557_v48 }
 0x1f6   :  { %v11801_v59 = vpop.permute.xlu1 %826  ;;  %v11803_v13 = vpop.permute.xlu0 %822 }
 0x1f7   :  { %16790 = vst [vmem:[#allocation146_spill] sm:$0xff] %v11801_v59  ;;  %16791 = vst [vmem:[#allocation147_spill] sm:$0xff] %v11803_v13  ;;  %7361 = vrot.lane.b32.xlu1 %v1253_v47, %s11197_s21  ;;  %v1254_v59 = vcombine.high %v1244_v18, %v16743_v49  ;;  %v1287_v47 = vcombine.high %v1263_v50, %v1278_v3 }
 0x1f9   :  { %7365 = vrot.lane.b32.xlu0 %v1244_v18, %s16636_s20 }
 0x1fa   :  { %v11811_v16 = vpop.permute.xlu1 %834  ;;  %v11813_v9 = vpop.permute.xlu0 %830 }
 0x1fb   :  { %16792 = vst [vmem:[#allocation148_spill] sm:$0xff] %v11811_v16  ;;  %16793 = vst [vmem:[#allocation149_spill] sm:$0xff] %v11813_v9  ;;  %7369 = vrot.lane.b32.xlu1 %v1254_v59, %s16604_s23  ;;  %v1294_v16 = vrot.slane %v1286_v57, %v11557_v48  ;;  %v1255_v9 = vcombine.high %v1251_v22, %v16743_v49  ;;  %v1301_v59 = vrot.slane %v1287_v47, %v11557_v48 }
 0x1fd   :  { %7373 = vrot.lane.b32.xlu0 %v1251_v22, %s11198_s22  ;;  %v1318_v26 = vcombine.high %v1294_v16, %v16743_v49  ;;  %v1319_v22 = vcombine.high %v1301_v59, %v16743_v49 }
 0x1fe   :  { %v11820_v13 = vpop.permute.xlu1 %842  ;;  %v11823_v46 = vpop.permute.xlu0 %838 }
 0x1ff   :  { %16794 = vst [vmem:[#allocation150_spill] sm:$0xff] %v11820_v13  ;;  %16795 = vst [vmem:[#allocation151_spill] sm:$0xff] %v11823_v46  ;;  %v1285_v13 = vrot.slane %v1271_v15, %v11234_v5  ;;  %7377 = vrot.lane.b32.xlu1 %v1255_v9, %s16633_s25 }
 0x201   :  { %7381 = vrot.lane.b32.xlu0 %v1294_v16, %s16595_s24  ;;  %v1302_v57 = vcombine.low %v1270_v14, %v1285_v13  ;;  %v1303_v47 = vcombine.high %v1270_v14, %v1285_v13  ;;  %v1322_v13 = vcombine.high %v11277_v25, %v16743_v49 }
 0x202   :  { %v11833_v18 = vpop.permute.xlu1 %850  ;;  %v11835_v23 = vpop.permute.xlu0 %846 }
 0x203   :  { %16796 = vst [vmem:[#allocation152_spill] sm:$0xff] %v11833_v18  ;;  %16797 = vst [vmem:[#allocation153_spill] sm:$0xff] %v11835_v23  ;;  %7385 = vrot.lane.b32.xlu1 %v1318_v26, %s16585_s27  ;;  %v1310_v16 = vrot.slane %v1302_v57, %v11557_v48 }
 0x205   :  { %7389 = vrot.lane.b32.xlu0 %v1301_v59, %s11202_s26  ;;  %v1320_v18 = vcombine.high %v1310_v16, %v16743_v49 }
 0x206   :  { %v11843_v3 = vpop.permute.xlu1 %858  ;;  %v11845_v50 = vpop.permute.xlu0 %854 }
 0x207   :  { %16798 = vst [vmem:[#allocation154_spill] sm:$0xff] %v11843_v3  ;;  %16799 = vst [vmem:[#allocation155_spill] sm:$0xff] %v11845_v50  ;;  %7393 = vrot.lane.b32.xlu1 %v1319_v22, %s16631_s29  ;;  %v1329_v3 = vrot.slane %v11277_v25, %v11234_v5  ;;  %v1337_v50 = vcombine.high %v11488_v24, %v16743_v49  ;;  %v1317_v22 = vrot.slane %v1303_v47, %v11557_v48 }
 0x208   :  { %v1336_v47 = vrot.slane %v1322_v13, %v11234_v5  ;;  %v1403_v13 = vcombine.high %v11494_v7, %v16743_v49 }
 0x209   :  { %7397 = vrot.lane.b32.xlu0 %v1310_v16, %s16582_s28  ;;  %v1352_v46 = vcombine.low %v1329_v3, %v1344_v39  ;;  %v1351_v23 = vrot.slane %v1337_v50, %v11234_v5  ;;  %v1353_v42 = vcombine.high %v1329_v3, %v1344_v39  ;;  %v1321_v16 = vcombine.high %v1317_v22, %v16743_v49 }
 0x20a   :  { %v11850_v9 = vpop.permute.xlu1 %7201  ;;  %v11852_v15 = vpop.permute.xlu0 %7197 }
 0x20b   :  { %7401 = vrot.lane.b32.xlu1 %v1320_v18, %s11207_s2  ;;  %v1360_v24 = vrot.slane %v1352_v46, %v11557_v48  ;;  %v1367_v25 = vrot.slane %v1353_v42, %v11557_v48  ;;  %v1368_v18 = vcombine.low %v1336_v47, %v1351_v23  ;;  %v1395_v46 = vrot.slane %v11283_v28, %v11234_v5 }
 0x20c   :  { %v1369_v39 = vcombine.high %v1336_v47, %v1351_v23 }
 0x20d   :  { %7405 = vrot.lane.b32.xlu0 %v1317_v22, %s16649_s30  ;;  %v1384_v17 = vcombine.high %v1360_v24, %v16743_v49  ;;  %v1385_v42 = vcombine.high %v1367_v25, %v16743_v49  ;;  %v1376_v22 = vrot.slane %v1368_v18, %v11557_v48  ;;  %v1419_v18 = vcombine.high %v1395_v46, %v1410_v19 }
 0x20e   :  { %v11861_v26 = vpop.permute.xlu1 %7209  ;;  %v11863_v59 = vpop.permute.xlu0 %7205  ;;  %v1383_v47 = vrot.slane %v1369_v39, %v11557_v48 }
 0x20f   :  { %7409 = vrot.lane.b32.xlu1 %v1321_v16, %s16629_s4  ;;  %v1388_v16 = vcombine.high %v11283_v28, %v16743_v49  ;;  %v1386_v23 = vcombine.high %v1376_v22, %v16743_v49  ;;  %v1433_v20 = vrot.slane %v1419_v18, %v11557_v48  ;;  %v1461_v18 = vrot.slane %v11281_v27, %v11234_v5 }
 0x211   :  { %7413 = vrot.lane.b32.xlu0 %v1360_v24, %s16578_s3  ;;  %v1418_v24 = vcombine.low %v1395_v46, %v1410_v19  ;;  %v1402_v28 = vrot.slane %v1388_v16, %v11234_v5  ;;  %v1476_v46 = vrot.slane %v11492_v11, %v11234_v5  ;;  %v1451_v16 = vcombine.high %v1433_v20, %v16743_v49 }
 0x212   :  { %v11873_v14 = vpop.permute.xlu1 %7217  ;;  %v11875_v57 = vpop.permute.xlu0 %7213 }
 0x213   :  { %7417 = vrot.lane.b32.xlu1 %v1384_v17, %s16647_s6  ;;  %v11911_v7 = vrot.slane %v1418_v24, %v11557_v48  ;;  %v1485_v53 = vcombine.high %v1461_v18, %v1476_v46 }
 0x215   :  { %7421 = vrot.lane.b32.xlu0 %v1367_v25, %s16627_s5  ;;  %v1417_v25 = vrot.slane %v1403_v13, %v11234_v5  ;;  %v1450_v39 = vcombine.high %v11911_v7, %v16743_v49 }
 0x216   :  { %v11887_v50 = vpop.permute.xlu1 %7225  ;;  %v11889_v3 = vpop.permute.xlu0 %7221 }
 0x217   :  { %7425 = vrot.lane.b32.xlu1 %v1385_v42, %s16569_s8  ;;  %s16800_s8 = smov 120   ;;  %v1387_v42 = vcombine.high %v1383_v47, %v16743_v49  ;;  %v1434_v52 = vcombine.low %v1402_v28, %v1417_v25  ;;  %v1435_v13 = vcombine.high %v1402_v28, %v1417_v25  ;;  %v1454_v28 = vcombine.high %v11281_v27, %v16743_v49 }
 0x219   :  { %7429 = vrot.lane.b32.xlu0 %v1376_v22, %s16624_s7  ;;  %v1442_v24 = vrot.slane %v1434_v52, %v11557_v48  ;;  %v1449_v25 = vrot.slane %v1435_v13, %v11557_v48 }
 0x21a   :  { %v11903_v17 = vpop.permute.xlu1 %7233  ;;  %v11905_v51 = vpop.permute.xlu0 %7229 }
 0x21b   :  { %7433 = vrot.lane.b32.xlu1 %v1386_v23, %s16644_s10  ;;  %v1452_v52 = vcombine.high %v1442_v24, %v16743_v49  ;;  %v1453_v13 = vcombine.high %v1449_v25, %v16743_v49 }
 0x21d   :  { %7437 = vrot.lane.b32.xlu0 %v1383_v47, %s16800_s8 }
 0x21e   :  { %v11922_v19 = vpop.permute.xlu0 %7237 }
 0x21f   :  { %v11920_v22 = vpop.permute.xlu1 %7241  ;;  %7441 = vrot.lane.b32.xlu1 %v1387_v42, %s16622_s9  ;;  %v1469_v42 = vcombine.high %v11492_v11, %v16743_v49 }
 0x220   :  { %16801 = vst [vmem:[#allocation156_spill] sm:$0xff] %v11920_v22 }
 0x221   :  { %7445 = vrot.lane.b32.xlu0 %v1450_v39, %s11187_s11  ;;  %v1484_v39 = vcombine.low %v1461_v18, %v1476_v46  ;;  %v1542_v18 = vrot.slane %v11498_v4, %v11234_v5 }
 0x222   :  { %v11933_v47 = vpop.permute.xlu0 %7245 }
 0x223   :  { %7449 = vrot.lane.b32.xlu1 %v1433_v20, %s16642_s0  ;;  %v11931_v23 = vpop.permute.xlu1 %7249  ;;  %16803 = vst [vmem:[#allocation158_spill] sm:$0xff] %v11933_v47  ;;  %v1492_v11 = vrot.slane %v1484_v39, %v11557_v48 }
 0x224   :  { %16802 = vst [vmem:[#allocation157_spill] sm:$0xff] %v11931_v23 }
 0x225   :  { %7453 = vrot.lane.b32.xlu0 %v1451_v16, %s16620_s13  ;;  %v1483_v16 = vrot.slane %v1469_v42, %v11234_v5  ;;  %v1516_v45 = vcombine.high %v1492_v11, %v16743_v49 }
 0x227   :  { %7457 = vrot.lane.b32.xlu1 %v1442_v24, %s11188_s12  ;;  %v11943_v20 = vpop.permute.xlu1 %7257  ;;  %v11948_v60 = vpop.permute.xlu0 %7253  ;;  %v1468_v24 = vrot.slane %v1454_v28, %v11234_v5 }
 0x228   :  { %16804 = vst [vmem:[#allocation159_spill] sm:$0xff] %v11943_v20  ;;  %16805 = vst [vmem:[#allocation160_spill] sm:$0xff] %v11948_v60 }
 0x229   :  { %7461 = vrot.lane.b32.xlu0 %v1452_v52, %s16640_s15  ;;  %v1500_v27 = vcombine.low %v1468_v24, %v1483_v16  ;;  %v1499_v52 = vrot.slane %v1485_v53, %v11557_v48  ;;  %v1501_v46 = vcombine.high %v1468_v24, %v1483_v16  ;;  %v1527_v53 = vrot.slane %v11287_v30, %v11234_v5 }
 0x22b   :  { %7465 = vrot.lane.b32.xlu1 %v1449_v25, %s16614_s14  ;;  %v1508_v42 = vrot.slane %v1500_v27, %v11557_v48  ;;  %v1517_v39 = vcombine.high %v1499_v52, %v16743_v49  ;;  %v1550_v16 = vcombine.low %v1527_v53, %v1542_v18  ;;  %v1520_v27 = vcombine.high %v11287_v30, %v16743_v49 }
 0x22d   :  { %7469 = vrot.lane.b32.xlu0 %v1453_v13, %s16609_s17  ;;  %v1518_v13 = vcombine.high %v1508_v42, %v16743_v49 }
 0x22f   :  { %v11956_v55 = vpop.permute.xlu1 %7265  ;;  %v11960_v43 = vpop.permute.xlu0 %7261  ;;  %7473 = vrot.lane.b32.xlu1 %v1492_v11, %s11192_s16  ;;  %v1515_v11 = vrot.slane %v1501_v46, %v11557_v48 }
 0x230   :  { %16806 = vst [vmem:[#allocation161_spill] sm:$0xff] %v11956_v55  ;;  %16807 = vst [vmem:[#allocation162_spill] sm:$0xff] %v11960_v43 }
 0x231   :  { %7477 = vrot.lane.b32.xlu0 %v1516_v45, %s16638_s19  ;;  %v1535_v45 = vcombine.high %v11498_v4, %v16743_v49  ;;  %v1558_v4 = vrot.slane %v1550_v16, %v11557_v48  ;;  %v1519_v46 = vcombine.high %v1515_v11, %v16743_v49  ;;  %v1608_v16 = vrot.slane %v11496_v8, %v11234_v5 }
 0x233   :  { %7481 = vrot.lane.b32.xlu1 %v1499_v52, %s16606_s18  ;;  %v11969_v25 = vpop.permute.xlu1 %7273  ;;  %v11974_v28 = vpop.permute.xlu0 %7269 }
 0x234   :  { %16808 = vst [vmem:[#allocation163_spill] sm:$0xff] %v11969_v25  ;;  %16809 = vst [vmem:[#allocation164_spill] sm:$0xff] %v11974_v28  ;;  %v1551_v25 = vcombine.high %v1527_v53, %v1542_v18 }
 0x235   :  { %7485 = vrot.lane.b32.xlu0 %v1517_v39, %s11197_s21  ;;  %v1549_v39 = vrot.slane %v1535_v45, %v11234_v5  ;;  %v1582_v45 = vcombine.high %v1558_v4, %v16743_v49 }
 0x237   :  { %7489 = vrot.lane.b32.xlu1 %v1508_v42, %s16636_s20  ;;  %v11981_v24 = vpop.permute.xlu1 %7281  ;;  %v11986_v52 = vpop.permute.xlu0 %7277  ;;  %v1534_v42 = vrot.slane %v1520_v27, %v11234_v5 }
 0x238   :  { %16810 = vst [vmem:[#allocation165_spill] sm:$0xff] %v11981_v24  ;;  %16811 = vst [vmem:[#allocation166_spill] sm:$0xff] %v11986_v52  ;;  %v1565_v24 = vrot.slane %v1551_v25, %v11557_v48  ;;  %v1593_v25 = vrot.slane %v11285_v29, %v11234_v5  ;;  %v1733_v52 = vcombine.high %v11500_v21, %v16743_v49 }
 0x239   :  { %7493 = vrot.lane.b32.xlu0 %v1518_v13, %s16604_s23  ;;  %v1566_v13 = vcombine.low %v1534_v42, %v1549_v39 }
 0x23a   :  { %v1747_v43 = vrot.slane %v1733_v52, %v11234_v5 }
 0x23b   :  { %7497 = vrot.lane.b32.xlu1 %v1515_v11, %s11198_s22  ;;  %v11992_v28 = vpop.permute.xlu1 %7289  ;;  %v11996_v30 = vpop.permute.xlu0 %7285  ;;  %v1567_v11 = vcombine.high %v1534_v42, %v1549_v39  ;;  %v1574_v27 = vrot.slane %v1566_v13, %v11557_v48 }
 0x23c   :  { %16812 = vst [vmem:[#allocation167_spill] sm:$0xff] %v11992_v28  ;;  %16813 = vst [vmem:[#allocation168_spill] sm:$0xff] %v11996_v30 }
 0x23d   :  { %7501 = vrot.lane.b32.xlu0 %v1519_v46, %s16633_s25  ;;  %v1583_v46 = vcombine.high %v1565_v24, %v16743_v49 }
 0x23f   :  { %7505 = vrot.lane.b32.xlu1 %v1558_v4, %s16595_s24  ;;  %v12004_v53 = vpop.permute.xlu0 %7293  ;;  %v1601_v4 = vcombine.high %v11496_v8, %v16743_v49 }
 0x240   :  { %16815 = vst [vmem:[#allocation170_spill] sm:$0xff] %v12004_v53  ;;  %v1584_v53 = vcombine.high %v1574_v27, %v16743_v49 }
 0x241   :  { %7509 = vrot.lane.b32.xlu0 %v1582_v45, %s16585_s27  ;;  %v1616_v45 = vcombine.low %v1593_v25, %v1608_v16  ;;  %v1615_v13 = vrot.slane %v1601_v4, %v11234_v5 }
 0x243   :  { %v12002_v18 = vpop.permute.xlu1 %7297  ;;  %7513 = vrot.lane.b32.xlu1 %v1565_v24, %s11202_s26  ;;  %v1586_v24 = vcombine.high %v11285_v29, %v16743_v49  ;;  %v1624_v8 = vrot.slane %v1616_v45, %v11557_v48 }
 0x244   :  { %16814 = vst [vmem:[#allocation169_spill] sm:$0xff] %v12002_v18  ;;  %v1581_v18 = vrot.slane %v1567_v11, %v11557_v48 }
 0x245   :  { %7517 = vrot.lane.b32.xlu0 %v1583_v46, %s16631_s29  ;;  %v1617_v46 = vcombine.high %v1593_v25, %v1608_v16  ;;  %v1648_v4 = vcombine.high %v1624_v8, %v16743_v49 }
 0x246   :  { %v1585_v11 = vcombine.high %v1581_v18, %v16743_v49 }
 0x247   :  { %v12018_v39 = vpop.permute.xlu1 %7305  ;;  %v12020_v42 = vpop.permute.xlu0 %7301  ;;  %7521 = vrot.lane.b32.xlu1 %v1574_v27, %s16582_s28  ;;  %v1600_v27 = vrot.slane %v1586_v24, %v11234_v5 }
 0x248   :  { %16816 = vst [vmem:[#allocation171_spill] sm:$0xff] %v12018_v39  ;;  %16817 = vst [vmem:[#allocation172_spill] sm:$0xff] %v12020_v42 }
 0x249   :  { %7525 = vrot.lane.b32.xlu0 %v1584_v53, %s11207_s2  ;;  %v1632_v29 = vcombine.low %v1600_v27, %v1615_v13  ;;  %v1631_v53 = vrot.slane %v1617_v46, %v11557_v48  ;;  %v1633_v45 = vcombine.high %v1600_v27, %v1615_v13  ;;  %v1659_v46 = vrot.slane %v11291_v32, %v11234_v5 }
 0x24b   :  { %v12029_v28 = vpop.permute.xlu1 %7313  ;;  %v12031_v30 = vpop.permute.xlu0 %7309  ;;  %7529 = vrot.lane.b32.xlu1 %v1581_v18, %s16649_s30  ;;  %v1674_v18 = vrot.slane %v11502_v12, %v11234_v5  ;;  %v1640_v24 = vrot.slane %v1632_v29, %v11557_v48  ;;  %v1647_v13 = vrot.slane %v1633_v45, %v11557_v48  ;;  %v1652_v29 = vcombine.high %v11291_v32, %v16743_v49 }
 0x24c   :  { %16818 = vst [vmem:[#allocation173_spill] sm:$0xff] %v12029_v28  ;;  %16819 = vst [vmem:[#allocation174_spill] sm:$0xff] %v12031_v30 }
 0x24d   :  { %7533 = vrot.lane.b32.xlu0 %v1585_v11, %s16629_s4  ;;  %v1649_v11 = vcombine.high %v1631_v53, %v16743_v49  ;;  %v1650_v27 = vcombine.high %v1640_v24, %v16743_v49  ;;  %v1683_v30 = vcombine.high %v1659_v46, %v1674_v18  ;;  %v1651_v45 = vcombine.high %v1647_v13, %v16743_v49 }
 0x24e   :  { %v1666_v42 = vrot.slane %v1652_v29, %v11234_v5 }
 0x24f   :  { %v12038_v16 = vpop.permute.xlu1 %7321  ;;  %7537 = vrot.lane.b32.xlu1 %v1624_v8, %s16578_s3  ;;  %v12041_v25 = vpop.permute.xlu0 %7317  ;;  %s16821_s3 = smov 108   ;;  %v1697_v32 = vrot.slane %v1683_v30, %v11557_v48 }
 0x250   :  { %16820 = vst [vmem:[#allocation175_spill] sm:$0xff] %v12041_v25  ;;  %v1682_v25 = vcombine.low %v1659_v46, %v1674_v18  ;;  %v1740_v46 = vrot.slane %v11500_v21, %v11234_v5 }
 0x251   :  { %7541 = vrot.lane.b32.xlu0 %v1648_v4, %s16647_s6  ;;  %v1667_v4 = vcombine.high %v11502_v12, %v16743_v49 }
 0x252   :  { %v12068_v39 = vrot.slane %v1682_v25, %v11557_v48 }
 0x253   :  { %7545 = vrot.lane.b32.xlu1 %v1631_v53, %s16627_s5  ;;  %v12051_v28 = vpop.permute.xlu0 %7325  ;;  %v12054_v8 = vpop.permute.xlu1 %7329 }
 0x255   :  { %7549 = vrot.lane.b32.xlu0 %v1649_v11, %s16821_s3  ;;  %v1681_v11 = vrot.slane %v1667_v4, %v11234_v5  ;;  %v1714_v4 = vcombine.high %v12068_v39, %v16743_v49 }
 0x257   :  { %7553 = vrot.lane.b32.xlu1 %v1640_v24, %s16624_s7  ;;  %v12064_v53 = vpop.permute.xlu0 %7333  ;;  %v12070_v12 = vpop.permute.xlu1 %7337  ;;  %v1698_v24 = vcombine.low %v1666_v42, %v1681_v11 }
 0x259   :  { %7557 = vrot.lane.b32.xlu0 %v1650_v27, %s16644_s10  ;;  %v1715_v27 = vcombine.high %v1697_v32, %v16743_v49  ;;  %v1706_v30 = vrot.slane %v1698_v24, %v11557_v48  ;;  %v1718_v24 = vcombine.high %v11289_v31, %v16743_v49 }
 0x25b   :  { %7561 = vrot.lane.b32.xlu1 %v1647_v13, %s16800_s8  ;;  %v1699_v13 = vcombine.high %v1666_v42, %v1681_v11  ;;  %v1716_v42 = vcombine.high %v1706_v30, %v16743_v49 }
 0x25d   :  { %7565 = vrot.lane.b32.xlu0 %v1651_v45, %s16622_s9  ;;  %v1725_v45 = vrot.slane %v11289_v31, %v11234_v5 }
 0x25f   :  { %v12079_v18 = vpop.permute.xlu0 %7341  ;;  %7569 = vrot.lane.b32.xlu1 %v1714_v4, %s11187_s11  ;;  %v1748_v55 = vcombine.low %v1725_v45, %v1740_v46  ;;  %v1749_v20 = vcombine.high %v1725_v45, %v1740_v46 }
 0x261   :  { %v12082_v25 = vpop.permute.xlu1 %7345  ;;  %7573 = vrot.lane.b32.xlu0 %v1697_v32, %s16642_s0  ;;  %v1713_v32 = vrot.slane %v1699_v13, %v11557_v48  ;;  %v1756_v21 = vrot.slane %v1748_v55, %v11557_v48  ;;  %v1732_v13 = vrot.slane %v1718_v24, %v11234_v5 }
 0x263   :  { %v12088_v29 = vpop.permute.xlu0 %7349  ;;  %7577 = vrot.lane.b32.xlu1 %v1715_v27, %s16620_s13  ;;  %v1764_v56 = vcombine.low %v1732_v13, %v1747_v43  ;;  %v1780_v52 = vcombine.high %v1756_v21, %v16743_v49  ;;  %v1765_v45 = vcombine.high %v1732_v13, %v1747_v43  ;;  %v1799_v43 = vcombine.high %v11506_v1, %v16743_v49 }
 0x265   :  { %v12094_v4 = vpop.permute.xlu1 %7353  ;;  %7581 = vrot.lane.b32.xlu0 %v1706_v30, %s11188_s12  ;;  %v1717_v30 = vcombine.high %v1713_v32, %v16743_v49 }
 0x267   :  { %v12100_v11 = vpop.permute.xlu0 %7357  ;;  %7585 = vrot.lane.b32.xlu1 %v1716_v42, %s16640_s15  ;;  %v1763_v42 = vrot.slane %v1749_v20, %v11557_v48  ;;  %v1772_v20 = vrot.slane %v1764_v56, %v11557_v48  ;;  %v1784_v56 = vcombine.high %v11295_v34, %v16743_v49 }
 0x269   :  { %v12106_v27 = vpop.permute.xlu1 %7361  ;;  %7589 = vrot.lane.b32.xlu0 %v1713_v32, %s16614_s14  ;;  %v1806_v32 = vrot.slane %v11506_v1, %v11234_v5  ;;  %v1781_v24 = vcombine.high %v1763_v42, %v16743_v49  ;;  %v1782_v44 = vcombine.high %v1772_v20, %v16743_v49 }
 0x26b   :  { %v12112_v60 = vpop.permute.xlu0 %7365  ;;  %7593 = vrot.lane.b32.xlu1 %v1717_v30, %s16609_s17 }
 0x26d   :  { %v12116_v31 = vpop.permute.xlu1 %7369  ;;  %7597 = vrot.lane.b32.xlu0 %v1756_v21, %s11192_s16  ;;  %v1791_v21 = vrot.slane %v11295_v34, %v11234_v5 }
 0x26f   :  { %v12121_v46 = vpop.permute.xlu0 %7373  ;;  %7601 = vrot.lane.b32.xlu1 %v1780_v52, %s16638_s19  ;;  %v1814_v13 = vcombine.low %v1791_v21, %v1806_v32  ;;  %v1815_v23 = vcombine.high %v1791_v21, %v1806_v32 }
 0x270   :  { %16822 = vst [vmem:[#allocation176_spill] sm:$0xff] %v12121_v46 }
 0x271   :  { %v12124_v55 = vpop.permute.xlu1 %7377  ;;  %7605 = vrot.lane.b32.xlu0 %v1763_v42, %s16606_s18  ;;  %v1822_v1 = vrot.slane %v1814_v13, %v11557_v48  ;;  %v1829_v34 = vrot.slane %v1815_v23, %v11557_v48 }
 0x272   :  { %16823 = vst [vmem:[#allocation177_spill] sm:$0xff] %v12124_v55 }
 0x273   :  { %v12130_v30 = vpop.permute.xlu0 %7381  ;;  %7609 = vrot.lane.b32.xlu1 %v1781_v24, %s11197_s21 }
 0x274   :  { %16824 = vst [vmem:[#allocation178_spill] sm:$0xff] %v12130_v30  ;;  %v1779_v30 = vrot.slane %v1765_v45, %v11557_v48  ;;  %v1798_v45 = vrot.slane %v1784_v56, %v11234_v5  ;;  %v1847_v56 = vcombine.high %v1829_v34, %v16743_v49 }
 0x275   :  { %v12136_v52 = vpop.permute.xlu1 %7385  ;;  %7613 = vrot.lane.b32.xlu0 %v1772_v20, %s16636_s20 }
 0x276   :  { %16825 = vst [vmem:[#allocation179_spill] sm:$0xff] %v12136_v52  ;;  %v1813_v52 = vrot.slane %v1799_v43, %v11234_v5  ;;  %v1783_v20 = vcombine.high %v1779_v30, %v16743_v49  ;;  %v1846_v43 = vcombine.high %v1822_v1, %v16743_v49 }
 0x277   :  { %v12142_v42 = vpop.permute.xlu0 %7389  ;;  %7617 = vrot.lane.b32.xlu1 %v1782_v44, %s16604_s23 }
 0x278   :  { %16826 = vst [vmem:[#allocation180_spill] sm:$0xff] %v12142_v42  ;;  %v1830_v44 = vcombine.low %v1798_v45, %v1813_v52  ;;  %v1831_v21 = vcombine.high %v1798_v45, %v1813_v52 }
 0x279   :  { %v12148_v24 = vpop.permute.xlu1 %7393  ;;  %7621 = vrot.lane.b32.xlu0 %v1779_v30, %s11198_s22  ;;  %v1872_v30 = vrot.slane %v11504_v6, %v11234_v5 }
 0x27a   :  { %16827 = vst [vmem:[#allocation181_spill] sm:$0xff] %v12148_v24  ;;  %v1838_v23 = vrot.slane %v1830_v44, %v11557_v48 }
 0x27b   :  { %v12154_v55 = vpop.permute.xlu0 %7397  ;;  %7625 = vrot.lane.b32.xlu1 %v1783_v20, %s16633_s25 }
 0x27c   :  { %16828 = vst [vmem:[#allocation182_spill] sm:$0xff] %v12154_v55  ;;  %v1848_v45 = vcombine.high %v1838_v23, %v16743_v49 }
 0x27d   :  { %7629 = vrot.lane.b32.xlu0 %v1822_v1, %s16595_s24  ;;  %v12160_v24 = vpop.permute.xlu1 %7401  ;;  %v1857_v1 = vrot.slane %v11293_v33, %v11234_v5 }
 0x27e   :  { %16829 = vst [vmem:[#allocation183_spill] sm:$0xff] %v12160_v24 }
 0x27f   :  { %v12163_v32 = vpop.permute.xlu0 %7405  ;;  %7633 = vrot.lane.b32.xlu1 %v1846_v43, %s16585_s27  ;;  %v1865_v43 = vcombine.high %v11504_v6, %v16743_v49 }
 0x280   :  { %16830 = vst [vmem:[#allocation184_spill] sm:$0xff] %v12163_v32  ;;  %v1880_v32 = vcombine.low %v1857_v1, %v1872_v30 }
 0x281   :  { %7637 = vrot.lane.b32.xlu0 %v1829_v34, %s11202_s26  ;;  %v12169_v13 = vpop.permute.xlu1 %7409  ;;  %v1845_v34 = vrot.slane %v1831_v21, %v11557_v48 }
 0x282   :  { %16831 = vst [vmem:[#allocation185_spill] sm:$0xff] %v12169_v13  ;;  %v1881_v13 = vcombine.high %v1857_v1, %v1872_v30  ;;  %v1888_v6 = vrot.slane %v1880_v32, %v11557_v48  ;;  %v1938_v32 = vrot.slane %v11510_v63, %v11234_v5 }
 0x283   :  { %v12173_v20 = vpop.permute.xlu0 %7413  ;;  %7641 = vrot.lane.b32.xlu1 %v1847_v56, %s16631_s29  ;;  %v1879_v56 = vrot.slane %v1865_v43, %v11234_v5 }
 0x284   :  { %16832 = vst [vmem:[#allocation186_spill] sm:$0xff] %v12173_v20  ;;  %v1850_v20 = vcombine.high %v11293_v33, %v16743_v49  ;;  %v1895_v33 = vrot.slane %v1881_v13, %v11557_v48  ;;  %v1912_v30 = vcombine.high %v1888_v6, %v16743_v49 }
 0x285   :  { %7645 = vrot.lane.b32.xlu0 %v1838_v23, %s16582_s28  ;;  %v12181_v52 = vpop.permute.xlu1 %7417  ;;  %v1849_v23 = vcombine.high %v1845_v34, %v16743_v49  ;;  %s16837_s28 = smov 96  }
 0x286   :  { %16833 = vst [vmem:[#allocation187_spill] sm:$0xff] %v12181_v52  ;;  %v1864_v21 = vrot.slane %v1850_v20, %v11234_v5  ;;  %v1923_v20 = vrot.slane %v11299_v36, %v11234_v5  ;;  %v1913_v13 = vcombine.high %v1895_v33, %v16743_v49 }
 0x287   :  { %v12185_v44 = vpop.permute.xlu0 %7421  ;;  %7649 = vrot.lane.b32.xlu1 %v1848_v45, %s11207_s2 }
 0x288   :  { %16834 = vst [vmem:[#allocation188_spill] sm:$0xff] %v12185_v44  ;;  %v1896_v45 = vcombine.low %v1864_v21, %v1879_v56  ;;  %v1897_v43 = vcombine.high %v1864_v21, %v1879_v56 }
 0x289   :  { %7653 = vrot.lane.b32.xlu0 %v1845_v34, %s16649_s30  ;;  %v12193_v24 = vpop.permute.xlu1 %7425 }
 0x28a   :  { %16835 = vst [vmem:[#allocation189_spill] sm:$0xff] %v12193_v24 }
 0x28b   :  { %v12196_v52 = vpop.permute.xlu0 %7429  ;;  %7657 = vrot.lane.b32.xlu1 %v1849_v23, %s16629_s4  ;;  %v1904_v23 = vrot.slane %v1896_v45, %v11557_v48 }
 0x28c   :  { %16836 = vst [vmem:[#allocation190_spill] sm:$0xff] %v12196_v52 }
 0x28d   :  { %7661 = vrot.lane.b32.xlu0 %v1888_v6, %s16837_s28  ;;  %v12202_v44 = vpop.permute.xlu1 %7433  ;;  %v1931_v6 = vcombine.high %v11510_v63, %v16743_v49  ;;  %v1914_v21 = vcombine.high %v1904_v23, %v16743_v49 }
 0x28e   :  { %16838 = vst [vmem:[#allocation191_spill] sm:$0xff] %v12202_v44  ;;  %v1946_v44 = vcombine.low %v1923_v20, %v1938_v32 }
 0x28f   :  { %v12207_v1 = vpop.permute.xlu0 %7437  ;;  %7665 = vrot.lane.b32.xlu1 %v1912_v30, %s16647_s6  ;;  %v1916_v30 = vcombine.high %v11299_v36, %v16743_v49  ;;  %v1945_v45 = vrot.slane %v1931_v6, %v11234_v5  ;;  %v2004_v6 = vrot.slane %v11508_v2, %v11234_v5 }
 0x290   :  { %16839 = vst [vmem:[#allocation192_spill] sm:$0xff] %v12207_v1  ;;  %v12231_v63 = vrot.slane %v1946_v44, %v11557_v48 }
 0x291   :  { %7669 = vrot.lane.b32.xlu0 %v1895_v33, %s16627_s5  ;;  %v12213_v34 = vpop.permute.xlu1 %7441  ;;  %v1911_v33 = vrot.slane %v1897_v43, %v11557_v48  ;;  %v1930_v36 = vrot.slane %v1916_v30, %v11234_v5 }
 0x292   :  { %16840 = vst [vmem:[#allocation193_spill] sm:$0xff] %v12213_v34  ;;  %v1947_v34 = vcombine.high %v1923_v20, %v1938_v32  ;;  %16841 = vst [vmem:[#allocation194_spill] sm:$0xff] %v12231_v63  ;;  %v1978_v44 = vcombine.high %v12231_v63, %v16743_v49 }
 0x293   :  { %v12219_v52 = vpop.permute.xlu0 %7445  ;;  %7673 = vrot.lane.b32.xlu1 %v1913_v13, %s16821_s3  ;;  %v1962_v24 = vcombine.low %v1930_v36, %v1945_v45  ;;  %v1963_v30 = vcombine.high %v1930_v36, %v1945_v45 }
 0x294   :  { %v1961_v32 = vrot.slane %v1947_v34, %v11557_v48  ;;  %v1989_v34 = vrot.slane %v11297_v35, %v11234_v5 }
 0x295   :  { %7677 = vrot.lane.b32.xlu0 %v1904_v23, %s16624_s7  ;;  %v12225_v56 = vpop.permute.xlu1 %7449  ;;  %v1915_v23 = vcombine.high %v1911_v33, %v16743_v49  ;;  %v1977_v36 = vrot.slane %v1963_v30, %v11557_v48 }
 0x296   :  { %v1979_v55 = vcombine.high %v1961_v32, %v16743_v49  ;;  %v2012_v63 = vcombine.low %v1989_v34, %v2004_v6  ;;  %v2013_v47 = vcombine.high %v1989_v34, %v2004_v6 }
 0x297   :  { %v12233_v1 = vpop.permute.xlu0 %7453  ;;  %7681 = vrot.lane.b32.xlu1 %v1914_v21, %s16644_s10  ;;  %v1981_v30 = vcombine.high %v1977_v36, %v16743_v49 }
 0x298   :  { %v2020_v46 = vrot.slane %v2012_v63, %v11557_v48 }
 0x299   :  { %7685 = vrot.lane.b32.xlu0 %v1911_v33, %s16800_s8  ;;  %v12238_v13 = vpop.permute.xlu1 %7457  ;;  %v1970_v33 = vrot.slane %v1962_v24, %v11557_v48 }
 0x29a   :  { %v2044_v6 = vcombine.high %v2020_v46, %v16743_v49 }
 0x29b   :  { %v12241_v43 = vpop.permute.xlu0 %7461  ;;  %7689 = vrot.lane.b32.xlu1 %v1915_v23, %s16622_s9  ;;  %v1980_v24 = vcombine.high %v1970_v33, %v16743_v49 }
 0x29d   :  { %7693 = vrot.lane.b32.xlu0 %v1978_v44, %s11187_s11  ;;  %v12248_v20 = vpop.permute.xlu1 %7465  ;;  %v1997_v44 = vcombine.high %v11508_v2, %v16743_v49 }
 0x29f   :  { %v12252_v21 = vpop.permute.xlu0 %7469  ;;  %7697 = vrot.lane.b32.xlu1 %v1961_v32, %s16642_s0  ;;  %v1982_v32 = vcombine.high %v11297_v35, %v16743_v49  ;;  %v2011_v42 = vrot.slane %v1997_v44, %v11234_v5  ;;  %v2027_v44 = vrot.slane %v2013_v47, %v11557_v48  ;;  %v2055_v47 = vrot.slane %v11303_v38, %v11234_v5 }
 0x2a1   :  { %7701 = vrot.lane.b32.xlu0 %v1979_v55, %s16620_s13  ;;  %v12260_v23 = vpop.permute.xlu1 %7473 }
 0x2a3   :  { %v12264_v45 = vpop.permute.xlu0 %7477  ;;  %7705 = vrot.lane.b32.xlu1 %v1970_v33, %s11188_s12  ;;  %v1996_v33 = vrot.slane %v1982_v32, %v11234_v5 }
 0x2a5   :  { %7709 = vrot.lane.b32.xlu0 %v1980_v24, %s16640_s15  ;;  %v12272_v55 = vpop.permute.xlu1 %7481  ;;  %v2028_v24 = vcombine.low %v1996_v33, %v2011_v42  ;;  %v2029_v34 = vcombine.high %v1996_v33, %v2011_v42  ;;  %v2063_v42 = vcombine.high %v11514_v61, %v16743_v49 }
 0x2a7   :  { %v12275_v2 = vpop.permute.xlu0 %7485  ;;  %7713 = vrot.lane.b32.xlu1 %v1977_v36, %s16614_s14  ;;  %v2070_v36 = vrot.slane %v11514_v61, %v11234_v5 }
 0x2a9   :  { %7717 = vrot.lane.b32.xlu0 %v1981_v30, %s16609_s17  ;;  %v12282_v35 = vpop.permute.xlu1 %7489  ;;  %v2036_v30 = vrot.slane %v2028_v24, %v11557_v48  ;;  %v2078_v33 = vcombine.low %v2055_v47, %v2070_v36 }
 0x2aa   :  { %16842 = vst [vmem:[#allocation195_spill] sm:$0xff] %v12282_v35 }
 0x2ab   :  { %v12284_v22 = vpop.permute.xlu0 %7493  ;;  %7721 = vrot.lane.b32.xlu1 %v2020_v46, %s11192_s16  ;;  %v2046_v24 = vcombine.high %v2036_v30, %v16743_v49 }
 0x2ac   :  { %16843 = vst [vmem:[#allocation196_spill] sm:$0xff] %v12284_v22  ;;  %v2045_v22 = vcombine.high %v2027_v44, %v16743_v49 }
 0x2ad   :  { %7725 = vrot.lane.b32.xlu0 %v2044_v6, %s16638_s19  ;;  %v12290_v63 = vpop.permute.xlu1 %7497 }
 0x2ae   :  { %16844 = vst [vmem:[#allocation197_spill] sm:$0xff] %v12290_v63  ;;  %v2079_v63 = vcombine.high %v2055_v47, %v2070_v36 }
 0x2af   :  { %v12294_v32 = vpop.permute.xlu0 %7501  ;;  %7729 = vrot.lane.b32.xlu1 %v2027_v44, %s16606_s18  ;;  %v2048_v44 = vcombine.high %v11303_v38, %v16743_v49 }
 0x2b0   :  { %16845 = vst [vmem:[#allocation198_spill] sm:$0xff] %v12294_v32  ;;  %v2043_v32 = vrot.slane %v2029_v34, %v11557_v48 }
 0x2b1   :  { %7733 = vrot.lane.b32.xlu0 %v2045_v22, %s11197_s21  ;;  %v12302_v46 = vpop.permute.xlu1 %7505 }
 0x2b2   :  { %16846 = vst [vmem:[#allocation199_spill] sm:$0xff] %v12302_v46  ;;  %v2077_v46 = vrot.slane %v2063_v42, %v11234_v5  ;;  %v2047_v34 = vcombine.high %v2043_v32, %v16743_v49  ;;  %v2093_v42 = vrot.slane %v2079_v63, %v11557_v48  ;;  %v2121_v63 = vrot.slane %v11301_v37, %v11234_v5 }
 0x2b3   :  { %v12306_v6 = vpop.permute.xlu0 %7509  ;;  %7737 = vrot.lane.b32.xlu1 %v2036_v30, %s16636_s20  ;;  %v2062_v30 = vrot.slane %v2048_v44, %v11234_v5 }
 0x2b4   :  { %16847 = vst [vmem:[#allocation200_spill] sm:$0xff] %v12306_v6  ;;  %v2086_v6 = vrot.slane %v2078_v33, %v11557_v48 }
 0x2b5   :  { %7741 = vrot.lane.b32.xlu0 %v2046_v24, %s16604_s23  ;;  %v12314_v22 = vpop.permute.xlu1 %7513  ;;  %v2094_v24 = vcombine.low %v2062_v30, %v2077_v46  ;;  %v2095_v33 = vcombine.high %v2062_v30, %v2077_v46 }
 0x2b6   :  { %v2110_v36 = vcombine.high %v2086_v6, %v16743_v49 }
 0x2b7   :  { %v12317_v61 = vpop.permute.xlu0 %7517  ;;  %7745 = vrot.lane.b32.xlu1 %v2043_v32, %s11198_s22  ;;  %v2136_v32 = vrot.slane %v11512_v0, %v11234_v5  ;;  %v2109_v30 = vrot.slane %v2095_v33, %v11557_v48 }
 0x2b9   :  { %7749 = vrot.lane.b32.xlu0 %v2047_v34, %s16633_s25  ;;  %v12324_v38 = vpop.permute.xlu1 %7521  ;;  %v2102_v34 = vrot.slane %v2094_v24, %v11557_v48  ;;  %v2113_v33 = vcombine.high %v2109_v30, %v16743_v49 }
 0x2ba   :  { %16848 = vst [vmem:[#allocation201_spill] sm:$0xff] %v12324_v38 }
 0x2bb   :  { %v12326_v35 = vpop.permute.xlu0 %7525  ;;  %7753 = vrot.lane.b32.xlu1 %v2086_v6, %s16595_s24  ;;  %v2112_v24 = vcombine.high %v2102_v34, %v16743_v49 }
 0x2bc   :  { %16849 = vst [vmem:[#allocation202_spill] sm:$0xff] %v12326_v35  ;;  %v2111_v35 = vcombine.high %v2093_v42, %v16743_v49 }
 0x2bd   :  { %7757 = vrot.lane.b32.xlu0 %v2110_v36, %s16585_s27  ;;  %v12332_v47 = vpop.permute.xlu1 %7529  ;;  %v2129_v36 = vcombine.high %v11512_v0, %v16743_v49  ;;  %s16854_s27 = smov 80  }
 0x2be   :  { %16850 = vst [vmem:[#allocation203_spill] sm:$0xff] %v12332_v47  ;;  %v2144_v47 = vcombine.low %v2121_v63, %v2136_v32 }
 0x2bf   :  { %v12336_v44 = vpop.permute.xlu0 %7533  ;;  %7761 = vrot.lane.b32.xlu1 %v2093_v42, %s11202_s26  ;;  %v2114_v42 = vcombine.high %v11301_v37, %v16743_v49 }
 0x2c0   :  { %16851 = vst [vmem:[#allocation204_spill] sm:$0xff] %v12336_v44  ;;  %v2145_v44 = vcombine.high %v2121_v63, %v2136_v32  ;;  %v2202_v63 = vrot.slane %v11518_v58, %v11234_v5 }
 0x2c1   :  { %7765 = vrot.lane.b32.xlu0 %v2111_v35, %s16631_s29  ;;  %v12344_v6 = vpop.permute.xlu1 %7537 }
 0x2c2   :  { %16852 = vst [vmem:[#allocation205_spill] sm:$0xff] %v12344_v6  ;;  %v2143_v6 = vrot.slane %v2129_v36, %v11234_v5  ;;  %v2159_v36 = vrot.slane %v2145_v44, %v11557_v48 }
 0x2c3   :  { %v12348_v46 = vpop.permute.xlu0 %7541  ;;  %7769 = vrot.lane.b32.xlu1 %v2102_v34, %s16854_s27  ;;  %v2128_v34 = vrot.slane %v2114_v42, %v11234_v5  ;;  %v10234_v42 = vsel %vm10172_vm0, %v11734_v54, %v12038_v16  ;;  %v10173_v54 = vsel %vm10172_vm0, %v11567_v10, %v11852_v15  ;;  %v2180_v15 = vcombine.high %v11311_v41, %v16743_v49 }
 0x2c4   :  { %16853 = vst [vmem:[#allocation206_spill] sm:$0xff] %v12348_v46  ;;  %v2152_v46 = vrot.slane %v2144_v47, %v11557_v48 }
 0x2c5   :  { %7773 = vrot.lane.b32.xlu0 %v2112_v24, %s11207_s2  ;;  %v12356_v35 = vpop.permute.xlu1 %7545  ;;  %v2160_v24 = vcombine.low %v2128_v34, %v2143_v6  ;;  %v2161_v47 = vcombine.high %v2128_v34, %v2143_v6  ;;  %v2187_v6 = vrot.slane %v11311_v41, %v11234_v5  ;;  %v10235_v34 = vsel %vm10174_vm1, %v10234_v42, %v12051_v28 }
 0x2c6   :  { %v2176_v32 = vcombine.high %v2152_v46, %v16743_v49  ;;  %v10236_v28 = vsel %vm10176_vm2, %v10235_v34, %v12054_v8 }
 0x2c7   :  { %v12359_v0 = vpop.permute.xlu0 %7549  ;;  %7777 = vrot.lane.b32.xlu1 %v2109_v30, %s16649_s30  ;;  %v2168_v44 = vrot.slane %v2160_v24, %v11557_v48  ;;  %v2210_v16 = vcombine.low %v2187_v6, %v2202_v63 }
 0x2c9   :  { %7781 = vrot.lane.b32.xlu0 %v2113_v33, %s16629_s4  ;;  %v12366_v37 = vpop.permute.xlu1 %7553  ;;  %v2178_v10 = vcombine.high %v2168_v44, %v16743_v49  ;;  %v12420_v41 = vrot.slane %v2210_v16, %v11557_v48 }
 0x2cb   :  { %v12368_v38 = vpop.permute.xlu0 %7557  ;;  %7785 = vrot.lane.b32.xlu1 %v2152_v46, %s16837_s28  ;;  %v2177_v46 = vcombine.high %v2159_v36, %v16743_v49 }
 0x2cd   :  { %7789 = vrot.lane.b32.xlu0 %v2176_v32, %s16647_s6  ;;  %v12376_v30 = vpop.permute.xlu1 %7561  ;;  %v2195_v32 = vcombine.high %v11518_v58, %v16743_v49 }
 0x2cf   :  { %v12381_v33 = vpop.permute.xlu0 %7565  ;;  %7793 = vrot.lane.b32.xlu1 %v2159_v36, %s16627_s5  ;;  %v10265_v36 = vsel %vm10172_vm0, %v11911_v7, %v12219_v52  ;;  %v12414_v7 = vrot.slane %v2195_v32, %v11234_v5  ;;  %v2194_v32 = vrot.slane %v2180_v15, %v11234_v5  ;;  %v2253_v15 = vrot.slane %v11309_v40, %v11234_v5 }
 0x2d0   :  { %16855 = vst [vmem:[#allocation207_spill] sm:$0xff] %v12381_v33  ;;  %v2175_v33 = vrot.slane %v2161_v47, %v11557_v48  ;;  %v10237_v47 = vsel %vm10178_vm3, %v10236_v28, %v12064_v53 }
 0x2d1   :  { %7797 = vrot.lane.b32.xlu0 %v2177_v46, %s16821_s3  ;;  %v7570_v24 = vpop.permute.xlu1 %7569  ;;  %v10175_v46 = vsel %vm10174_vm1, %v10173_v54, %v11850_v9  ;;  %v10266_v9 = vsel %vm10174_vm1, %v10265_v36, %v12225_v56 }
 0x2d2   :  { %v10296_v58 = vsel %vm10172_vm0, %v12068_v39, %v7570_v24  ;;  %v2211_v39 = vcombine.high %v2187_v6, %v2202_v63  ;;  %v10177_v52 = vsel %vm10176_vm2, %v10175_v46, %v11863_v59  ;;  %v10267_v63 = vsel %vm10176_vm2, %v10266_v9, %v12233_v1 }
 0x2d3   :  { %v7574_v42 = vpop.permute.xlu0 %7573  ;;  %7801 = vrot.lane.b32.xlu1 %v2168_v44, %s16624_s7  ;;  %v10238_v44 = vsel %vm16619_vm4, %v10237_v47, %v12070_v12  ;;  %v2179_v34 = vcombine.high %v2175_v33, %v16743_v49  ;;  %v10179_v54 = vsel %vm10178_vm3, %v10177_v52, %v11861_v26  ;;  %v2226_v24 = vcombine.low %v2194_v32, %v12414_v7 }
 0x2d4   :  { %v10297_v8 = vsel %vm10174_vm1, %v10296_v58, %v7574_v42  ;;  %v10239_v56 = vsel %vm16618_vm5, %v10238_v44, %v12079_v18  ;;  %v2225_v16 = vrot.slane %v2211_v39, %v11557_v48  ;;  %v10181_v1 = vsel %vm16619_vm4, %v10179_v54, %v11875_v57 }
 0x2d5   :  { %7805 = vrot.lane.b32.xlu0 %v2178_v10, %s16644_s10  ;;  %v7578_v53 = vpop.permute.xlu1 %7577  ;;  %v10268_v26 = vsel %vm10178_vm3, %v10267_v63, %v12238_v13  ;;  %v2242_v18 = vcombine.high %v12420_v41, %v16743_v49  ;;  %v10183_v42 = vsel %vm16618_vm5, %v10181_v1, %v11873_v14  ;;  %v2246_v44 = vcombine.high %v11309_v40, %v16743_v49 }
 0x2d6   :  { %v10298_v6 = vsel %vm10176_vm2, %v10297_v8, %v7578_v53  ;;  %v10269_v36 = vsel %vm16619_vm4, %v10268_v26, %v12241_v43  ;;  %v2227_v43 = vcombine.high %v2194_v32, %v12414_v7  ;;  %v10185_v46 = vsel %vm16613_vm6, %v10183_v42, %v11889_v3 }
 0x2d7   :  { %v7582_v59 = vpop.permute.xlu0 %7581  ;;  %7809 = vrot.lane.b32.xlu1 %v2175_v33, %s16800_s8  ;;  %v10240_v33 = vsel %vm16613_vm6, %v10239_v56, %v12082_v25  ;;  %v2268_v25 = vrot.slane %v11516_v62, %v11234_v5  ;;  %v10270_v14 = vsel %vm16618_vm5, %v10269_v36, %v12248_v20  ;;  %v2243_v47 = vcombine.high %v2225_v16, %v16743_v49  ;;  %v16857_v36 = vld [vmem:[#allocation176_spill] sm:$0xff] }
 0x2d8   :  { %v10299_v12 = vsel %vm10178_vm3, %v10298_v6, %v7582_v59  ;;  %v10241_v13 = vsel %vm16611_vm7, %v10240_v33, %v12088_v29  ;;  %v2234_v8 = vrot.slane %v2226_v24, %v11557_v48  ;;  %v10271_v7 = vsel %vm16613_vm6, %v10270_v14, %v12252_v21  ;;  %v16861_v14 = vld [vmem:[#allocation196_spill] sm:$0xff] }
 0x2d9   :  { %7813 = vrot.lane.b32.xlu0 %v2179_v34, %s16622_s9  ;;  %v7586_v28 = vpop.permute.xlu1 %7585  ;;  %v10242_v39 = vsel %vm16612_vm8, %v10241_v13, %v12094_v4  ;;  %v10187_v9 = vsel %vm16611_vm7, %v10185_v46, %v11887_v50  ;;  %v2261_v4 = vcombine.high %v11516_v62, %v16743_v49  ;;  %v2276_v21 = vcombine.low %v2253_v15, %v2268_v25  ;;  %v16859_v13 = vld [vmem:[#allocation195_spill] sm:$0xff] }
 0x2da   :  { %v10300_v57 = vsel %vm16619_vm4, %v10299_v12, %v7586_v28  ;;  %v10243_v20 = vsel %vm16616_vm9, %v10242_v39, %v12100_v11  ;;  %v10189_v63 = vsel %vm16612_vm8, %v10187_v9, %v11905_v51  ;;  %v10272_v50 = vsel %vm16611_vm7, %v10271_v7, %v12260_v23  ;;  %v16862_v39 = vld [vmem:[#allocation157_spill] sm:$0xff] }
 0x2db   :  { %v7590_v58 = vpop.permute.xlu0 %7589  ;;  %7817 = vrot.lane.b32.xlu1 %v2242_v18, %s11187_s11  ;;  %v2244_v6 = vcombine.high %v2234_v8, %v16743_v49  ;;  %v2241_v59 = vrot.slane %v2227_v43, %v11557_v48  ;;  %v10244_v40 = vsel %vm16617_vm10, %v10243_v20, %v12106_v27  ;;  %v10273_v62 = vsel %vm16612_vm8, %v10272_v50, %v12264_v45  ;;  %v16856_v18 = vld [vmem:[#allocation156_spill] sm:$0xff]  ;;  %v16860_v43 = vld [vmem:[#allocation177_spill] sm:$0xff] }
 0x2dc   :  { %v10301_v10 = vsel %vm16618_vm5, %v10300_v57, %v7590_v58  ;;  %v10191_v32 = vsel %vm16616_vm9, %v10189_v63, %v11903_v17  ;;  %v10245_v23 = vsel %vm16588_vm11, %v10244_v40, %v12112_v60  ;;  %v12503_v56 = vrot.slane %v2246_v44, %v11234_v5  ;;  %v16864_v20 = vld [vmem:[#allocation9_spill] sm:$0xff]  ;;  %v16866_v63 = vld [vmem:[#allocation160_spill] sm:$0xff] }
 0x2dd   :  { %7821 = vrot.lane.b32.xlu0 %v2225_v16, %s16642_s0  ;;  %v7594_v29 = vpop.permute.xlu1 %7593  ;;  %v12506_v27 = vrot.slane %v2261_v4, %v11234_v5  ;;  %v2277_v45 = vcombine.high %v2253_v15, %v2268_v25  ;;  %v10193_v12 = vsel %vm16617_vm10, %v10191_v32, %v11922_v19  ;;  %v2284_v17 = vrot.slane %v2276_v21, %v11557_v48  ;;  %v16865_v4 = vld [vmem:[#allocation83_spill] sm:$0xff]  ;;  %v16869_v32 = vld [vmem:[#allocation198_spill] sm:$0xff] }
 0x2de   :  { %v10302_v3 = vsel %vm16613_vm6, %v10301_v10, %v7594_v29  ;;  %v10274_v60 = vsel %vm16616_vm9, %v10273_v62, %v12272_v55  ;;  %v2245_v1 = vcombine.high %v2241_v59, %v16743_v49  ;;  %v10246_v24 = vsel %vm16587_vm12, %v10245_v23, %v12116_v31  ;;  %v16858_v31 = vld [vmem:[#allocation158_spill] sm:$0xff] }
 0x2df   :  { %v7598_v52 = vpop.permute.xlu0 %7597  ;;  %7825 = vrot.lane.b32.xlu1 %v2243_v47, %s16620_s13  ;;  %v10275_v26 = vsel %vm16617_vm10, %v10274_v60, %v12275_v2  ;;  %v10195_v33 = vsel %vm16588_vm11, %v10193_v12, %v16856_v18  ;;  %v10247_v57 = vsel %vm16590_vm13, %v10246_v24, %v16857_v36  ;;  %v2292_v58 = vcombine.low %v12503_v56, %v12506_v27  ;;  %v16871_v12 = vld [vmem:[#allocation180_spill] sm:$0xff]  ;;  %v16872_v24 = vld [vmem:[#allocation162_spill] sm:$0xff] }
 0x2e0   :  { %v10303_v53 = vsel %vm16611_vm7, %v10302_v3, %v7598_v52  ;;  %v10197_v42 = vsel %vm16587_vm12, %v10195_v33, %v16858_v31  ;;  %v2291_v2 = vrot.slane %v2277_v45, %v11557_v48  ;;  %v10276_v10 = vsel %vm16588_vm11, %v10275_v26, %v16859_v13  ;;  %v16863_v3 = vld [vmem:[#allocation178_spill] sm:$0xff] }
 0x2e1   :  { %7829 = vrot.lane.b32.xlu0 %v2234_v8, %s11188_s12  ;;  %v7602_v11 = vpop.permute.xlu1 %7601  ;;  %v2308_v25 = vcombine.high %v2284_v17, %v16743_v49  ;;  %v10248_v46 = vsel %vm16589_vm14, %v10247_v57, %v16860_v43  ;;  %v10277_v29 = vsel %vm16587_vm12, %v10276_v10, %v16861_v14  ;;  %v10199_v7 = vsel %vm16590_vm13, %v10197_v42, %v16862_v39  ;;  %v16874_v57 = vld [vmem:[#allocation181_spill] sm:$0xff] }
 0x2e2   :  { %v10304_v51 = vsel %vm16612_vm8, %v10303_v53, %v7602_v11  ;;  %v10249_v52 = vsel %vm16592_vm15, %v10248_v46, %v16863_v3  ;;  %v2319_v53 = vrot.slane %v16864_v20, %v11234_v5  ;;  %v2293_v44 = vcombine.high %v12503_v56, %v12506_v27  ;;  %v16867_v11 = vld [vmem:[#allocation197_spill] sm:$0xff]  ;;  %v16870_v27 = vld [vmem:[#allocation159_spill] sm:$0xff] }
 0x2e3   :  { %v7606_v34 = vpop.permute.xlu0 %7605  ;;  %7833 = vrot.lane.b32.xlu1 %v2244_v6, %s16640_s15  ;;  %v2334_v21 = vrot.slane %v16865_v4, %v11234_v5  ;;  %v10201_v50 = vsel %vm16589_vm14, %v10199_v7, %v16866_v63  ;;  %v10278_v6 = vsel %vm16590_vm13, %v10277_v29, %v16867_v11  ;;  %v2309_v40 = vcombine.high %v2291_v2, %v16743_v49  ;;  %v16876_v10 = vld [vmem:[#allocation161_spill] sm:$0xff]  ;;  %v16880_v63 = vld [vmem:[#allocation163_spill] sm:$0xff]  ;;  %v16881_v11 = vld [vmem:[#allocation184_spill] sm:$0xff] }
 0x2e4   :  { %v10305_v54 = vsel %vm16616_vm9, %v10304_v51, %v7606_v34  ;;  %v2300_v62 = vrot.slane %v2292_v58, %v11557_v48  ;;  %v16868_v51 = vld [vmem:[#allocation179_spill] sm:$0xff]  ;;  %v10279_v23 = vsel %vm16589_vm14, %v10278_v6, %v16869_v32  ;;  %v10203_v45 = vsel %vm16592_vm15, %v10201_v50, %v16870_v27  ;;  %v16875_v58 = vld [vmem:[#allocation200_spill] sm:$0xff]  ;;  %v16885_v27 = vld [vmem:[#allocation202_spill] sm:$0xff] }
 0x2e5   :  { %7837 = vrot.lane.b32.xlu0 %v2241_v59, %s16614_s14  ;;  %v7610_v16 = vpop.permute.xlu1 %7609  ;;  %v2307_v36 = vrot.slane %v2293_v44, %v11557_v48  ;;  %v2312_v13 = vcombine.high %v16864_v20, %v16743_v49  ;;  %v2343_v29 = vcombine.high %v2319_v53, %v2334_v21 }
 0x2e6   :  { %v10306_v19 = vsel %vm16617_vm10, %v10305_v54, %v7610_v16  ;;  %v2327_v16 = vcombine.high %v16865_v4, %v16743_v49  ;;  %v2310_v33 = vcombine.high %v2300_v62, %v16743_v49 }
 0x2e7   :  { %v7614_v28 = vpop.permute.xlu0 %7613  ;;  %7841 = vrot.lane.b32.xlu1 %v2245_v1, %s16609_s17  ;;  %v2342_v1 = vcombine.low %v2319_v53, %v2334_v21  ;;  %v2326_v21 = vrot.slane %v2312_v13, %v11234_v5 }
 0x2e8   :  { %v10307_v55 = vsel %vm16588_vm11, %v10306_v19, %v7614_v28  ;;  %vm16594_vm11 = vcmask 588800   ;;  %v16873_v19 = vld [vmem:[#allocation199_spill] sm:$0xff]  ;;  %v12593_v14 = vrot.slane %v2327_v16, %v11234_v5 }
 0x2e9   :  { %7845 = vrot.lane.b32.xlu0 %v2284_v17, %s11192_s16  ;;  %v7618_v15 = vpop.permute.xlu1 %7617  ;;  %v10280_v28 = vsel %vm16592_vm15, %v10279_v23, %v16873_v19  ;;  %v2350_v39 = vrot.slane %v2342_v1, %v11557_v48  ;;  %v16887_v1 = vld [vmem:[#allocation186_spill] sm:$0xff]  ;;  %v16889_v19 = vld [vmem:[#allocation8_spill] sm:$0xff] }
 0x2ea   :  { %v10308_v47 = vsel %vm16587_vm12, %v10307_v55, %v7618_v15  ;;  %vm16591_vm12 = vcmask 556032  }
 0x2eb   :  { %v7622_v8 = vpop.permute.xlu0 %7621  ;;  %7849 = vrot.lane.b32.xlu1 %v2308_v25, %s16638_s19  ;;  %v10250_v34 = vsel %vm16591_vm12, %v10249_v52, %v16868_v51  ;;  %v10205_v26 = vsel %vm16591_vm12, %v10203_v45, %v16872_v24  ;;  %v10281_v31 = vsel %vm16591_vm12, %v10280_v28, %v16875_v58  ;;  %v16877_v25 = vld [vmem:[#allocation182_spill] sm:$0xff]  ;;  %v2311_v52 = vcombine.high %v2307_v36, %v16743_v49  ;;  %v16883_v51 = vld [vmem:[#allocation201_spill] sm:$0xff]  ;;  %v16892_v58 = vld [vmem:[#allocation203_spill] sm:$0xff] }
 0x2ec   :  { %v10309_v9 = vsel %vm16590_vm13, %v10308_v47, %v7622_v8  ;;  %v10251_v17 = vsel %vm16594_vm11, %v10250_v34, %v16871_v12  ;;  %vm16598_vm13 = vcmask 654336   ;;  %v10207_v15 = vsel %vm16594_vm11, %v10205_v26, %v16876_v10  ;;  %v16878_v47 = vld [vmem:[#allocation164_spill] sm:$0xff]  ;;  %v16893_v10 = vld [vmem:[#allocation187_spill] sm:$0xff] }
 0x2ed   :  { %7853 = vrot.lane.b32.xlu0 %v2291_v2, %s16606_s18  ;;  %v7626_v59 = vpop.permute.xlu1 %7625  ;;  %v10282_v7 = vsel %vm16594_vm11, %v10281_v31, %v12314_v22  ;;  %v2374_v23 = vcombine.high %v2350_v39, %v16743_v49  ;;  %v2385_v28 = vrot.slane %v16889_v19, %v11234_v5 }
 0x2ee   :  { %v10310_v54 = vsel %vm16589_vm14, %v10309_v9, %v7626_v59  ;;  %vm16593_vm14 = vcmask 621568   ;;  %v16879_v9 = vld [vmem:[#allocation183_spill] sm:$0xff]  ;;  %v2357_v59 = vrot.slane %v2343_v29, %v11557_v48 }
 0x2ef   :  { %v7630_v56 = vpop.permute.xlu0 %7629  ;;  %7857 = vrot.lane.b32.xlu1 %v2309_v40, %s11197_s21  ;;  %v10252_v55 = vsel %vm16593_vm14, %v10251_v17, %v16874_v57  ;;  %v10209_v8 = vsel %vm16593_vm14, %v10207_v15, %v16878_v47  ;;  %v10283_v53 = vsel %vm16593_vm14, %v10282_v7, %v12317_v61  ;;  %v16882_v40 = vld [vmem:[#allocation166_spill] sm:$0xff]  ;;  %v16891_v57 = vld [vmem:[#allocation168_spill] sm:$0xff]  ;;  %v16895_v29 = vld [vmem:[#allocation167_spill] sm:$0xff] }
 0x2f0   :  { %v10311_v60 = vsel %vm16592_vm15, %v10310_v54, %v7630_v56  ;;  %v10253_v43 = vsel %vm16598_vm13, %v10252_v55, %v16877_v25  ;;  %vm16600_vm15 = vcmask 719872   ;;  %v10211_v50 = vsel %vm16598_vm13, %v10209_v8, %v16880_v63  ;;  %v16884_v54 = vld [vmem:[#allocation185_spill] sm:$0xff]  ;;  %v16894_v25 = vld [vmem:[#allocation204_spill] sm:$0xff] }
 0x2f1   :  { %7861 = vrot.lane.b32.xlu0 %v2300_v62, %s16636_s20  ;;  %v7634_v18 = vpop.permute.xlu1 %7633  ;;  %v2358_v62 = vcombine.low %v2326_v21, %v12593_v14  ;;  %v10284_v34 = vsel %vm16598_vm13, %v10283_v53, %v16883_v51  ;;  %v16896_v8 = vld [vmem:[#allocation188_spill] sm:$0xff] }
 0x2f2   :  { %v10312_v42 = vsel %vm16591_vm12, %v10311_v60, %v7634_v18  ;;  %vm16597_vm12 = vcmask 687104   ;;  %v16886_v60 = vld [vmem:[#allocation165_spill] sm:$0xff]  ;;  %v16890_v18 = vld [vmem:[#allocation82_spill] sm:$0xff] }
 0x2f3   :  { %v7638_v2 = vpop.permute.xlu0 %7637  ;;  %7865 = vrot.lane.b32.xlu1 %v2310_v33, %s16604_s23  ;;  %v10254_v20 = vsel %vm16597_vm12, %v10253_v43, %v16879_v9  ;;  %v10213_v61 = vsel %vm16597_vm12, %v10211_v50, %v16882_v40  ;;  %v10285_v45 = vsel %vm16597_vm12, %v10284_v34, %v16885_v27  ;;  %v2400_v33 = vrot.slane %v16890_v18, %v11234_v5  ;;  %v16902_v34 = vld [vmem:[#allocation190_spill] sm:$0xff] }
 0x2f4   :  { %v10313_v46 = vsel %vm16594_vm11, %v10312_v42, %v7638_v2  ;;  %v10255_v22 = vsel %vm16600_vm15, %v10254_v20, %v16881_v11  ;;  %vm16602_vm11 = vcmask 785408   ;;  %v10215_v16 = vsel %vm16600_vm15, %v10213_v61, %v16886_v60  ;;  %v16897_v20 = vld [vmem:[#allocation170_spill] sm:$0xff]  ;;  %v16899_v11 = vld [vmem:[#allocation189_spill] sm:$0xff] }
 0x2f5   :  { %7869 = vrot.lane.b32.xlu0 %v2307_v36, %s11198_s22  ;;  %v7642_v3 = vpop.permute.xlu1 %7641  ;;  %v2359_v36 = vcombine.high %v2326_v21, %v12593_v14  ;;  %v10286_v31 = vsel %vm16600_vm15, %v10285_v45, %v16892_v58  ;;  %v2375_v2 = vcombine.high %v2357_v59, %v16743_v49  ;;  %v2366_v13 = vrot.slane %v2358_v62, %v11557_v48  ;;  %v16901_v62 = vld [vmem:[#allocation169_spill] sm:$0xff]  ;;  %v16903_v45 = vld [vmem:[#allocation172_spill] sm:$0xff] }
 0x2f6   :  { %v10314_v44 = vsel %vm16593_vm14, %v10313_v46, %v7642_v3  ;;  %vm16599_vm14 = vcmask 752640   ;;  %v2378_v3 = vcombine.high %v16889_v19, %v16743_v49  ;;  %v2408_v9 = vcombine.low %v2385_v28, %v2400_v33 }
 0x2f7   :  { %v7646_v4 = vpop.permute.xlu0 %7645  ;;  %7873 = vrot.lane.b32.xlu1 %v2311_v52, %s16633_s25  ;;  %v10256_v56 = vsel %vm16599_vm14, %v10255_v22, %v16884_v54  ;;  %v10217_v55 = vsel %vm16599_vm14, %v10215_v16, %v16891_v57  ;;  %v10287_v43 = vsel %vm16599_vm14, %v10286_v31, %v16894_v25  ;;  %v2393_v52 = vcombine.high %v16890_v18, %v16743_v49  ;;  %v16906_v57 = vld [vmem:[#allocation192_spill] sm:$0xff]  ;;  %v16907_v31 = vld [vmem:[#allocation174_spill] sm:$0xff] }
 0x2f8   :  { %v10315_v6 = vsel %vm16598_vm13, %v10314_v44, %v7646_v4  ;;  %v10257_v24 = vsel %vm16602_vm11, %v10256_v56, %v16887_v1  ;;  %vm10222_vm13 = vcmask 850944   ;;  %v10219_v47 = vsel %vm16602_vm11, %v10217_v55, %v16895_v29  ;;  %v16898_v44 = vld [vmem:[#allocation205_spill] sm:$0xff] }
 0x2f9   :  { %7877 = vrot.lane.b32.xlu0 %v2350_v39, %s16595_s24  ;;  %v7650_v32 = vpop.permute.xlu1 %7649  ;;  %s16888_s24 = smov 68   ;;  %v10288_v4 = vsel %vm16602_vm11, %v10287_v43, %v16898_v44  ;;  %v2376_v63 = vcombine.high %v2366_v13, %v16743_v49  ;;  %v2373_v50 = vrot.slane %v2359_v36, %v11557_v48  ;;  %v2392_v54 = vrot.slane %v2378_v3, %v11234_v5  ;;  %v16909_v43 = vld [vmem:[#allocation193_spill] sm:$0xff] }
 0x2fa   :  { %v10316_v12 = vsel %vm16597_vm12, %v10315_v6, %v7650_v32  ;;  %vm16601_vm12 = vcmask 818176   ;;  %v16900_v6 = vld [vmem:[#allocation206_spill] sm:$0xff]  ;;  %v2407_v56 = vrot.slane %v2393_v52, %v11234_v5  ;;  %v2409_v27 = vcombine.high %v2385_v28, %v2400_v33  ;;  %v16905_v33 = vld [vmem:[#allocation171_spill] sm:$0xff] }
 0x2fb   :  { %v7654_v17 = vpop.permute.xlu0 %7653  ;;  %7881 = vrot.lane.b32.xlu1 %v2374_v23, %s16888_s24  ;;  %v10258_v15 = vsel %vm16601_vm12, %v10257_v24, %v16893_v10  ;;  %v10221_v53 = vsel %vm16601_vm12, %v10219_v47, %v16897_v20  ;;  %v2377_v1 = vcombine.high %v2373_v50, %v16743_v49  ;;  %v16904_v24 = vld [vmem:[#allocation191_spill] sm:$0xff] }
 0x2fc   :  { %v10317_v26 = vsel %vm16600_vm15, %v10316_v12, %v7654_v17  ;;  %v10259_v39 = vsel %vm10222_vm13, %v10258_v15, %v16896_v8  ;;  %vm10226_vm15 = vcmask 916480   ;;  %v10223_v51 = vsel %vm10222_vm13, %v10221_v53, %v16901_v62  ;;  %v16908_v15 = vld [vmem:[#allocation85_spill] sm:$0xff] }
 0x2fd   :  { %7885 = vrot.lane.b32.xlu0 %v2357_v59, %s11202_s26  ;;  %v7658_v42 = vpop.permute.xlu1 %7657  ;;  %v10289_v59 = vsel %vm16601_vm12, %v10288_v4, %v16900_v6  ;;  %v2416_v17 = vrot.slane %v2408_v9, %v11557_v48  ;;  %v2424_v58 = vcombine.low %v2392_v54, %v2407_v56  ;;  %v2466_v25 = vrot.slane %v16908_v15, %v11234_v5  ;;  %v16910_v8 = vld [vmem:[#allocation173_spill] sm:$0xff]  ;;  %v16912_v9 = vld [vmem:[#allocation175_spill] sm:$0xff] }
 0x2fe   :  { %v10318_v46 = vsel %vm16599_vm14, %v10317_v26, %v7658_v42  ;;  %vm16603_vm14 = vcmask 883712   ;;  %v10290_v60 = vsel %vm10222_vm13, %v10289_v59, %v12356_v35  ;;  %v2425_v52 = vcombine.high %v2392_v54, %v2407_v56 }
 0x2ff   :  { %v7662_v14 = vpop.permute.xlu0 %7661  ;;  %7889 = vrot.lane.b32.xlu1 %v2375_v2, %s16631_s29  ;;  %v10260_v22 = vsel %vm16603_vm14, %v10259_v39, %v16899_v11  ;;  %v10225_v12 = vsel %vm16603_vm14, %v10223_v51, %v16903_v45  ;;  %v10291_v19 = vsel %vm16603_vm14, %v10290_v60, %v12359_v0  ;;  %v2423_v0 = vrot.slane %v2409_v27, %v11557_v48  ;;  %v16913_v11 = vld [vmem:[#allocation207_spill] sm:$0xff] }
 0x300   :  { %v10319_v7 = vsel %vm16602_vm11, %v10318_v46, %v7662_v14  ;;  %v10261_v32 = vsel %vm10226_vm15, %v10260_v22, %v16902_v34  ;;  %vm10230_vm11 = vcmask 982016   ;;  %v10227_v36 = vsel %vm10226_vm15, %v10225_v12, %v16905_v33 }
 0x301   :  { %7893 = vrot.lane.b32.xlu0 %v2366_v13, %s16854_s27  ;;  %v7666_v21 = vpop.permute.xlu1 %7665  ;;  %v10292_v2 = vsel %vm10226_vm15, %v10291_v19, %v12366_v37  ;;  %v2440_v10 = vcombine.high %v2416_v17, %v16743_v49  ;;  %v2441_v4 = vcombine.high %v2423_v0, %v16743_v49 }
 0x302   :  { %v10320_v40 = vsel %vm16601_vm12, %v10319_v7, %v7666_v21  ;;  %vm10228_vm12 = vcmask 949248   ;;  %v16911_v7 = vld [vmem:[#allocation11_spill] sm:$0xff]  ;;  %v2432_v21 = vrot.slane %v2424_v58, %v11557_v48 }
 0x303   :  { %v7670_v61 = vpop.permute.xlu0 %7669  ;;  %7897 = vrot.lane.b32.xlu1 %v2376_v63, %s11207_s2  ;;  %v10262_v26 = vsel %vm10228_vm12, %v10261_v32, %v16904_v24  ;;  %v10229_v42 = vsel %vm10228_vm12, %v10227_v36, %v16907_v31  ;;  %v10293_v14 = vsel %vm10228_vm12, %v10292_v2, %v12368_v38  ;;  %v2451_v3 = vrot.slane %v16911_v7, %v11234_v5 }
 0x304   :  { %v10321_v23 = vsel %vm10222_vm13, %v10320_v40, %v7670_v61  ;;  %v10263_v55 = vsel %vm10230_vm11, %v10262_v26, %v16906_v57  ;;  %v10231_v39 = vsel %vm10230_vm11, %v10229_v42, %v16910_v8  ;;  %v10294_v53 = vsel %vm10230_vm11, %v10293_v14, %v12376_v30 }
 0x305   :  { %7901 = vrot.lane.b32.xlu0 %v2373_v50, %s16649_s30  ;;  %v7674_v16 = vpop.permute.xlu1 %7673  ;;  %v2459_v63 = vcombine.high %v16908_v15, %v16743_v49  ;;  %v2474_v50 = vcombine.low %v2451_v3, %v2466_v25  ;;  %v2444_v30 = vcombine.high %v16911_v7, %v16743_v49  ;;  %v2442_v34 = vcombine.high %v2432_v21, %v16743_v49 }
 0x306   :  { %v10322_v28 = vsel %vm16603_vm14, %v10321_v23, %v7674_v16  ;;  %vm10232_vm14 = vcmask 1014784   ;;  %v2439_v32 = vrot.slane %v2425_v52, %v11557_v48  ;;  %v2475_v54 = vcombine.high %v2451_v3, %v2466_v25 }
 0x307   :  { %v7678_v18 = vpop.permute.xlu0 %7677  ;;  %7905 = vrot.lane.b32.xlu1 %v2377_v1, %s16629_s4  ;;  %v10264_v46 = vsel %vm10232_vm14, %v10263_v55, %v16909_v43  ;;  %v10233_v20 = vsel %vm10232_vm14, %v10231_v39, %v16912_v9  ;;  %v10295_v22 = vsel %vm10232_vm14, %v10294_v53, %v16913_v11  ;;  %v2473_v23 = vrot.slane %v2459_v63, %v11234_v5  ;;  %v16918_v63 = vld [vmem:[#allocation13_spill] sm:$0xff] }
 0x308   :  { %v10323_v35 = vsel %vm10226_vm15, %v10322_v28, %v7678_v18  ;;  %v10971_v38 = vcombine.low %v10233_v20, %v10264_v46  ;;  %v12744_v56 = vrot.slane %v2474_v50, %v11557_v48  ;;  %v2458_v12 = vrot.slane %v2444_v30, %v11234_v5  ;;  %v16914_v28 = vld [vmem:[#allocation84_spill] sm:$0xff] }
 0x309   :  { %7909 = vrot.lane.b32.xlu0 %v2416_v17, %s16837_s28  ;;  %v7682_v13 = vpop.permute.xlu1 %7681  ;;  %v2443_v60 = vcombine.high %v2439_v32, %v16743_v49  ;;  %v2489_v24 = vrot.slane %v2475_v54, %v11557_v48  ;;  %v2532_v18 = vrot.slane %v16914_v28, %v11234_v5  ;;  %v2525_v42 = vcombine.high %v16914_v28, %v16743_v49 }
 0x30a   :  { %v10324_v29 = vsel %vm10228_vm12, %v10323_v35, %v7682_v13  ;;  %v10979_v61 = vrot.slane %v10971_v38, %v11234_v5  ;;  %v2490_v16 = vcombine.low %v2458_v12, %v2473_v23  ;;  %v2506_v26 = vcombine.high %v12744_v56, %v16743_v49  ;;  %v16915_v35 = vld [vmem:[#allocation10_spill] sm:$0xff]  ;;  %v16916_v38 = vld [vmem:[#allocation87_spill] sm:$0xff] }
 0x30b   :  { %v7686_v47 = vpop.permute.xlu0 %7685  ;;  %7913 = vrot.lane.b32.xlu1 %v2440_v10, %s16647_s6  ;;  %v2491_v33 = vcombine.high %v2458_v12, %v2473_v23  ;;  %v2507_v55 = vcombine.high %v2489_v24, %v16743_v49  ;;  %v2517_v58 = vrot.slane %v16915_v35, %v11234_v5  ;;  %v2510_v15 = vcombine.high %v16915_v35, %v16743_v49 }
 0x30c   :  { %v10325_v37 = vsel %vm10230_vm11, %v10324_v29, %v7686_v47  ;;  %v2498_v57 = vrot.slane %v2490_v16, %v11557_v48  ;;  %v2539_v43 = vrot.slane %v2525_v42, %v11234_v5  ;;  %v2598_v53 = vrot.slane %v16916_v38, %v11234_v5 }
 0x30d   :  { %7917 = vrot.lane.b32.xlu0 %v2423_v0, %s16627_s5  ;;  %v7690_v44 = vpop.permute.xlu1 %7689  ;;  %v2540_v0 = vcombine.low %v2517_v58, %v2532_v18  ;;  %v2505_v13 = vrot.slane %v2491_v33, %v11557_v48  ;;  %v2541_v46 = vcombine.high %v2517_v58, %v2532_v18  ;;  %v2524_v8 = vrot.slane %v2510_v15, %v11234_v5 }
 0x30e   :  { %v10326_v6 = vsel %vm10232_vm14, %v10325_v37, %v7690_v44  ;;  %v2508_v10 = vcombine.high %v2498_v57, %v16743_v49  ;;  %v2583_v50 = vrot.slane %v16918_v63, %v11234_v5 }
 0x30f   :  { %v12730_v59 = vpop.permute.xlu0 %7693  ;;  %v10972_v40 = vcombine.low %v10295_v22, %v10326_v6  ;;  %7921 = vrot.lane.b32.xlu1 %v2441_v4, %s16821_s3  ;;  %v2548_v29 = vrot.slane %v2540_v0, %v11557_v48  ;;  %v2509_v47 = vcombine.high %v2505_v13, %v16743_v49  ;;  %v2556_v37 = vcombine.low %v2524_v8, %v2539_v43 }
 0x310   :  { %v2555_v3 = vrot.slane %v2541_v46, %v11557_v48  ;;  %v2557_v20 = vcombine.high %v2524_v8, %v2539_v43  ;;  %v2591_v22 = vcombine.high %v16916_v38, %v16743_v49  ;;  %v2606_v6 = vcombine.low %v2583_v50, %v2598_v53 }
 0x311   :  { %7925 = vrot.lane.b32.xlu0 %v2432_v21, %s16624_s7  ;;  %v10986_v62 = vrot.slane %v10972_v40, %v11234_v5  ;;  %v12738_v51 = vpop.permute.xlu1 %7697  ;;  %v2572_v52 = vcombine.high %v2548_v29, %v16743_v49  ;;  %v2564_v4 = vrot.slane %v2556_v37, %v11557_v48  ;;  %v2607_v23 = vcombine.high %v2583_v50, %v2598_v53 }
 0x312   :  { %v2573_v21 = vcombine.high %v2555_v3, %v16743_v49  ;;  %v2571_v30 = vrot.slane %v2557_v20, %v11557_v48 }
 0x313   :  { %v12746_v27 = vpop.permute.xlu0 %7701  ;;  %v10987_v45 = vcombine.low %v10979_v61, %v10986_v62  ;;  %7929 = vrot.lane.b32.xlu1 %v2442_v34, %s16644_s10  ;;  %v2574_v61 = vcombine.high %v2564_v4, %v16743_v49  ;;  %v2576_v62 = vcombine.high %v16918_v63, %v16743_v49  ;;  %v2621_v28 = vrot.slane %v2607_v23, %v11557_v48 }
 0x314   :  { %v2575_v12 = vcombine.high %v2571_v30, %v16743_v49 }
 0x315   :  { %7933 = vrot.lane.b32.xlu0 %v2439_v32, %s16800_s8  ;;  %11079 = vst [vmem:[#allocation5] sm:$0xff] %v10987_v45  ;;  %v12751_v17 = vpop.permute.xlu1 %7705  ;;  %v2605_v32 = vrot.slane %v2591_v22, %v11234_v5  ;;  %v2614_v45 = vrot.slane %v2606_v6, %v11557_v48  ;;  %v2639_v0 = vcombine.high %v2621_v28, %v16743_v49 }
 0x317   :  { %v12754_v1 = vpop.permute.xlu0 %7709  ;;  %7937 = vrot.lane.b32.xlu1 %v2443_v60, %s16622_s9  ;;  %v2590_v60 = vrot.slane %v2576_v62, %v11234_v5  ;;  %v2638_v18 = vcombine.high %v2614_v45, %v16743_v49 }
 0x319   :  { %7941 = vrot.lane.b32.xlu0 %v2506_v26, %s11187_s11  ;;  %v12761_v19 = vpop.permute.xlu1 %7713  ;;  %v2623_v35 = vcombine.high %v2590_v60, %v2605_v32 }
 0x31b   :  { %v12765_v36 = vpop.permute.xlu0 %7717  ;;  %7945 = vrot.lane.b32.xlu1 %v2489_v24, %s16642_s0  ;;  %v2622_v24 = vcombine.low %v2590_v60, %v2605_v32 }
 0x31d   :  { %7949 = vrot.lane.b32.xlu0 %v2507_v55, %s16620_s13  ;;  %v12773_v31 = vpop.permute.xlu1 %7721  ;;  %v2630_v42 = vrot.slane %v2622_v24, %v11557_v48  ;;  %v16939_v24 = vld [vmem:[#allocation15_spill] sm:$0xff] }
 0x31f   :  { %v12777_v2 = vpop.permute.xlu0 %7725  ;;  %7953 = vrot.lane.b32.xlu1 %v2498_v57, %s11188_s12  ;;  %v16927_v57 = vld [vmem:[#allocation86_spill] sm:$0xff]  ;;  %v2640_v8 = vcombine.high %v2630_v42, %v16743_v49 }
 0x320   :  { %v2664_v55 = vrot.slane %v16927_v57, %v11234_v5  ;;  %v2657_v43 = vcombine.high %v16927_v57, %v16743_v49 }
 0x321   :  { %7957 = vrot.lane.b32.xlu0 %v2508_v10, %s16640_s15  ;;  %v12785_v25 = vpop.permute.xlu1 %7729 }
 0x323   :  { %v12788_v14 = vpop.permute.xlu0 %7733  ;;  %7961 = vrot.lane.b32.xlu1 %v2505_v13, %s16614_s14  ;;  %v16929_v13 = vld [vmem:[#allocation12_spill] sm:$0xff] }
 0x324   :  { %v2649_v10 = vrot.slane %v16929_v13, %v11234_v5  ;;  %v2642_v37 = vcombine.high %v16929_v13, %v16743_v49  ;;  %v2708_v13 = vcombine.high %v16939_v24, %v16743_v49 }
 0x325   :  { %7965 = vrot.lane.b32.xlu0 %v2509_v47, %s16609_s17  ;;  %v12795_v39 = vpop.permute.xlu1 %7737  ;;  %v2637_v47 = vrot.slane %v2623_v35, %v11557_v48 }
 0x326   :  { %v2672_v46 = vcombine.low %v2649_v10, %v2664_v55  ;;  %v2673_v20 = vcombine.high %v2649_v10, %v2664_v55 }
 0x327   :  { %v12797_v7 = vpop.permute.xlu0 %7741  ;;  %7969 = vrot.lane.b32.xlu1 %v2548_v29, %s11192_s16 }
 0x328   :  { %v2680_v53 = vrot.slane %v2672_v46, %v11557_v48  ;;  %v2687_v6 = vrot.slane %v2673_v20, %v11557_v48 }
 0x329   :  { %7973 = vrot.lane.b32.xlu0 %v2572_v52, %s16638_s19  ;;  %v12803_v9 = vpop.permute.xlu1 %7745  ;;  %v2671_v52 = vrot.slane %v2657_v43, %v11234_v5 }
 0x32a   :  { %v2705_v60 = vcombine.high %v2687_v6, %v16743_v49 }
 0x32b   :  { %v12807_v44 = vpop.permute.xlu0 %7749  ;;  %7977 = vrot.lane.b32.xlu1 %v2555_v3, %s16606_s18 }
 0x32c   :  { %16917 = vst [vmem:[#allocation156_spill] sm:$0xff] %v12807_v44 }
 0x32d   :  { %7981 = vrot.lane.b32.xlu0 %v2573_v21, %s11197_s21  ;;  %v12815_v11 = vpop.permute.xlu1 %7753  ;;  %v2656_v21 = vrot.slane %v2642_v37, %v11234_v5 }
 0x32e   :  { %16919 = vst [vmem:[#allocation176_spill] sm:$0xff] %v12815_v11 }
 0x32f   :  { %v12819_v40 = vpop.permute.xlu0 %7757  ;;  %7985 = vrot.lane.b32.xlu1 %v2564_v4, %s16636_s20  ;;  %v2641_v4 = vcombine.high %v2637_v47, %v16743_v49  ;;  %v2688_v50 = vcombine.low %v2656_v21, %v2671_v52  ;;  %v2689_v23 = vcombine.high %v2656_v21, %v2671_v52  ;;  %v2722_v52 = vrot.slane %v2708_v13, %v11234_v5 }
 0x330   :  { %16920 = vst [vmem:[#allocation158_spill] sm:$0xff] %v12819_v40 }
 0x331   :  { %7989 = vrot.lane.b32.xlu0 %v2574_v61, %s16604_s23  ;;  %v12827_v34 = vpop.permute.xlu1 %7761  ;;  %s16925_s23 = smov 64   ;;  %v16936_v61 = vld [vmem:[#allocation89_spill] sm:$0xff] }
 0x332   :  { %16921 = vst [vmem:[#allocation195_spill] sm:$0xff] %v12827_v34  ;;  %v2730_v62 = vrot.slane %v16936_v61, %v11234_v5 }
 0x333   :  { %v12830_v54 = vpop.permute.xlu0 %7765  ;;  %7993 = vrot.lane.b32.xlu1 %v2571_v30, %s11198_s22  ;;  %v2704_v30 = vcombine.high %v2680_v53, %v16743_v49 }
 0x334   :  { %16922 = vst [vmem:[#allocation177_spill] sm:$0xff] %v12830_v54 }
 0x335   :  { %7997 = vrot.lane.b32.xlu0 %v2575_v12, %s16633_s25  ;;  %v12837_v16 = vpop.permute.xlu1 %7769  ;;  %v2696_v12 = vrot.slane %v2688_v50, %v11557_v48 }
 0x336   :  { %16923 = vst [vmem:[#allocation196_spill] sm:$0xff] %v12837_v16 }
 0x337   :  { %v12839_v26 = vpop.permute.xlu0 %7773  ;;  %8001 = vrot.lane.b32.xlu1 %v2614_v45, %s16925_s23 }
 0x338   :  { %16924 = vst [vmem:[#allocation157_spill] sm:$0xff] %v12839_v26 }
 0x339   :  { %8005 = vrot.lane.b32.xlu0 %v2638_v18, %s16888_s24  ;;  %v12845_v33 = vpop.permute.xlu1 %7777  ;;  %v2723_v18 = vcombine.high %v16936_v61, %v16743_v49 }
 0x33a   :  { %16926 = vst [vmem:[#allocation178_spill] sm:$0xff] %v12845_v33 }
 0x33b   :  { %v12849_v58 = vpop.permute.xlu0 %7781  ;;  %8009 = vrot.lane.b32.xlu1 %v2621_v28, %s11202_s26  ;;  %v2715_v28 = vrot.slane %v16939_v24, %v11234_v5  ;;  %v2737_v10 = vrot.slane %v2723_v18, %v11234_v5  ;;  %v16941_v24 = vld [vmem:[#allocation14_spill] sm:$0xff] }
 0x33c   :  { %16928 = vst [vmem:[#allocation9_spill] sm:$0xff] %v12849_v58 }
 0x33d   :  { %8013 = vrot.lane.b32.xlu0 %v2639_v0, %s16631_s29  ;;  %v12857_v15 = vpop.permute.xlu1 %7785  ;;  %v2738_v57 = vcombine.low %v2715_v28, %v2730_v62  ;;  %v2706_v0 = vcombine.high %v2696_v12, %v16743_v49  ;;  %v2739_v43 = vcombine.high %v2715_v28, %v2730_v62  ;;  %v2755_v61 = vcombine.high %v2722_v52, %v2737_v10 }
 0x33e   :  { %16930 = vst [vmem:[#allocation83_spill] sm:$0xff] %v12857_v15  ;;  %v2781_v28 = vrot.slane %v16941_v24, %v11234_v5 }
 0x33f   :  { %v12861_v29 = vpop.permute.xlu0 %7789  ;;  %8017 = vrot.lane.b32.xlu1 %v2630_v42, %s16854_s27  ;;  %v2703_v42 = vrot.slane %v2689_v23, %v11557_v48  ;;  %v12913_v46 = vrot.slane %v2738_v57, %v11557_v48  ;;  %v2753_v20 = vrot.slane %v2739_v43, %v11557_v48  ;;  %v2769_v13 = vrot.slane %v2755_v61, %v11557_v48 }
 0x340   :  { %16931 = vst [vmem:[#allocation160_spill] sm:$0xff] %v12861_v29  ;;  %v2774_v43 = vcombine.high %v16941_v24, %v16743_v49 }
 0x341   :  { %8021 = vrot.lane.b32.xlu0 %v2640_v8, %s11207_s2  ;;  %v12869_v3 = vpop.permute.xlu1 %7793  ;;  %v2707_v37 = vcombine.high %v2703_v42, %v16743_v49  ;;  %v2770_v21 = vcombine.high %v12913_v46, %v16743_v49  ;;  %v2771_v23 = vcombine.high %v2753_v20, %v16743_v49 }
 0x342   :  { %16932 = vst [vmem:[#allocation197_spill] sm:$0xff] %v12869_v3  ;;  %v2788_v61 = vrot.slane %v2774_v43, %v11234_v5 }
 0x343   :  { %v12872_v38 = vpop.permute.xlu0 %7797  ;;  %8025 = vrot.lane.b32.xlu1 %v2637_v47, %s16649_s30 }
 0x344   :  { %16933 = vst [vmem:[#allocation179_spill] sm:$0xff] %v12872_v38 }
 0x345   :  { %8029 = vrot.lane.b32.xlu0 %v2641_v4, %s16629_s4  ;;  %v12879_v63 = vpop.permute.xlu1 %7801 }
 0x346   :  { %16934 = vst [vmem:[#allocation198_spill] sm:$0xff] %v12879_v63 }
 0x347   :  { %v12881_v22 = vpop.permute.xlu0 %7805  ;;  %8033 = vrot.lane.b32.xlu1 %v2680_v53, %s16837_s28  ;;  %v2754_v53 = vcombine.low %v2722_v52, %v2737_v10 }
 0x348   :  { %16935 = vst [vmem:[#allocation159_spill] sm:$0xff] %v12881_v22 }
 0x349   :  { %8037 = vrot.lane.b32.xlu0 %v2704_v30, %s16647_s6  ;;  %v12889_v32 = vpop.permute.xlu1 %7809 }
 0x34a   :  { %16937 = vst [vmem:[#allocation180_spill] sm:$0xff] %v12889_v32 }
 0x34b   :  { %v12891_v45 = vpop.permute.xlu0 %7813  ;;  %8041 = vrot.lane.b32.xlu1 %v2687_v6, %s16627_s5  ;;  %v16940_v6 = vld [vmem:[#allocation88_spill] sm:$0xff] }
 0x34c   :  { %16938 = vst [vmem:[#allocation162_spill] sm:$0xff] %v12891_v45  ;;  %v2796_v30 = vrot.slane %v16940_v6, %v11234_v5  ;;  %v2789_v18 = vcombine.high %v16940_v6, %v16743_v49 }
 0x34d   :  { %8045 = vrot.lane.b32.xlu0 %v2705_v60, %s16821_s3  ;;  %v12901_v55 = vpop.permute.xlu1 %7817 }
 0x34e   :  { %v2804_v57 = vcombine.low %v2781_v28, %v2796_v30  ;;  %v2805_v52 = vcombine.high %v2781_v28, %v2796_v30 }
 0x34f   :  { %v12903_v35 = vpop.permute.xlu0 %7821  ;;  %8049 = vrot.lane.b32.xlu1 %v2696_v12, %s16624_s7  ;;  %v2762_v12 = vrot.slane %v2754_v53, %v11557_v48 }
 0x351   :  { %8053 = vrot.lane.b32.xlu0 %v2706_v0, %s16644_s10  ;;  %v12915_v47 = vpop.permute.xlu1 %7825  ;;  %v2772_v0 = vcombine.high %v2762_v12, %v16743_v49 }
 0x353   :  { %v12917_v8 = vpop.permute.xlu0 %7829  ;;  %8057 = vrot.lane.b32.xlu1 %v2703_v42, %s16800_s8 }
 0x355   :  { %8061 = vrot.lane.b32.xlu0 %v2707_v37, %s16622_s9  ;;  %v12924_v4 = vpop.permute.xlu1 %7833  ;;  %v2803_v37 = vrot.slane %v2789_v18, %v11234_v5 }
 0x357   :  { %v12928_v50 = vpop.permute.xlu0 %7837  ;;  %8065 = vrot.lane.b32.xlu1 %v2770_v21, %s11187_s11  ;;  %v2773_v21 = vcombine.high %v2769_v13, %v16743_v49  ;;  %v2821_v18 = vcombine.high %v2788_v61, %v2803_v37 }
 0x359   :  { %8069 = vrot.lane.b32.xlu0 %v2753_v20, %s16642_s0  ;;  %v12934_v62 = vpop.permute.xlu1 %7841  ;;  %v2812_v20 = vrot.slane %v2804_v57, %v11557_v48  ;;  %v16942_v57 = vld [vmem:[#allocation91_spill] sm:$0xff] }
 0x35b   :  { %v12938_v60 = vpop.permute.xlu0 %7845  ;;  %8073 = vrot.lane.b32.xlu1 %v2771_v23, %s16620_s13  ;;  %v2819_v23 = vrot.slane %v2805_v52, %v11557_v48  ;;  %v2836_v30 = vcombine.high %v2812_v20, %v16743_v49 }
 0x35d   :  { %8077 = vrot.lane.b32.xlu0 %v2762_v12, %s11188_s12  ;;  %v12946_v42 = vpop.permute.xlu1 %7849  ;;  %v2820_v12 = vcombine.low %v2788_v61, %v2803_v37  ;;  %v2837_v43 = vcombine.high %v2819_v23, %v16743_v49  ;;  %v2855_v37 = vcombine.high %v16942_v57, %v16743_v49 }
 0x35f   :  { %v12950_v10 = vpop.permute.xlu0 %7853  ;;  %8081 = vrot.lane.b32.xlu1 %v2772_v0, %s16640_s15  ;;  %v2862_v0 = vrot.slane %v16942_v57, %v11234_v5  ;;  %v2828_v52 = vrot.slane %v2820_v12, %v11557_v48 }
 0x361   :  { %8085 = vrot.lane.b32.xlu0 %v2769_v13, %s16614_s14  ;;  %v12958_v53 = vpop.permute.xlu1 %7857  ;;  %v2838_v32 = vcombine.high %v2828_v52, %v16743_v49 }
 0x363   :  { %v12961_v6 = vpop.permute.xlu0 %7861  ;;  %8089 = vrot.lane.b32.xlu1 %v2773_v21, %s16609_s17 }
 0x365   :  { %8093 = vrot.lane.b32.xlu0 %v2812_v20, %s11192_s16  ;;  %v12967_v24 = vpop.permute.xlu1 %7865  ;;  %v16944_v20 = vld [vmem:[#allocation17_spill] sm:$0xff] }
 0x366   :  { %v2847_v45 = vrot.slane %v16944_v20, %v11234_v5  ;;  %v2840_v22 = vcombine.high %v16944_v20, %v16743_v49 }
 0x367   :  { %v12970_v28 = vpop.permute.xlu0 %7869  ;;  %8097 = vrot.lane.b32.xlu1 %v2836_v30, %s16638_s19 }
 0x368   :  { %v2870_v61 = vcombine.low %v2847_v45, %v2862_v0  ;;  %v2871_v63 = vcombine.high %v2847_v45, %v2862_v0 }
 0x369   :  { %8101 = vrot.lane.b32.xlu0 %v2819_v23, %s16606_s18  ;;  %v12976_v13 = vpop.permute.xlu1 %7873  ;;  %v2835_v23 = vrot.slane %v2821_v18, %v11557_v48  ;;  %s16947_s18 = smov 52   ;;  %v2854_v18 = vrot.slane %v2840_v22, %v11234_v5 }
 0x36a   :  { %v2878_v57 = vrot.slane %v2870_v61, %v11557_v48 }
 0x36b   :  { %v12980_v21 = vpop.permute.xlu0 %7877  ;;  %8105 = vrot.lane.b32.xlu1 %v2837_v43, %s11197_s21  ;;  %v2869_v43 = vrot.slane %v2855_v37, %v11234_v5  ;;  %v16952_v37 = vld [vmem:[#allocation90_spill] sm:$0xff] }
 0x36c   :  { %16943 = vst [vmem:[#allocation199_spill] sm:$0xff] %v12980_v21  ;;  %v2902_v45 = vcombine.high %v2878_v57, %v16743_v49  ;;  %v2928_v22 = vrot.slane %v16952_v37, %v11234_v5 }
 0x36d   :  { %8109 = vrot.lane.b32.xlu0 %v2828_v52, %s16636_s20  ;;  %v12988_v30 = vpop.permute.xlu1 %7881  ;;  %v2839_v52 = vcombine.high %v2835_v23, %v16743_v49  ;;  %v2886_v20 = vcombine.low %v2854_v18, %v2869_v43  ;;  %v2887_v61 = vcombine.high %v2854_v18, %v2869_v43 }
 0x36e   :  { %16945 = vst [vmem:[#allocation181_spill] sm:$0xff] %v12988_v30 }
 0x36f   :  { %v12992_v12 = vpop.permute.xlu0 %7885  ;;  %8113 = vrot.lane.b32.xlu1 %v2838_v32, %s16947_s18  ;;  %v2885_v32 = vrot.slane %v2871_v63, %v11557_v48  ;;  %v2894_v63 = vrot.slane %v2886_v20, %v11557_v48 }
 0x370   :  { %16946 = vst [vmem:[#allocation200_spill] sm:$0xff] %v12992_v12 }
 0x371   :  { %8117 = vrot.lane.b32.xlu0 %v2835_v23, %s11198_s22  ;;  %v13000_v38 = vpop.permute.xlu1 %7889  ;;  %v2904_v18 = vcombine.high %v2894_v63, %v16743_v49 }
 0x372   :  { %16948 = vst [vmem:[#allocation161_spill] sm:$0xff] %v13000_v38 }
 0x373   :  { %v13003_v3 = vpop.permute.xlu0 %7893  ;;  %8121 = vrot.lane.b32.xlu1 %v2839_v52, %s16633_s25  ;;  %v2903_v52 = vcombine.high %v2885_v32, %v16743_v49 }
 0x374   :  { %16949 = vst [vmem:[#allocation182_spill] sm:$0xff] %v13003_v3 }
 0x375   :  { %8125 = vrot.lane.b32.xlu0 %v2878_v57, %s16925_s23  ;;  %v13009_v29 = vpop.permute.xlu1 %7897  ;;  %v16955_v57 = vld [vmem:[#allocation16_spill] sm:$0xff] }
 0x376   :  { %16950 = vst [vmem:[#allocation164_spill] sm:$0xff] %v13009_v29  ;;  %v2913_v58 = vrot.slane %v16955_v57, %v11234_v5 }
 0x377   :  { %v13012_v0 = vpop.permute.xlu0 %7901  ;;  %8129 = vrot.lane.b32.xlu1 %v2902_v45, %s16888_s24  ;;  %v2921_v45 = vcombine.high %v16952_v37, %v16743_v49 }
 0x378   :  { %16951 = vst [vmem:[#allocation183_spill] sm:$0xff] %v13012_v0  ;;  %v2936_v33 = vcombine.low %v2913_v58, %v2928_v22 }
 0x379   :  { %8133 = vrot.lane.b32.xlu0 %v2885_v32, %s11202_s26  ;;  %v13018_v23 = vpop.permute.xlu1 %7905  ;;  %v2901_v32 = vrot.slane %v2887_v61, %v11557_v48 }
 0x37a   :  { %16953 = vst [vmem:[#allocation163_spill] sm:$0xff] %v13018_v23  ;;  %v2937_v23 = vcombine.high %v2913_v58, %v2928_v22  ;;  %v2944_v37 = vrot.slane %v2936_v33, %v11557_v48  ;;  %v16961_v33 = vld [vmem:[#allocation93_spill] sm:$0xff] }
 0x37b   :  { %v13022_v15 = vpop.permute.xlu0 %7909  ;;  %8137 = vrot.lane.b32.xlu1 %v2903_v52, %s16631_s29  ;;  %v2935_v52 = vrot.slane %v2921_v45, %v11234_v5  ;;  %v2994_v22 = vrot.slane %v16961_v33, %v11234_v5 }
 0x37c   :  { %16954 = vst [vmem:[#allocation184_spill] sm:$0xff] %v13022_v15  ;;  %v2906_v15 = vcombine.high %v16955_v57, %v16743_v49  ;;  %v2951_v57 = vrot.slane %v2937_v23, %v11557_v48  ;;  %v2968_v58 = vcombine.high %v2944_v37, %v16743_v49 }
 0x37d   :  { %8141 = vrot.lane.b32.xlu0 %v2894_v63, %s16854_s27  ;;  %v13030_v43 = vpop.permute.xlu1 %7913  ;;  %v2905_v63 = vcombine.high %v2901_v32, %v16743_v49 }
 0x37e   :  { %16956 = vst [vmem:[#allocation166_spill] sm:$0xff] %v13030_v43  ;;  %v2920_v61 = vrot.slane %v2906_v15, %v11234_v5  ;;  %v16963_v15 = vld [vmem:[#allocation19_spill] sm:$0xff]  ;;  %v2969_v23 = vcombine.high %v2951_v57, %v16743_v49 }
 0x37f   :  { %v13034_v20 = vpop.permute.xlu0 %7917  ;;  %8145 = vrot.lane.b32.xlu1 %v2904_v18, %s11207_s2 }
 0x380   :  { %16957 = vst [vmem:[#allocation201_spill] sm:$0xff] %v13034_v20  ;;  %v2952_v18 = vcombine.low %v2920_v61, %v2935_v52 }
 0x381   :  { %8149 = vrot.lane.b32.xlu0 %v2901_v32, %s16649_s30  ;;  %v13042_v26 = vpop.permute.xlu1 %7921  ;;  %v2979_v32 = vrot.slane %v16963_v15, %v11234_v5 }
 0x382   :  { %16958 = vst [vmem:[#allocation185_spill] sm:$0xff] %v13042_v26 }
 0x383   :  { %v13045_v43 = vpop.permute.xlu0 %7925  ;;  %8153 = vrot.lane.b32.xlu1 %v2905_v63, %s16629_s4  ;;  %v2953_v63 = vcombine.high %v2920_v61, %v2935_v52  ;;  %v3002_v26 = vcombine.low %v2979_v32, %v2994_v22 }
 0x384   :  { %16959 = vst [vmem:[#allocation202_spill] sm:$0xff] %v13045_v43 }
 0x385   :  { %8157 = vrot.lane.b32.xlu0 %v2944_v37, %s16837_s28  ;;  %v13051_v20 = vpop.permute.xlu1 %7929  ;;  %v2987_v37 = vcombine.high %v16961_v33, %v16743_v49  ;;  %v13080_v33 = vrot.slane %v3002_v26, %v11557_v48 }
 0x386   :  { %16960 = vst [vmem:[#allocation165_spill] sm:$0xff] %v13051_v20  ;;  %v2960_v20 = vrot.slane %v2952_v18, %v11557_v48 }
 0x387   :  { %v13056_v45 = vpop.permute.xlu0 %7933  ;;  %8161 = vrot.lane.b32.xlu1 %v2968_v58, %s16647_s6  ;;  %v2972_v58 = vcombine.high %v16963_v15, %v16743_v49  ;;  %v3001_v18 = vrot.slane %v2987_v37, %v11234_v5  ;;  %16965 = vst [vmem:[#allocation82_spill] sm:$0xff] %v13080_v33  ;;  %v3034_v26 = vcombine.high %v13080_v33, %v16743_v49  ;;  %v16966_v37 = vld [vmem:[#allocation92_spill] sm:$0xff] }
 0x388   :  { %16962 = vst [vmem:[#allocation186_spill] sm:$0xff] %v13056_v45  ;;  %v2970_v61 = vcombine.high %v2960_v20, %v16743_v49 }
 0x389   :  { %8165 = vrot.lane.b32.xlu0 %v2951_v57, %s16627_s5  ;;  %v13062_v43 = vpop.permute.xlu1 %7937  ;;  %v2967_v57 = vrot.slane %v2953_v63, %v11557_v48  ;;  %v2986_v15 = vrot.slane %v2972_v58, %v11234_v5  ;;  %v3060_v58 = vrot.slane %v16966_v37, %v11234_v5 }
 0x38a   :  { %16964 = vst [vmem:[#allocation8_spill] sm:$0xff] %v13062_v43  ;;  %v3003_v43 = vcombine.high %v2979_v32, %v2994_v22 }
 0x38b   :  { %v13068_v0 = vpop.permute.xlu0 %7941  ;;  %8169 = vrot.lane.b32.xlu1 %v2969_v23, %s16821_s3  ;;  %v3018_v16 = vcombine.low %v2986_v15, %v3001_v18 }
 0x38c   :  { %v3017_v22 = vrot.slane %v3003_v43, %v11557_v48  ;;  %v16967_v43 = vld [vmem:[#allocation18_spill] sm:$0xff] }
 0x38d   :  { %8173 = vrot.lane.b32.xlu0 %v2960_v20, %s16624_s7  ;;  %v13074_v52 = vpop.permute.xlu1 %7945  ;;  %v2971_v20 = vcombine.high %v2967_v57, %v16743_v49  ;;  %v3045_v33 = vrot.slane %v16967_v43, %v11234_v5 }
 0x38e   :  { %v3035_v54 = vcombine.high %v3017_v22, %v16743_v49 }
 0x38f   :  { %v13082_v45 = vpop.permute.xlu0 %7949  ;;  %8177 = vrot.lane.b32.xlu1 %v2970_v61, %s16644_s10  ;;  %v3019_v61 = vcombine.high %v2986_v15, %v3001_v18  ;;  %v3068_v3 = vcombine.low %v3045_v33, %v3060_v58  ;;  %v3069_v38 = vcombine.high %v3045_v33, %v3060_v58 }
 0x391   :  { %8181 = vrot.lane.b32.xlu0 %v2967_v57, %s16800_s8  ;;  %v13087_v23 = vpop.permute.xlu1 %7953  ;;  %v3026_v57 = vrot.slane %v3018_v16, %v11557_v48  ;;  %v3033_v15 = vrot.slane %v3019_v61, %v11557_v48  ;;  %v3076_v40 = vrot.slane %v3068_v3, %v11557_v48 }
 0x393   :  { %v13090_v63 = vpop.permute.xlu0 %7957  ;;  %8185 = vrot.lane.b32.xlu1 %v2971_v20, %s16622_s9  ;;  %v3036_v16 = vcombine.high %v3026_v57, %v16743_v49  ;;  %v3037_v61 = vcombine.high %v3033_v15, %v16743_v49  ;;  %v3100_v33 = vcombine.high %v3076_v40, %v16743_v49 }
 0x395   :  { %8189 = vrot.lane.b32.xlu0 %v3034_v26, %s11187_s11  ;;  %v13097_v32 = vpop.permute.xlu1 %7961  ;;  %v3053_v26 = vcombine.high %v16966_v37, %v16743_v49 }
 0x397   :  { %v13101_v29 = vpop.permute.xlu0 %7965  ;;  %8193 = vrot.lane.b32.xlu1 %v3017_v22, %s16642_s0  ;;  %v3038_v22 = vcombine.high %v16967_v43, %v16743_v49  ;;  %v3067_v34 = vrot.slane %v3053_v26, %v11234_v5  ;;  %v3083_v26 = vrot.slane %v3069_v38, %v11557_v48  ;;  %v16972_v38 = vld [vmem:[#allocation21_spill] sm:$0xff] }
 0x398   :  { %v3111_v44 = vrot.slane %v16972_v38, %v11234_v5 }
 0x399   :  { %8197 = vrot.lane.b32.xlu0 %v3035_v54, %s16620_s13  ;;  %v13109_v20 = vpop.permute.xlu1 %7969  ;;  %v3101_v30 = vcombine.high %v3083_v26, %v16743_v49 }
 0x39b   :  { %v13113_v18 = vpop.permute.xlu0 %7973  ;;  %8201 = vrot.lane.b32.xlu1 %v3026_v57, %s11188_s12  ;;  %v3052_v57 = vrot.slane %v3038_v22, %v11234_v5 }
 0x39d   :  { %8205 = vrot.lane.b32.xlu0 %v3036_v16, %s16640_s15  ;;  %v13121_v54 = vpop.permute.xlu1 %7977  ;;  %v3084_v16 = vcombine.low %v3052_v57, %v3067_v34  ;;  %v3085_v58 = vcombine.high %v3052_v57, %v3067_v34 }
 0x39f   :  { %v13124_v37 = vpop.permute.xlu0 %7981  ;;  %8209 = vrot.lane.b32.xlu1 %v3033_v15, %s16614_s14  ;;  %v16969_v15 = vld [vmem:[#allocation95_spill] sm:$0xff]  ;;  %v3092_v11 = vrot.slane %v3084_v16, %v11557_v48 }
 0x3a0   :  { %v3126_v22 = vrot.slane %v16969_v15, %v11234_v5  ;;  %v3119_v34 = vcombine.high %v16969_v15, %v16743_v49 }
 0x3a1   :  { %8213 = vrot.lane.b32.xlu0 %v3037_v61, %s16609_s17  ;;  %v13131_v43 = vpop.permute.xlu1 %7985  ;;  %s16971_s17 = smov 40   ;;  %v3102_v16 = vcombine.high %v3092_v11, %v16743_v49 }
 0x3a2   :  { %v3134_v57 = vcombine.low %v3111_v44, %v3126_v22 }
 0x3a3   :  { %v13133_v12 = vpop.permute.xlu0 %7989  ;;  %8217 = vrot.lane.b32.xlu1 %v3076_v40, %s11192_s16 }
 0x3a5   :  { %8221 = vrot.lane.b32.xlu0 %v3100_v33, %s16638_s19  ;;  %v13139_v3 = vpop.permute.xlu1 %7993 }
 0x3a6   :  { %16968 = vst [vmem:[#allocation168_spill] sm:$0xff] %v13139_v3  ;;  %v3135_v3 = vcombine.high %v3111_v44, %v3126_v22 }
 0x3a7   :  { %v13143_v61 = vpop.permute.xlu0 %7997  ;;  %8225 = vrot.lane.b32.xlu1 %v3083_v26, %s16971_s17  ;;  %v3104_v26 = vcombine.high %v16972_v38, %v16743_v49 }
 0x3a8   :  { %16970 = vst [vmem:[#allocation203_spill] sm:$0xff] %v13143_v61  ;;  %v3099_v61 = vrot.slane %v3085_v58, %v11557_v48 }
 0x3a9   :  { %8229 = vrot.lane.b32.xlu0 %v3101_v30, %s11197_s21  ;;  %v13151_v40 = vpop.permute.xlu1 %8001 }
 0x3aa   :  { %16973 = vst [vmem:[#allocation187_spill] sm:$0xff] %v13151_v40  ;;  %v3133_v40 = vrot.slane %v3119_v34, %v11234_v5  ;;  %v3103_v58 = vcombine.high %v3099_v61, %v16743_v49  ;;  %v3149_v34 = vrot.slane %v3135_v3, %v11557_v48  ;;  %v16982_v3 = vld [vmem:[#allocation20_spill] sm:$0xff] }
 0x3ab   :  { %v13155_v33 = vpop.permute.xlu0 %8005  ;;  %8233 = vrot.lane.b32.xlu1 %v3092_v11, %s16636_s20  ;;  %v3118_v11 = vrot.slane %v3104_v26, %v11234_v5 }
 0x3ac   :  { %16974 = vst [vmem:[#allocation204_spill] sm:$0xff] %v13155_v33  ;;  %v3142_v33 = vrot.slane %v3134_v57, %v11557_v48 }
 0x3ad   :  { %8237 = vrot.lane.b32.xlu0 %v3102_v16, %s16947_s18  ;;  %v13163_v30 = vpop.permute.xlu1 %8009  ;;  %v3150_v16 = vcombine.low %v3118_v11, %v3133_v40  ;;  %v3151_v26 = vcombine.high %v3118_v11, %v3133_v40 }
 0x3ae   :  { %16975 = vst [vmem:[#allocation167_spill] sm:$0xff] %v13163_v30  ;;  %v3166_v44 = vcombine.high %v3142_v33, %v16743_v49 }
 0x3af   :  { %v13166_v15 = vpop.permute.xlu0 %8013  ;;  %8241 = vrot.lane.b32.xlu1 %v3099_v61, %s11198_s22  ;;  %v16980_v61 = vld [vmem:[#allocation94_spill] sm:$0xff]  ;;  %v3165_v11 = vrot.slane %v3151_v26, %v11557_v48 }
 0x3b0   :  { %16976 = vst [vmem:[#allocation188_spill] sm:$0xff] %v13166_v15  ;;  %v3192_v57 = vrot.slane %v16980_v61, %v11234_v5  ;;  %v3177_v15 = vrot.slane %v16982_v3, %v11234_v5 }
 0x3b1   :  { %8245 = vrot.lane.b32.xlu0 %v3103_v58, %s16633_s25  ;;  %v13173_v38 = vpop.permute.xlu1 %8017  ;;  %v3169_v26 = vcombine.high %v3165_v11, %v16743_v49 }
 0x3b2   :  { %16977 = vst [vmem:[#allocation170_spill] sm:$0xff] %v13173_v38  ;;  %v3158_v38 = vrot.slane %v3150_v16, %v11557_v48 }
 0x3b3   :  { %v13175_v21 = vpop.permute.xlu0 %8021  ;;  %8249 = vrot.lane.b32.xlu1 %v3142_v33, %s16925_s23 }
 0x3b4   :  { %16978 = vst [vmem:[#allocation205_spill] sm:$0xff] %v13175_v21  ;;  %v3167_v21 = vcombine.high %v3149_v34, %v16743_v49  ;;  %v3168_v16 = vcombine.high %v3158_v38, %v16743_v49 }
 0x3b5   :  { %8253 = vrot.lane.b32.xlu0 %v3166_v44, %s16888_s24  ;;  %v13181_v22 = vpop.permute.xlu1 %8025  ;;  %v3185_v44 = vcombine.high %v16980_v61, %v16743_v49 }
 0x3b6   :  { %16979 = vst [vmem:[#allocation189_spill] sm:$0xff] %v13181_v22  ;;  %v3200_v22 = vcombine.low %v3177_v15, %v3192_v57 }
 0x3b7   :  { %v13185_v58 = vpop.permute.xlu0 %8029  ;;  %8257 = vrot.lane.b32.xlu1 %v3149_v34, %s11202_s26  ;;  %v3170_v34 = vcombine.high %v16982_v3, %v16743_v49 }
 0x3b8   :  { %16981 = vst [vmem:[#allocation206_spill] sm:$0xff] %v13185_v58  ;;  %v3201_v58 = vcombine.high %v3177_v15, %v3192_v57  ;;  %v16988_v57 = vld [vmem:[#allocation97_spill] sm:$0xff] }
 0x3b9   :  { %8261 = vrot.lane.b32.xlu0 %v3167_v21, %s16631_s29  ;;  %v13193_v33 = vpop.permute.xlu1 %8033 }
 0x3ba   :  { %16983 = vst [vmem:[#allocation169_spill] sm:$0xff] %v13193_v33  ;;  %v3199_v33 = vrot.slane %v3185_v44, %v11234_v5  ;;  %v3215_v44 = vrot.slane %v3201_v58, %v11557_v48 }
 0x3bb   :  { %v13197_v40 = vpop.permute.xlu0 %8037  ;;  %8265 = vrot.lane.b32.xlu1 %v3158_v38, %s16854_s27  ;;  %v3184_v38 = vrot.slane %v3170_v34, %v11234_v5 }
 0x3bc   :  { %16984 = vst [vmem:[#allocation190_spill] sm:$0xff] %v13197_v40  ;;  %v3208_v40 = vrot.slane %v3200_v22, %v11557_v48 }
 0x3bd   :  { %8269 = vrot.lane.b32.xlu0 %v3168_v16, %s11207_s2  ;;  %v13205_v21 = vpop.permute.xlu1 %8041  ;;  %v3216_v16 = vcombine.low %v3184_v38, %v3199_v33  ;;  %v3217_v22 = vcombine.high %v3184_v38, %v3199_v33  ;;  %v16992_v38 = vld [vmem:[#allocation194_spill] sm:$0xff] }
 0x3be   :  { %v3232_v15 = vcombine.high %v3208_v40, %v16743_v49 }
 0x3bf   :  { %v13208_v61 = vpop.permute.xlu0 %8045  ;;  %8273 = vrot.lane.b32.xlu1 %v3165_v11, %s16649_s30  ;;  %v3258_v11 = vrot.slane %v16988_v57, %v11234_v5  ;;  %v3224_v58 = vrot.slane %v3216_v16, %v11557_v48 }
 0x3c0   :  { %16985 = vst [vmem:[#allocation172_spill] sm:$0xff] %v13208_v61 }
 0x3c1   :  { %8277 = vrot.lane.b32.xlu0 %v3169_v26, %s16629_s4  ;;  %v13215_v3 = vpop.permute.xlu1 %8049  ;;  %v10358_v26 = vsel %vm10172_vm0, %v12420_v41, %v12901_v55  ;;  %v3251_v41 = vcombine.high %v16988_v57, %v16743_v49 }
 0x3c2   :  { %16986 = vst [vmem:[#allocation191_spill] sm:$0xff] %v13215_v3  ;;  %v10359_v33 = vsel %vm10174_vm1, %v10358_v26, %v12903_v35  ;;  %v10389_v35 = vsel %vm10172_vm0, %v12744_v56, %v13068_v0 }
 0x3c3   :  { %v13217_v30 = vpop.permute.xlu0 %8053  ;;  %8281 = vrot.lane.b32.xlu1 %v3208_v40, %s16837_s28  ;;  %v16991_v40 = vld [vmem:[#allocation23_spill] sm:$0xff] }
 0x3c4   :  { %16987 = vst [vmem:[#allocation171_spill] sm:$0xff] %v13217_v30  ;;  %v3233_v30 = vcombine.high %v3215_v44, %v16743_v49  ;;  %v3243_v61 = vrot.slane %v16991_v40, %v11234_v5  ;;  %v3236_v57 = vcombine.high %v16991_v40, %v16743_v49 }
 0x3c5   :  { %8285 = vrot.lane.b32.xlu0 %v3232_v15, %s16647_s6  ;;  %v13225_v34 = vpop.permute.xlu1 %8057  ;;  %v10327_v15 = vsel %vm10172_vm0, %v16992_v38, %v12730_v59 }
 0x3c6   :  { %16989 = vst [vmem:[#allocation192_spill] sm:$0xff] %v13225_v34  ;;  %v3266_v55 = vcombine.low %v3243_v61, %v3258_v11  ;;  %v10360_v34 = vsel %vm10176_vm2, %v10359_v33, %v12915_v47  ;;  %v10328_v26 = vsel %vm10174_vm1, %v10327_v15, %v12738_v51  ;;  %v3267_v0 = vcombine.high %v3243_v61, %v3258_v11 }
 0x3c7   :  { %v13230_v3 = vpop.permute.xlu0 %8061  ;;  %8289 = vrot.lane.b32.xlu1 %v3215_v44, %s16627_s5  ;;  %v10329_v56 = vsel %vm10176_vm2, %v10328_v26, %v12746_v27  ;;  %v10390_v51 = vsel %vm10174_vm1, %v10389_v35, %v13074_v52  ;;  %v3250_v61 = vrot.slane %v3236_v57, %v11234_v5 }
 0x3c8   :  { %16990 = vst [vmem:[#allocation174_spill] sm:$0xff] %v13230_v3  ;;  %v3231_v3 = vrot.slane %v3217_v22, %v11557_v48  ;;  %v10361_v22 = vsel %vm10178_vm3, %v10360_v34, %v12917_v8  ;;  %v13267_v40 = vrot.slane %v3266_v55, %v11557_v48  ;;  %v10391_v34 = vsel %vm10176_vm2, %v10390_v51, %v13082_v45  ;;  %v16994_v51 = vld [vmem:[#allocation22_spill] sm:$0xff] }
 0x3c9   :  { %8293 = vrot.lane.b32.xlu0 %v3233_v30, %s16821_s3  ;;  %v8066_v16 = vpop.permute.xlu1 %8065  ;;  %v3234_v30 = vcombine.high %v3224_v58, %v16743_v49  ;;  %v10362_v8 = vsel %vm16619_vm4, %v10361_v22, %v12924_v4  ;;  %v10330_v11 = vsel %vm10178_vm3, %v10329_v56, %v12751_v17  ;;  %v3281_v15 = vrot.slane %v3267_v0, %v11557_v48 }
 0x3ca   :  { %v10420_v44 = vsel %vm10172_vm0, %v12913_v46, %v8066_v16  ;;  %v3265_v46 = vrot.slane %v3251_v41, %v11234_v5  ;;  %v3235_v38 = vcombine.high %v3231_v3, %v16743_v49  ;;  %v10363_v52 = vsel %vm16618_vm5, %v10362_v8, %v12928_v50 }
 0x3cb   :  { %v8070_v59 = vpop.permute.xlu0 %8069  ;;  %8297 = vrot.lane.b32.xlu1 %v3224_v58, %s16624_s7  ;;  %v10331_v45 = vsel %vm16619_vm4, %v10330_v11, %v12754_v1  ;;  %v10392_v55 = vsel %vm10178_vm3, %v10391_v34, %v13087_v23  ;;  %v3298_v17 = vcombine.high %v13267_v40, %v16743_v49  ;;  %v10364_v50 = vsel %vm16613_vm6, %v10363_v52, %v12934_v62 }
 0x3cc   :  { %v10421_v47 = vsel %vm10174_vm1, %v10420_v44, %v8070_v59  ;;  %v3282_v41 = vcombine.low %v3250_v61, %v3265_v46  ;;  %v10332_v44 = vsel %vm16618_vm5, %v10331_v45, %v12761_v19  ;;  %v10365_v59 = vsel %vm16611_vm7, %v10364_v50, %v12938_v60 }
 0x3cd   :  { %8301 = vrot.lane.b32.xlu0 %v3234_v30, %s16644_s10  ;;  %v8074_v33 = vpop.permute.xlu1 %8073  ;;  %v16993_v30 = vld [vmem:[#allocation96_spill] sm:$0xff]  ;;  %v10333_v62 = vsel %vm16613_vm6, %v10332_v44, %v12765_v36  ;;  %v3299_v22 = vcombine.high %v3281_v15, %v16743_v49  ;;  %v3302_v52 = vcombine.high %v16994_v51, %v16743_v49 }
 0x3ce   :  { %v10422_v27 = vsel %vm10176_vm2, %v10421_v47, %v8074_v33  ;;  %v3324_v57 = vrot.slane %v16993_v30, %v11234_v5  ;;  %v3290_v60 = vrot.slane %v3282_v41, %v11557_v48  ;;  %v10366_v47 = vsel %vm16612_vm8, %v10365_v59, %v12946_v42 }
 0x3cf   :  { %v8078_v58 = vpop.permute.xlu0 %8077  ;;  %8305 = vrot.lane.b32.xlu1 %v3231_v3, %s16800_s8  ;;  %v10393_v3 = vsel %vm16619_vm4, %v10392_v55, %v13090_v63  ;;  %v3283_v63 = vcombine.high %v3250_v61, %v3265_v46  ;;  %v3309_v46 = vrot.slane %v16994_v51, %v11234_v5  ;;  %v10367_v33 = vsel %vm16616_vm9, %v10366_v47, %v12950_v10  ;;  %v17012_v47 = vld [vmem:[#allocation168_spill] sm:$0xff]  ;;  %v17014_v51 = vld [vmem:[#allocation181_spill] sm:$0xff] }
 0x3d0   :  { %v10423_v4 = vsel %vm10178_vm3, %v10422_v27, %v8078_v58  ;;  %v10394_v26 = vsel %vm16618_vm5, %v10393_v3, %v13097_v32  ;;  %v10334_v32 = vsel %vm16611_vm7, %v10333_v62, %v12773_v31  ;;  %v3317_v42 = vcombine.high %v16993_v30, %v16743_v49 }
 0x3d1   :  { %8309 = vrot.lane.b32.xlu0 %v3235_v38, %s16622_s9  ;;  %v8082_v16 = vpop.permute.xlu1 %8081  ;;  %v10395_v56 = vsel %vm16613_vm6, %v10394_v26, %v13101_v29  ;;  %v10335_v29 = vsel %vm16612_vm8, %v10334_v32, %v12777_v2  ;;  %v3332_v34 = vcombine.low %v3309_v46, %v3324_v57  ;;  %v3300_v58 = vcombine.high %v3290_v60, %v16743_v49  ;;  %v17016_v32 = vld [vmem:[#allocation203_spill] sm:$0xff] }
 0x3d2   :  { %v10424_v1 = vsel %vm16619_vm4, %v10423_v4, %v8082_v16  ;;  %v10396_v27 = vsel %vm16611_vm7, %v10395_v56, %v13109_v20  ;;  %v3297_v10 = vrot.slane %v3283_v63, %v11557_v48  ;;  %v10368_v38 = vsel %vm16617_vm10, %v10367_v33, %v12958_v53  ;;  %v17006_v63 = vld [vmem:[#allocation199_spill] sm:$0xff] }
 0x3d3   :  { %v8086_v35 = vpop.permute.xlu0 %8085  ;;  %8313 = vrot.lane.b32.xlu1 %v3298_v17, %s11187_s11  ;;  %v10397_v61 = vsel %vm16612_vm8, %v10396_v27, %v13113_v18  ;;  %v10336_v20 = vsel %vm16616_vm9, %v10335_v29, %v12785_v25  ;;  %v3331_v53 = vrot.slane %v3317_v42, %v11234_v5  ;;  %v3340_v41 = vrot.slane %v3332_v34, %v11557_v48  ;;  %v17018_v29 = vld [vmem:[#allocation25_spill] sm:$0xff]  ;;  %v17019_v27 = vld [vmem:[#allocation176_spill] sm:$0xff] }
 0x3d4   :  { %v10425_v23 = vsel %vm16618_vm5, %v10424_v1, %v8086_v35  ;;  %v10337_v18 = vsel %vm16617_vm10, %v10336_v20, %v12788_v14  ;;  %v10398_v25 = vsel %vm16616_vm9, %v10397_v61, %v13121_v54  ;;  %v3316_v3 = vrot.slane %v3302_v52, %v11234_v5  ;;  %v17026_v20 = vld [vmem:[#allocation187_spill] sm:$0xff] }
 0x3d5   :  { %8317 = vrot.lane.b32.xlu0 %v3281_v15, %s16642_s0  ;;  %v8090_v19 = vpop.permute.xlu1 %8089  ;;  %v3333_v15 = vcombine.high %v3309_v46, %v3324_v57  ;;  %v10399_v17 = vsel %vm16617_vm10, %v10398_v25, %v13124_v37  ;;  %vm17007_vm5 = vcmask 523264   ;;  %v3375_v34 = vrot.slane %v17018_v29, %v11234_v5  ;;  %v17030_v25 = vld [vmem:[#allocation204_spill] sm:$0xff] }
 0x3d6   :  { %v10426_v0 = vsel %vm16613_vm6, %v10425_v23, %v8090_v19  ;;  %vm16998_vm6 = vcmask 457728   ;;  %v3348_v44 = vcombine.low %v3316_v3, %v3331_v53  ;;  %v3349_v19 = vcombine.high %v3316_v3, %v3331_v53  ;;  %v17034_v3 = vld [vmem:[#allocation182_spill] sm:$0xff] }
 0x3d7   :  { %v8094_v36 = vpop.permute.xlu0 %8093  ;;  %8321 = vrot.lane.b32.xlu1 %v3299_v22, %s16620_s13  ;;  %v3347_v37 = vrot.slane %v3333_v15, %v11557_v48  ;;  %v17009_v22 = vld [vmem:[#allocation156_spill] sm:$0xff]  ;;  %v17028_v15 = vld [vmem:[#allocation161_spill] sm:$0xff] }
 0x3d8   :  { %v10427_v8 = vsel %vm16611_vm7, %v10426_v0, %v8094_v36  ;;  %vm16995_vm7 = vcmask 392192   ;;  %v3356_v36 = vrot.slane %v3348_v44, %v11557_v48 }
 0x3d9   :  { %8325 = vrot.lane.b32.xlu0 %v3290_v60, %s11188_s12  ;;  %v8098_v31 = vpop.permute.xlu1 %8097  ;;  %v10369_v4 = vsel %vm16995_vm7, %v10368_v38, %v12961_v6  ;;  %v3301_v6 = vcombine.high %v3297_v10, %v16743_v49  ;;  %vm16996_vm7 = vcmask 424960   ;;  %v3365_v0 = vcombine.high %v3347_v37, %v16743_v49 }
 0x3da   :  { %v10428_v11 = vsel %vm16612_vm8, %v10427_v8, %v8098_v31  ;;  %v10370_v16 = vsel %vm16996_vm7, %v10369_v4, %v12967_v24  ;;  %vm16997_vm8 = vcmask 392192   ;;  %v3366_v53 = vcombine.high %v3356_v36, %v16743_v49 }
 0x3db   :  { %v8102_v2 = vpop.permute.xlu0 %8101  ;;  %8329 = vrot.lane.b32.xlu1 %v3300_v58, %s16640_s15  ;;  %v10338_v1 = vsel %vm16997_vm8, %v10337_v18, %v12795_v39  ;;  %v10371_v54 = vsel %vm16998_vm6, %v10370_v16, %v12970_v28  ;;  %v3364_v39 = vcombine.high %v3340_v41, %v16743_v49  ;;  %vm17002_vm6 = vcmask 490496   ;;  %v17021_v58 = vld [vmem:[#allocation200_spill] sm:$0xff] }
 0x3dc   :  { %v10429_v45 = vsel %vm16616_vm9, %v10428_v11, %v8102_v2  ;;  %vm17000_vm9 = vmmov %vm16997_vm8  ;;  %v10339_v24 = vsel %vm16996_vm7, %v10338_v1, %v12797_v7  ;;  %v10372_v28 = vsel %vm17002_vm6, %v10371_v54, %v12976_v13  ;;  %v17024_v11 = vld [vmem:[#allocation158_spill] sm:$0xff]  ;;  %v3363_v18 = vrot.slane %v3349_v19, %v11557_v48 }
 0x3dd   :  { %8333 = vrot.lane.b32.xlu0 %v3297_v10, %s16614_s14  ;;  %v8106_v55 = vpop.permute.xlu1 %8105  ;;  %s16999_s14 = smov 28   ;;  %v10373_v26 = vsel %vm17007_vm5, %v10372_v28, %v17006_v63  ;;  %vm17010_vm4 = vmmov %vm17002_vm6  ;;  %vm17015_vm5 = vcmask 556032  }
 0x3de   :  { %v10430_v50 = vsel %vm16617_vm10, %v10429_v45, %v8106_v55  ;;  %vm17001_vm10 = vmmov %vm16997_vm8  ;;  %v10374_v46 = vsel %vm17015_vm5, %v10373_v26, %v17014_v51  ;;  %v17052_v51 = vld [vmem:[#allocation170_spill] sm:$0xff] }
 0x3df   :  { %v8110_v14 = vpop.permute.xlu0 %8109  ;;  %8337 = vrot.lane.b32.xlu1 %v3301_v6, %s16999_s14  ;;  %v10400_v59 = vsel %vm17001_vm10, %v10399_v17, %v13131_v43  ;;  %vm17003_vm8 = vmmov %vm16996_vm7  ;;  %v3368_v17 = vcombine.high %v17018_v29, %v16743_v49  ;;  %v17056_v29 = vld [vmem:[#allocation205_spill] sm:$0xff] }
 0x3e0   :  { %v10431_v35 = vsel %vm17000_vm9, %v10430_v50, %v8110_v14  ;;  %v10401_v30 = vsel %vm17003_vm8, %v10400_v59, %v13133_v12  ;;  %vm17004_vm9 = vmmov %vm16996_vm7  ;;  %vm17005_vm7 = vcmask 457728   ;;  %v17011_v12 = vld [vmem:[#allocation99_spill] sm:$0xff] }
 0x3e1   :  { %8341 = vrot.lane.b32.xlu0 %v3340_v41, %s11192_s16  ;;  %v8114_v23 = vpop.permute.xlu1 %8113  ;;  %v10340_v62 = vsel %vm17005_vm7, %v10339_v24, %v12803_v9  ;;  %vm17008_vm10 = vmmov %vm17005_vm7  ;;  %v3390_v60 = vrot.slane %v17011_v12, %v11234_v5  ;;  %v3383_v61 = vcombine.high %v17011_v12, %v16743_v49  ;;  %v17033_v50 = vld [vmem:[#allocation195_spill] sm:$0xff]  ;;  %v17037_v24 = vld [vmem:[#allocation177_spill] sm:$0xff]  ;;  %v3382_v19 = vrot.slane %v3368_v17, %v11234_v5 }
 0x3e2   :  { %v10432_v57 = vsel %vm17004_vm9, %v10431_v35, %v8114_v23  ;;  %v10341_v13 = vsel %vm17010_vm4, %v10340_v62, %v17009_v22  ;;  %vm17013_vm6 = vmmov %vm17005_vm7  ;;  %vm17020_vm9 = vcmask 523264   ;;  %vm17022_vm7 = vcmask 588800   ;;  %v17039_v23 = vld [vmem:[#allocation167_spill] sm:$0xff]  ;;  %v17043_v62 = vld [vmem:[#allocation188_spill] sm:$0xff] }
 0x3e3   :  { %v8118_v7 = vpop.permute.xlu0 %8117  ;;  %8345 = vrot.lane.b32.xlu1 %v3364_v39, %s16638_s19  ;;  %v10402_v56 = vsel %vm17013_vm6, %v10401_v30, %v17012_v47  ;;  %vm17017_vm8 = vmmov %vm17010_vm4  ;;  %v10342_v31 = vsel %vm17020_vm9, %v10341_v13, %v17019_v27  ;;  %v10375_v10 = vsel %vm17022_vm7, %v10374_v46, %v17021_v58  ;;  %v3398_v52 = vcombine.low %v3375_v34, %v3390_v60  ;;  %v17046_v22 = vld [vmem:[#allocation196_spill] sm:$0xff]  ;;  %v17047_v12 = vld [vmem:[#allocation183_spill] sm:$0xff] }
 0x3e4   :  { %v10433_v43 = vsel %vm17008_vm10, %v10432_v57, %v8118_v7  ;;  %v10403_v33 = vsel %vm17017_vm8, %v10402_v56, %v17016_v32  ;;  %vm17023_vm10 = vmmov %vm17020_vm9  ;;  %vm17029_vm8 = vcmask 621568   ;;  %v3397_v35 = vrot.slane %v3383_v61, %v11234_v5  ;;  %v17041_v57 = vld [vmem:[#allocation164_spill] sm:$0xff]  ;;  %v17050_v56 = vld [vmem:[#allocation157_spill] sm:$0xff] }
 0x3e5   :  { %8349 = vrot.lane.b32.xlu0 %v3347_v37, %s16971_s17  ;;  %v8122_v9 = vpop.permute.xlu1 %8121  ;;  %vm17025_vm6 = vmmov %vm17015_vm5  ;;  %v10376_v41 = vsel %vm17029_vm8, %v10375_v10, %v17028_v15  ;;  %v3399_v44 = vcombine.high %v3375_v34, %v3390_v60  ;;  %v3406_v59 = vrot.slane %v3398_v52, %v11557_v48  ;;  %v3367_v30 = vcombine.high %v3363_v18, %v16743_v49  ;;  %v17059_v58 = vld [vmem:[#allocation178_spill] sm:$0xff] }
 0x3e6   :  { %v10434_v8 = vsel %vm17010_vm4, %v10433_v43, %v8122_v9  ;;  %v10343_v2 = vsel %vm17025_vm6, %v10342_v31, %v17024_v11  ;;  %vm17027_vm5 = vmmov %vm17020_vm9 }
 0x3e7   :  { %v8126_v42 = vpop.permute.xlu0 %8125  ;;  %8353 = vrot.lane.b32.xlu1 %v3365_v0, %s11197_s21  ;;  %v10404_v4 = vsel %vm17027_vm5, %v10403_v33, %v17026_v20  ;;  %vm17031_vm4 = vmmov %vm17025_vm6  ;;  %v10344_v14 = vsel %vm17022_vm7, %v10343_v2, %v17033_v50  ;;  %v3413_v0 = vrot.slane %v3399_v44, %v11557_v48  ;;  %v3430_v33 = vcombine.high %v3406_v59, %v16743_v49  ;;  %v17063_v2 = vld [vmem:[#allocation98_spill] sm:$0xff]  ;;  %v17064_v20 = vld [vmem:[#allocation9_spill] sm:$0xff] }
 0x3e8   :  { %v10435_v38 = vsel %vm17023_vm10, %v10434_v8, %v8126_v42  ;;  %v10405_v55 = vsel %vm17031_vm4, %v10404_v4, %v17030_v25  ;;  %vm17032_vm9 = vmmov %vm17031_vm4  ;;  %vm17035_vm10 = vcmask 654336   ;;  %vm17042_vm4 = vcmask 687104   ;;  %v17054_v8 = vld [vmem:[#allocation163_spill] sm:$0xff] }
 0x3e9   :  { %8357 = vrot.lane.b32.xlu0 %v3356_v36, %s16636_s20  ;;  %v8130_v45 = vpop.permute.xlu1 %8129  ;;  %v10377_v1 = vsel %vm17035_vm10, %v10376_v41, %v17034_v3  ;;  %vm17036_vm6 = vmmov %vm17022_vm7  ;;  %v3414_v36 = vcombine.low %v3382_v19, %v3397_v35  ;;  %v3456_v52 = vrot.slane %v17063_v2, %v11234_v5  ;;  %v3431_v41 = vcombine.high %v3413_v0, %v16743_v49  ;;  %v17073_v3 = vld [vmem:[#allocation24_spill] sm:$0xff] }
 0x3ea   :  { %v10436_v6 = vsel %vm17032_vm9, %v10435_v38, %v8130_v45  ;;  %vm17038_vm5 = vmmov %vm17029_vm8  ;;  %v10378_v7 = vsel %vm17042_vm4, %v10377_v1, %v17041_v57  ;;  %v17060_v38 = vld [vmem:[#allocation184_spill] sm:$0xff]  ;;  %v3415_v45 = vcombine.high %v3382_v19, %v3397_v35  ;;  %v3441_v1 = vrot.slane %v17073_v3, %v11234_v5  ;;  %v17083_v19 = vld [vmem:[#allocation190_spill] sm:$0xff] }
 0x3eb   :  { %v8134_v16 = vpop.permute.xlu0 %8133  ;;  %8361 = vrot.lane.b32.xlu1 %v3366_v53, %s16947_s18  ;;  %v10345_v37 = vsel %vm17038_vm5, %v10344_v14, %v17037_v24  ;;  %vm17040_vm8 = vmmov %vm17036_vm6  ;;  %v17066_v53 = vld [vmem:[#allocation189_spill] sm:$0xff]  ;;  %v3422_v25 = vrot.slane %v3414_v36, %v11557_v48 }
 0x3ec   :  { %v10437_v54 = vsel %vm17036_vm6, %v10436_v6, %v8134_v16  ;;  %v10406_v39 = vsel %vm17040_vm8, %v10405_v55, %v17039_v23  ;;  %vm17044_vm9 = vmmov %vm17038_vm5  ;;  %v10346_v13 = vsel %vm17035_vm10, %v10345_v37, %v17046_v22  ;;  %vm17048_vm6 = vcmask 719872   ;;  %v17068_v55 = vld [vmem:[#allocation166_spill] sm:$0xff]  ;;  %v17075_v24 = vld [vmem:[#allocation201_spill] sm:$0xff] }
 0x3ed   :  { %8365 = vrot.lane.b32.xlu0 %v3363_v18, %s11198_s22  ;;  %v8138_v28 = vpop.permute.xlu1 %8137  ;;  %v10407_v63 = vsel %vm17044_vm9, %v10406_v39, %v17043_v62  ;;  %vm17045_vm7 = vmmov %vm17038_vm5  ;;  %v10379_v60 = vsel %vm17048_vm6, %v10378_v7, %v17047_v12  ;;  %vm17055_vm9 = vcmask 752640   ;;  %v17070_v16 = vld [vmem:[#allocation206_spill] sm:$0xff]  ;;  %v17077_v23 = vld [vmem:[#allocation160_spill] sm:$0xff]  ;;  %v3432_v62 = vcombine.high %v3422_v25, %v16743_v49 }
 0x3ee   :  { %v10438_v26 = vsel %vm17045_vm7, %v10437_v54, %v8138_v28  ;;  %vm17049_vm5 = vmmov %vm17035_vm10  ;;  %v10380_v42 = vsel %vm17055_vm9, %v10379_v60, %v17054_v8  ;;  %v17074_v54 = vld [vmem:[#allocation83_spill] sm:$0xff]  ;;  %v3464_v28 = vcombine.low %v3441_v1, %v3456_v52  ;;  %v3434_v60 = vcombine.high %v17073_v3, %v16743_v49 }
 0x3ef   :  { %v8142_v43 = vpop.permute.xlu0 %8141  ;;  %8369 = vrot.lane.b32.xlu1 %v3367_v30, %s16633_s25  ;;  %vm17051_vm8 = vmmov %vm17042_vm4  ;;  %v17079_v30 = vld [vmem:[#allocation169_spill] sm:$0xff]  ;;  %v17100_v3 = vld [vmem:[#allocation171_spill] sm:$0xff] }
 0x3f0   :  { %v10439_v47 = vsel %vm17049_vm5, %v10438_v26, %v8142_v43  ;;  %v10347_v9 = vsel %vm17051_vm8, %v10346_v13, %v17050_v56  ;;  %vm17053_vm4 = vmmov %vm17049_vm5  ;;  %vm17061_vm5 = vcmask 785408   ;;  %v17081_v26 = vld [vmem:[#allocation185_spill] sm:$0xff]  ;;  %v3472_v8 = vrot.slane %v3464_v28, %v11557_v48  ;;  %v17103_v28 = vld [vmem:[#allocation162_spill] sm:$0xff] }
 0x3f1   :  { %8373 = vrot.lane.b32.xlu0 %v3406_v59, %s16925_s23  ;;  %v10408_v46 = vsel %vm17053_vm4, %v10407_v63, %v17052_v51  ;;  %v8146_v32 = vpop.permute.xlu1 %8145  ;;  %vm17057_vm7 = vmmov %vm17051_vm8  ;;  %v10348_v10 = vsel %vm17048_vm6, %v10347_v9, %v17059_v58  ;;  %v10381_v61 = vsel %vm17061_vm5, %v10380_v42, %v17060_v38  ;;  %v3449_v59 = vcombine.high %v17063_v2, %v16743_v49  ;;  %v17087_v9 = vld [vmem:[#allocation202_spill] sm:$0xff]  ;;  %v17091_v58 = vld [vmem:[#allocation172_spill] sm:$0xff] }
 0x3f2   :  { %v10409_v34 = vsel %vm17057_vm7, %v10408_v46, %v17056_v29  ;;  %vm17058_vm10 = vmmov %vm17057_vm7  ;;  %vm17069_vm7 = vcmask 818176   ;;  %v3429_v63 = vrot.slane %v3415_v45, %v11557_v48  ;;  %v17088_v46 = vld [vmem:[#allocation179_spill] sm:$0xff]  ;;  %v17094_v2 = vld [vmem:[#allocation198_spill] sm:$0xff] }
 0x3f3   :  { %v10440_v27 = vsel %vm17058_vm10, %v10439_v47, %v8146_v32  ;;  %v8150_v31 = vpop.permute.xlu0 %8149  ;;  %8377 = vrot.lane.b32.xlu1 %v3430_v33, %s16888_s24  ;;  %vm17062_vm8 = vmmov %vm17048_vm6  ;;  %v10382_v6 = vsel %vm17069_vm7, %v10381_v61, %v17068_v55  ;;  %v17086_v47 = vld [vmem:[#allocation197_spill] sm:$0xff]  ;;  %v3463_v51 = vrot.slane %v3449_v59, %v11234_v5  ;;  %v3465_v33 = vcombine.high %v3441_v1, %v3456_v52  ;;  %v17096_v45 = vld [vmem:[#allocation159_spill] sm:$0xff] }
 0x3f4   :  { %v10441_v11 = vsel %vm17062_vm8, %v10440_v27, %v8150_v31  ;;  %vm17065_vm4 = vmmov %vm17055_vm9  ;;  %v10383_v37 = vsel %vm10222_vm13, %v10382_v6, %v17075_v24  ;;  %v17090_v27 = vld [vmem:[#allocation165_spill] sm:$0xff]  ;;  %v3496_v6 = vcombine.high %v3472_v8, %v16743_v49  ;;  %v17101_v24 = vld [vmem:[#allocation180_spill] sm:$0xff] }
 0x3f5   :  { %v10349_v4 = vsel %vm17065_vm4, %v10348_v10, %v17064_v20  ;;  %8381 = vrot.lane.b32.xlu0 %v3413_v0, %s11202_s26  ;;  %vm17067_vm9 = vmmov %vm17048_vm6  ;;  %v8154_v15 = vpop.permute.xlu1 %8153  ;;  %v17095_v20 = vld [vmem:[#allocation186_spill] sm:$0xff]  ;;  %v17102_v59 = vld [vmem:[#allocation27_spill] sm:$0xff] }
 0x3f6   :  { %v10410_v18 = vsel %vm17067_vm9, %v10409_v34, %v17066_v53  ;;  %vm17071_vm10 = vmmov %vm17065_vm4  ;;  %v10350_v35 = vsel %vm17061_vm5, %v10349_v4, %v17074_v54  ;;  %v3433_v34 = vcombine.high %v3429_v63, %v16743_v49 }
 0x3f7   :  { %v10411_v17 = vsel %vm17071_vm10, %v10410_v18, %v17070_v16  ;;  %vm17072_vm6 = vmmov %vm17065_vm4  ;;  %v8158_v14 = vpop.permute.xlu0 %8157  ;;  %8385 = vrot.lane.b32.xlu1 %v3431_v41, %s16631_s29  ;;  %v3479_v18 = vrot.slane %v3465_v33, %v11557_v48  ;;  %v17097_v41 = vld [vmem:[#allocation191_spill] sm:$0xff]  ;;  %v17098_v16 = vld [vmem:[#allocation101_spill] sm:$0xff] }
 0x3f8   :  { %v10442_v50 = vsel %vm17072_vm6, %v10441_v11, %v8154_v15  ;;  %vm17076_vm8 = vmmov %vm17061_vm5  ;;  %v3448_v11 = vrot.slane %v3434_v60, %v11234_v5 }
 0x3f9   :  { %v10443_v44 = vsel %vm17076_vm8, %v10442_v50, %v8158_v14  ;;  %vm17078_vm4 = vmmov %vm17069_vm7  ;;  %8389 = vrot.lane.b32.xlu0 %v3422_v25, %s16854_s27  ;;  %v8162_v7 = vpop.permute.xlu1 %8161  ;;  %vm17082_vm7 = vcmask 883712   ;;  %v17099_v50 = vld [vmem:[#allocation8_spill] sm:$0xff] }
 0x3fa   :  { %v10351_v39 = vsel %vm17078_vm4, %v10350_v35, %v17077_v23  ;;  %vm17080_vm9 = vmmov %vm17061_vm5  ;;  %v10384_v43 = vsel %vm17082_vm7, %v10383_v37, %v17081_v26  ;;  %v3480_v15 = vcombine.low %v3448_v11, %v3463_v51  ;;  %v3507_v23 = vrot.slane %v17102_v59, %v11234_v5 }
 0x3fb   :  { %v10412_v57 = vsel %vm17080_vm9, %v10411_v17, %v17079_v30  ;;  %vm17084_vm10 = vmmov %vm17078_vm4  ;;  %v8166_v12 = vpop.permute.xlu0 %8165  ;;  %v10352_v56 = vsel %vm10222_vm13, %v10351_v39, %v17086_v47  ;;  %v10385_v0 = vsel %vm10226_vm15, %v10384_v43, %v17087_v9  ;;  %8393 = vrot.lane.b32.xlu1 %v3432_v62, %s11207_s2  ;;  %v3522_v17 = vrot.slane %v17098_v16, %v11234_v5 }
 0x3fc   :  { %v10413_v22 = vsel %vm17084_vm10, %v10412_v57, %v17083_v19  ;;  %vm17085_vm6 = vmmov %vm17078_vm4  ;;  %v10386_v31 = vsel %vm10228_vm12, %v10385_v0, %v17090_v27  ;;  %v3481_v39 = vcombine.high %v3448_v11, %v3463_v51  ;;  %v3497_v26 = vcombine.high %v3479_v18, %v16743_v49 }
 0x3fd   :  { %v10444_v13 = vsel %vm17085_vm6, %v10443_v44, %v8162_v7  ;;  %vm17089_vm5 = vmmov %vm17082_vm7  ;;  %8397 = vrot.lane.b32.xlu0 %v3429_v63, %s16649_s30  ;;  %v10414_v42 = vsel %vm10222_vm13, %v10413_v22, %v13205_v21  ;;  %v8170_v29 = vpop.permute.xlu1 %8169  ;;  %v10387_v21 = vsel %vm10230_vm11, %v10386_v31, %v17095_v20  ;;  %v17104_v7 = vld [vmem:[#allocation192_spill] sm:$0xff]  ;;  %v3488_v43 = vrot.slane %v3480_v15, %v11557_v48 }
 0x3fe   :  { %v10445_v36 = vsel %vm10222_vm13, %v10444_v13, %v8166_v12  ;;  %v10353_v32 = vsel %vm17089_vm5, %v10352_v56, %v17088_v46  ;;  %vm17092_vm8 = vmmov %vm17089_vm5  ;;  %v10388_v14 = vsel %vm10232_vm14, %v10387_v21, %v17099_v50  ;;  %v3515_v19 = vcombine.high %v17098_v16, %v16743_v49  ;;  %v17105_v13 = vld [vmem:[#allocation174_spill] sm:$0xff] }
 0x3ff   :  { %v10415_v10 = vsel %vm17092_vm8, %v10414_v42, %v17091_v58  ;;  %vm17093_vm4 = vmmov %vm17089_vm5  ;;  %v8174_v61 = vpop.permute.xlu0 %8173  ;;  %v10354_v52 = vsel %vm10226_vm15, %v10353_v32, %v17094_v2  ;;  %8401 = vrot.lane.b32.xlu1 %v3433_v34, %s16629_s4  ;;  %v3530_v22 = vcombine.low %v3507_v23, %v3522_v17  ;;  %v3500_v9 = vcombine.high %v17102_v59, %v16743_v49 }
 0x400   :  { %v10446_v38 = vsel %vm17093_vm4, %v10445_v36, %v8170_v29  ;;  %v10355_v53 = vsel %vm10228_vm12, %v10354_v52, %v17096_v45  ;;  %v10416_v25 = vsel %vm10226_vm15, %v10415_v10, %v17097_v41  ;;  %v3498_v46 = vcombine.high %v3488_v43, %v16743_v49  ;;  %v17106_v52 = vld [vmem:[#allocation100_spill] sm:$0xff] }
 0x401   :  { %v10447_v4 = vsel %vm10226_vm15, %v10446_v38, %v8174_v61  ;;  %8405 = vrot.lane.b32.xlu0 %v3472_v8, %s16837_s28  ;;  %v8178_v55 = vpop.permute.xlu1 %8177  ;;  %v10417_v1 = vsel %vm10228_vm12, %v10416_v25, %v17100_v3  ;;  %v10356_v37 = vsel %vm10230_vm11, %v10355_v53, %v17101_v24  ;;  %v3495_v32 = vrot.slane %v3481_v39, %v11557_v48 }
 0x402   :  { %v10448_v54 = vsel %vm10228_vm12, %v10447_v4, %v8178_v55  ;;  %v10357_v30 = vsel %vm10232_vm14, %v10356_v37, %v17103_v28  ;;  %v10418_v62 = vsel %vm10230_vm11, %v10417_v1, %v17104_v7  ;;  %v3529_v33 = vrot.slane %v3515_v19, %v11234_v5  ;;  %v17109_v7 = vld [vmem:[#allocation103_spill] sm:$0xff]  ;;  %v17111_v19 = vld [vmem:[#allocation29_spill] sm:$0xff] }
 0x403   :  { %v8182_v35 = vpop.permute.xlu0 %8181  ;;  %8409 = vrot.lane.b32.xlu1 %v3496_v6, %s16647_s6  ;;  %v10988_v57 = vcombine.low %v10357_v30, %v10388_v14  ;;  %v10419_v12 = vsel %vm10232_vm14, %v10418_v62, %v17105_v13  ;;  %v3531_v8 = vcombine.high %v3507_v23, %v3522_v17  ;;  %v13577_v42 = vrot.slane %v3530_v22, %v11557_v48 }
 0x404   :  { %v10449_v44 = vsel %vm10230_vm11, %v10448_v54, %v8182_v35  ;;  %v3514_v27 = vrot.slane %v3500_v9, %v11234_v5  ;;  %v3499_v58 = vcombine.high %v3495_v32, %v16743_v49  ;;  %v3588_v20 = vrot.slane %v17106_v52, %v11234_v5 }
 0x405   :  { %8413 = vrot.lane.b32.xlu0 %v3479_v18, %s16627_s5  ;;  %v8186_v63 = vpop.permute.xlu1 %8185  ;;  %v10996_v0 = vrot.slane %v10988_v57, %v11234_v5  ;;  %v3545_v61 = vrot.slane %v3531_v8, %v11557_v48  ;;  %v3562_v11 = vcombine.high %v13577_v42, %v16743_v49  ;;  %v17107_v18 = vld [vmem:[#allocation26_spill] sm:$0xff]  ;;  %v3581_v25 = vcombine.high %v17106_v52, %v16743_v49 }
 0x406   :  { %v10450_v60 = vsel %vm10232_vm14, %v10449_v44, %v8186_v63  ;;  %v3546_v10 = vcombine.low %v3514_v27, %v3529_v33  ;;  %v3547_v21 = vcombine.high %v3514_v27, %v3529_v33  ;;  %v3573_v15 = vrot.slane %v17107_v18, %v11234_v5 }
 0x407   :  { %v13563_v47 = vpop.permute.xlu0 %8189  ;;  %v10989_v56 = vcombine.low %v10419_v12, %v10450_v60  ;;  %8417 = vrot.lane.b32.xlu1 %v3497_v26, %s16821_s3  ;;  %v3563_v53 = vcombine.high %v3545_v61, %v16743_v49  ;;  %v3566_v50 = vcombine.high %v17107_v18, %v16743_v49  ;;  %v3595_v3 = vrot.slane %v3581_v25, %v11234_v5 }
 0x408   :  { %v3554_v45 = vrot.slane %v3546_v10, %v11557_v48  ;;  %v3596_v55 = vcombine.low %v3573_v15, %v3588_v20  ;;  %v3561_v16 = vrot.slane %v3547_v21, %v11557_v48  ;;  %v3597_v1 = vcombine.high %v3573_v15, %v3588_v20 }
 0x409   :  { %8421 = vrot.lane.b32.xlu0 %v3488_v43, %s16624_s7  ;;  %v11003_v36 = vrot.slane %v10989_v56, %v11234_v5  ;;  %v13571_v51 = vpop.permute.xlu1 %8193  ;;  %v3580_v37 = vrot.slane %v3566_v50, %v11234_v5  ;;  %v3654_v62 = vrot.slane %v17109_v7, %v11234_v5  ;;  %v3639_v22 = vrot.slane %v17111_v19, %v11234_v5 }
 0x40a   :  { %v3564_v17 = vcombine.high %v3554_v45, %v16743_v49  ;;  %v3604_v35 = vrot.slane %v3596_v55, %v11557_v48  ;;  %v3565_v24 = vcombine.high %v3561_v16, %v16743_v49  ;;  %v3611_v39 = vrot.slane %v3597_v1, %v11557_v48 }
 0x40b   :  { %v13579_v29 = vpop.permute.xlu0 %8197  ;;  %v11004_v34 = vcombine.low %v10996_v0, %v11003_v36  ;;  %8425 = vrot.lane.b32.xlu1 %v3498_v46, %s16644_s10  ;;  %v3612_v59 = vcombine.low %v3580_v37, %v3595_v3  ;;  %v3613_v57 = vcombine.high %v3580_v37, %v3595_v3  ;;  %v3647_v12 = vcombine.high %v17109_v7, %v16743_v49 }
 0x40c   :  { %v3628_v28 = vcombine.high %v3604_v35, %v16743_v49  ;;  %v3629_v43 = vcombine.high %v3611_v39, %v16743_v49  ;;  %v3662_v60 = vcombine.low %v3639_v22, %v3654_v62  ;;  %v3632_v36 = vcombine.high %v17111_v19, %v16743_v49 }
 0x40d   :  { %8429 = vrot.lane.b32.xlu0 %v3495_v32, %s16800_s8  ;;  %11080 = vst [vmem:[#allocation5 + $0x8] sm:$0xff] %v11004_v34  ;;  %v13584_v31 = vpop.permute.xlu1 %8201  ;;  %v3620_v26 = vrot.slane %v3612_v59, %v11557_v48  ;;  %v3627_v9 = vrot.slane %v3613_v57, %v11557_v48  ;;  %v3661_v32 = vrot.slane %v3647_v12, %v11234_v5  ;;  %vm17186_vm9 = vcmask 162816  }
 0x40e   :  { %v3663_v33 = vcombine.high %v3639_v22, %v3654_v62  ;;  %v3670_v34 = vrot.slane %v3662_v60, %v11557_v48  ;;  %vm17187_vm7 = vcmask 195584   ;;  %vm17188_vm10 = vmmov %vm17186_vm9  ;;  %vm17189_vm6 = vcmask 228352  }
 0x40f   :  { %v13587_v38 = vpop.permute.xlu0 %8205  ;;  %8433 = vrot.lane.b32.xlu1 %v3499_v58, %s16622_s9  ;;  %v3630_v0 = vcombine.high %v3620_v26, %v16743_v49  ;;  %v3631_v27 = vcombine.high %v3627_v9, %v16743_v49  ;;  %v3646_v58 = vrot.slane %v3632_v36, %v11234_v5  ;;  %vm17190_vm5 = vmmov %vm17186_vm9 }
 0x410   :  { %v3677_v52 = vrot.slane %v3663_v33, %v11557_v48  ;;  %v3694_v20 = vcombine.high %v3670_v34, %v16743_v49  ;;  %vm17191_vm8 = vmmov %vm17190_vm5 }
 0x411   :  { %8437 = vrot.lane.b32.xlu0 %v3562_v11, %s11187_s11  ;;  %v13594_v2 = vpop.permute.xlu1 %8209  ;;  %v3679_v18 = vcombine.high %v3646_v58, %v3661_v32  ;;  %vm17192_vm4 = vmmov %vm17187_vm7 }
 0x412   :  { %v3695_v55 = vcombine.high %v3677_v52, %v16743_v49 }
 0x413   :  { %v13598_v4 = vpop.permute.xlu0 %8213  ;;  %8441 = vrot.lane.b32.xlu1 %v3545_v61, %s16642_s0  ;;  %v3678_v61 = vcombine.low %v3646_v58, %v3661_v32 }
 0x415   :  { %8445 = vrot.lane.b32.xlu0 %v3563_v53, %s16620_s13  ;;  %v13606_v41 = vpop.permute.xlu1 %8217  ;;  %s17108_s13 = smov 24   ;;  %v3686_v25 = vrot.slane %v3678_v61, %v11557_v48  ;;  %v17131_v61 = vld [vmem:[#allocation31_spill] sm:$0xff] }
 0x417   :  { %v13610_v6 = vpop.permute.xlu0 %8221  ;;  %8449 = vrot.lane.b32.xlu1 %v3554_v45, %s11188_s12  ;;  %v17119_v45 = vld [vmem:[#allocation102_spill] sm:$0xff]  ;;  %v3696_v37 = vcombine.high %v3686_v25, %v16743_v49 }
 0x418   :  { %v3720_v53 = vrot.slane %v17119_v45, %v11234_v5  ;;  %v3713_v3 = vcombine.high %v17119_v45, %v16743_v49 }
 0x419   :  { %8453 = vrot.lane.b32.xlu0 %v3564_v17, %s16640_s15  ;;  %v13618_v14 = vpop.permute.xlu1 %8225 }
 0x41b   :  { %v13621_v54 = vpop.permute.xlu0 %8229  ;;  %8457 = vrot.lane.b32.xlu1 %v3561_v16, %s17108_s13  ;;  %v17121_v16 = vld [vmem:[#allocation28_spill] sm:$0xff] }
 0x41c   :  { %v3705_v17 = vrot.slane %v17121_v16, %v11234_v5  ;;  %v3698_v59 = vcombine.high %v17121_v16, %v16743_v49  ;;  %v3764_v16 = vcombine.high %v17131_v61, %v16743_v49 }
 0x41d   :  { %8461 = vrot.lane.b32.xlu0 %v3565_v24, %s16999_s14  ;;  %v13628_v44 = vpop.permute.xlu1 %8233  ;;  %v3693_v24 = vrot.slane %v3679_v18, %v11557_v48 }
 0x41e   :  { %v3728_v1 = vcombine.low %v3705_v17, %v3720_v53  ;;  %v3729_v57 = vcombine.high %v3705_v17, %v3720_v53 }
 0x41f   :  { %v13630_v23 = vpop.permute.xlu0 %8237  ;;  %8465 = vrot.lane.b32.xlu1 %v3604_v35, %s11192_s16 }
 0x420   :  { %v3736_v62 = vrot.slane %v3728_v1, %v11557_v48  ;;  %v3743_v60 = vrot.slane %v3729_v57, %v11557_v48 }
 0x421   :  { %8469 = vrot.lane.b32.xlu0 %v3628_v28, %s16638_s19  ;;  %v13636_v30 = vpop.permute.xlu1 %8241  ;;  %v3727_v28 = vrot.slane %v3713_v3, %v11234_v5 }
 0x422   :  { %v3761_v58 = vcombine.high %v3743_v60, %v16743_v49 }
 0x423   :  { %v13640_v63 = vpop.permute.xlu0 %8245  ;;  %8473 = vrot.lane.b32.xlu1 %v3611_v39, %s16971_s17 }
 0x424   :  { %17110 = vst [vmem:[#allocation85_spill] sm:$0xff] %v13640_v63 }
 0x425   :  { %8477 = vrot.lane.b32.xlu0 %v3629_v43, %s11197_s21  ;;  %v13648_v13 = vpop.permute.xlu1 %8249  ;;  %v3712_v43 = vrot.slane %v3698_v59, %v11234_v5 }
 0x426   :  { %17112 = vst [vmem:[#allocation193_spill] sm:$0xff] %v13648_v13 }
 0x427   :  { %v13652_v56 = vpop.permute.xlu0 %8253  ;;  %8481 = vrot.lane.b32.xlu1 %v3620_v26, %s16636_s20  ;;  %v3697_v26 = vcombine.high %v3693_v24, %v16743_v49  ;;  %v3744_v22 = vcombine.low %v3712_v43, %v3727_v28  ;;  %v3745_v33 = vcombine.high %v3712_v43, %v3727_v28  ;;  %v3778_v28 = vrot.slane %v3764_v16, %v11234_v5 }
 0x428   :  { %17113 = vst [vmem:[#allocation173_spill] sm:$0xff] %v13652_v56 }
 0x429   :  { %8485 = vrot.lane.b32.xlu0 %v3630_v0, %s16947_s18  ;;  %v13660_v46 = vpop.permute.xlu1 %8257  ;;  %v17128_v0 = vld [vmem:[#allocation105_spill] sm:$0xff] }
 0x42a   :  { %17114 = vst [vmem:[#allocation11_spill] sm:$0xff] %v13660_v46  ;;  %v3786_v36 = vrot.slane %v17128_v0, %v11234_v5 }
 0x42b   :  { %v13663_v8 = vpop.permute.xlu0 %8261  ;;  %8489 = vrot.lane.b32.xlu1 %v3627_v9, %s11198_s22  ;;  %v3760_v9 = vcombine.high %v3736_v62, %v16743_v49 }
 0x42c   :  { %17115 = vst [vmem:[#allocation175_spill] sm:$0xff] %v13663_v8 }
 0x42d   :  { %8493 = vrot.lane.b32.xlu0 %v3631_v27, %s16633_s25  ;;  %v13670_v10 = vpop.permute.xlu1 %8265  ;;  %v3752_v27 = vrot.slane %v3744_v22, %v11557_v48 }
 0x42e   :  { %17116 = vst [vmem:[#allocation207_spill] sm:$0xff] %v13670_v10 }
 0x42f   :  { %v13672_v11 = vpop.permute.xlu0 %8269  ;;  %8497 = vrot.lane.b32.xlu1 %v3670_v34, %s16925_s23 }
 0x430   :  { %17117 = vst [vmem:[#allocation84_spill] sm:$0xff] %v13672_v11 }
 0x431   :  { %8501 = vrot.lane.b32.xlu0 %v3694_v20, %s16888_s24  ;;  %v13678_v21 = vpop.permute.xlu1 %8273  ;;  %v3779_v20 = vcombine.high %v17128_v0, %v16743_v49 }
 0x432   :  { %17118 = vst [vmem:[#allocation10_spill] sm:$0xff] %v13678_v21 }
 0x433   :  { %v13682_v15 = vpop.permute.xlu0 %8277  ;;  %8505 = vrot.lane.b32.xlu1 %v3677_v52, %s11202_s26  ;;  %v3771_v52 = vrot.slane %v17131_v61, %v11234_v5  ;;  %v3793_v17 = vrot.slane %v3779_v20, %v11234_v5  ;;  %v17133_v61 = vld [vmem:[#allocation30_spill] sm:$0xff] }
 0x434   :  { %17120 = vst [vmem:[#allocation87_spill] sm:$0xff] %v13682_v15 }
 0x435   :  { %8509 = vrot.lane.b32.xlu0 %v3695_v55, %s16631_s29  ;;  %v13690_v50 = vpop.permute.xlu1 %8281  ;;  %v3794_v45 = vcombine.low %v3771_v52, %v3786_v36  ;;  %v3762_v55 = vcombine.high %v3752_v27, %v16743_v49  ;;  %v3795_v3 = vcombine.high %v3771_v52, %v3786_v36  ;;  %v3811_v0 = vcombine.high %v3778_v28, %v3793_v17 }
 0x436   :  { %17122 = vst [vmem:[#allocation13_spill] sm:$0xff] %v13690_v50  ;;  %v3837_v52 = vrot.slane %v17133_v61, %v11234_v5 }
 0x437   :  { %v13694_v35 = vpop.permute.xlu0 %8285  ;;  %8513 = vrot.lane.b32.xlu1 %v3686_v25, %s16854_s27  ;;  %v3759_v25 = vrot.slane %v3745_v33, %v11557_v48  ;;  %v13746_v1 = vrot.slane %v3794_v45, %v11557_v48  ;;  %v3809_v57 = vrot.slane %v3795_v3, %v11557_v48  ;;  %v3825_v16 = vrot.slane %v3811_v0, %v11557_v48 }
 0x438   :  { %17123 = vst [vmem:[#allocation86_spill] sm:$0xff] %v13694_v35  ;;  %v3830_v3 = vcombine.high %v17133_v61, %v16743_v49 }
 0x439   :  { %8517 = vrot.lane.b32.xlu0 %v3696_v37, %s11207_s2  ;;  %v13702_v39 = vpop.permute.xlu1 %8289  ;;  %v3763_v59 = vcombine.high %v3759_v25, %v16743_v49  ;;  %v3826_v43 = vcombine.high %v13746_v1, %v16743_v49  ;;  %v3827_v33 = vcombine.high %v3809_v57, %v16743_v49 }
 0x43a   :  { %17124 = vst [vmem:[#allocation12_spill] sm:$0xff] %v13702_v39  ;;  %v3844_v0 = vrot.slane %v3830_v3, %v11234_v5 }
 0x43b   :  { %v13705_v7 = vpop.permute.xlu0 %8293  ;;  %8521 = vrot.lane.b32.xlu1 %v3693_v24, %s16649_s30 }
 0x43c   :  { %17125 = vst [vmem:[#allocation89_spill] sm:$0xff] %v13705_v7 }
 0x43d   :  { %8525 = vrot.lane.b32.xlu0 %v3697_v26, %s16629_s4  ;;  %v13712_v19 = vpop.permute.xlu1 %8297 }
 0x43e   :  { %17126 = vst [vmem:[#allocation15_spill] sm:$0xff] %v13712_v19 }
 0x43f   :  { %v13714_v12 = vpop.permute.xlu0 %8301  ;;  %8529 = vrot.lane.b32.xlu1 %v3736_v62, %s16837_s28  ;;  %v3810_v62 = vcombine.low %v3778_v28, %v3793_v17 }
 0x440   :  { %17127 = vst [vmem:[#allocation88_spill] sm:$0xff] %v13714_v12 }
 0x441   :  { %8533 = vrot.lane.b32.xlu0 %v3760_v9, %s16647_s6  ;;  %v13722_v32 = vpop.permute.xlu1 %8305 }
 0x442   :  { %17129 = vst [vmem:[#allocation14_spill] sm:$0xff] %v13722_v32 }
 0x443   :  { %v13724_v34 = vpop.permute.xlu0 %8309  ;;  %8537 = vrot.lane.b32.xlu1 %v3743_v60, %s16627_s5  ;;  %v17132_v60 = vld [vmem:[#allocation104_spill] sm:$0xff] }
 0x444   :  { %17130 = vst [vmem:[#allocation91_spill] sm:$0xff] %v13724_v34  ;;  %v3852_v9 = vrot.slane %v17132_v60, %v11234_v5  ;;  %v3845_v20 = vcombine.high %v17132_v60, %v16743_v49 }
 0x445   :  { %8541 = vrot.lane.b32.xlu0 %v3761_v58, %s16821_s3  ;;  %v13734_v53 = vpop.permute.xlu1 %8313 }
 0x446   :  { %v3860_v45 = vcombine.low %v3837_v52, %v3852_v9  ;;  %v3861_v28 = vcombine.high %v3837_v52, %v3852_v9 }
 0x447   :  { %v13736_v18 = vpop.permute.xlu0 %8317  ;;  %8545 = vrot.lane.b32.xlu1 %v3752_v27, %s16624_s7  ;;  %v3818_v27 = vrot.slane %v3810_v62, %v11557_v48 }
 0x449   :  { %8549 = vrot.lane.b32.xlu0 %v3762_v55, %s16644_s10  ;;  %v13748_v24 = vpop.permute.xlu1 %8321  ;;  %v3828_v55 = vcombine.high %v3818_v27, %v16743_v49 }
 0x44b   :  { %v13750_v37 = vpop.permute.xlu0 %8325  ;;  %8553 = vrot.lane.b32.xlu1 %v3759_v25, %s16800_s8 }
 0x44d   :  { %8557 = vrot.lane.b32.xlu0 %v3763_v59, %s16622_s9  ;;  %v13757_v26 = vpop.permute.xlu1 %8329  ;;  %s17134_s9 = smov 12   ;;  %v3859_v59 = vrot.slane %v3845_v20, %v11234_v5 }
 0x44f   :  { %v13761_v22 = vpop.permute.xlu0 %8333  ;;  %8561 = vrot.lane.b32.xlu1 %v3826_v43, %s11187_s11  ;;  %v3829_v43 = vcombine.high %v3825_v16, %v16743_v49  ;;  %v3877_v20 = vcombine.high %v3844_v0, %v3859_v59 }
 0x451   :  { %8565 = vrot.lane.b32.xlu0 %v3809_v57, %s16642_s0  ;;  %v13767_v36 = vpop.permute.xlu1 %8337  ;;  %v3868_v57 = vrot.slane %v3860_v45, %v11557_v48  ;;  %v17135_v45 = vld [vmem:[#allocation107_spill] sm:$0xff] }
 0x453   :  { %v13771_v58 = vpop.permute.xlu0 %8341  ;;  %8569 = vrot.lane.b32.xlu1 %v3827_v33, %s17134_s9  ;;  %v3875_v33 = vrot.slane %v3861_v28, %v11557_v48  ;;  %v3892_v9 = vcombine.high %v3868_v57, %v16743_v49 }
 0x455   :  { %8573 = vrot.lane.b32.xlu0 %v3818_v27, %s11188_s12  ;;  %v13779_v25 = vpop.permute.xlu1 %8345  ;;  %v3876_v27 = vcombine.low %v3844_v0, %v3859_v59  ;;  %v3893_v3 = vcombine.high %v3875_v33, %v16743_v49  ;;  %v3911_v59 = vcombine.high %v17135_v45, %v16743_v49 }
 0x457   :  { %v13783_v17 = vpop.permute.xlu0 %8349  ;;  %8577 = vrot.lane.b32.xlu1 %v3828_v55, %s16640_s15  ;;  %v3918_v55 = vrot.slane %v17135_v45, %v11234_v5  ;;  %v3884_v28 = vrot.slane %v3876_v27, %v11557_v48 }
 0x459   :  { %8581 = vrot.lane.b32.xlu0 %v3825_v16, %s17108_s13  ;;  %v13791_v62 = vpop.permute.xlu1 %8353  ;;  %v3894_v32 = vcombine.high %v3884_v28, %v16743_v49 }
 0x45b   :  { %v13794_v60 = vpop.permute.xlu0 %8357  ;;  %8585 = vrot.lane.b32.xlu1 %v3829_v43, %s16999_s14 }
 0x45d   :  { %8589 = vrot.lane.b32.xlu0 %v3868_v57, %s11192_s16  ;;  %v13800_v61 = vpop.permute.xlu1 %8361  ;;  %v17137_v57 = vld [vmem:[#allocation33_spill] sm:$0xff] }
 0x45e   :  { %v3903_v34 = vrot.slane %v17137_v57, %v11234_v5  ;;  %v3896_v12 = vcombine.high %v17137_v57, %v16743_v49 }
 0x45f   :  { %v13803_v52 = vpop.permute.xlu0 %8365  ;;  %8593 = vrot.lane.b32.xlu1 %v3892_v9, %s16638_s19 }
 0x460   :  { %v3926_v0 = vcombine.low %v3903_v34, %v3918_v55  ;;  %v3927_v19 = vcombine.high %v3903_v34, %v3918_v55 }
 0x461   :  { %8597 = vrot.lane.b32.xlu0 %v3875_v33, %s16971_s17  ;;  %v13809_v16 = vpop.permute.xlu1 %8369  ;;  %v3891_v33 = vrot.slane %v3877_v20, %v11557_v48  ;;  %v3910_v20 = vrot.slane %v3896_v12, %v11234_v5 }
 0x462   :  { %v3934_v45 = vrot.slane %v3926_v0, %v11557_v48 }
 0x463   :  { %v13813_v43 = vpop.permute.xlu0 %8373  ;;  %8601 = vrot.lane.b32.xlu1 %v3893_v3, %s11197_s21  ;;  %v3925_v3 = vrot.slane %v3911_v59, %v11234_v5  ;;  %v17144_v59 = vld [vmem:[#allocation106_spill] sm:$0xff] }
 0x464   :  { %17136 = vst [vmem:[#allocation17_spill] sm:$0xff] %v13813_v43  ;;  %v3958_v34 = vcombine.high %v3934_v45, %v16743_v49  ;;  %v3984_v12 = vrot.slane %v17144_v59, %v11234_v5 }
 0x465   :  { %8605 = vrot.lane.b32.xlu0 %v3884_v28, %s16636_s20  ;;  %v13821_v9 = vpop.permute.xlu1 %8377  ;;  %v3895_v28 = vcombine.high %v3891_v33, %v16743_v49  ;;  %v3942_v57 = vcombine.low %v3910_v20, %v3925_v3  ;;  %v3943_v0 = vcombine.high %v3910_v20, %v3925_v3 }
 0x466   :  { %17138 = vst [vmem:[#allocation90_spill] sm:$0xff] %v13821_v9 }
 0x467   :  { %v13825_v27 = vpop.permute.xlu0 %8381  ;;  %8609 = vrot.lane.b32.xlu1 %v3894_v32, %s16947_s18  ;;  %v3941_v32 = vrot.slane %v3927_v19, %v11557_v48  ;;  %v3950_v19 = vrot.slane %v3942_v57, %v11557_v48 }
 0x468   :  { %17139 = vst [vmem:[#allocation16_spill] sm:$0xff] %v13825_v27 }
 0x469   :  { %8613 = vrot.lane.b32.xlu0 %v3891_v33, %s11198_s22  ;;  %v13833_v7 = vpop.permute.xlu1 %8385  ;;  %v3960_v20 = vcombine.high %v3950_v19, %v16743_v49 }
 0x46a   :  { %17140 = vst [vmem:[#allocation93_spill] sm:$0xff] %v13833_v7 }
 0x46b   :  { %v13836_v39 = vpop.permute.xlu0 %8389  ;;  %8617 = vrot.lane.b32.xlu1 %v3895_v28, %s16633_s25  ;;  %v3959_v28 = vcombine.high %v3941_v32, %v16743_v49 }
 0x46c   :  { %17141 = vst [vmem:[#allocation19_spill] sm:$0xff] %v13836_v39 }
 0x46d   :  { %8621 = vrot.lane.b32.xlu0 %v3934_v45, %s16925_s23  ;;  %v13842_v35 = vpop.permute.xlu1 %8393  ;;  %v17147_v45 = vld [vmem:[#allocation32_spill] sm:$0xff] }
 0x46e   :  { %17142 = vst [vmem:[#allocation92_spill] sm:$0xff] %v13842_v35  ;;  %v3969_v15 = vrot.slane %v17147_v45, %v11234_v5 }
 0x46f   :  { %v13845_v55 = vpop.permute.xlu0 %8397  ;;  %8625 = vrot.lane.b32.xlu1 %v3958_v34, %s16888_s24  ;;  %v3977_v34 = vcombine.high %v17144_v59, %v16743_v49 }
 0x470   :  { %17143 = vst [vmem:[#allocation18_spill] sm:$0xff] %v13845_v55  ;;  %v3992_v21 = vcombine.low %v3969_v15, %v3984_v12 }
 0x471   :  { %8629 = vrot.lane.b32.xlu0 %v3941_v32, %s11202_s26  ;;  %v13851_v33 = vpop.permute.xlu1 %8401  ;;  %v3957_v32 = vrot.slane %v3943_v0, %v11557_v48 }
 0x472   :  { %17145 = vst [vmem:[#allocation95_spill] sm:$0xff] %v13851_v33  ;;  %v3993_v33 = vcombine.high %v3969_v15, %v3984_v12  ;;  %v4000_v59 = vrot.slane %v3992_v21, %v11557_v48  ;;  %v17153_v21 = vld [vmem:[#allocation109_spill] sm:$0xff] }
 0x473   :  { %v13855_v50 = vpop.permute.xlu0 %8405  ;;  %8633 = vrot.lane.b32.xlu1 %v3959_v28, %s16631_s29  ;;  %v3991_v28 = vrot.slane %v3977_v34, %v11234_v5  ;;  %v4050_v12 = vrot.slane %v17153_v21, %v11234_v5 }
 0x474   :  { %17146 = vst [vmem:[#allocation21_spill] sm:$0xff] %v13855_v50  ;;  %v3962_v50 = vcombine.high %v17147_v45, %v16743_v49  ;;  %v4007_v45 = vrot.slane %v3993_v33, %v11557_v48  ;;  %v4024_v15 = vcombine.high %v4000_v59, %v16743_v49 }
 0x475   :  { %8637 = vrot.lane.b32.xlu0 %v3950_v19, %s16854_s27  ;;  %v13863_v3 = vpop.permute.xlu1 %8409  ;;  %v3961_v19 = vcombine.high %v3957_v32, %v16743_v49 }
 0x476   :  { %17148 = vst [vmem:[#allocation94_spill] sm:$0xff] %v13863_v3  ;;  %v3976_v0 = vrot.slane %v3962_v50, %v11234_v5  ;;  %v17155_v50 = vld [vmem:[#allocation35_spill] sm:$0xff]  ;;  %v4025_v33 = vcombine.high %v4007_v45, %v16743_v49 }
 0x477   :  { %v13867_v57 = vpop.permute.xlu0 %8413  ;;  %8641 = vrot.lane.b32.xlu1 %v3960_v20, %s11207_s2 }
 0x478   :  { %17149 = vst [vmem:[#allocation20_spill] sm:$0xff] %v13867_v57  ;;  %v4008_v20 = vcombine.low %v3976_v0, %v3991_v28 }
 0x479   :  { %8645 = vrot.lane.b32.xlu0 %v3957_v32, %s16649_s30  ;;  %v13875_v11 = vpop.permute.xlu1 %8417  ;;  %v4035_v32 = vrot.slane %v17155_v50, %v11234_v5 }
 0x47a   :  { %17150 = vst [vmem:[#allocation97_spill] sm:$0xff] %v13875_v11 }
 0x47b   :  { %v13878_v3 = vpop.permute.xlu0 %8421  ;;  %8649 = vrot.lane.b32.xlu1 %v3961_v19, %s16629_s4  ;;  %v4009_v19 = vcombine.high %v3976_v0, %v3991_v28  ;;  %v4058_v11 = vcombine.low %v4035_v32, %v4050_v12 }
 0x47c   :  { %17151 = vst [vmem:[#allocation23_spill] sm:$0xff] %v13878_v3 }
 0x47d   :  { %8653 = vrot.lane.b32.xlu0 %v4000_v59, %s16837_s28  ;;  %v13884_v57 = vpop.permute.xlu1 %8425  ;;  %v4043_v59 = vcombine.high %v17153_v21, %v16743_v49  ;;  %v13913_v21 = vrot.slane %v4058_v11, %v11557_v48 }
 0x47e   :  { %17152 = vst [vmem:[#allocation194_spill] sm:$0xff] %v13884_v57  ;;  %v4016_v57 = vrot.slane %v4008_v20, %v11557_v48 }
 0x47f   :  { %v13889_v34 = vpop.permute.xlu0 %8429  ;;  %8657 = vrot.lane.b32.xlu1 %v4024_v15, %s16647_s6  ;;  %v4028_v15 = vcombine.high %v17155_v50, %v16743_v49  ;;  %v4057_v20 = vrot.slane %v4043_v59, %v11234_v5  ;;  %17157 = vst [vmem:[#allocation199_spill] sm:$0xff] %v13913_v21  ;;  %v4090_v11 = vcombine.high %v13913_v21, %v16743_v49  ;;  %v17159_v59 = vld [vmem:[#allocation108_spill] sm:$0xff] }
 0x480   :  { %17154 = vst [vmem:[#allocation96_spill] sm:$0xff] %v13889_v34  ;;  %v4026_v0 = vcombine.high %v4016_v57, %v16743_v49 }
 0x481   :  { %8661 = vrot.lane.b32.xlu0 %v4007_v45, %s16627_s5  ;;  %v13895_v3 = vpop.permute.xlu1 %8433  ;;  %v4023_v45 = vrot.slane %v4009_v19, %v11557_v48  ;;  %v4042_v50 = vrot.slane %v4028_v15, %v11234_v5  ;;  %v4116_v15 = vrot.slane %v17159_v59, %v11234_v5 }
 0x482   :  { %17156 = vst [vmem:[#allocation22_spill] sm:$0xff] %v13895_v3  ;;  %v4059_v3 = vcombine.high %v4035_v32, %v4050_v12 }
 0x483   :  { %v13901_v55 = vpop.permute.xlu0 %8437  ;;  %8665 = vrot.lane.b32.xlu1 %v4025_v33, %s16821_s3  ;;  %v4074_v10 = vcombine.low %v4042_v50, %v4057_v20 }
 0x484   :  { %v4073_v12 = vrot.slane %v4059_v3, %v11557_v48  ;;  %v17160_v3 = vld [vmem:[#allocation34_spill] sm:$0xff] }
 0x485   :  { %8669 = vrot.lane.b32.xlu0 %v4016_v57, %s16624_s7  ;;  %v13907_v28 = vpop.permute.xlu1 %8441  ;;  %v4027_v57 = vcombine.high %v4023_v45, %v16743_v49  ;;  %s17158_s7 = smov 124   ;;  %v4101_v21 = vrot.slane %v17160_v3, %v11234_v5 }
 0x486   :  { %v4091_v8 = vcombine.high %v4073_v12, %v16743_v49 }
 0x487   :  { %v13915_v34 = vpop.permute.xlu0 %8445  ;;  %8673 = vrot.lane.b32.xlu1 %v4026_v0, %s16644_s10  ;;  %v4075_v0 = vcombine.high %v4042_v50, %v4057_v20  ;;  %v4124_v39 = vcombine.low %v4101_v21, %v4116_v15  ;;  %v4125_v7 = vcombine.high %v4101_v21, %v4116_v15 }
 0x489   :  { %8677 = vrot.lane.b32.xlu0 %v4023_v45, %s16800_s8  ;;  %v13920_v33 = vpop.permute.xlu1 %8449  ;;  %v4082_v45 = vrot.slane %v4074_v10, %v11557_v48  ;;  %v4089_v50 = vrot.slane %v4075_v0, %v11557_v48  ;;  %v4132_v56 = vrot.slane %v4124_v39, %v11557_v48 }
 0x48b   :  { %v13923_v19 = vpop.permute.xlu0 %8453  ;;  %8681 = vrot.lane.b32.xlu1 %v4027_v57, %s17158_s7  ;;  %v4092_v10 = vcombine.high %v4082_v45, %v16743_v49  ;;  %v4093_v0 = vcombine.high %v4089_v50, %v16743_v49  ;;  %v4156_v21 = vcombine.high %v4132_v56, %v16743_v49 }
 0x48d   :  { %8685 = vrot.lane.b32.xlu0 %v4090_v11, %s11187_s11  ;;  %v13930_v32 = vpop.permute.xlu1 %8457  ;;  %v4109_v11 = vcombine.high %v17159_v59, %v16743_v49 }
 0x48f   :  { %v13934_v35 = vpop.permute.xlu0 %8461  ;;  %8689 = vrot.lane.b32.xlu1 %v4073_v12, %s16642_s0  ;;  %v4094_v12 = vcombine.high %v17160_v3, %v16743_v49  ;;  %v4123_v46 = vrot.slane %v4109_v11, %v11234_v5  ;;  %v4139_v11 = vrot.slane %v4125_v7, %v11557_v48  ;;  %v17164_v7 = vld [vmem:[#allocation37_spill] sm:$0xff] }
 0x490   :  { %v4167_v63 = vrot.slane %v17164_v7, %v11234_v5 }
 0x491   :  { %8693 = vrot.lane.b32.xlu0 %v4091_v8, %s17134_s9  ;;  %v13942_v57 = vpop.permute.xlu1 %8465  ;;  %v4157_v9 = vcombine.high %v4139_v11, %v16743_v49 }
 0x493   :  { %v13946_v20 = vpop.permute.xlu0 %8469  ;;  %8697 = vrot.lane.b32.xlu1 %v4082_v45, %s11188_s12  ;;  %v4108_v45 = vrot.slane %v4094_v12, %v11234_v5 }
 0x495   :  { %8701 = vrot.lane.b32.xlu0 %v4092_v10, %s16640_s15  ;;  %v13954_v8 = vpop.permute.xlu1 %8473  ;;  %v4140_v10 = vcombine.low %v4108_v45, %v4123_v46  ;;  %v4141_v15 = vcombine.high %v4108_v45, %v4123_v46 }
 0x497   :  { %v13957_v59 = vpop.permute.xlu0 %8477  ;;  %8705 = vrot.lane.b32.xlu1 %v4089_v50, %s17108_s13  ;;  %v17162_v50 = vld [vmem:[#allocation111_spill] sm:$0xff]  ;;  %v4148_v13 = vrot.slane %v4140_v10, %v11557_v48 }
 0x498   :  { %v4182_v12 = vrot.slane %v17162_v50, %v11234_v5  ;;  %v4175_v46 = vcombine.high %v17162_v50, %v16743_v49 }
 0x499   :  { %8709 = vrot.lane.b32.xlu0 %v4093_v0, %s16999_s14  ;;  %v13964_v3 = vpop.permute.xlu1 %8481  ;;  %v4158_v10 = vcombine.high %v4148_v13, %v16743_v49 }
 0x49a   :  { %v4190_v45 = vcombine.low %v4167_v63, %v4182_v12 }
 0x49b   :  { %v13966_v27 = vpop.permute.xlu0 %8485  ;;  %8713 = vrot.lane.b32.xlu1 %v4132_v56, %s11192_s16 }
 0x49d   :  { %8717 = vrot.lane.b32.xlu0 %v4156_v21, %s16638_s19  ;;  %v13972_v39 = vpop.permute.xlu1 %8489 }
 0x49e   :  { %17161 = vst [vmem:[#allocation156_spill] sm:$0xff] %v13972_v39  ;;  %v4191_v39 = vcombine.high %v4167_v63, %v4182_v12 }
 0x49f   :  { %v13976_v0 = vpop.permute.xlu0 %8493  ;;  %8721 = vrot.lane.b32.xlu1 %v4139_v11, %s16971_s17  ;;  %v4160_v11 = vcombine.high %v17164_v7, %v16743_v49 }
 0x4a0   :  { %17163 = vst [vmem:[#allocation99_spill] sm:$0xff] %v13976_v0  ;;  %v4155_v0 = vrot.slane %v4141_v15, %v11557_v48 }
 0x4a1   :  { %8725 = vrot.lane.b32.xlu0 %v4157_v9, %s11197_s21  ;;  %v13984_v56 = vpop.permute.xlu1 %8497 }
 0x4a2   :  { %17165 = vst [vmem:[#allocation168_spill] sm:$0xff] %v13984_v56  ;;  %v4189_v56 = vrot.slane %v4175_v46, %v11234_v5  ;;  %v4159_v15 = vcombine.high %v4155_v0, %v16743_v49  ;;  %v4205_v46 = vrot.slane %v4191_v39, %v11557_v48  ;;  %v17174_v39 = vld [vmem:[#allocation36_spill] sm:$0xff] }
 0x4a3   :  { %v13988_v21 = vpop.permute.xlu0 %8501  ;;  %8729 = vrot.lane.b32.xlu1 %v4148_v13, %s16636_s20  ;;  %v4174_v13 = vrot.slane %v4160_v11, %v11234_v5 }
 0x4a4   :  { %17166 = vst [vmem:[#allocation181_spill] sm:$0xff] %v13988_v21  ;;  %v4198_v21 = vrot.slane %v4190_v45, %v11557_v48 }
 0x4a5   :  { %8733 = vrot.lane.b32.xlu0 %v4158_v10, %s16947_s18  ;;  %v13996_v9 = vpop.permute.xlu1 %8505  ;;  %v4206_v10 = vcombine.low %v4174_v13, %v4189_v56  ;;  %v4207_v11 = vcombine.high %v4174_v13, %v4189_v56 }
 0x4a6   :  { %17167 = vst [vmem:[#allocation203_spill] sm:$0xff] %v13996_v9  ;;  %v4222_v63 = vcombine.high %v4198_v21, %v16743_v49 }
 0x4a7   :  { %v13999_v50 = vpop.permute.xlu0 %8509  ;;  %8737 = vrot.lane.b32.xlu1 %v4155_v0, %s11198_s22  ;;  %v17172_v0 = vld [vmem:[#allocation110_spill] sm:$0xff]  ;;  %v4221_v13 = vrot.slane %v4207_v11, %v11557_v48 }
 0x4a8   :  { %17168 = vst [vmem:[#allocation25_spill] sm:$0xff] %v13999_v50  ;;  %v4248_v45 = vrot.slane %v17172_v0, %v11234_v5  ;;  %v4233_v50 = vrot.slane %v17174_v39, %v11234_v5 }
 0x4a9   :  { %8741 = vrot.lane.b32.xlu0 %v4159_v15, %s16633_s25  ;;  %v14006_v7 = vpop.permute.xlu1 %8513  ;;  %v4225_v11 = vcombine.high %v4221_v13, %v16743_v49 }
 0x4aa   :  { %17169 = vst [vmem:[#allocation176_spill] sm:$0xff] %v14006_v7  ;;  %v4214_v7 = vrot.slane %v4206_v10, %v11557_v48 }
 0x4ab   :  { %v14008_v43 = vpop.permute.xlu0 %8517  ;;  %8745 = vrot.lane.b32.xlu1 %v4198_v21, %s16925_s23 }
 0x4ac   :  { %17170 = vst [vmem:[#allocation200_spill] sm:$0xff] %v14008_v43  ;;  %v4223_v43 = vcombine.high %v4205_v46, %v16743_v49  ;;  %v4224_v10 = vcombine.high %v4214_v7, %v16743_v49 }
 0x4ad   :  { %8749 = vrot.lane.b32.xlu0 %v4222_v63, %s16888_s24  ;;  %v14014_v12 = vpop.permute.xlu1 %8521  ;;  %v4241_v63 = vcombine.high %v17172_v0, %v16743_v49 }
 0x4ae   :  { %17171 = vst [vmem:[#allocation158_spill] sm:$0xff] %v14014_v12  ;;  %v4256_v12 = vcombine.low %v4233_v50, %v4248_v45 }
 0x4af   :  { %v14018_v15 = vpop.permute.xlu0 %8525  ;;  %8753 = vrot.lane.b32.xlu1 %v4205_v46, %s11202_s26  ;;  %v4226_v46 = vcombine.high %v17174_v39, %v16743_v49 }
 0x4b0   :  { %17173 = vst [vmem:[#allocation187_spill] sm:$0xff] %v14018_v15  ;;  %v4257_v15 = vcombine.high %v4233_v50, %v4248_v45  ;;  %v17180_v45 = vld [vmem:[#allocation113_spill] sm:$0xff] }
 0x4b1   :  { %8757 = vrot.lane.b32.xlu0 %v4223_v43, %s16631_s29  ;;  %v14026_v21 = vpop.permute.xlu1 %8529 }
 0x4b2   :  { %17175 = vst [vmem:[#allocation161_spill] sm:$0xff] %v14026_v21  ;;  %v4255_v21 = vrot.slane %v4241_v63, %v11234_v5  ;;  %v4271_v63 = vrot.slane %v4257_v15, %v11557_v48 }
 0x4b3   :  { %v14030_v56 = vpop.permute.xlu0 %8533  ;;  %8761 = vrot.lane.b32.xlu1 %v4214_v7, %s16854_s27  ;;  %v4240_v7 = vrot.slane %v4226_v46, %v11234_v5 }
 0x4b4   :  { %17176 = vst [vmem:[#allocation204_spill] sm:$0xff] %v14030_v56  ;;  %v4264_v56 = vrot.slane %v4256_v12, %v11557_v48 }
 0x4b5   :  { %8765 = vrot.lane.b32.xlu0 %v4224_v10, %s11207_s2  ;;  %v14038_v43 = vpop.permute.xlu1 %8537  ;;  %v4272_v10 = vcombine.low %v4240_v7, %v4255_v21  ;;  %v4273_v12 = vcombine.high %v4240_v7, %v4255_v21  ;;  %v17184_v7 = vld [vmem:[#allocation82_spill] sm:$0xff] }
 0x4b6   :  { %v4288_v50 = vcombine.high %v4264_v56, %v16743_v49 }
 0x4b7   :  { %v14041_v0 = vpop.permute.xlu0 %8541  ;;  %8769 = vrot.lane.b32.xlu1 %v4221_v13, %s16649_s30  ;;  %v4314_v13 = vrot.slane %v17180_v45, %v11234_v5  ;;  %v4280_v15 = vrot.slane %v4272_v10, %v11557_v48 }
 0x4b8   :  { %17177 = vst [vmem:[#allocation195_spill] sm:$0xff] %v14041_v0 }
 0x4b9   :  { %8773 = vrot.lane.b32.xlu0 %v4225_v11, %s16629_s4  ;;  %v14048_v39 = vpop.permute.xlu1 %8545  ;;  %v10482_v11 = vsel %vm10172_vm0, %v13267_v40, %v13734_v53  ;;  %v4307_v40 = vcombine.high %v17180_v45, %v16743_v49 }
 0x4ba   :  { %17178 = vst [vmem:[#allocation182_spill] sm:$0xff] %v14048_v39  ;;  %v10483_v21 = vsel %vm10174_vm1, %v10482_v11, %v13736_v18  ;;  %v10513_v18 = vsel %vm10172_vm0, %v13577_v42, %v13901_v55 }
 0x4bb   :  { %v14050_v9 = vpop.permute.xlu0 %8549  ;;  %8777 = vrot.lane.b32.xlu1 %v4264_v56, %s16837_s28  ;;  %v17183_v56 = vld [vmem:[#allocation39_spill] sm:$0xff] }
 0x4bc   :  { %17179 = vst [vmem:[#allocation177_spill] sm:$0xff] %v14050_v9  ;;  %v4289_v9 = vcombine.high %v4271_v63, %v16743_v49  ;;  %v4299_v0 = vrot.slane %v17183_v56, %v11234_v5  ;;  %v4292_v45 = vcombine.high %v17183_v56, %v16743_v49 }
 0x4bd   :  { %8781 = vrot.lane.b32.xlu0 %v4288_v50, %s16647_s6  ;;  %v14058_v46 = vpop.permute.xlu1 %8553  ;;  %v10451_v50 = vsel %vm10172_vm0, %v17184_v7, %v13563_v47 }
 0x4be   :  { %17181 = vst [vmem:[#allocation167_spill] sm:$0xff] %v14058_v46  ;;  %v4322_v53 = vcombine.low %v4299_v0, %v4314_v13  ;;  %v10484_v46 = vsel %vm10176_vm2, %v10483_v21, %v13748_v24  ;;  %v10452_v11 = vsel %vm10174_vm1, %v10451_v50, %v13571_v51  ;;  %v4323_v55 = vcombine.high %v4299_v0, %v4314_v13 }
 0x4bf   :  { %v14063_v39 = vpop.permute.xlu0 %8557  ;;  %8785 = vrot.lane.b32.xlu1 %v4271_v63, %s16627_s5  ;;  %s17185_s5 = smov 112   ;;  %v10453_v42 = vsel %vm10176_vm2, %v10452_v11, %v13579_v29  ;;  %v10514_v51 = vsel %vm10174_vm1, %v10513_v18, %v13907_v28  ;;  %v4306_v0 = vrot.slane %v4292_v45, %v11234_v5 }
 0x4c0   :  { %17182 = vst [vmem:[#allocation164_spill] sm:$0xff] %v14063_v39  ;;  %v4287_v39 = vrot.slane %v4273_v12, %v11557_v48  ;;  %v10485_v12 = vsel %vm10178_vm3, %v10484_v46, %v13750_v37  ;;  %v14100_v56 = vrot.slane %v4322_v53, %v11557_v48  ;;  %v10515_v46 = vsel %vm10176_vm2, %v10514_v51, %v13915_v34  ;;  %v17201_v51 = vld [vmem:[#allocation38_spill] sm:$0xff] }
 0x4c1   :  { %8789 = vrot.lane.b32.xlu0 %v4289_v9, %s16821_s3  ;;  %v8562_v10 = vpop.permute.xlu1 %8561  ;;  %v4290_v9 = vcombine.high %v4280_v15, %v16743_v49  ;;  %v10486_v37 = vsel %vm17186_vm9, %v10485_v12, %v13757_v26  ;;  %v10454_v13 = vsel %vm10178_vm3, %v10453_v42, %v13584_v31  ;;  %v4337_v50 = vrot.slane %v4323_v55, %v11557_v48 }
 0x4c2   :  { %v10544_v63 = vsel %vm10172_vm0, %v13746_v1, %v8562_v10  ;;  %v4321_v1 = vrot.slane %v4307_v40, %v11234_v5  ;;  %v4291_v7 = vcombine.high %v4287_v39, %v16743_v49  ;;  %v10487_v28 = vsel %vm17187_vm7, %v10486_v37, %v13761_v22  ;;  %vm17194_vm7 = vmmov %vm17192_vm4 }
 0x4c3   :  { %v8566_v47 = vpop.permute.xlu0 %8565  ;;  %8793 = vrot.lane.b32.xlu1 %v4280_v15, %s17185_s5  ;;  %v10455_v34 = vsel %vm17188_vm10, %v10454_v13, %v13587_v38  ;;  %v10516_v53 = vsel %vm10178_vm3, %v10515_v46, %v13920_v33  ;;  %v4354_v31 = vcombine.high %v14100_v56, %v16743_v49  ;;  %v10488_v22 = vsel %vm17189_vm6, %v10487_v28, %v13767_v36  ;;  %vm17196_vm10 = vmmov %vm17189_vm6 }
 0x4c4   :  { %v10545_v24 = vsel %vm10174_vm1, %v10544_v63, %v8566_v47  ;;  %v4338_v40 = vcombine.low %v4306_v0, %v4321_v1  ;;  %v10456_v63 = vsel %vm17192_vm4, %v10455_v34, %v13594_v2  ;;  %vm17193_vm9 = vcmask 261120   ;;  %vm17197_vm6 = vmmov %vm17192_vm4 }
 0x4c5   :  { %8797 = vrot.lane.b32.xlu0 %v4290_v9, %s16644_s10  ;;  %v8570_v21 = vpop.permute.xlu1 %8569  ;;  %v10489_v47 = vsel %vm17193_vm9, %v10488_v22, %v13771_v58  ;;  %v17195_v9 = vld [vmem:[#allocation112_spill] sm:$0xff]  ;;  %v10457_v36 = vsel %vm17196_vm10, %v10456_v63, %v13598_v4  ;;  %v4355_v12 = vcombine.high %v4337_v50, %v16743_v49  ;;  %v4358_v28 = vcombine.high %v17201_v51, %v16743_v49 }
 0x4c6   :  { %v10546_v29 = vsel %vm10176_vm2, %v10545_v24, %v8570_v21  ;;  %v4380_v45 = vrot.slane %v17195_v9, %v11234_v5  ;;  %v4346_v58 = vrot.slane %v4338_v40, %v11557_v48 }
 0x4c7   :  { %v8574_v15 = vpop.permute.xlu0 %8573  ;;  %8801 = vrot.lane.b32.xlu1 %v4287_v39, %s16800_s8  ;;  %v10517_v39 = vsel %vm17190_vm5, %v10516_v53, %v13923_v19  ;;  %v4339_v19 = vcombine.high %v4306_v0, %v4321_v1  ;;  %vm17198_vm5 = vcmask 293888   ;;  %v4365_v1 = vrot.slane %v17201_v51, %v11234_v5  ;;  %v17231_v51 = vld [vmem:[#allocation90_spill] sm:$0xff] }
 0x4c8   :  { %v10547_v26 = vsel %vm10178_vm3, %v10546_v29, %v8574_v15  ;;  %v10518_v11 = vsel %vm17197_vm6, %v10517_v39, %v13930_v32  ;;  %v10490_v24 = vsel %vm17198_vm5, %v10489_v47, %v13779_v25  ;;  %v10458_v32 = vsel %vm17193_vm9, %v10457_v36, %v13606_v41  ;;  %vm17204_vm6 = vmmov %vm17198_vm5 }
 0x4c9   :  { %8805 = vrot.lane.b32.xlu0 %v4291_v7, %s17158_s7  ;;  %v8578_v10 = vpop.permute.xlu1 %8577  ;;  %v4373_v25 = vcombine.high %v17195_v9, %v16743_v49  ;;  %v4388_v46 = vcombine.low %v4365_v1, %v4380_v45  ;;  %vm17205_vm5 = vmmov %vm17193_vm9  ;;  %v4356_v15 = vcombine.high %v4346_v58, %v16743_v49  ;;  %v4372_v39 = vrot.slane %v4358_v28, %v11234_v5 }
 0x4ca   :  { %v10548_v38 = vsel %vm17191_vm8, %v10547_v26, %v8578_v10  ;;  %vm17199_vm8 = vmmov %vm17196_vm10 }
 0x4cb   :  { %v8582_v18 = vpop.permute.xlu0 %8581  ;;  %8809 = vrot.lane.b32.xlu1 %v4354_v31, %s11187_s11  ;;  %v10519_v42 = vsel %vm17199_vm8, %v10518_v11, %v13934_v35  ;;  %vm17200_vm4 = vmmov %vm17199_vm8  ;;  %v10459_v35 = vsel %vm17204_vm6, %v10458_v32, %v13610_v6  ;;  %vm17206_vm8 = vcmask 359424   ;;  %v4396_v40 = vrot.slane %v4388_v46, %v11557_v48  ;;  %v17233_v32 = vld [vmem:[#allocation99_spill] sm:$0xff] }
 0x4cc   :  { %v10549_v33 = vsel %vm17194_vm7, %v10548_v38, %v8582_v18  ;;  %vm17202_vm7 = vcmask 326656   ;;  %vm17203_vm10 = vmmov %vm17193_vm9  ;;  %v10520_v29 = vsel %vm17205_vm5, %v10519_v42, %v13942_v57 }
 0x4cd   :  { %8813 = vrot.lane.b32.xlu0 %v4337_v50, %s16642_s0  ;;  %v8586_v2 = vpop.permute.xlu1 %8585  ;;  %v10491_v21 = vsel %vm17202_vm7, %v10490_v24, %v13783_v17  ;;  %v4353_v17 = vrot.slane %v4339_v19, %v11557_v48  ;;  %v10460_v57 = vsel %vm17202_vm7, %v10459_v35, %v13618_v14  ;;  %vm17211_vm5 = vmmov %vm17206_vm8  ;;  %v4389_v50 = vcombine.high %v4365_v1, %v4380_v45  ;;  %v17223_v19 = vld [vmem:[#allocation17_spill] sm:$0xff]  ;;  %v17229_v24 = vld [vmem:[#allocation156_spill] sm:$0xff] }
 0x4ce   :  { %v10550_v55 = vsel %vm17200_vm4, %v10549_v33, %v8586_v2  ;;  %v10492_v7 = vsel %vm17206_vm8, %v10491_v21, %v13791_v62  ;;  %vm17207_vm4 = vmmov %vm17204_vm6  ;;  %v4387_v62 = vrot.slane %v4373_v25, %v11234_v5  ;;  %v17236_v35 = vld [vmem:[#allocation41_spill] sm:$0xff] }
 0x4cf   :  { %v8590_v4 = vpop.permute.xlu0 %8589  ;;  %8817 = vrot.lane.b32.xlu1 %v4355_v12, %s17134_s9  ;;  %v10521_v0 = vsel %vm17207_vm4, %v10520_v29, %v13946_v20  ;;  %vm17208_vm9 = vmmov %vm17207_vm4  ;;  %v10461_v20 = vsel %vm17211_vm5, %v10460_v57, %v13621_v54  ;;  %vm17213_vm4 = vcmask 424960   ;;  %v17226_v12 = vld [vmem:[#allocation85_spill] sm:$0xff]  ;;  %v4431_v46 = vrot.slane %v17236_v35, %v11234_v5  ;;  %v17243_v57 = vld [vmem:[#allocation168_spill] sm:$0xff] }
 0x4d0   :  { %v10551_v37 = vsel %vm17203_vm10, %v10550_v55, %v8590_v4  ;;  %vm17209_vm10 = vcmask 392192   ;;  %vm17210_vm6 = vmmov %vm17202_vm7  ;;  %v4404_v63 = vcombine.low %v4372_v39, %v4387_v62  ;;  %v4405_v2 = vcombine.high %v4372_v39, %v4387_v62  ;;  %v17237_v29 = vld [vmem:[#allocation193_spill] sm:$0xff]  ;;  %v17251_v39 = vld [vmem:[#allocation19_spill] sm:$0xff] }
 0x4d1   :  { %8821 = vrot.lane.b32.xlu0 %v4346_v58, %s11188_s12  ;;  %v8594_v41 = vpop.permute.xlu1 %8593  ;;  %v10493_v26 = vsel %vm17209_vm10, %v10492_v7, %v13794_v60  ;;  %vm17212_vm8 = vmmov %vm17210_vm6  ;;  %v4357_v60 = vcombine.high %v4353_v17, %v16743_v49  ;;  %v10462_v38 = vsel %vm17209_vm10, %v10461_v20, %v13628_v44  ;;  %v4420_v44 = vcombine.high %v4396_v40, %v16743_v49 }
 0x4d2   :  { %v10552_v13 = vsel %vm17208_vm9, %v10551_v37, %v8594_v41  ;;  %v10522_v14 = vsel %vm17212_vm8, %v10521_v0, %v13954_v8  ;;  %v10494_v10 = vsel %vm17213_vm4, %v10493_v26, %v13800_v61  ;;  %vm17214_vm9 = vmmov %vm17211_vm5  ;;  %v4412_v4 = vrot.slane %v4404_v63, %v11557_v48 }
 0x4d3   :  { %v8598_v6 = vpop.permute.xlu0 %8597  ;;  %8825 = vrot.lane.b32.xlu1 %v4356_v15, %s16640_s15  ;;  %v10523_v31 = vsel %vm17214_vm9, %v10522_v14, %v13957_v59  ;;  %vm17215_vm7 = vmmov %vm17211_vm5  ;;  %v4403_v59 = vrot.slane %v4389_v50, %v11557_v48  ;;  %vm17220_vm9 = vcmask 490496   ;;  %v17238_v15 = vld [vmem:[#allocation16_spill] sm:$0xff]  ;;  %v4419_v20 = vrot.slane %v4405_v2, %v11557_v48  ;;  %v17245_v50 = vld [vmem:[#allocation93_spill] sm:$0xff] }
 0x4d4   :  { %v10553_v34 = vsel %vm17210_vm6, %v10552_v13, %v8598_v6  ;;  %vm17216_vm6 = vcmask 457728   ;;  %vm17217_vm5 = vmmov %vm17209_vm10  ;;  %v17241_v13 = vld [vmem:[#allocation173_spill] sm:$0xff]  ;;  %v4422_v62 = vcombine.high %v4412_v4, %v16743_v49 }
 0x4d5   :  { %8829 = vrot.lane.b32.xlu0 %v4353_v17, %s17108_s13  ;;  %v8602_v53 = vpop.permute.xlu1 %8601  ;;  %v10495_v8 = vsel %vm17216_vm6, %v10494_v10, %v13803_v52  ;;  %vm17218_vm8 = vmmov %vm17213_vm4  ;;  %v4421_v55 = vcombine.high %v4403_v59, %v16743_v49  ;;  %v17247_v14 = vld [vmem:[#allocation181_spill] sm:$0xff] }
 0x4d6   :  { %v10554_v22 = vsel %vm17215_vm7, %v10553_v34, %v8602_v53  ;;  %v10463_v61 = vsel %vm17218_vm8, %v10462_v38, %v13630_v23  ;;  %vm17219_vm4 = vmmov %vm17217_vm5  ;;  %v10496_v52 = vsel %vm17220_vm9, %v10495_v8, %v13809_v16 }
 0x4d7   :  { %v8606_v54 = vpop.permute.xlu0 %8605  ;;  %8833 = vrot.lane.b32.xlu1 %v4357_v60, %s16999_s14  ;;  %v10524_v47 = vsel %vm17219_vm4, %v10523_v31, %v13964_v3  ;;  %vm17221_vm7 = vmmov %vm17218_vm8  ;;  %v10464_v36 = vsel %vm17216_vm6, %v10463_v61, %v13636_v30  ;;  %v4424_v31 = vcombine.high %v17236_v35, %v16743_v49  ;;  %v17254_v61 = vld [vmem:[#allocation175_spill] sm:$0xff]  ;;  %v17273_v35 = vld [vmem:[#allocation200_spill] sm:$0xff] }
 0x4d8   :  { %v10555_v18 = vsel %vm17217_vm5, %v10554_v22, %v8606_v54  ;;  %v10525_v9 = vsel %vm17221_vm7, %v10524_v47, %v13966_v27  ;;  %vm17222_vm10 = vmmov %vm17221_vm7  ;;  %vm17224_vm5 = vcmask 523264   ;;  %v17228_v27 = vld [vmem:[#allocation115_spill] sm:$0xff]  ;;  %vm17232_vm7 = vcmask 556032  }
 0x4d9   :  { %8837 = vrot.lane.b32.xlu0 %v4396_v40, %s11192_s16  ;;  %v8610_v33 = vpop.permute.xlu1 %8609  ;;  %v10497_v11 = vsel %vm17224_vm5, %v10496_v52, %v17223_v19  ;;  %vm17225_vm8 = vmmov %vm17216_vm6  ;;  %v4446_v58 = vrot.slane %v17228_v27, %v11234_v5  ;;  %v4439_v0 = vcombine.high %v17228_v27, %v16743_v49  ;;  %v17250_v22 = vld [vmem:[#allocation11_spill] sm:$0xff]  ;;  %v4438_v2 = vrot.slane %v4424_v31, %v11234_v5  ;;  %v17264_v27 = vld [vmem:[#allocation18_spill] sm:$0xff] }
 0x4da   :  { %v10556_v45 = vsel %vm17222_vm10, %v10555_v18, %v8610_v33  ;;  %vm17227_vm4 = vmmov %vm17220_vm9  ;;  %v10498_v1 = vsel %vm17232_vm7, %v10497_v11, %v17231_v51  ;;  %v17256_v33 = vld [vmem:[#allocation203_spill] sm:$0xff]  ;;  %v17269_v51 = vld [vmem:[#allocation176_spill] sm:$0xff] }
 0x4db   :  { %v8614_v23 = vpop.permute.xlu0 %8613  ;;  %8841 = vrot.lane.b32.xlu1 %v4420_v44, %s16638_s19  ;;  %v10465_v16 = vsel %vm17227_vm4, %v10464_v36, %v17226_v12  ;;  %vm17230_vm9 = vmmov %vm17216_vm6  ;;  %v4454_v28 = vcombine.low %v4431_v46, %v4446_v58  ;;  %v4453_v18 = vrot.slane %v4439_v0, %v11234_v5  ;;  %v4455_v63 = vcombine.high %v4431_v46, %v4446_v58  ;;  %v17260_v36 = vld [vmem:[#allocation25_spill] sm:$0xff]  ;;  %v17263_v12 = vld [vmem:[#allocation207_spill] sm:$0xff] }
 0x4dc   :  { %v10557_v3 = vsel %vm17225_vm8, %v10556_v45, %v8614_v23  ;;  %v10526_v42 = vsel %vm17230_vm9, %v10525_v9, %v17229_v24  ;;  %vm17234_vm10 = vmmov %vm17227_vm4  ;;  %v10466_v41 = vsel %vm17224_vm5, %v10465_v16, %v17237_v29  ;;  %vm17239_vm8 = vcmask 588800   ;;  %v17258_v45 = vld [vmem:[#allocation92_spill] sm:$0xff] }
 0x4dd   :  { %8845 = vrot.lane.b32.xlu0 %v4403_v59, %s16971_s17  ;;  %v8618_v30 = vpop.permute.xlu1 %8617  ;;  %v10527_v21 = vsel %vm17234_vm10, %v10526_v42, %v17233_v32  ;;  %vm17235_vm6 = vmmov %vm17227_vm4  ;;  %v10499_v17 = vsel %vm17239_vm8, %v10498_v1, %v17238_v15  ;;  %vm17246_vm10 = vcmask 621568   ;;  %v4462_v47 = vrot.slane %v4454_v28, %v11557_v48  ;;  %v17267_v42 = vld [vmem:[#allocation84_spill] sm:$0xff]  ;;  %v17276_v15 = vld [vmem:[#allocation10_spill] sm:$0xff] }
 0x4de   :  { %v10558_v37 = vsel %vm17235_vm6, %v10557_v3, %v8618_v30  ;;  %vm17240_vm4 = vmmov %vm17224_vm5  ;;  %v10500_v40 = vsel %vm17246_vm10, %v10499_v17, %v17245_v50  ;;  %v4423_v9 = vcombine.high %v4419_v20, %v16743_v49 }
 0x4df   :  { %v8622_v25 = vpop.permute.xlu0 %8621  ;;  %8849 = vrot.lane.b32.xlu1 %v4421_v55, %s11197_s21  ;;  %vm17242_vm9 = vmmov %vm17232_vm7  ;;  %v4469_v55 = vrot.slane %v4455_v63, %v11557_v48 }
 0x4e0   :  { %v10559_v7 = vsel %vm17240_vm4, %v10558_v37, %v8622_v25  ;;  %v10467_v6 = vsel %vm17242_vm9, %v10466_v41, %v17241_v13  ;;  %vm17244_vm7 = vmmov %vm17240_vm4  ;;  %vm17252_vm4 = vcmask 654336   ;;  %v17271_v37 = vld [vmem:[#allocation95_spill] sm:$0xff] }
 0x4e1   :  { %8853 = vrot.lane.b32.xlu0 %v4412_v4, %s16636_s20  ;;  %v10528_v26 = vsel %vm17244_vm7, %v10527_v21, %v17243_v57  ;;  %v8626_v34 = vpop.permute.xlu1 %8625  ;;  %vm17248_vm6 = vmmov %vm17242_vm9  ;;  %v10468_v54 = vsel %vm17239_vm8, %v10467_v6, %v17250_v22  ;;  %v10501_v38 = vsel %vm17252_vm4, %v10500_v40, %v17251_v39  ;;  %v4470_v4 = vcombine.low %v4438_v2, %v4453_v18  ;;  %v17280_v6 = vld [vmem:[#allocation114_spill] sm:$0xff]  ;;  %v17281_v57 = vld [vmem:[#allocation87_spill] sm:$0xff] }
 0x4e2   :  { %v10529_v53 = vsel %vm17248_vm6, %v10528_v26, %v17247_v14  ;;  %vm17249_vm5 = vmmov %vm17248_vm6  ;;  %vm17259_vm6 = vcmask 687104   ;;  %v4486_v21 = vcombine.high %v4462_v47, %v16743_v49  ;;  %v4512_v28 = vrot.slane %v17280_v6, %v11234_v5  ;;  %v17290_v39 = vld [vmem:[#allocation40_spill] sm:$0xff] }
 0x4e3   :  { %v10560_v60 = vsel %vm17249_vm5, %v10559_v7, %v8626_v34  ;;  %v8630_v10 = vpop.permute.xlu0 %8629  ;;  %8857 = vrot.lane.b32.xlu1 %v4422_v62, %s16947_s18  ;;  %vm17253_vm9 = vmmov %vm17239_vm8  ;;  %v10502_v23 = vsel %vm17259_vm6, %v10501_v38, %v17258_v45  ;;  %v17277_v7 = vld [vmem:[#allocation21_spill] sm:$0xff]  ;;  %v4471_v34 = vcombine.high %v4438_v2, %v4453_v18  ;;  %v17283_v62 = vld [vmem:[#allocation158_spill] sm:$0xff]  ;;  %v4487_v40 = vcombine.high %v4469_v55, %v16743_v49 }
 0x4e4   :  { %v10561_v8 = vsel %vm17253_vm9, %v10560_v60, %v8630_v10  ;;  %vm17255_vm7 = vmmov %vm17246_vm10  ;;  %vm17265_vm9 = vcmask 719872   ;;  %v4478_v14 = vrot.slane %v4470_v4, %v11557_v48  ;;  %v17287_v10 = vld [vmem:[#allocation187_spill] sm:$0xff]  ;;  %v4497_v38 = vrot.slane %v17290_v39, %v11234_v5  ;;  %v17300_v2 = vld [vmem:[#allocation204_spill] sm:$0xff] }
 0x4e5   :  { %v10469_v59 = vsel %vm17255_vm7, %v10468_v54, %v17254_v61  ;;  %8861 = vrot.lane.b32.xlu0 %v4419_v20, %s11198_s22  ;;  %vm17257_vm10 = vmmov %vm17239_vm8  ;;  %v8634_v52 = vpop.permute.xlu1 %8633  ;;  %v10503_v58 = vsel %vm17265_vm9, %v10502_v23, %v17264_v27  ;;  %v17292_v61 = vld [vmem:[#allocation20_spill] sm:$0xff] }
 0x4e6   :  { %v10530_v44 = vsel %vm17257_vm10, %v10529_v53, %v17256_v33  ;;  %vm17261_vm5 = vmmov %vm17255_vm7  ;;  %v10470_v16 = vsel %vm17252_vm4, %v10469_v59, %v17263_v12  ;;  %v17285_v53 = vld [vmem:[#allocation94_spill] sm:$0xff] }
 0x4e7   :  { %v10531_v19 = vsel %vm17261_vm5, %v10530_v44, %v17260_v36  ;;  %vm17262_vm8 = vmmov %vm17261_vm5  ;;  %v8638_v3 = vpop.permute.xlu0 %8637  ;;  %8865 = vrot.lane.b32.xlu1 %v4423_v9, %s16633_s25  ;;  %vm17272_vm5 = vcmask 752640   ;;  %v17294_v33 = vld [vmem:[#allocation86_spill] sm:$0xff]  ;;  %v17296_v9 = vld [vmem:[#allocation161_spill] sm:$0xff]  ;;  %v4488_v36 = vcombine.high %v4478_v14, %v16743_v49 }
 0x4e8   :  { %v10562_v11 = vsel %vm17262_vm8, %v10561_v8, %v8634_v52  ;;  %vm17266_vm7 = vmmov %vm17252_vm4  ;;  %v10504_v25 = vsel %vm17272_vm5, %v10503_v58, %v17271_v37  ;;  %v17291_v8 = vld [vmem:[#allocation13_spill] sm:$0xff]  ;;  %v4520_v52 = vcombine.low %v4497_v38, %v4512_v28  ;;  %v4490_v58 = vcombine.high %v17290_v39, %v16743_v49 }
 0x4e9   :  { %v10563_v24 = vsel %vm17266_vm7, %v10562_v11, %v8638_v3  ;;  %vm17268_vm10 = vmmov %vm17259_vm6  ;;  %8869 = vrot.lane.b32.xlu0 %v4462_v47, %s16925_s23  ;;  %v8642_v32 = vpop.permute.xlu1 %8641  ;;  %vm17278_vm7 = vcmask 785408   ;;  %v4505_v47 = vcombine.high %v17280_v6, %v16743_v49  ;;  %v17298_v11 = vld [vmem:[#allocation97_spill] sm:$0xff]  ;;  %v17311_v6 = vld [vmem:[#allocation15_spill] sm:$0xff] }
 0x4ea   :  { %v10471_v30 = vsel %vm17268_vm10, %v10470_v16, %v17267_v42  ;;  %vm17270_vm6 = vmmov %vm17252_vm4  ;;  %v10505_v0 = vsel %vm17278_vm7, %v10504_v25, %v17277_v7  ;;  %v4528_v37 = vrot.slane %v4520_v52, %v11557_v48  ;;  %v17317_v39 = vld [vmem:[#allocation177_spill] sm:$0xff]  ;;  %v17320_v52 = vld [vmem:[#allocation91_spill] sm:$0xff] }
 0x4eb   :  { %v10532_v1 = vsel %vm17270_vm6, %v10531_v19, %v17269_v51  ;;  %vm17274_vm8 = vmmov %vm17268_vm10  ;;  %v8646_v41 = vpop.permute.xlu0 %8645  ;;  %v10472_v17 = vsel %vm17265_vm9, %v10471_v30, %v17276_v15  ;;  %8873 = vrot.lane.b32.xlu1 %v4486_v21, %s16888_s24  ;;  %v4485_v19 = vrot.slane %v4471_v34, %v11557_v48  ;;  %v17304_v30 = vld [vmem:[#allocation23_spill] sm:$0xff]  ;;  %v4519_v51 = vrot.slane %v4505_v47, %v11234_v5  ;;  %v17313_v34 = vld [vmem:[#allocation88_spill] sm:$0xff] }
 0x4ec   :  { %v10533_v46 = vsel %vm17274_vm8, %v10532_v1, %v17273_v35  ;;  %vm17275_vm4 = vmmov %vm17274_vm8  ;;  %vm17286_vm8 = vcmask 818176   ;;  %v17305_v1 = vld [vmem:[#allocation89_spill] sm:$0xff]  ;;  %v4521_v21 = vcombine.high %v4497_v38, %v4512_v28  ;;  %v17308_v15 = vld [vmem:[#allocation195_spill] sm:$0xff] }
 0x4ed   :  { %v10564_v29 = vsel %vm17275_vm4, %v10563_v24, %v8642_v32  ;;  %vm17279_vm10 = vmmov %vm17265_vm9  ;;  %8877 = vrot.lane.b32.xlu0 %v4469_v55, %s11202_s26  ;;  %v8650_v50 = vpop.permute.xlu1 %8649  ;;  %v10506_v60 = vsel %vm17286_vm8, %v10505_v0, %v17285_v53  ;;  %v17303_v24 = vld [vmem:[#allocation12_spill] sm:$0xff]  ;;  %v17319_v47 = vld [vmem:[#allocation43_spill] sm:$0xff] }
 0x4ee   :  { %v10565_v13 = vsel %vm17279_vm10, %v10564_v29, %v8646_v41  ;;  %vm17282_vm6 = vmmov %vm17272_vm5  ;;  %v10507_v59 = vsel %vm10222_vm13, %v10506_v60, %v17292_v61  ;;  %v17307_v29 = vld [vmem:[#allocation194_spill] sm:$0xff]  ;;  %v4552_v60 = vcombine.high %v4528_v37, %v16743_v49 }
 0x4ef   :  { %v10473_v26 = vsel %vm17282_vm6, %v10472_v17, %v17281_v57  ;;  %vm17284_vm5 = vmmov %vm17265_vm9  ;;  %v8654_v54 = vpop.permute.xlu0 %8653  ;;  %8881 = vrot.lane.b32.xlu1 %v4487_v40, %s16631_s29  ;;  %v17312_v57 = vld [vmem:[#allocation96_spill] sm:$0xff]  ;;  %v17314_v40 = vld [vmem:[#allocation182_spill] sm:$0xff] }
 0x4f0   :  { %v10534_v20 = vsel %vm17284_vm5, %v10533_v46, %v17283_v62  ;;  %vm17288_vm4 = vmmov %vm17282_vm6  ;;  %v10474_v18 = vsel %vm17278_vm7, %v10473_v26, %v17291_v8  ;;  %v4489_v46 = vcombine.high %v4485_v19, %v16743_v49  ;;  %v17318_v61 = vld [vmem:[#allocation14_spill] sm:$0xff] }
 0x4f1   :  { %v10535_v31 = vsel %vm17288_vm4, %v10534_v20, %v17287_v10  ;;  %vm17289_vm9 = vmmov %vm17288_vm4  ;;  %8885 = vrot.lane.b32.xlu0 %v4478_v14, %s16854_s27  ;;  %v8658_v23 = vpop.permute.xlu1 %8657  ;;  %v4535_v20 = vrot.slane %v4521_v21, %v11557_v48  ;;  %v17315_v10 = vld [vmem:[#allocation117_spill] sm:$0xff] }
 0x4f2   :  { %v10566_v22 = vsel %vm17289_vm9, %v10565_v13, %v8650_v50  ;;  %vm17293_vm10 = vmmov %vm17278_vm7  ;;  %v4504_v13 = vrot.slane %v4490_v58, %v11234_v5 }
 0x4f3   :  { %v10567_v63 = vsel %vm17293_vm10, %v10566_v22, %v8654_v54  ;;  %vm17295_vm6 = vmmov %vm17286_vm8  ;;  %vm17299_vm8 = vcmask 883712   ;;  %v8662_v27 = vpop.permute.xlu0 %8661  ;;  %8889 = vrot.lane.b32.xlu1 %v4488_v36, %s11207_s2  ;;  %v17316_v22 = vld [vmem:[#allocation22_spill] sm:$0xff] }
 0x4f4   :  { %v10475_v44 = vsel %vm17295_vm6, %v10474_v18, %v17294_v33  ;;  %vm17297_vm5 = vmmov %vm17278_vm7  ;;  %v10508_v3 = vsel %vm17299_vm8, %v10507_v59, %v17298_v11  ;;  %v4536_v50 = vcombine.low %v4504_v13, %v4519_v51  ;;  %v4563_v33 = vrot.slane %v17319_v47, %v11234_v5 }
 0x4f5   :  { %v10536_v45 = vsel %vm17297_vm5, %v10535_v31, %v17296_v9  ;;  %vm17301_vm4 = vmmov %vm17295_vm6  ;;  %v10476_v42 = vsel %vm10222_vm13, %v10475_v44, %v17303_v24  ;;  %v10509_v55 = vsel %vm10226_vm15, %v10508_v3, %v17304_v30  ;;  %8893 = vrot.lane.b32.xlu0 %v4485_v19, %s16649_s30  ;;  %v8666_v35 = vpop.permute.xlu1 %8665  ;;  %v4578_v31 = vrot.slane %v17315_v10, %v11234_v5 }
 0x4f6   :  { %v10537_v12 = vsel %vm17301_vm4, %v10536_v45, %v17300_v2  ;;  %vm17302_vm9 = vmmov %vm17301_vm4  ;;  %v10510_v41 = vsel %vm10228_vm12, %v10509_v55, %v17307_v29  ;;  %v4537_v44 = vcombine.high %v4504_v13, %v4519_v51  ;;  %v4553_v11 = vcombine.high %v4535_v20, %v16743_v49 }
 0x4f7   :  { %v10568_v16 = vsel %vm17302_vm9, %v10567_v63, %v8658_v23  ;;  %vm17306_vm7 = vmmov %vm17299_vm8  ;;  %v10538_v25 = vsel %vm10222_vm13, %v10537_v12, %v14038_v43  ;;  %v8670_v0 = vpop.permute.xlu0 %8669  ;;  %v10511_v43 = vsel %vm10230_vm11, %v10510_v41, %v17312_v57  ;;  %8897 = vrot.lane.b32.xlu1 %v4489_v46, %s16629_s4  ;;  %s17321_s4 = smov 104   ;;  %v17322_v23 = vld [vmem:[#allocation167_spill] sm:$0xff]  ;;  %v4544_v3 = vrot.slane %v4536_v50, %v11557_v48 }
 0x4f8   :  { %v10569_v4 = vsel %vm10222_vm13, %v10568_v16, %v8662_v27  ;;  %v10477_v32 = vsel %vm17306_vm7, %v10476_v42, %v17305_v1  ;;  %vm17309_vm10 = vmmov %vm17306_vm7  ;;  %v10512_v54 = vsel %vm10232_vm14, %v10511_v43, %v17316_v22  ;;  %v4571_v2 = vcombine.high %v17315_v10, %v16743_v49  ;;  %v17323_v16 = vld [vmem:[#allocation164_spill] sm:$0xff] }
 0x4f9   :  { %v10539_v17 = vsel %vm17309_vm10, %v10538_v25, %v17308_v15  ;;  %vm17310_vm6 = vmmov %vm17306_vm7  ;;  %v10478_v28 = vsel %vm10226_vm15, %v10477_v32, %v17311_v6  ;;  %8901 = vrot.lane.b32.xlu0 %v4528_v37, %s16837_s28  ;;  %v8674_v53 = vpop.permute.xlu1 %8673  ;;  %v4586_v12 = vcombine.low %v4563_v33, %v4578_v31  ;;  %v4556_v30 = vcombine.high %v17319_v47, %v16743_v49 }
 0x4fa   :  { %v10570_v7 = vsel %vm17310_vm6, %v10569_v4, %v8666_v35  ;;  %v10479_v62 = vsel %vm10228_vm12, %v10478_v28, %v17313_v34  ;;  %v10540_v14 = vsel %vm10226_vm15, %v10539_v17, %v17314_v40  ;;  %v4554_v1 = vcombine.high %v4544_v3, %v16743_v49  ;;  %v17324_v28 = vld [vmem:[#allocation116_spill] sm:$0xff] }
 0x4fb   :  { %v10571_v26 = vsel %vm10226_vm15, %v10570_v7, %v8670_v0  ;;  %v10541_v38 = vsel %vm10228_vm12, %v10540_v14, %v17317_v39  ;;  %v8678_v18 = vpop.permute.xlu0 %8677  ;;  %v10480_v59 = vsel %vm10230_vm11, %v10479_v62, %v17318_v61  ;;  %8905 = vrot.lane.b32.xlu1 %v4552_v60, %s16647_s6  ;;  %v4551_v32 = vrot.slane %v4537_v44, %v11557_v48 }
 0x4fc   :  { %v10572_v8 = vsel %vm10228_vm12, %v10571_v26, %v8674_v53  ;;  %v10481_v9 = vsel %vm10232_vm14, %v10480_v59, %v17320_v52  ;;  %v10542_v36 = vsel %vm10230_vm11, %v10541_v38, %v17322_v23  ;;  %v4585_v21 = vrot.slane %v4571_v2, %v11234_v5  ;;  %v17326_v23 = vld [vmem:[#allocation119_spill] sm:$0xff]  ;;  %v17328_v2 = vld [vmem:[#allocation45_spill] sm:$0xff] }
 0x4fd   :  { %v10573_v63 = vsel %vm10230_vm11, %v10572_v8, %v8678_v18  ;;  %8909 = vrot.lane.b32.xlu0 %v4535_v20, %s17321_s4  ;;  %v11005_v45 = vcombine.low %v10481_v9, %v10512_v54  ;;  %v8682_v19 = vpop.permute.xlu1 %8681  ;;  %v10543_v27 = vsel %vm10232_vm14, %v10542_v36, %v17323_v16  ;;  %v4587_v37 = vcombine.high %v4563_v33, %v4578_v31  ;;  %v17325_v20 = vld [vmem:[#allocation42_spill] sm:$0xff] }
 0x4fe   :  { %v10574_v58 = vsel %vm10232_vm14, %v10573_v63, %v8682_v19  ;;  %v14410_v25 = vrot.slane %v4586_v12, %v11557_v48  ;;  %v4570_v29 = vrot.slane %v4556_v30, %v11234_v5  ;;  %v4555_v15 = vcombine.high %v4551_v32, %v16743_v49 }
 0x4ff   :  { %v14396_v24 = vpop.permute.xlu0 %8685  ;;  %v11006_v42 = vcombine.low %v10543_v27, %v10574_v58  ;;  %8913 = vrot.lane.b32.xlu1 %v4553_v11, %s16821_s3  ;;  %v11013_v55 = vrot.slane %v11005_v45, %v11234_v5  ;;  %v4601_v0 = vrot.slane %v4587_v37, %v11557_v48  ;;  %v4644_v57 = vrot.slane %v17324_v28, %v11234_v5 }
 0x500   :  { %v4602_v17 = vcombine.low %v4570_v29, %v4585_v21  ;;  %v4618_v13 = vcombine.high %v14410_v25, %v16743_v49  ;;  %v4603_v43 = vcombine.high %v4570_v29, %v4585_v21  ;;  %v4629_v50 = vrot.slane %v17325_v20, %v11234_v5 }
 0x501   :  { %8917 = vrot.lane.b32.xlu0 %v4544_v3, %s17185_s5  ;;  %v11020_v4 = vrot.slane %v11006_v42, %v11234_v5  ;;  %v14404_v51 = vpop.permute.xlu1 %8689  ;;  %v4619_v62 = vcombine.high %v4601_v0, %v16743_v49  ;;  %v4637_v14 = vcombine.high %v17324_v28, %v16743_v49  ;;  %v4622_v22 = vcombine.high %v17325_v20, %v16743_v49 }
 0x502   :  { %v4610_v34 = vrot.slane %v4602_v17, %v11557_v48  ;;  %v4652_v53 = vcombine.low %v4629_v50, %v4644_v57  ;;  %v4617_v10 = vrot.slane %v4603_v43, %v11557_v48  ;;  %v4653_v38 = vcombine.high %v4629_v50, %v4644_v57 }
 0x503   :  { %v14412_v35 = vpop.permute.xlu0 %8693  ;;  %v11021_v46 = vcombine.low %v11013_v55, %v11020_v4  ;;  %8921 = vrot.lane.b32.xlu1 %v4554_v1, %s16644_s10  ;;  %v4651_v39 = vrot.slane %v4637_v14, %v11234_v5  ;;  %v4636_v59 = vrot.slane %v4622_v22, %v11234_v5  ;;  %v4710_v36 = vrot.slane %v17326_v23, %v11234_v5 }
 0x504   :  { %v4620_v31 = vcombine.high %v4610_v34, %v16743_v49  ;;  %v4660_v18 = vrot.slane %v4652_v53, %v11557_v48  ;;  %v4621_v61 = vcombine.high %v4617_v10, %v16743_v49  ;;  %v4667_v44 = vrot.slane %v4653_v38, %v11557_v48 }
 0x505   :  { %8925 = vrot.lane.b32.xlu0 %v4551_v32, %s16800_s8  ;;  %11081 = vst [vmem:[#allocation5 + $0x10] sm:$0xff] %v11021_v46  ;;  %v14417_v41 = vpop.permute.xlu1 %8697  ;;  %v4668_v47 = vcombine.low %v4636_v59, %v4651_v39  ;;  %v4669_v45 = vcombine.high %v4636_v59, %v4651_v39  ;;  %v4695_v12 = vrot.slane %v17328_v2, %v11234_v5  ;;  %vm17403_vm5 = vcmask 162816  }
 0x506   :  { %v4684_v52 = vcombine.high %v4660_v18, %v16743_v49  ;;  %v4685_v3 = vcombine.high %v4667_v44, %v16743_v49  ;;  %v4703_v27 = vcombine.high %v17326_v23, %v16743_v49  ;;  %v4688_v4 = vcombine.high %v17328_v2, %v16743_v49  ;;  %vm17405_vm4 = vmmov %vm17403_vm5 }
 0x507   :  { %v14420_v7 = vpop.permute.xlu0 %8701  ;;  %8929 = vrot.lane.b32.xlu1 %v4555_v15, %s17158_s7  ;;  %v4676_v11 = vrot.slane %v4668_v47, %v11557_v48  ;;  %v4718_v58 = vcombine.low %v4695_v12, %v4710_v36  ;;  %v4683_v30 = vrot.slane %v4669_v45, %v11557_v48  ;;  %v4719_v21 = vcombine.high %v4695_v12, %v4710_v36  ;;  %vm17407_vm7 = vmmov %vm17405_vm4 }
 0x508   :  { %v4717_v32 = vrot.slane %v4703_v27, %v11234_v5  ;;  %v4702_v15 = vrot.slane %v4688_v4, %v11234_v5  ;;  %vm17404_vm8 = vcmask 195584   ;;  %vm17406_vm9 = vcmask 228352   ;;  %vm17408_vm10 = vmmov %vm17405_vm4 }
 0x509   :  { %8933 = vrot.lane.b32.xlu0 %v4618_v13, %s11187_s11  ;;  %v14427_v6 = vpop.permute.xlu1 %8705  ;;  %v4686_v55 = vcombine.high %v4676_v11, %v16743_v49  ;;  %v4726_v46 = vrot.slane %v4718_v58, %v11557_v48  ;;  %v4687_v29 = vcombine.high %v4683_v30, %v16743_v49  ;;  %v4733_v28 = vrot.slane %v4719_v21, %v11557_v48  ;;  %vm17409_vm6 = vmmov %vm17404_vm8 }
 0x50a   :  { %v4735_v20 = vcombine.high %v4702_v15, %v4717_v32 }
 0x50b   :  { %v14431_v26 = vpop.permute.xlu0 %8709  ;;  %8937 = vrot.lane.b32.xlu1 %v4601_v0, %s16642_s0  ;;  %v4734_v0 = vcombine.low %v4702_v15, %v4717_v32  ;;  %v4750_v57 = vcombine.high %v4726_v46, %v16743_v49  ;;  %v4751_v53 = vcombine.high %v4733_v28, %v16743_v49 }
 0x50d   :  { %8941 = vrot.lane.b32.xlu0 %v4619_v62, %s17134_s9  ;;  %v14439_v40 = vpop.permute.xlu1 %8713  ;;  %v4742_v14 = vrot.slane %v4734_v0, %v11557_v48  ;;  %v17349_v0 = vld [vmem:[#allocation47_spill] sm:$0xff] }
 0x50f   :  { %v14443_v60 = vpop.permute.xlu0 %8717  ;;  %8945 = vrot.lane.b32.xlu1 %v4610_v34, %s11188_s12  ;;  %v17336_v34 = vld [vmem:[#allocation118_spill] sm:$0xff]  ;;  %v4752_v59 = vcombine.high %v4742_v14, %v16743_v49 }
 0x510   :  { %v4776_v62 = vrot.slane %v17336_v34, %v11234_v5  ;;  %v4769_v39 = vcombine.high %v17336_v34, %v16743_v49 }
 0x511   :  { %8949 = vrot.lane.b32.xlu0 %v4620_v31, %s16640_s15  ;;  %v14451_v54 = vpop.permute.xlu1 %8721 }
 0x513   :  { %v14454_v8 = vpop.permute.xlu0 %8725  ;;  %8953 = vrot.lane.b32.xlu1 %v4617_v10, %s17108_s13  ;;  %v17338_v10 = vld [vmem:[#allocation44_spill] sm:$0xff] }
 0x514   :  { %v4761_v31 = vrot.slane %v17338_v10, %v11234_v5  ;;  %v4754_v47 = vcombine.high %v17338_v10, %v16743_v49  ;;  %v4820_v10 = vcombine.high %v17349_v0, %v16743_v49 }
 0x515   :  { %8957 = vrot.lane.b32.xlu0 %v4621_v61, %s16999_s14  ;;  %v14461_v63 = vpop.permute.xlu1 %8729  ;;  %v4749_v61 = vrot.slane %v4735_v20, %v11557_v48 }
 0x516   :  { %v4784_v38 = vcombine.low %v4761_v31, %v4776_v62  ;;  %v4785_v45 = vcombine.high %v4761_v31, %v4776_v62 }
 0x517   :  { %v14463_v33 = vpop.permute.xlu0 %8733  ;;  %8961 = vrot.lane.b32.xlu1 %v4660_v18, %s11192_s16 }
 0x518   :  { %v4792_v36 = vrot.slane %v4784_v38, %v11557_v48  ;;  %v4799_v58 = vrot.slane %v4785_v45, %v11557_v48 }
 0x519   :  { %8965 = vrot.lane.b32.xlu0 %v4684_v52, %s16638_s19  ;;  %v14469_v9 = vpop.permute.xlu1 %8737  ;;  %v4783_v52 = vrot.slane %v4769_v39, %v11234_v5 }
 0x51a   :  { %v4817_v15 = vcombine.high %v4799_v58, %v16743_v49 }
 0x51b   :  { %v14473_v19 = vpop.permute.xlu0 %8741  ;;  %8969 = vrot.lane.b32.xlu1 %v4667_v44, %s16971_s17 }
 0x51c   :  { %17327 = vst [vmem:[#allocation188_spill] sm:$0xff] %v14473_v19 }
 0x51d   :  { %8973 = vrot.lane.b32.xlu0 %v4685_v3, %s11197_s21  ;;  %v14481_v16 = vpop.permute.xlu1 %8745  ;;  %v4768_v3 = vrot.slane %v4754_v47, %v11234_v5 }
 0x51e   :  { %17329 = vst [vmem:[#allocation196_spill] sm:$0xff] %v14481_v16 }
 0x51f   :  { %v14485_v42 = vpop.permute.xlu0 %8749  ;;  %8977 = vrot.lane.b32.xlu1 %v4676_v11, %s16636_s20  ;;  %v4753_v11 = vcombine.high %v4749_v61, %v16743_v49  ;;  %v4800_v12 = vcombine.low %v4768_v3, %v4783_v52  ;;  %v4801_v21 = vcombine.high %v4768_v3, %v4783_v52  ;;  %v4834_v52 = vrot.slane %v4820_v10, %v11234_v5 }
 0x520   :  { %17330 = vst [vmem:[#allocation183_spill] sm:$0xff] %v14485_v42 }
 0x521   :  { %8981 = vrot.lane.b32.xlu0 %v4686_v55, %s16947_s18  ;;  %v14493_v1 = vpop.permute.xlu1 %8753  ;;  %v17346_v55 = vld [vmem:[#allocation121_spill] sm:$0xff] }
 0x522   :  { %17331 = vst [vmem:[#allocation157_spill] sm:$0xff] %v14493_v1  ;;  %v4842_v4 = vrot.slane %v17346_v55, %v11234_v5 }
 0x523   :  { %v14496_v37 = vpop.permute.xlu0 %8757  ;;  %8985 = vrot.lane.b32.xlu1 %v4683_v30, %s11198_s22  ;;  %v4816_v30 = vcombine.high %v4792_v36, %v16743_v49 }
 0x524   :  { %17332 = vst [vmem:[#allocation170_spill] sm:$0xff] %v14496_v37 }
 0x525   :  { %8989 = vrot.lane.b32.xlu0 %v4687_v29, %s16633_s25  ;;  %v14503_v17 = vpop.permute.xlu1 %8761  ;;  %v4808_v29 = vrot.slane %v4800_v12, %v11557_v48 }
 0x526   :  { %17333 = vst [vmem:[#allocation163_spill] sm:$0xff] %v14503_v17 }
 0x527   :  { %v14505_v13 = vpop.permute.xlu0 %8765  ;;  %8993 = vrot.lane.b32.xlu1 %v4726_v46, %s16925_s23 }
 0x528   :  { %17334 = vst [vmem:[#allocation205_spill] sm:$0xff] %v14505_v13 }
 0x529   :  { %8997 = vrot.lane.b32.xlu0 %v4750_v57, %s16888_s24  ;;  %v14511_v43 = vpop.permute.xlu1 %8769  ;;  %v4835_v57 = vcombine.high %v17346_v55, %v16743_v49 }
 0x52a   :  { %17335 = vst [vmem:[#allocation178_spill] sm:$0xff] %v14511_v43 }
 0x52b   :  { %v14515_v50 = vpop.permute.xlu0 %8773  ;;  %9001 = vrot.lane.b32.xlu1 %v4733_v28, %s11202_s26  ;;  %v4827_v28 = vrot.slane %v17349_v0, %v11234_v5  ;;  %v4849_v31 = vrot.slane %v4835_v57, %v11234_v5  ;;  %v17351_v0 = vld [vmem:[#allocation46_spill] sm:$0xff] }
 0x52c   :  { %17337 = vst [vmem:[#allocation184_spill] sm:$0xff] %v14515_v50 }
 0x52d   :  { %9005 = vrot.lane.b32.xlu0 %v4751_v53, %s16631_s29  ;;  %v14523_v22 = vpop.permute.xlu1 %8777  ;;  %s17343_s29 = smov 92   ;;  %v4850_v34 = vcombine.low %v4827_v28, %v4842_v4  ;;  %v4818_v53 = vcombine.high %v4808_v29, %v16743_v49  ;;  %v4851_v39 = vcombine.high %v4827_v28, %v4842_v4  ;;  %v4867_v55 = vcombine.high %v4834_v52, %v4849_v31 }
 0x52e   :  { %17339 = vst [vmem:[#allocation98_spill] sm:$0xff] %v14523_v22  ;;  %v4893_v28 = vrot.slane %v17351_v0, %v11234_v5 }
 0x52f   :  { %v14527_v18 = vpop.permute.xlu0 %8781  ;;  %9009 = vrot.lane.b32.xlu1 %v4742_v14, %s16854_s27  ;;  %v4815_v14 = vrot.slane %v4801_v21, %v11557_v48  ;;  %v14579_v38 = vrot.slane %v4850_v34, %v11557_v48  ;;  %v4865_v45 = vrot.slane %v4851_v39, %v11557_v48  ;;  %v4881_v10 = vrot.slane %v4867_v55, %v11557_v48 }
 0x530   :  { %17340 = vst [vmem:[#allocation9_spill] sm:$0xff] %v14527_v18  ;;  %v4886_v39 = vcombine.high %v17351_v0, %v16743_v49 }
 0x531   :  { %9013 = vrot.lane.b32.xlu0 %v4752_v59, %s11207_s2  ;;  %v14535_v44 = vpop.permute.xlu1 %8785  ;;  %v4819_v47 = vcombine.high %v4815_v14, %v16743_v49  ;;  %v4882_v3 = vcombine.high %v14579_v38, %v16743_v49  ;;  %v4883_v21 = vcombine.high %v4865_v45, %v16743_v49 }
 0x532   :  { %17341 = vst [vmem:[#allocation189_spill] sm:$0xff] %v14535_v44  ;;  %v4900_v55 = vrot.slane %v4886_v39, %v11234_v5 }
 0x533   :  { %v14538_v23 = vpop.permute.xlu0 %8789  ;;  %9017 = vrot.lane.b32.xlu1 %v4749_v61, %s16649_s30 }
 0x534   :  { %17342 = vst [vmem:[#allocation166_spill] sm:$0xff] %v14538_v23 }
 0x535   :  { %9021 = vrot.lane.b32.xlu0 %v4753_v11, %s17343_s29  ;;  %v14545_v2 = vpop.permute.xlu1 %8793 }
 0x536   :  { %17344 = vst [vmem:[#allocation206_spill] sm:$0xff] %v14545_v2 }
 0x537   :  { %v14547_v27 = vpop.permute.xlu0 %8797  ;;  %9025 = vrot.lane.b32.xlu1 %v4792_v36, %s16837_s28  ;;  %v4866_v36 = vcombine.low %v4834_v52, %v4849_v31 }
 0x538   :  { %17345 = vst [vmem:[#allocation24_spill] sm:$0xff] %v14547_v27 }
 0x539   :  { %9029 = vrot.lane.b32.xlu0 %v4816_v30, %s16647_s6  ;;  %v14555_v32 = vpop.permute.xlu1 %8801 }
 0x53a   :  { %17347 = vst [vmem:[#allocation83_spill] sm:$0xff] %v14555_v32 }
 0x53b   :  { %v14557_v46 = vpop.permute.xlu0 %8805  ;;  %9033 = vrot.lane.b32.xlu1 %v4799_v58, %s17321_s4  ;;  %v17350_v58 = vld [vmem:[#allocation120_spill] sm:$0xff] }
 0x53c   :  { %17348 = vst [vmem:[#allocation201_spill] sm:$0xff] %v14557_v46  ;;  %v4908_v30 = vrot.slane %v17350_v58, %v11234_v5  ;;  %v4901_v57 = vcombine.high %v17350_v58, %v16743_v49 }
 0x53d   :  { %9037 = vrot.lane.b32.xlu0 %v4817_v15, %s16821_s3  ;;  %v14567_v62 = vpop.permute.xlu1 %8809 }
 0x53e   :  { %v4916_v34 = vcombine.low %v4893_v28, %v4908_v30  ;;  %v4917_v52 = vcombine.high %v4893_v28, %v4908_v30 }
 0x53f   :  { %v14569_v20 = vpop.permute.xlu0 %8813  ;;  %9041 = vrot.lane.b32.xlu1 %v4808_v29, %s17185_s5  ;;  %v4874_v29 = vrot.slane %v4866_v36, %v11557_v48 }
 0x541   :  { %9045 = vrot.lane.b32.xlu0 %v4818_v53, %s16644_s10  ;;  %v14581_v61 = vpop.permute.xlu1 %8817  ;;  %v4884_v53 = vcombine.high %v4874_v29, %v16743_v49 }
 0x543   :  { %v14583_v59 = vpop.permute.xlu0 %8821  ;;  %9049 = vrot.lane.b32.xlu1 %v4815_v14, %s16800_s8 }
 0x545   :  { %9053 = vrot.lane.b32.xlu0 %v4819_v47, %s17158_s7  ;;  %v14590_v11 = vpop.permute.xlu1 %8825  ;;  %v4915_v47 = vrot.slane %v4901_v57, %v11234_v5 }
 0x547   :  { %v14594_v12 = vpop.permute.xlu0 %8829  ;;  %9057 = vrot.lane.b32.xlu1 %v4882_v3, %s11187_s11  ;;  %v4885_v3 = vcombine.high %v4881_v10, %v16743_v49  ;;  %v4933_v57 = vcombine.high %v4900_v55, %v4915_v47 }
 0x549   :  { %9061 = vrot.lane.b32.xlu0 %v4865_v45, %s16642_s0  ;;  %v14600_v4 = vpop.permute.xlu1 %8833  ;;  %v4924_v45 = vrot.slane %v4916_v34, %v11557_v48  ;;  %v17352_v34 = vld [vmem:[#allocation123_spill] sm:$0xff] }
 0x54b   :  { %v14604_v15 = vpop.permute.xlu0 %8837  ;;  %9065 = vrot.lane.b32.xlu1 %v4883_v21, %s17134_s9  ;;  %v4931_v21 = vrot.slane %v4917_v52, %v11557_v48  ;;  %v4948_v30 = vcombine.high %v4924_v45, %v16743_v49 }
 0x54d   :  { %9069 = vrot.lane.b32.xlu0 %v4874_v29, %s11188_s12  ;;  %v14612_v14 = vpop.permute.xlu1 %8841  ;;  %v4932_v29 = vcombine.low %v4900_v55, %v4915_v47  ;;  %v4949_v39 = vcombine.high %v4931_v21, %v16743_v49  ;;  %v4967_v47 = vcombine.high %v17352_v34, %v16743_v49 }
 0x54f   :  { %v14616_v31 = vpop.permute.xlu0 %8845  ;;  %9073 = vrot.lane.b32.xlu1 %v4884_v53, %s16640_s15  ;;  %v4974_v53 = vrot.slane %v17352_v34, %v11234_v5  ;;  %v4940_v52 = vrot.slane %v4932_v29, %v11557_v48 }
 0x551   :  { %9077 = vrot.lane.b32.xlu0 %v4881_v10, %s17108_s13  ;;  %v14624_v36 = vpop.permute.xlu1 %8849  ;;  %v4950_v32 = vcombine.high %v4940_v52, %v16743_v49 }
 0x553   :  { %v14627_v58 = vpop.permute.xlu0 %8853  ;;  %9081 = vrot.lane.b32.xlu1 %v4885_v3, %s16999_s14 }
 0x555   :  { %9085 = vrot.lane.b32.xlu0 %v4924_v45, %s11192_s16  ;;  %v14633_v0 = vpop.permute.xlu1 %8857  ;;  %v17354_v45 = vld [vmem:[#allocation49_spill] sm:$0xff] }
 0x556   :  { %v4959_v46 = vrot.slane %v17354_v45, %v11234_v5  ;;  %v4952_v27 = vcombine.high %v17354_v45, %v16743_v49 }
 0x557   :  { %v14636_v28 = vpop.permute.xlu0 %8861  ;;  %9089 = vrot.lane.b32.xlu1 %v4948_v30, %s16638_s19 }
 0x558   :  { %v4982_v55 = vcombine.low %v4959_v46, %v4974_v53  ;;  %v4983_v2 = vcombine.high %v4959_v46, %v4974_v53 }
 0x559   :  { %9093 = vrot.lane.b32.xlu0 %v4931_v21, %s16971_s17  ;;  %v14642_v10 = vpop.permute.xlu1 %8865  ;;  %v4947_v21 = vrot.slane %v4933_v57, %v11557_v48  ;;  %v4966_v57 = vrot.slane %v4952_v27, %v11234_v5 }
 0x55a   :  { %v4990_v34 = vrot.slane %v4982_v55, %v11557_v48 }
 0x55b   :  { %v14646_v3 = vpop.permute.xlu0 %8869  ;;  %9097 = vrot.lane.b32.xlu1 %v4949_v39, %s11197_s21  ;;  %v4981_v39 = vrot.slane %v4967_v47, %v11234_v5  ;;  %v17361_v47 = vld [vmem:[#allocation122_spill] sm:$0xff] }
 0x55c   :  { %17353 = vst [vmem:[#allocation160_spill] sm:$0xff] %v14646_v3  ;;  %v5014_v46 = vcombine.high %v4990_v34, %v16743_v49  ;;  %v5040_v27 = vrot.slane %v17361_v47, %v11234_v5 }
 0x55d   :  { %9101 = vrot.lane.b32.xlu0 %v4940_v52, %s16636_s20  ;;  %v14654_v30 = vpop.permute.xlu1 %8873  ;;  %v4951_v52 = vcombine.high %v4947_v21, %v16743_v49  ;;  %v4998_v45 = vcombine.low %v4966_v57, %v4981_v39  ;;  %v4999_v55 = vcombine.high %v4966_v57, %v4981_v39 }
 0x55e   :  { %17355 = vst [vmem:[#allocation169_spill] sm:$0xff] %v14654_v30 }
 0x55f   :  { %v14658_v29 = vpop.permute.xlu0 %8877  ;;  %9105 = vrot.lane.b32.xlu1 %v4950_v32, %s16947_s18  ;;  %v4997_v32 = vrot.slane %v4983_v2, %v11557_v48  ;;  %v5006_v2 = vrot.slane %v4998_v45, %v11557_v48 }
 0x560   :  { %17356 = vst [vmem:[#allocation185_spill] sm:$0xff] %v14658_v29 }
 0x561   :  { %9109 = vrot.lane.b32.xlu0 %v4947_v21, %s11198_s22  ;;  %v14666_v23 = vpop.permute.xlu1 %8881  ;;  %v5016_v57 = vcombine.high %v5006_v2, %v16743_v49 }
 0x562   :  { %17357 = vst [vmem:[#allocation190_spill] sm:$0xff] %v14666_v23 }
 0x563   :  { %v14669_v44 = vpop.permute.xlu0 %8885  ;;  %9113 = vrot.lane.b32.xlu1 %v4951_v52, %s16633_s25  ;;  %v5015_v52 = vcombine.high %v4997_v32, %v16743_v49  ;;  %s17365_s25 = smov 76  }
 0x564   :  { %17358 = vst [vmem:[#allocation197_spill] sm:$0xff] %v14669_v44 }
 0x565   :  { %9117 = vrot.lane.b32.xlu0 %v4990_v34, %s16925_s23  ;;  %v14675_v18 = vpop.permute.xlu1 %8889  ;;  %v17364_v34 = vld [vmem:[#allocation48_spill] sm:$0xff] }
 0x566   :  { %17359 = vst [vmem:[#allocation202_spill] sm:$0xff] %v14675_v18  ;;  %v5025_v50 = vrot.slane %v17364_v34, %v11234_v5 }
 0x567   :  { %v14678_v53 = vpop.permute.xlu0 %8893  ;;  %9121 = vrot.lane.b32.xlu1 %v5014_v46, %s16888_s24  ;;  %v5033_v46 = vcombine.high %v17361_v47, %v16743_v49 }
 0x568   :  { %17360 = vst [vmem:[#allocation179_spill] sm:$0xff] %v14678_v53  ;;  %v5048_v43 = vcombine.low %v5025_v50, %v5040_v27 }
 0x569   :  { %9125 = vrot.lane.b32.xlu0 %v4997_v32, %s11202_s26  ;;  %v14684_v21 = vpop.permute.xlu1 %8897  ;;  %v5013_v32 = vrot.slane %v4999_v55, %v11557_v48 }
 0x56a   :  { %17362 = vst [vmem:[#allocation165_spill] sm:$0xff] %v14684_v21  ;;  %v5049_v21 = vcombine.high %v5025_v50, %v5040_v27  ;;  %v5056_v47 = vrot.slane %v5048_v43, %v11557_v48  ;;  %v17371_v43 = vld [vmem:[#allocation125_spill] sm:$0xff] }
 0x56b   :  { %v14688_v22 = vpop.permute.xlu0 %8901  ;;  %9129 = vrot.lane.b32.xlu1 %v5015_v52, %s17365_s25  ;;  %v5047_v52 = vrot.slane %v5033_v46, %v11234_v5  ;;  %v5106_v27 = vrot.slane %v17371_v43, %v11234_v5 }
 0x56c   :  { %17363 = vst [vmem:[#allocation172_spill] sm:$0xff] %v14688_v22  ;;  %v5018_v22 = vcombine.high %v17364_v34, %v16743_v49  ;;  %v5063_v34 = vrot.slane %v5049_v21, %v11557_v48  ;;  %v5080_v50 = vcombine.high %v5056_v47, %v16743_v49 }
 0x56d   :  { %9133 = vrot.lane.b32.xlu0 %v5006_v2, %s16854_s27  ;;  %v14696_v39 = vpop.permute.xlu1 %8905  ;;  %v5017_v2 = vcombine.high %v5013_v32, %v16743_v49 }
 0x56e   :  { %17366 = vst [vmem:[#allocation198_spill] sm:$0xff] %v14696_v39  ;;  %v5032_v55 = vrot.slane %v5018_v22, %v11234_v5  ;;  %v17373_v22 = vld [vmem:[#allocation51_spill] sm:$0xff]  ;;  %v5081_v21 = vcombine.high %v5063_v34, %v16743_v49 }
 0x56f   :  { %v14700_v45 = vpop.permute.xlu0 %8909  ;;  %9137 = vrot.lane.b32.xlu1 %v5016_v57, %s11207_s2 }
 0x570   :  { %17367 = vst [vmem:[#allocation186_spill] sm:$0xff] %v14700_v45  ;;  %v5064_v57 = vcombine.low %v5032_v55, %v5047_v52 }
 0x571   :  { %9141 = vrot.lane.b32.xlu0 %v5013_v32, %s16649_s30  ;;  %v14708_v13 = vpop.permute.xlu1 %8913  ;;  %v5091_v32 = vrot.slane %v17373_v22, %v11234_v5 }
 0x572   :  { %17368 = vst [vmem:[#allocation159_spill] sm:$0xff] %v14708_v13 }
 0x573   :  { %v14711_v39 = vpop.permute.xlu0 %8917  ;;  %9145 = vrot.lane.b32.xlu1 %v5017_v2, %s17343_s29  ;;  %v5065_v2 = vcombine.high %v5032_v55, %v5047_v52  ;;  %v5114_v13 = vcombine.low %v5091_v32, %v5106_v27 }
 0x574   :  { %17369 = vst [vmem:[#allocation191_spill] sm:$0xff] %v14711_v39 }
 0x575   :  { %9149 = vrot.lane.b32.xlu0 %v5056_v47, %s16837_s28  ;;  %v14717_v45 = vpop.permute.xlu1 %8921  ;;  %v5099_v47 = vcombine.high %v17371_v43, %v16743_v49  ;;  %v14746_v43 = vrot.slane %v5114_v13, %v11557_v48 }
 0x576   :  { %17370 = vst [vmem:[#allocation101_spill] sm:$0xff] %v14717_v45  ;;  %v5072_v45 = vrot.slane %v5064_v57, %v11557_v48 }
 0x577   :  { %v14722_v46 = vpop.permute.xlu0 %8925  ;;  %9153 = vrot.lane.b32.xlu1 %v5080_v50, %s16647_s6  ;;  %v5084_v50 = vcombine.high %v17373_v22, %v16743_v49  ;;  %v5113_v57 = vrot.slane %v5099_v47, %v11234_v5  ;;  %17375 = vst [vmem:[#allocation180_spill] sm:$0xff] %v14746_v43  ;;  %v5146_v13 = vcombine.high %v14746_v43, %v16743_v49  ;;  %v17376_v47 = vld [vmem:[#allocation124_spill] sm:$0xff] }
 0x578   :  { %17372 = vst [vmem:[#allocation8_spill] sm:$0xff] %v14722_v46  ;;  %v5082_v55 = vcombine.high %v5072_v45, %v16743_v49 }
 0x579   :  { %9157 = vrot.lane.b32.xlu0 %v5063_v34, %s17321_s4  ;;  %v14728_v39 = vpop.permute.xlu1 %8929  ;;  %v5079_v34 = vrot.slane %v5065_v2, %v11557_v48  ;;  %v5098_v22 = vrot.slane %v5084_v50, %v11234_v5  ;;  %v5172_v50 = vrot.slane %v17376_v47, %v11234_v5 }
 0x57a   :  { %17374 = vst [vmem:[#allocation171_spill] sm:$0xff] %v14728_v39  ;;  %v5115_v39 = vcombine.high %v5091_v32, %v5106_v27 }
 0x57b   :  { %v14734_v53 = vpop.permute.xlu0 %8933  ;;  %9161 = vrot.lane.b32.xlu1 %v5081_v21, %s16821_s3  ;;  %v5130_v17 = vcombine.low %v5098_v22, %v5113_v57 }
 0x57c   :  { %v5129_v27 = vrot.slane %v5115_v39, %v11557_v48  ;;  %v17377_v39 = vld [vmem:[#allocation50_spill] sm:$0xff] }
 0x57d   :  { %9165 = vrot.lane.b32.xlu0 %v5072_v45, %s17185_s5  ;;  %v14740_v52 = vpop.permute.xlu1 %8937  ;;  %v5083_v45 = vcombine.high %v5079_v34, %v16743_v49  ;;  %v5157_v43 = vrot.slane %v17377_v39, %v11234_v5 }
 0x57e   :  { %v5147_v37 = vcombine.high %v5129_v27, %v16743_v49 }
 0x57f   :  { %v14748_v46 = vpop.permute.xlu0 %8941  ;;  %9169 = vrot.lane.b32.xlu1 %v5082_v55, %s16644_s10  ;;  %v5131_v55 = vcombine.high %v5098_v22, %v5113_v57  ;;  %v5180_v44 = vcombine.low %v5157_v43, %v5172_v50  ;;  %v5181_v23 = vcombine.high %v5157_v43, %v5172_v50 }
 0x581   :  { %9173 = vrot.lane.b32.xlu0 %v5079_v34, %s16800_s8  ;;  %v14753_v21 = vpop.permute.xlu1 %8945  ;;  %v5138_v34 = vrot.slane %v5130_v17, %v11557_v48  ;;  %v5145_v22 = vrot.slane %v5131_v55, %v11557_v48  ;;  %v5188_v42 = vrot.slane %v5180_v44, %v11557_v48 }
 0x583   :  { %v14756_v2 = vpop.permute.xlu0 %8949  ;;  %9177 = vrot.lane.b32.xlu1 %v5083_v45, %s17158_s7  ;;  %v5148_v17 = vcombine.high %v5138_v34, %v16743_v49  ;;  %v5149_v55 = vcombine.high %v5145_v22, %v16743_v49  ;;  %v5212_v43 = vcombine.high %v5188_v42, %v16743_v49 }
 0x585   :  { %9181 = vrot.lane.b32.xlu0 %v5146_v13, %s11187_s11  ;;  %v14763_v32 = vpop.permute.xlu1 %8953  ;;  %v5165_v13 = vcombine.high %v17376_v47, %v16743_v49 }
 0x587   :  { %v14767_v18 = vpop.permute.xlu0 %8957  ;;  %9185 = vrot.lane.b32.xlu1 %v5129_v27, %s16642_s0  ;;  %v5150_v27 = vcombine.high %v17377_v39, %v16743_v49  ;;  %v5179_v1 = vrot.slane %v5165_v13, %v11234_v5  ;;  %v5195_v13 = vrot.slane %v5181_v23, %v11557_v48  ;;  %v17381_v23 = vld [vmem:[#allocation53_spill] sm:$0xff] }
 0x588   :  { %v5223_v19 = vrot.slane %v17381_v23, %v11234_v5 }
 0x589   :  { %9189 = vrot.lane.b32.xlu0 %v5147_v37, %s17134_s9  ;;  %v14775_v45 = vpop.permute.xlu1 %8961  ;;  %v5213_v30 = vcombine.high %v5195_v13, %v16743_v49 }
 0x58b   :  { %v14779_v57 = vpop.permute.xlu0 %8965  ;;  %9193 = vrot.lane.b32.xlu1 %v5138_v34, %s11188_s12  ;;  %v5164_v34 = vrot.slane %v5150_v27, %v11234_v5 }
 0x58d   :  { %9197 = vrot.lane.b32.xlu0 %v5148_v17, %s16640_s15  ;;  %v14787_v37 = vpop.permute.xlu1 %8969  ;;  %v5196_v17 = vcombine.low %v5164_v34, %v5179_v1  ;;  %v5197_v50 = vcombine.high %v5164_v34, %v5179_v1 }
 0x58f   :  { %v14790_v47 = vpop.permute.xlu0 %8973  ;;  %9201 = vrot.lane.b32.xlu1 %v5145_v22, %s17108_s13  ;;  %v17379_v22 = vld [vmem:[#allocation127_spill] sm:$0xff]  ;;  %v5204_v16 = vrot.slane %v5196_v17, %v11557_v48 }
 0x590   :  { %v5238_v27 = vrot.slane %v17379_v22, %v11234_v5  ;;  %v5231_v1 = vcombine.high %v17379_v22, %v16743_v49 }
 0x591   :  { %9205 = vrot.lane.b32.xlu0 %v5149_v55, %s16999_s14  ;;  %v14797_v39 = vpop.permute.xlu1 %8977  ;;  %v5214_v17 = vcombine.high %v5204_v16, %v16743_v49 }
 0x592   :  { %v5246_v34 = vcombine.low %v5223_v19, %v5238_v27 }
 0x593   :  { %v14799_v29 = vpop.permute.xlu0 %8981  ;;  %9209 = vrot.lane.b32.xlu1 %v5188_v42, %s11192_s16 }
 0x595   :  { %9213 = vrot.lane.b32.xlu0 %v5212_v43, %s16638_s19  ;;  %v14805_v44 = vpop.permute.xlu1 %8985 }
 0x596   :  { %17378 = vst [vmem:[#allocation27_spill] sm:$0xff] %v14805_v44  ;;  %v5247_v44 = vcombine.high %v5223_v19, %v5238_v27 }
 0x597   :  { %v14809_v55 = vpop.permute.xlu0 %8989  ;;  %9217 = vrot.lane.b32.xlu1 %v5195_v13, %s16971_s17  ;;  %v5216_v13 = vcombine.high %v17381_v23, %v16743_v49 }
 0x598   :  { %17380 = vst [vmem:[#allocation162_spill] sm:$0xff] %v14809_v55  ;;  %v5211_v55 = vrot.slane %v5197_v50, %v11557_v48 }
 0x599   :  { %9221 = vrot.lane.b32.xlu0 %v5213_v30, %s11197_s21  ;;  %v14817_v42 = vpop.permute.xlu1 %8993 }
 0x59a   :  { %17382 = vst [vmem:[#allocation192_spill] sm:$0xff] %v14817_v42  ;;  %v5245_v42 = vrot.slane %v5231_v1, %v11234_v5  ;;  %v5215_v50 = vcombine.high %v5211_v55, %v16743_v49  ;;  %v5261_v1 = vrot.slane %v5247_v44, %v11557_v48  ;;  %v17392_v44 = vld [vmem:[#allocation52_spill] sm:$0xff] }
 0x59b   :  { %v14821_v43 = vpop.permute.xlu0 %8997  ;;  %9225 = vrot.lane.b32.xlu1 %v5204_v16, %s16636_s20  ;;  %v5230_v16 = vrot.slane %v5216_v13, %v11234_v5  ;;  %s17386_s20 = smov 60  }
 0x59c   :  { %17383 = vst [vmem:[#allocation174_spill] sm:$0xff] %v14821_v43  ;;  %v5254_v43 = vrot.slane %v5246_v34, %v11557_v48 }
 0x59d   :  { %9229 = vrot.lane.b32.xlu0 %v5214_v17, %s16947_s18  ;;  %v14829_v30 = vpop.permute.xlu1 %9001  ;;  %v5262_v17 = vcombine.low %v5230_v16, %v5245_v42  ;;  %v5263_v13 = vcombine.high %v5230_v16, %v5245_v42 }
 0x59e   :  { %17384 = vst [vmem:[#allocation100_spill] sm:$0xff] %v14829_v30  ;;  %v5278_v19 = vcombine.high %v5254_v43, %v16743_v49 }
 0x59f   :  { %v14832_v22 = vpop.permute.xlu0 %9005  ;;  %9233 = vrot.lane.b32.xlu1 %v5211_v55, %s11198_s22  ;;  %v17390_v55 = vld [vmem:[#allocation126_spill] sm:$0xff]  ;;  %v5277_v16 = vrot.slane %v5263_v13, %v11557_v48 }
 0x5a0   :  { %17385 = vst [vmem:[#allocation26_spill] sm:$0xff] %v14832_v22  ;;  %v5304_v34 = vrot.slane %v17390_v55, %v11234_v5  ;;  %v5289_v22 = vrot.slane %v17392_v44, %v11234_v5 }
 0x5a1   :  { %9237 = vrot.lane.b32.xlu0 %v5215_v50, %s17386_s20  ;;  %v14839_v23 = vpop.permute.xlu1 %9009  ;;  %v5281_v13 = vcombine.high %v5277_v16, %v16743_v49 }
 0x5a2   :  { %17387 = vst [vmem:[#allocation103_spill] sm:$0xff] %v14839_v23  ;;  %v5270_v23 = vrot.slane %v5262_v17, %v11557_v48 }
 0x5a3   :  { %v14841_v3 = vpop.permute.xlu0 %9013  ;;  %9241 = vrot.lane.b32.xlu1 %v5254_v43, %s16925_s23 }
 0x5a4   :  { %17388 = vst [vmem:[#allocation29_spill] sm:$0xff] %v14841_v3  ;;  %v5279_v3 = vcombine.high %v5261_v1, %v16743_v49  ;;  %v5280_v17 = vcombine.high %v5270_v23, %v16743_v49 }
 0x5a5   :  { %9245 = vrot.lane.b32.xlu0 %v5278_v19, %s16888_s24  ;;  %v14847_v27 = vpop.permute.xlu1 %9017  ;;  %v5297_v19 = vcombine.high %v17390_v55, %v16743_v49 }
 0x5a6   :  { %17389 = vst [vmem:[#allocation102_spill] sm:$0xff] %v14847_v27  ;;  %v5312_v27 = vcombine.low %v5289_v22, %v5304_v34 }
 0x5a7   :  { %v14851_v50 = vpop.permute.xlu0 %9021  ;;  %9249 = vrot.lane.b32.xlu1 %v5261_v1, %s11202_s26  ;;  %v5282_v1 = vcombine.high %v17392_v44, %v16743_v49 }
 0x5a8   :  { %17391 = vst [vmem:[#allocation28_spill] sm:$0xff] %v14851_v50  ;;  %v5313_v50 = vcombine.high %v5289_v22, %v5304_v34  ;;  %v17398_v34 = vld [vmem:[#allocation129_spill] sm:$0xff] }
 0x5a9   :  { %9253 = vrot.lane.b32.xlu0 %v5279_v3, %s17365_s25  ;;  %v14859_v43 = vpop.permute.xlu1 %9025 }
 0x5aa   :  { %17393 = vst [vmem:[#allocation105_spill] sm:$0xff] %v14859_v43  ;;  %v5311_v43 = vrot.slane %v5297_v19, %v11234_v5  ;;  %v5327_v19 = vrot.slane %v5313_v50, %v11557_v48 }
 0x5ab   :  { %v14863_v42 = vpop.permute.xlu0 %9029  ;;  %9257 = vrot.lane.b32.xlu1 %v5270_v23, %s16854_s27  ;;  %v5296_v23 = vrot.slane %v5282_v1, %v11234_v5 }
 0x5ac   :  { %17394 = vst [vmem:[#allocation31_spill] sm:$0xff] %v14863_v42  ;;  %v5320_v42 = vrot.slane %v5312_v27, %v11557_v48 }
 0x5ad   :  { %9261 = vrot.lane.b32.xlu0 %v5280_v17, %s11207_s2  ;;  %v14871_v3 = vpop.permute.xlu1 %9033  ;;  %v5328_v17 = vcombine.low %v5296_v23, %v5311_v43  ;;  %v5329_v27 = vcombine.high %v5296_v23, %v5311_v43  ;;  %v17402_v23 = vld [vmem:[#allocation199_spill] sm:$0xff] }
 0x5ae   :  { %v5344_v22 = vcombine.high %v5320_v42, %v16743_v49 }
 0x5af   :  { %v14874_v55 = vpop.permute.xlu0 %9037  ;;  %9265 = vrot.lane.b32.xlu1 %v5277_v16, %s16649_s30  ;;  %v5370_v16 = vrot.slane %v17398_v34, %v11234_v5  ;;  %v5336_v50 = vrot.slane %v5328_v17, %v11557_v48 }
 0x5b0   :  { %17395 = vst [vmem:[#allocation104_spill] sm:$0xff] %v14874_v55 }
 0x5b1   :  { %9269 = vrot.lane.b32.xlu0 %v5281_v13, %s17343_s29  ;;  %v14881_v44 = vpop.permute.xlu1 %9041  ;;  %v10606_v13 = vsel %vm10172_vm0, %v14100_v56, %v14567_v62  ;;  %v5363_v56 = vcombine.high %v17398_v34, %v16743_v49 }
 0x5b2   :  { %17396 = vst [vmem:[#allocation30_spill] sm:$0xff] %v14881_v44  ;;  %v10607_v43 = vsel %vm10174_vm1, %v10606_v13, %v14569_v20  ;;  %v10637_v20 = vsel %vm10172_vm0, %v14410_v25, %v14734_v53 }
 0x5b3   :  { %v14883_v30 = vpop.permute.xlu0 %9045  ;;  %9273 = vrot.lane.b32.xlu1 %v5320_v42, %s16837_s28  ;;  %v17401_v42 = vld [vmem:[#allocation55_spill] sm:$0xff] }
 0x5b4   :  { %17397 = vst [vmem:[#allocation107_spill] sm:$0xff] %v14883_v30  ;;  %v5345_v30 = vcombine.high %v5327_v19, %v16743_v49  ;;  %v5355_v55 = vrot.slane %v17401_v42, %v11234_v5  ;;  %v5348_v34 = vcombine.high %v17401_v42, %v16743_v49 }
 0x5b5   :  { %9277 = vrot.lane.b32.xlu0 %v5344_v22, %s16647_s6  ;;  %v14891_v1 = vpop.permute.xlu1 %9049  ;;  %v10575_v22 = vsel %vm10172_vm0, %v17402_v23, %v14396_v24 }
 0x5b6   :  { %17399 = vst [vmem:[#allocation33_spill] sm:$0xff] %v14891_v1  ;;  %v5378_v62 = vcombine.low %v5355_v55, %v5370_v16  ;;  %v10608_v1 = vsel %vm10176_vm2, %v10607_v43, %v14581_v61  ;;  %v10576_v13 = vsel %vm10174_vm1, %v10575_v22, %v14404_v51  ;;  %v5379_v53 = vcombine.high %v5355_v55, %v5370_v16 }
 0x5b7   :  { %v14896_v44 = vpop.permute.xlu0 %9053  ;;  %9281 = vrot.lane.b32.xlu1 %v5327_v19, %s17321_s4  ;;  %v10577_v25 = vsel %vm10176_vm2, %v10576_v13, %v14412_v35  ;;  %v10638_v51 = vsel %vm10174_vm1, %v10637_v20, %v14740_v52  ;;  %v5362_v55 = vrot.slane %v5348_v34, %v11234_v5 }
 0x5b8   :  { %17400 = vst [vmem:[#allocation106_spill] sm:$0xff] %v14896_v44  ;;  %v5343_v44 = vrot.slane %v5329_v27, %v11557_v48  ;;  %v10609_v27 = vsel %vm10178_vm3, %v10608_v1, %v14583_v59  ;;  %v14933_v42 = vrot.slane %v5378_v62, %v11557_v48  ;;  %v10639_v1 = vsel %vm10176_vm2, %v10638_v51, %v14748_v46  ;;  %v17418_v51 = vld [vmem:[#allocation54_spill] sm:$0xff] }
 0x5b9   :  { %9285 = vrot.lane.b32.xlu0 %v5345_v30, %s16821_s3  ;;  %v9058_v17 = vpop.permute.xlu1 %9057  ;;  %v5346_v30 = vcombine.high %v5336_v50, %v16743_v49  ;;  %v10610_v59 = vsel %vm17403_vm5, %v10609_v27, %v14590_v11  ;;  %v10578_v16 = vsel %vm10178_vm3, %v10577_v25, %v14417_v41  ;;  %v5393_v22 = vrot.slane %v5379_v53, %v11557_v48 }
 0x5ba   :  { %v10668_v19 = vsel %vm10172_vm0, %v14579_v38, %v9058_v17  ;;  %v5377_v38 = vrot.slane %v5363_v56, %v11234_v5  ;;  %v5347_v23 = vcombine.high %v5343_v44, %v16743_v49  ;;  %v10611_v52 = vsel %vm17404_vm8, %v10610_v59, %v14594_v12  ;;  %vm17411_vm8 = vmmov %vm17409_vm6 }
 0x5bb   :  { %v9062_v24 = vpop.permute.xlu0 %9061  ;;  %9289 = vrot.lane.b32.xlu1 %v5336_v50, %s17185_s5  ;;  %v10579_v46 = vsel %vm17405_vm4, %v10578_v16, %v14420_v7  ;;  %v10640_v62 = vsel %vm10178_vm3, %v10639_v1, %v14753_v21  ;;  %v5410_v41 = vcombine.high %v14933_v42, %v16743_v49  ;;  %v10612_v12 = vsel %vm17406_vm9, %v10611_v52, %v14600_v4  ;;  %vm17413_vm4 = vmmov %vm17406_vm9 }
 0x5bc   :  { %v10669_v61 = vsel %vm10174_vm1, %v10668_v19, %v9062_v24  ;;  %v5394_v56 = vcombine.low %v5362_v55, %v5377_v38  ;;  %v10580_v19 = vsel %vm17409_vm6, %v10579_v46, %v14427_v6  ;;  %vm17410_vm5 = vcmask 261120   ;;  %vm17414_vm9 = vmmov %vm17409_vm6 }
 0x5bd   :  { %9293 = vrot.lane.b32.xlu0 %v5346_v30, %s16644_s10  ;;  %v9066_v43 = vpop.permute.xlu1 %9065  ;;  %v10613_v24 = vsel %vm17410_vm5, %v10612_v12, %v14604_v15  ;;  %v17412_v30 = vld [vmem:[#allocation128_spill] sm:$0xff]  ;;  %v10581_v4 = vsel %vm17413_vm4, %v10580_v19, %v14431_v26  ;;  %v5411_v27 = vcombine.high %v5393_v22, %v16743_v49  ;;  %vm17417_vm6 = vmmov %vm17413_vm4  ;;  %v5414_v52 = vcombine.high %v17418_v51, %v16743_v49 }
 0x5be   :  { %v10670_v35 = vsel %vm10176_vm2, %v10669_v61, %v9066_v43  ;;  %v5436_v34 = vrot.slane %v17412_v30, %v11234_v5  ;;  %v5402_v15 = vrot.slane %v5394_v56, %v11557_v48 }
 0x5bf   :  { %v9070_v50 = vpop.permute.xlu0 %9069  ;;  %9297 = vrot.lane.b32.xlu1 %v5343_v44, %s16800_s8  ;;  %v10641_v44 = vsel %vm17407_vm7, %v10640_v62, %v14756_v2  ;;  %v5395_v2 = vcombine.high %v5362_v55, %v5377_v38  ;;  %vm17415_vm7 = vcmask 293888   ;;  %v5421_v38 = vrot.slane %v17418_v51, %v11234_v5  ;;  %v17448_v51 = vld [vmem:[#allocation169_spill] sm:$0xff] }
 0x5c0   :  { %v10671_v11 = vsel %vm10178_vm3, %v10670_v35, %v9070_v50  ;;  %v10642_v13 = vsel %vm17414_vm9, %v10641_v44, %v14763_v32  ;;  %v10614_v61 = vsel %vm17415_vm7, %v10613_v24, %v14612_v14  ;;  %v10582_v32 = vsel %vm17410_vm5, %v10581_v4, %v14439_v40  ;;  %vm17421_vm9 = vmmov %vm17415_vm7 }
 0x5c1   :  { %9301 = vrot.lane.b32.xlu0 %v5347_v23, %s17158_s7  ;;  %v9074_v17 = vpop.permute.xlu1 %9073  ;;  %v5429_v14 = vcombine.high %v17412_v30, %v16743_v49  ;;  %v5444_v1 = vcombine.low %v5421_v38, %v5436_v34  ;;  %v5412_v50 = vcombine.high %v5402_v15, %v16743_v49  ;;  %v5428_v44 = vrot.slane %v5414_v52, %v11234_v5 }
 0x5c2   :  { %v10672_v7 = vsel %vm17408_vm10, %v10671_v11, %v9074_v17  ;;  %vm17416_vm10 = vmmov %vm17413_vm4 }
 0x5c3   :  { %v9078_v20 = vpop.permute.xlu0 %9077  ;;  %9305 = vrot.lane.b32.xlu1 %v5410_v41, %s11187_s11  ;;  %v10643_v25 = vsel %vm17416_vm10, %v10642_v13, %v14767_v18  ;;  %vm17420_vm4 = vmmov %vm17410_vm5  ;;  %v10583_v18 = vsel %vm17421_vm9, %v10582_v32, %v14443_v60  ;;  %vm17423_vm10 = vcmask 359424   ;;  %v5452_v56 = vrot.slane %v5444_v1, %v11557_v48  ;;  %v17450_v32 = vld [vmem:[#allocation162_spill] sm:$0xff] }
 0x5c4   :  { %v10673_v21 = vsel %vm17411_vm8, %v10672_v7, %v9078_v20  ;;  %vm17419_vm8 = vcmask 326656   ;;  %vm17422_vm7 = vmmov %vm17420_vm4 }
 0x5c5   :  { %9309 = vrot.lane.b32.xlu0 %v5393_v22, %s16642_s0  ;;  %v9082_v6 = vpop.permute.xlu1 %9081  ;;  %v10615_v43 = vsel %vm17419_vm8, %v10614_v61, %v14616_v31  ;;  %v10644_v35 = vsel %vm17422_vm7, %v10643_v25, %v14775_v45  ;;  %v5409_v31 = vrot.slane %v5395_v2, %v11557_v48  ;;  %v10584_v45 = vsel %vm17419_vm8, %v10583_v18, %v14451_v54  ;;  %vm17428_vm7 = vmmov %vm17423_vm10  ;;  %v17440_v2 = vld [vmem:[#allocation160_spill] sm:$0xff]  ;;  %v17446_v61 = vld [vmem:[#allocation27_spill] sm:$0xff] }
 0x5c6   :  { %v10674_v53 = vsel %vm17417_vm6, %v10673_v21, %v9082_v6  ;;  %v10616_v23 = vsel %vm17423_vm10, %v10615_v43, %v14624_v36  ;;  %vm17424_vm6 = vmmov %vm17421_vm9  ;;  %v5443_v36 = vrot.slane %v5429_v14, %v11234_v5  ;;  %v5445_v22 = vcombine.high %v5421_v38, %v5436_v34  ;;  %v17453_v18 = vld [vmem:[#allocation57_spill] sm:$0xff] }
 0x5c7   :  { %v9086_v26 = vpop.permute.xlu0 %9085  ;;  %9313 = vrot.lane.b32.xlu1 %v5411_v27, %s17134_s9  ;;  %v10645_v55 = vsel %vm17424_vm6, %v10644_v35, %v14779_v57  ;;  %vm17425_vm5 = vmmov %vm17424_vm6  ;;  %v10585_v57 = vsel %vm17428_vm7, %v10584_v45, %v14454_v8  ;;  %vm17430_vm6 = vcmask 424960   ;;  %v17443_v27 = vld [vmem:[#allocation188_spill] sm:$0xff]  ;;  %v5487_v1 = vrot.slane %v17453_v18, %v11234_v5 }
 0x5c8   :  { %v10675_v59 = vsel %vm17420_vm4, %v10674_v53, %v9086_v26  ;;  %vm17426_vm4 = vcmask 392192   ;;  %vm17427_vm9 = vmmov %vm17419_vm8  ;;  %v5460_v19 = vcombine.low %v5428_v44, %v5443_v36  ;;  %v5461_v6 = vcombine.high %v5428_v44, %v5443_v36  ;;  %v17454_v35 = vld [vmem:[#allocation196_spill] sm:$0xff]  ;;  %v17469_v44 = vld [vmem:[#allocation197_spill] sm:$0xff] }
 0x5c9   :  { %9317 = vrot.lane.b32.xlu0 %v5402_v15, %s11188_s12  ;;  %v9090_v40 = vpop.permute.xlu1 %9089  ;;  %v10617_v11 = vsel %vm17426_vm4, %v10616_v23, %v14627_v58  ;;  %vm17429_vm10 = vmmov %vm17419_vm8  ;;  %v5413_v58 = vcombine.high %v5409_v31, %v16743_v49  ;;  %v10586_v7 = vsel %vm17426_vm4, %v10585_v57, %v14461_v63  ;;  %v5476_v63 = vcombine.high %v5452_v56, %v16743_v49  ;;  %v17461_v45 = vld [vmem:[#allocation192_spill] sm:$0xff] }
 0x5ca   :  { %v10676_v16 = vsel %vm17425_vm5, %v10675_v59, %v9090_v40  ;;  %v10646_v54 = vsel %vm17429_vm10, %v10645_v55, %v14787_v37  ;;  %v10618_v17 = vsel %vm17430_vm6, %v10617_v11, %v14633_v0  ;;  %vm17431_vm5 = vmmov %vm17428_vm7  ;;  %v5468_v26 = vrot.slane %v5460_v19, %v11557_v48 }
 0x5cb   :  { %v9094_v60 = vpop.permute.xlu0 %9093  ;;  %9321 = vrot.lane.b32.xlu1 %v5412_v50, %s16640_s15  ;;  %v10647_v41 = vsel %vm17431_vm5, %v10646_v54, %v14790_v47  ;;  %vm17432_vm8 = vmmov %vm17431_vm5  ;;  %v5459_v47 = vrot.slane %v5445_v22, %v11557_v48  ;;  %vm17437_vm5 = vcmask 490496   ;;  %v17455_v50 = vld [vmem:[#allocation185_spill] sm:$0xff]  ;;  %v5475_v57 = vrot.slane %v5461_v6, %v11557_v48  ;;  %v17463_v22 = vld [vmem:[#allocation190_spill] sm:$0xff] }
 0x5cc   :  { %v10677_v46 = vsel %vm17427_vm9, %v10676_v16, %v9094_v60  ;;  %vm17433_vm9 = vcmask 457728   ;;  %vm17434_vm7 = vmmov %vm17426_vm4  ;;  %v17458_v16 = vld [vmem:[#allocation183_spill] sm:$0xff]  ;;  %v5478_v36 = vcombine.high %v5468_v26, %v16743_v49  ;;  %v17465_v54 = vld [vmem:[#allocation174_spill] sm:$0xff] }
 0x5cd   :  { %9325 = vrot.lane.b32.xlu0 %v5409_v31, %s17108_s13  ;;  %v9098_v62 = vpop.permute.xlu1 %9097  ;;  %v10619_v37 = vsel %vm17433_vm9, %v10618_v17, %v14636_v28  ;;  %vm17435_vm10 = vmmov %vm17430_vm6  ;;  %v5477_v53 = vcombine.high %v5459_v47, %v16743_v49 }
 0x5ce   :  { %v10678_v12 = vsel %vm17432_vm8, %v10677_v46, %v9098_v62  ;;  %v10587_v0 = vsel %vm17435_vm10, %v10586_v7, %v14463_v33  ;;  %vm17436_vm6 = vmmov %vm17426_vm4  ;;  %v10620_v28 = vsel %vm17437_vm5, %v10619_v37, %v14642_v10 }
 0x5cf   :  { %v9102_v8 = vpop.permute.xlu0 %9101  ;;  %9329 = vrot.lane.b32.xlu1 %v5413_v58, %s16999_s14  ;;  %v10648_v24 = vsel %vm17436_vm6, %v10647_v41, %v14797_v39  ;;  %vm17438_vm8 = vmmov %vm17435_vm10  ;;  %v10588_v4 = vsel %vm17433_vm9, %v10587_v0, %v14469_v9  ;;  %v5480_v41 = vcombine.high %v17453_v18, %v16743_v49  ;;  %v17472_v0 = vld [vmem:[#allocation170_spill] sm:$0xff]  ;;  %v17491_v18 = vld [vmem:[#allocation29_spill] sm:$0xff] }
 0x5d0   :  { %v10679_v20 = vsel %vm17434_vm7, %v10678_v12, %v9102_v8  ;;  %v10649_v30 = vsel %vm17438_vm8, %v10648_v24, %v14799_v29  ;;  %vm17439_vm4 = vmmov %vm17438_vm8  ;;  %vm17441_vm7 = vcmask 523264   ;;  %v17445_v29 = vld [vmem:[#allocation131_spill] sm:$0xff]  ;;  %vm17449_vm8 = vcmask 556032   ;;  %v17468_v12 = vld [vmem:[#allocation157_spill] sm:$0xff] }
 0x5d1   :  { %9333 = vrot.lane.b32.xlu0 %v5452_v56, %s11192_s16  ;;  %v9106_v21 = vpop.permute.xlu1 %9105  ;;  %v10621_v13 = vsel %vm17441_vm7, %v10620_v28, %v17440_v2  ;;  %vm17442_vm10 = vmmov %vm17433_vm9  ;;  %v5502_v15 = vrot.slane %v17445_v29, %v11234_v5  ;;  %v5495_v55 = vcombine.high %v17445_v29, %v16743_v49  ;;  %v5494_v6 = vrot.slane %v5480_v41, %v11234_v5  ;;  %v17482_v29 = vld [vmem:[#allocation179_spill] sm:$0xff] }
 0x5d2   :  { %v10680_v34 = vsel %vm17439_vm4, %v10679_v20, %v9106_v21  ;;  %vm17444_vm6 = vmmov %vm17437_vm5  ;;  %v10622_v38 = vsel %vm17449_vm8, %v10621_v13, %v17448_v51  ;;  %v17474_v21 = vld [vmem:[#allocation100_spill] sm:$0xff]  ;;  %v17487_v51 = vld [vmem:[#allocation103_spill] sm:$0xff] }
 0x5d3   :  { %v9110_v33 = vpop.permute.xlu0 %9109  ;;  %9337 = vrot.lane.b32.xlu1 %v5476_v63, %s16638_s19  ;;  %v10589_v10 = vsel %vm17444_vm6, %v10588_v4, %v17443_v27  ;;  %vm17447_vm5 = vmmov %vm17433_vm9  ;;  %s17460_s19 = smov 48   ;;  %v5510_v52 = vcombine.low %v5487_v1, %v5502_v15  ;;  %v5509_v20 = vrot.slane %v5495_v55, %v11234_v5  ;;  %v5511_v19 = vcombine.high %v5487_v1, %v5502_v15  ;;  %v17478_v4 = vld [vmem:[#allocation26_spill] sm:$0xff]  ;;  %v17481_v27 = vld [vmem:[#allocation163_spill] sm:$0xff] }
 0x5d4   :  { %v10681_v39 = vsel %vm17442_vm10, %v10680_v34, %v9110_v33  ;;  %v10650_v25 = vsel %vm17447_vm5, %v10649_v30, %v17446_v61  ;;  %vm17451_vm4 = vmmov %vm17444_vm6  ;;  %v10590_v40 = vsel %vm17441_vm7, %v10589_v10, %v17454_v35  ;;  %vm17456_vm10 = vcmask 588800   ;;  %v17476_v34 = vld [vmem:[#allocation202_spill] sm:$0xff] }
 0x5d5   :  { %9341 = vrot.lane.b32.xlu0 %v5459_v47, %s16971_s17  ;;  %v9114_v9 = vpop.permute.xlu1 %9113  ;;  %v10651_v43 = vsel %vm17451_vm4, %v10650_v25, %v17450_v32  ;;  %vm17452_vm9 = vmmov %vm17451_vm4  ;;  %v10623_v31 = vsel %vm17456_vm10, %v10622_v38, %v17455_v50  ;;  %vm17464_vm4 = vcmask 621568   ;;  %v5518_v24 = vrot.slane %v5510_v52, %v11557_v48  ;;  %v17485_v25 = vld [vmem:[#allocation205_spill] sm:$0xff]  ;;  %v17494_v50 = vld [vmem:[#allocation178_spill] sm:$0xff] }
 0x5d6   :  { %v10682_v59 = vsel %vm17452_vm9, %v10681_v39, %v9114_v9  ;;  %vm17457_vm6 = vmmov %vm17441_vm7  ;;  %v10624_v56 = vsel %vm17464_vm4, %v10623_v31, %v17463_v22  ;;  %v5479_v30 = vcombine.high %v5475_v57, %v16743_v49 }
 0x5d7   :  { %v9118_v14 = vpop.permute.xlu0 %9117  ;;  %9345 = vrot.lane.b32.xlu1 %v5477_v53, %s11197_s21  ;;  %vm17459_vm5 = vmmov %vm17449_vm8  ;;  %v5525_v53 = vrot.slane %v5511_v19, %v11557_v48 }
 0x5d8   :  { %v10683_v23 = vsel %vm17457_vm6, %v10682_v59, %v9118_v14  ;;  %v10591_v60 = vsel %vm17459_vm5, %v10590_v40, %v17458_v16  ;;  %vm17462_vm8 = vmmov %vm17457_vm6  ;;  %vm17470_vm6 = vcmask 654336   ;;  %v17489_v59 = vld [vmem:[#allocation165_spill] sm:$0xff] }
 0x5d9   :  { %9349 = vrot.lane.b32.xlu0 %v5468_v26, %s17460_s19  ;;  %v10652_v11 = vsel %vm17462_vm8, %v10651_v43, %v17461_v45  ;;  %v9122_v46 = vpop.permute.xlu1 %9121  ;;  %vm17466_vm9 = vmmov %vm17459_vm5  ;;  %v10592_v8 = vsel %vm17456_vm10, %v10591_v60, %v17468_v12  ;;  %v10625_v7 = vsel %vm17470_vm6, %v10624_v56, %v17469_v44  ;;  %v5526_v26 = vcombine.low %v5494_v6, %v5509_v20  ;;  %v17498_v60 = vld [vmem:[#allocation130_spill] sm:$0xff]  ;;  %v17499_v45 = vld [vmem:[#allocation184_spill] sm:$0xff] }
 0x5da   :  { %v10653_v62 = vsel %vm17466_vm9, %v10652_v11, %v17465_v54  ;;  %vm17467_vm7 = vmmov %vm17459_vm5  ;;  %vm17477_vm9 = vcmask 687104   ;;  %v5542_v43 = vcombine.high %v5518_v24, %v16743_v49  ;;  %v5568_v52 = vrot.slane %v17498_v60, %v11234_v5  ;;  %v17508_v44 = vld [vmem:[#allocation56_spill] sm:$0xff] }
 0x5db   :  { %v10684_v58 = vsel %vm17467_vm7, %v10683_v23, %v9122_v46  ;;  %v9126_v17 = vpop.permute.xlu0 %9125  ;;  %9353 = vrot.lane.b32.xlu1 %v5478_v36, %s16947_s18  ;;  %vm17471_vm5 = vmmov %vm17456_vm10  ;;  %v10626_v33 = vsel %vm17477_vm9, %v10625_v7, %v17476_v34  ;;  %v17495_v23 = vld [vmem:[#allocation172_spill] sm:$0xff]  ;;  %v5527_v46 = vcombine.high %v5494_v6, %v5509_v20  ;;  %v17501_v36 = vld [vmem:[#allocation102_spill] sm:$0xff]  ;;  %v5543_v56 = vcombine.high %v5525_v53, %v16743_v49 }
 0x5dc   :  { %v10685_v37 = vsel %vm17471_vm5, %v10684_v58, %v9126_v17  ;;  %vm17473_vm8 = vmmov %vm17464_vm4  ;;  %v5534_v54 = vrot.slane %v5526_v26, %v11557_v48  ;;  %v17505_v17 = vld [vmem:[#allocation28_spill] sm:$0xff]  ;;  %v5553_v7 = vrot.slane %v17508_v44, %v11234_v5  ;;  %v17518_v6 = vld [vmem:[#allocation31_spill] sm:$0xff] }
 0x5dd   :  { %v10593_v47 = vsel %vm17473_vm8, %v10592_v8, %v17472_v0  ;;  %9357 = vrot.lane.b32.xlu0 %v5475_v57, %s11198_s22  ;;  %vm17475_vm4 = vmmov %vm17471_vm5  ;;  %v9130_v28 = vpop.permute.xlu1 %9129  ;;  %vm17483_vm5 = vcmask 719872   ;;  %v17510_v0 = vld [vmem:[#allocation186_spill] sm:$0xff] }
 0x5de   :  { %v10654_v63 = vsel %vm17475_vm4, %v10653_v62, %v17474_v21  ;;  %vm17479_vm7 = vmmov %vm17473_vm8  ;;  %v10594_v10 = vsel %vm17470_vm6, %v10593_v47, %v17481_v27  ;;  %v10627_v15 = vsel %vm17483_vm5, %v10626_v33, %v17482_v29  ;;  %v17503_v62 = vld [vmem:[#allocation198_spill] sm:$0xff]  ;;  %v17512_v21 = vld [vmem:[#allocation9_spill] sm:$0xff] }
 0x5df   :  { %v10655_v2 = vsel %vm17479_vm7, %v10654_v63, %v17478_v4  ;;  %vm17480_vm10 = vmmov %vm17479_vm7  ;;  %v9134_v39 = vpop.permute.xlu0 %9133  ;;  %9361 = vrot.lane.b32.xlu1 %v5479_v30, %s17386_s20  ;;  %vm17490_vm7 = vcmask 752640   ;;  %v17514_v30 = vld [vmem:[#allocation105_spill] sm:$0xff]  ;;  %v5544_v4 = vcombine.high %v5534_v54, %v16743_v49 }
 0x5e0   :  { %v10686_v13 = vsel %vm17480_vm10, %v10685_v37, %v9130_v28  ;;  %vm17484_vm8 = vmmov %vm17470_vm6  ;;  %v10628_v14 = vsel %vm17490_vm7, %v10627_v15, %v17489_v59  ;;  %v17509_v37 = vld [vmem:[#allocation98_spill] sm:$0xff]  ;;  %v5576_v28 = vcombine.low %v5553_v7, %v5568_v52  ;;  %v5546_v15 = vcombine.high %v17508_v44, %v16743_v49  ;;  %v17535_v44 = vld [vmem:[#allocation107_spill] sm:$0xff] }
 0x5e1   :  { %v10687_v61 = vsel %vm17484_vm8, %v10686_v13, %v9134_v39  ;;  %vm17486_vm4 = vmmov %vm17477_vm9  ;;  %9365 = vrot.lane.b32.xlu0 %v5518_v24, %s16925_s23  ;;  %v9138_v32 = vpop.permute.xlu1 %9137  ;;  %vm17496_vm8 = vcmask 785408   ;;  %v5561_v24 = vcombine.high %v17498_v60, %v16743_v49  ;;  %v17516_v13 = vld [vmem:[#allocation159_spill] sm:$0xff]  ;;  %v17529_v60 = vld [vmem:[#allocation206_spill] sm:$0xff] }
 0x5e2   :  { %v10595_v9 = vsel %vm17486_vm4, %v10594_v10, %v17485_v25  ;;  %vm17488_vm9 = vmmov %vm17470_vm6  ;;  %v10629_v55 = vsel %vm17496_vm8, %v10628_v14, %v17495_v23  ;;  %v5584_v59 = vrot.slane %v5576_v28, %v11557_v48  ;;  %v17538_v28 = vld [vmem:[#allocation201_spill] sm:$0xff] }
 0x5e3   :  { %v10656_v38 = vsel %vm17488_vm9, %v10655_v2, %v17487_v51  ;;  %vm17492_vm10 = vmmov %vm17486_vm4  ;;  %v9142_v40 = vpop.permute.xlu0 %9141  ;;  %v10596_v31 = vsel %vm17483_vm5, %v10595_v9, %v17494_v50  ;;  %9369 = vrot.lane.b32.xlu1 %v5542_v43, %s16888_s24  ;;  %v5541_v2 = vrot.slane %v5527_v46, %v11557_v48  ;;  %v17522_v9 = vld [vmem:[#allocation191_spill] sm:$0xff]  ;;  %v5575_v51 = vrot.slane %v5561_v24, %v11234_v5  ;;  %v17526_v50 = vld [vmem:[#allocation104_spill] sm:$0xff] }
 0x5e4   :  { %v10657_v1 = vsel %vm17492_vm10, %v10656_v38, %v17491_v18  ;;  %vm17493_vm6 = vmmov %vm17486_vm4  ;;  %vm17504_vm10 = vcmask 818176   ;;  %v17523_v38 = vld [vmem:[#allocation166_spill] sm:$0xff]  ;;  %v5577_v43 = vcombine.high %v5553_v7, %v5568_v52  ;;  %v17531_v46 = vld [vmem:[#allocation24_spill] sm:$0xff] }
 0x5e5   :  { %v10688_v35 = vsel %vm17493_vm6, %v10687_v61, %v9138_v32  ;;  %vm17497_vm4 = vmmov %vm17483_vm5  ;;  %9373 = vrot.lane.b32.xlu0 %v5525_v53, %s11202_s26  ;;  %v9146_v22 = vpop.permute.xlu1 %9145  ;;  %v10630_v58 = vsel %vm17504_vm10, %v10629_v55, %v17503_v62  ;;  %v17521_v61 = vld [vmem:[#allocation189_spill] sm:$0xff]  ;;  %v17537_v24 = vld [vmem:[#allocation59_spill] sm:$0xff] }
 0x5e6   :  { %v10689_v16 = vsel %vm17497_vm4, %v10688_v35, %v9142_v40  ;;  %vm17500_vm9 = vmmov %vm17490_vm7  ;;  %v10631_v47 = vsel %vm10222_vm13, %v10630_v58, %v17510_v0  ;;  %v17525_v35 = vld [vmem:[#allocation101_spill] sm:$0xff]  ;;  %v5608_v58 = vcombine.high %v5584_v59, %v16743_v49  ;;  %v17536_v0 = vld [vmem:[#allocation83_spill] sm:$0xff] }
 0x5e7   :  { %v10597_v11 = vsel %vm17500_vm9, %v10596_v31, %v17499_v45  ;;  %vm17502_vm7 = vmmov %vm17497_vm4  ;;  %v9150_v8 = vpop.permute.xlu0 %9149  ;;  %9377 = vrot.lane.b32.xlu1 %v5543_v56, %s17365_s25  ;;  %v17530_v45 = vld [vmem:[#allocation8_spill] sm:$0xff]  ;;  %v17532_v56 = vld [vmem:[#allocation30_spill] sm:$0xff] }
 0x5e8   :  { %v10658_v57 = vsel %vm17502_vm7, %v10657_v1, %v17501_v36  ;;  %vm17506_vm6 = vmmov %vm17500_vm9  ;;  %v10598_v20 = vsel %vm17496_vm8, %v10597_v11, %v17509_v37  ;;  %v5545_v1 = vcombine.high %v5541_v2, %v16743_v49 }
 0x5e9   :  { %v10659_v41 = vsel %vm17506_vm6, %v10658_v57, %v17505_v17  ;;  %vm17507_vm5 = vmmov %vm17506_vm6  ;;  %9381 = vrot.lane.b32.xlu0 %v5534_v54, %s16854_s27  ;;  %v9154_v33 = vpop.permute.xlu1 %9153  ;;  %v5591_v57 = vrot.slane %v5577_v43, %v11557_v48  ;;  %v17533_v17 = vld [vmem:[#allocation133_spill] sm:$0xff] }
 0x5ea   :  { %v10690_v12 = vsel %vm17507_vm5, %v10689_v16, %v9146_v22  ;;  %vm17511_vm4 = vmmov %vm17496_vm8  ;;  %v5560_v16 = vrot.slane %v5546_v15, %v11234_v5 }
 0x5eb   :  { %v10691_v19 = vsel %vm17511_vm4, %v10690_v12, %v9150_v8  ;;  %vm17513_vm9 = vmmov %vm17504_vm10  ;;  %vm17517_vm10 = vcmask 883712   ;;  %v9158_v29 = vpop.permute.xlu0 %9157  ;;  %9385 = vrot.lane.b32.xlu1 %v5544_v4, %s11207_s2  ;;  %v17534_v12 = vld [vmem:[#allocation171_spill] sm:$0xff] }
 0x5ec   :  { %v10599_v63 = vsel %vm17513_vm9, %v10598_v20, %v17512_v21  ;;  %vm17515_vm7 = vmmov %vm17511_vm4  ;;  %v10632_v39 = vsel %vm17517_vm10, %v10631_v47, %v17516_v13  ;;  %v5592_v22 = vcombine.low %v5560_v16, %v5575_v51  ;;  %v5619_v21 = vrot.slane %v17537_v24, %v11234_v5 }
 0x5ed   :  { %v10660_v34 = vsel %vm17515_vm7, %v10659_v41, %v17514_v30  ;;  %vm17519_vm6 = vmmov %vm17513_vm9  ;;  %v10600_v25 = vsel %vm10222_vm13, %v10599_v63, %v17521_v61  ;;  %v10633_v53 = vsel %vm10226_vm15, %v10632_v39, %v17522_v9  ;;  %9389 = vrot.lane.b32.xlu0 %v5541_v2, %s16649_s30  ;;  %v9162_v18 = vpop.permute.xlu1 %9161  ;;  %v5634_v41 = vrot.slane %v17533_v17, %v11234_v5 }
 0x5ee   :  { %v10661_v27 = vsel %vm17519_vm6, %v10660_v34, %v17518_v6  ;;  %vm17520_vm5 = vmmov %vm17519_vm6  ;;  %v10634_v40 = vsel %vm10228_vm12, %v10633_v53, %v17525_v35  ;;  %v5593_v63 = vcombine.high %v5560_v16, %v5575_v51  ;;  %v5609_v13 = vcombine.high %v5591_v57, %v16743_v49 }
 0x5ef   :  { %v10692_v10 = vsel %vm17520_vm5, %v10691_v19, %v9154_v33  ;;  %vm17524_vm8 = vmmov %vm17517_vm10  ;;  %v10662_v14 = vsel %vm10222_vm13, %v10661_v27, %v14871_v3  ;;  %v9166_v55 = vpop.permute.xlu0 %9165  ;;  %v10635_v3 = vsel %vm10230_vm11, %v10634_v40, %v17530_v45  ;;  %9393 = vrot.lane.b32.xlu1 %v5545_v1, %s17343_s29  ;;  %v17539_v33 = vld [vmem:[#allocation33_spill] sm:$0xff]  ;;  %v5600_v39 = vrot.slane %v5592_v22, %v11557_v48 }
 0x5f0   :  { %v10693_v26 = vsel %vm10222_vm13, %v10692_v10, %v9158_v29  ;;  %v10601_v32 = vsel %vm17524_vm8, %v10600_v25, %v17523_v38  ;;  %vm17527_vm4 = vmmov %vm17524_vm8  ;;  %v10636_v8 = vsel %vm10232_vm14, %v10635_v3, %v17534_v12  ;;  %v5627_v6 = vcombine.high %v17533_v17, %v16743_v49  ;;  %v17540_v10 = vld [vmem:[#allocation106_spill] sm:$0xff] }
 0x5f1   :  { %v10663_v31 = vsel %vm17527_vm4, %v10662_v14, %v17526_v50  ;;  %vm17528_vm9 = vmmov %vm17527_vm4  ;;  %v10602_v52 = vsel %vm10226_vm15, %v10601_v32, %v17529_v60  ;;  %9397 = vrot.lane.b32.xlu0 %v5584_v59, %s16837_s28  ;;  %v9170_v62 = vpop.permute.xlu1 %9169  ;;  %v5642_v27 = vcombine.low %v5619_v21, %v5634_v41  ;;  %v5612_v9 = vcombine.high %v17537_v24, %v16743_v49 }
 0x5f2   :  { %v10694_v23 = vsel %vm17528_vm9, %v10693_v26, %v9162_v18  ;;  %v10603_v36 = vsel %vm10228_vm12, %v10602_v52, %v17531_v46  ;;  %v10664_v54 = vsel %vm10226_vm15, %v10663_v31, %v17532_v56  ;;  %v5610_v38 = vcombine.high %v5600_v39, %v16743_v49  ;;  %v17541_v52 = vld [vmem:[#allocation132_spill] sm:$0xff] }
 0x5f3   :  { %v10695_v11 = vsel %vm10226_vm15, %v10694_v23, %v9166_v55  ;;  %v10665_v7 = vsel %vm10228_vm12, %v10664_v54, %v17535_v44  ;;  %v9174_v20 = vpop.permute.xlu0 %9173  ;;  %v10604_v47 = vsel %vm10230_vm11, %v10603_v36, %v17536_v0  ;;  %9401 = vrot.lane.b32.xlu1 %v5608_v58, %s16647_s6  ;;  %v5607_v32 = vrot.slane %v5593_v63, %v11557_v48 }
 0x5f4   :  { %v10696_v37 = vsel %vm10228_vm12, %v10695_v11, %v9170_v62  ;;  %v10605_v30 = vsel %vm10232_vm14, %v10604_v47, %v17538_v28  ;;  %v10666_v4 = vsel %vm10230_vm11, %v10665_v7, %v17539_v33  ;;  %v5641_v43 = vrot.slane %v5627_v6, %v11234_v5  ;;  %v17544_v33 = vld [vmem:[#allocation135_spill] sm:$0xff]  ;;  %v17546_v6 = vld [vmem:[#allocation61_spill] sm:$0xff] }
 0x5f5   :  { %v10697_v19 = vsel %vm10230_vm11, %v10696_v37, %v9174_v20  ;;  %9405 = vrot.lane.b32.xlu0 %v5591_v57, %s17321_s4  ;;  %v11022_v34 = vcombine.low %v10605_v30, %v10636_v8  ;;  %v9178_v2 = vpop.permute.xlu1 %9177  ;;  %v10667_v29 = vsel %vm10232_vm14, %v10666_v4, %v17540_v10  ;;  %v5643_v59 = vcombine.high %v5619_v21, %v5634_v41  ;;  %v17542_v57 = vld [vmem:[#allocation58_spill] sm:$0xff] }
 0x5f6   :  { %v10698_v15 = vsel %vm10232_vm14, %v10697_v19, %v9178_v2  ;;  %v15243_v14 = vrot.slane %v5642_v27, %v11557_v48  ;;  %v5626_v35 = vrot.slane %v5612_v9, %v11234_v5  ;;  %v5611_v50 = vcombine.high %v5607_v32, %v16743_v49 }
 0x5f7   :  { %v15229_v61 = vpop.permute.xlu0 %9181  ;;  %v11023_v25 = vcombine.low %v10667_v29, %v10698_v15  ;;  %9409 = vrot.lane.b32.xlu1 %v5609_v13, %s16821_s3  ;;  %v11030_v53 = vrot.slane %v11022_v34, %v11234_v5  ;;  %v5657_v55 = vrot.slane %v5643_v59, %v11557_v48  ;;  %v5700_v45 = vrot.slane %v17541_v52, %v11234_v5 }
 0x5f8   :  { %v5658_v31 = vcombine.low %v5626_v35, %v5641_v43  ;;  %v5674_v16 = vcombine.high %v15243_v14, %v16743_v49  ;;  %v5659_v3 = vcombine.high %v5626_v35, %v5641_v43  ;;  %v5685_v22 = vrot.slane %v17542_v57, %v11234_v5 }
 0x5f9   :  { %9413 = vrot.lane.b32.xlu0 %v5600_v39, %s17185_s5  ;;  %v11037_v26 = vrot.slane %v11023_v25, %v11234_v5  ;;  %v15237_v51 = vpop.permute.xlu1 %9185  ;;  %v5675_v36 = vcombine.high %v5657_v55, %v16743_v49  ;;  %v5693_v54 = vcombine.high %v17541_v52, %v16743_v49  ;;  %v5678_v12 = vcombine.high %v17542_v57, %v16743_v49 }
 0x5fa   :  { %v5666_v46 = vrot.slane %v5658_v31, %v11557_v48  ;;  %v5708_v62 = vcombine.low %v5685_v22, %v5700_v45  ;;  %v5673_v17 = vrot.slane %v5659_v3, %v11557_v48  ;;  %v5709_v7 = vcombine.high %v5685_v22, %v5700_v45 }
 0x5fb   :  { %v15245_v18 = vpop.permute.xlu0 %9189  ;;  %v11038_v1 = vcombine.low %v11030_v53, %v11037_v26  ;;  %9417 = vrot.lane.b32.xlu1 %v5610_v38, %s16644_s10  ;;  %v5707_v44 = vrot.slane %v5693_v54, %v11234_v5  ;;  %v5692_v47 = vrot.slane %v5678_v12, %v11234_v5  ;;  %v5766_v4 = vrot.slane %v17544_v33, %v11234_v5 }
 0x5fc   :  { %v5676_v41 = vcombine.high %v5666_v46, %v16743_v49  ;;  %v5716_v20 = vrot.slane %v5708_v62, %v11557_v48  ;;  %v5677_v0 = vcombine.high %v5673_v17, %v16743_v49  ;;  %v5723_v63 = vrot.slane %v5709_v7, %v11557_v48 }
 0x5fd   :  { %9421 = vrot.lane.b32.xlu0 %v5607_v32, %s16800_s8  ;;  %11082 = vst [vmem:[#allocation5 + $0x18] sm:$0xff] %v11038_v1  ;;  %v15250_v40 = vpop.permute.xlu1 %9193  ;;  %v5724_v24 = vcombine.low %v5692_v47, %v5707_v44  ;;  %v5725_v34 = vcombine.high %v5692_v47, %v5707_v44  ;;  %v5751_v27 = vrot.slane %v17546_v6, %v11234_v5  ;;  %vm17621_vm7 = vcmask 162816  }
 0x5fe   :  { %v5740_v28 = vcombine.high %v5716_v20, %v16743_v49  ;;  %v5741_v39 = vcombine.high %v5723_v63, %v16743_v49  ;;  %v5759_v29 = vcombine.high %v17544_v33, %v16743_v49  ;;  %v5744_v26 = vcombine.high %v17546_v6, %v16743_v49  ;;  %vm17623_vm6 = vmmov %vm17621_vm7 }
 0x5ff   :  { %v15253_v23 = vpop.permute.xlu0 %9197  ;;  %9425 = vrot.lane.b32.xlu1 %v5611_v50, %s17158_s7  ;;  %v5732_v13 = vrot.slane %v5724_v24, %v11557_v48  ;;  %v5774_v15 = vcombine.low %v5751_v27, %v5766_v4  ;;  %v5739_v9 = vrot.slane %v5725_v34, %v11557_v48  ;;  %v5775_v43 = vcombine.high %v5751_v27, %v5766_v4  ;;  %vm17625_vm8 = vmmov %vm17623_vm6 }
 0x600   :  { %v5773_v32 = vrot.slane %v5759_v29, %v11234_v5  ;;  %v5758_v50 = vrot.slane %v5744_v26, %v11234_v5  ;;  %vm17622_vm10 = vcmask 195584   ;;  %vm17624_vm5 = vcmask 228352   ;;  %vm17626_vm4 = vmmov %vm17623_vm6 }
 0x601   :  { %9429 = vrot.lane.b32.xlu0 %v5674_v16, %s11187_s11  ;;  %v15260_v60 = vpop.permute.xlu1 %9201  ;;  %v5742_v53 = vcombine.high %v5732_v13, %v16743_v49  ;;  %v5782_v1 = vrot.slane %v5774_v15, %v11557_v48  ;;  %v5743_v35 = vcombine.high %v5739_v9, %v16743_v49  ;;  %v5789_v52 = vrot.slane %v5775_v43, %v11557_v48  ;;  %vm17627_vm9 = vmmov %vm17622_vm10 }
 0x602   :  { %v5791_v57 = vcombine.high %v5758_v50, %v5773_v32 }
 0x603   :  { %v15264_v11 = vpop.permute.xlu0 %9205  ;;  %9433 = vrot.lane.b32.xlu1 %v5657_v55, %s16642_s0  ;;  %v5790_v55 = vcombine.low %v5758_v50, %v5773_v32  ;;  %v5806_v45 = vcombine.high %v5782_v1, %v16743_v49  ;;  %v5807_v62 = vcombine.high %v5789_v52, %v16743_v49 }
 0x605   :  { %9437 = vrot.lane.b32.xlu0 %v5675_v36, %s17134_s9  ;;  %v15272_v56 = vpop.permute.xlu1 %9209  ;;  %v5798_v54 = vrot.slane %v5790_v55, %v11557_v48  ;;  %v17566_v55 = vld [vmem:[#allocation63_spill] sm:$0xff] }
 0x607   :  { %v15276_v58 = vpop.permute.xlu0 %9213  ;;  %9441 = vrot.lane.b32.xlu1 %v5666_v46, %s11188_s12  ;;  %v17554_v46 = vld [vmem:[#allocation134_spill] sm:$0xff]  ;;  %v5808_v47 = vcombine.high %v5798_v54, %v16743_v49 }
 0x608   :  { %v5832_v36 = vrot.slane %v17554_v46, %v11234_v5  ;;  %v5825_v44 = vcombine.high %v17554_v46, %v16743_v49 }
 0x609   :  { %9445 = vrot.lane.b32.xlu0 %v5676_v41, %s16640_s15  ;;  %v15284_v8 = vpop.permute.xlu1 %9217  ;;  %s17543_s15 = smov 36  }
 0x60b   :  { %v15287_v37 = vpop.permute.xlu0 %9221  ;;  %9449 = vrot.lane.b32.xlu1 %v5673_v17, %s17108_s13  ;;  %v17556_v17 = vld [vmem:[#allocation60_spill] sm:$0xff] }
 0x60c   :  { %v5817_v41 = vrot.slane %v17556_v17, %v11234_v5  ;;  %v5810_v24 = vcombine.high %v17556_v17, %v16743_v49  ;;  %v5876_v17 = vcombine.high %v17566_v55, %v16743_v49 }
 0x60d   :  { %9453 = vrot.lane.b32.xlu0 %v5677_v0, %s16999_s14  ;;  %v15294_v19 = vpop.permute.xlu1 %9225  ;;  %v5805_v0 = vrot.slane %v5791_v57, %v11557_v48 }
 0x60e   :  { %v5840_v7 = vcombine.low %v5817_v41, %v5832_v36  ;;  %v5841_v34 = vcombine.high %v5817_v41, %v5832_v36 }
 0x60f   :  { %v15296_v21 = vpop.permute.xlu0 %9229  ;;  %9457 = vrot.lane.b32.xlu1 %v5716_v20, %s11192_s16 }
 0x610   :  { %v5848_v4 = vrot.slane %v5840_v7, %v11557_v48  ;;  %v5855_v15 = vrot.slane %v5841_v34, %v11557_v48 }
 0x611   :  { %9461 = vrot.lane.b32.xlu0 %v5740_v28, %s17543_s15  ;;  %v15302_v30 = vpop.permute.xlu1 %9233  ;;  %v5839_v28 = vrot.slane %v5825_v44, %v11234_v5 }
 0x612   :  { %v5873_v50 = vcombine.high %v5855_v15, %v16743_v49 }
 0x613   :  { %v15306_v2 = vpop.permute.xlu0 %9237  ;;  %9465 = vrot.lane.b32.xlu1 %v5723_v63, %s16971_s17 }
 0x614   :  { %17545 = vst [vmem:[#allocation32_spill] sm:$0xff] %v15306_v2 }
 0x615   :  { %9469 = vrot.lane.b32.xlu0 %v5741_v39, %s11197_s21  ;;  %v15314_v10 = vpop.permute.xlu1 %9241  ;;  %v5824_v39 = vrot.slane %v5810_v24, %v11234_v5 }
 0x616   :  { %17547 = vst [vmem:[#allocation109_spill] sm:$0xff] %v15314_v10 }
 0x617   :  { %v15318_v25 = vpop.permute.xlu0 %9245  ;;  %9473 = vrot.lane.b32.xlu1 %v5732_v13, %s17460_s19  ;;  %v5809_v13 = vcombine.high %v5805_v0, %v16743_v49  ;;  %v5856_v27 = vcombine.low %v5824_v39, %v5839_v28  ;;  %v5857_v43 = vcombine.high %v5824_v39, %v5839_v28  ;;  %v5890_v28 = vrot.slane %v5876_v17, %v11234_v5 }
 0x618   :  { %17548 = vst [vmem:[#allocation35_spill] sm:$0xff] %v15318_v25 }
 0x619   :  { %9477 = vrot.lane.b32.xlu0 %v5742_v53, %s16947_s18  ;;  %v15326_v38 = vpop.permute.xlu1 %9249  ;;  %v17563_v53 = vld [vmem:[#allocation137_spill] sm:$0xff] }
 0x61a   :  { %17549 = vst [vmem:[#allocation108_spill] sm:$0xff] %v15326_v38  ;;  %v5898_v26 = vrot.slane %v17563_v53, %v11234_v5 }
 0x61b   :  { %v15329_v59 = vpop.permute.xlu0 %9253  ;;  %9481 = vrot.lane.b32.xlu1 %v5739_v9, %s11198_s22  ;;  %v5872_v9 = vcombine.high %v5848_v4, %v16743_v49 }
 0x61c   :  { %17550 = vst [vmem:[#allocation34_spill] sm:$0xff] %v15329_v59 }
 0x61d   :  { %9485 = vrot.lane.b32.xlu0 %v5743_v35, %s17386_s20  ;;  %v15336_v31 = vpop.permute.xlu1 %9257  ;;  %v5864_v35 = vrot.slane %v5856_v27, %v11557_v48 }
 0x61e   :  { %17551 = vst [vmem:[#allocation111_spill] sm:$0xff] %v15336_v31 }
 0x61f   :  { %v15338_v16 = vpop.permute.xlu0 %9261  ;;  %9489 = vrot.lane.b32.xlu1 %v5782_v1, %s16925_s23 }
 0x620   :  { %17552 = vst [vmem:[#allocation37_spill] sm:$0xff] %v15338_v16 }
 0x621   :  { %9493 = vrot.lane.b32.xlu0 %v5806_v45, %s16888_s24  ;;  %v15344_v3 = vpop.permute.xlu1 %9265  ;;  %v5891_v45 = vcombine.high %v17563_v53, %v16743_v49 }
 0x622   :  { %17553 = vst [vmem:[#allocation110_spill] sm:$0xff] %v15344_v3 }
 0x623   :  { %v15348_v22 = vpop.permute.xlu0 %9269  ;;  %9497 = vrot.lane.b32.xlu1 %v5789_v52, %s11202_s26  ;;  %v5883_v52 = vrot.slane %v17566_v55, %v11234_v5  ;;  %v5905_v41 = vrot.slane %v5891_v45, %v11234_v5  ;;  %v17568_v55 = vld [vmem:[#allocation62_spill] sm:$0xff] }
 0x624   :  { %17555 = vst [vmem:[#allocation36_spill] sm:$0xff] %v15348_v22 }
 0x625   :  { %9501 = vrot.lane.b32.xlu0 %v5807_v62, %s17365_s25  ;;  %v15356_v12 = vpop.permute.xlu1 %9273  ;;  %v5906_v46 = vcombine.low %v5883_v52, %v5898_v26  ;;  %v5874_v62 = vcombine.high %v5864_v35, %v16743_v49  ;;  %v5907_v44 = vcombine.high %v5883_v52, %v5898_v26  ;;  %v5923_v53 = vcombine.high %v5890_v28, %v5905_v41 }
 0x626   :  { %17557 = vst [vmem:[#allocation113_spill] sm:$0xff] %v15356_v12  ;;  %v5949_v52 = vrot.slane %v17568_v55, %v11234_v5 }
 0x627   :  { %v15360_v20 = vpop.permute.xlu0 %9277  ;;  %9505 = vrot.lane.b32.xlu1 %v5798_v54, %s16854_s27  ;;  %v5871_v54 = vrot.slane %v5857_v43, %v11557_v48  ;;  %v15412_v7 = vrot.slane %v5906_v46, %v11557_v48  ;;  %v5921_v34 = vrot.slane %v5907_v44, %v11557_v48  ;;  %v5937_v17 = vrot.slane %v5923_v53, %v11557_v48 }
 0x628   :  { %17558 = vst [vmem:[#allocation39_spill] sm:$0xff] %v15360_v20  ;;  %v5942_v44 = vcombine.high %v17568_v55, %v16743_v49 }
 0x629   :  { %9509 = vrot.lane.b32.xlu0 %v5808_v47, %s11207_s2  ;;  %v15368_v63 = vpop.permute.xlu1 %9281  ;;  %v5875_v24 = vcombine.high %v5871_v54, %v16743_v49  ;;  %v5938_v39 = vcombine.high %v15412_v7, %v16743_v49  ;;  %v5939_v43 = vcombine.high %v5921_v34, %v16743_v49 }
 0x62a   :  { %17559 = vst [vmem:[#allocation82_spill] sm:$0xff] %v15368_v63  ;;  %v5956_v53 = vrot.slane %v5942_v44, %v11234_v5 }
 0x62b   :  { %v15371_v33 = vpop.permute.xlu0 %9285  ;;  %9513 = vrot.lane.b32.xlu1 %v5805_v0, %s16649_s30 }
 0x62c   :  { %17560 = vst [vmem:[#allocation112_spill] sm:$0xff] %v15371_v33 }
 0x62d   :  { %9517 = vrot.lane.b32.xlu0 %v5809_v13, %s17343_s29  ;;  %v15378_v6 = vpop.permute.xlu1 %9289 }
 0x62e   :  { %17561 = vst [vmem:[#allocation38_spill] sm:$0xff] %v15378_v6 }
 0x62f   :  { %v15380_v29 = vpop.permute.xlu0 %9293  ;;  %9521 = vrot.lane.b32.xlu1 %v5848_v4, %s16837_s28  ;;  %v5922_v4 = vcombine.low %v5890_v28, %v5905_v41 }
 0x630   :  { %17562 = vst [vmem:[#allocation17_spill] sm:$0xff] %v15380_v29 }
 0x631   :  { %9525 = vrot.lane.b32.xlu0 %v5872_v9, %s16647_s6  ;;  %v15388_v32 = vpop.permute.xlu1 %9297 }
 0x632   :  { %17564 = vst [vmem:[#allocation85_spill] sm:$0xff] %v15388_v32 }
 0x633   :  { %v15390_v1 = vpop.permute.xlu0 %9301  ;;  %9529 = vrot.lane.b32.xlu1 %v5855_v15, %s17321_s4  ;;  %v17567_v15 = vld [vmem:[#allocation136_spill] sm:$0xff] }
 0x634   :  { %17565 = vst [vmem:[#allocation115_spill] sm:$0xff] %v15390_v1  ;;  %v5964_v9 = vrot.slane %v17567_v15, %v11234_v5  ;;  %v5957_v45 = vcombine.high %v17567_v15, %v16743_v49 }
 0x635   :  { %9533 = vrot.lane.b32.xlu0 %v5873_v50, %s16821_s3  ;;  %v15400_v36 = vpop.permute.xlu1 %9305 }
 0x636   :  { %v5972_v46 = vcombine.low %v5949_v52, %v5964_v9  ;;  %v5973_v28 = vcombine.high %v5949_v52, %v5964_v9 }
 0x637   :  { %v15402_v57 = vpop.permute.xlu0 %9309  ;;  %9537 = vrot.lane.b32.xlu1 %v5864_v35, %s17185_s5  ;;  %v5930_v35 = vrot.slane %v5922_v4, %v11557_v48 }
 0x639   :  { %9541 = vrot.lane.b32.xlu0 %v5874_v62, %s16644_s10  ;;  %v15414_v0 = vpop.permute.xlu1 %9313  ;;  %v5940_v62 = vcombine.high %v5930_v35, %v16743_v49 }
 0x63b   :  { %v15416_v47 = vpop.permute.xlu0 %9317  ;;  %9545 = vrot.lane.b32.xlu1 %v5871_v54, %s16800_s8 }
 0x63d   :  { %9549 = vrot.lane.b32.xlu0 %v5875_v24, %s17158_s7  ;;  %v15423_v13 = vpop.permute.xlu1 %9321  ;;  %v5971_v24 = vrot.slane %v5957_v45, %v11234_v5 }
 0x63f   :  { %v15427_v27 = vpop.permute.xlu0 %9325  ;;  %9553 = vrot.lane.b32.xlu1 %v5938_v39, %s11187_s11  ;;  %v5941_v39 = vcombine.high %v5937_v17, %v16743_v49  ;;  %v5989_v45 = vcombine.high %v5956_v53, %v5971_v24 }
 0x641   :  { %9557 = vrot.lane.b32.xlu0 %v5921_v34, %s16642_s0  ;;  %v15433_v26 = vpop.permute.xlu1 %9329  ;;  %s17569_s0 = smov 20   ;;  %v5980_v34 = vrot.slane %v5972_v46, %v11557_v48  ;;  %v17570_v46 = vld [vmem:[#allocation139_spill] sm:$0xff] }
 0x643   :  { %v15437_v50 = vpop.permute.xlu0 %9333  ;;  %9561 = vrot.lane.b32.xlu1 %v5939_v43, %s17134_s9  ;;  %v5987_v43 = vrot.slane %v5973_v28, %v11557_v48  ;;  %v6004_v9 = vcombine.high %v5980_v34, %v16743_v49 }
 0x645   :  { %9565 = vrot.lane.b32.xlu0 %v5930_v35, %s11188_s12  ;;  %v15445_v54 = vpop.permute.xlu1 %9337  ;;  %v5988_v35 = vcombine.low %v5956_v53, %v5971_v24  ;;  %v6005_v44 = vcombine.high %v5987_v43, %v16743_v49  ;;  %v6023_v24 = vcombine.high %v17570_v46, %v16743_v49 }
 0x647   :  { %v15449_v41 = vpop.permute.xlu0 %9341  ;;  %9569 = vrot.lane.b32.xlu1 %v5940_v62, %s17569_s0  ;;  %v6030_v62 = vrot.slane %v17570_v46, %v11234_v5  ;;  %v5996_v28 = vrot.slane %v5988_v35, %v11557_v48 }
 0x649   :  { %9573 = vrot.lane.b32.xlu0 %v5937_v17, %s17108_s13  ;;  %v15457_v4 = vpop.permute.xlu1 %9345  ;;  %v6006_v32 = vcombine.high %v5996_v28, %v16743_v49 }
 0x64b   :  { %v15460_v15 = vpop.permute.xlu0 %9349  ;;  %9577 = vrot.lane.b32.xlu1 %v5941_v39, %s16999_s14 }
 0x64d   :  { %9581 = vrot.lane.b32.xlu0 %v5980_v34, %s11192_s16  ;;  %v15466_v55 = vpop.permute.xlu1 %9353  ;;  %v17572_v34 = vld [vmem:[#allocation65_spill] sm:$0xff] }
 0x64e   :  { %v6015_v1 = vrot.slane %v17572_v34, %v11234_v5  ;;  %v6008_v29 = vcombine.high %v17572_v34, %v16743_v49 }
 0x64f   :  { %v15469_v52 = vpop.permute.xlu0 %9357  ;;  %9585 = vrot.lane.b32.xlu1 %v6004_v9, %s17543_s15 }
 0x650   :  { %v6038_v53 = vcombine.low %v6015_v1, %v6030_v62  ;;  %v6039_v6 = vcombine.high %v6015_v1, %v6030_v62 }
 0x651   :  { %9589 = vrot.lane.b32.xlu0 %v5987_v43, %s16971_s17  ;;  %v15475_v17 = vpop.permute.xlu1 %9361  ;;  %v6003_v43 = vrot.slane %v5989_v45, %v11557_v48  ;;  %v6022_v45 = vrot.slane %v6008_v29, %v11234_v5 }
 0x652   :  { %v6046_v46 = vrot.slane %v6038_v53, %v11557_v48 }
 0x653   :  { %v15479_v39 = vpop.permute.xlu0 %9365  ;;  %9593 = vrot.lane.b32.xlu1 %v6005_v44, %s11197_s21  ;;  %v6037_v44 = vrot.slane %v6023_v24, %v11234_v5  ;;  %v17579_v24 = vld [vmem:[#allocation138_spill] sm:$0xff] }
 0x654   :  { %17571 = vst [vmem:[#allocation156_spill] sm:$0xff] %v15479_v39  ;;  %v6070_v1 = vcombine.high %v6046_v46, %v16743_v49  ;;  %v6096_v29 = vrot.slane %v17579_v24, %v11234_v5 }
 0x655   :  { %9597 = vrot.lane.b32.xlu0 %v5996_v28, %s17460_s19  ;;  %v15487_v9 = vpop.permute.xlu1 %9369  ;;  %v6007_v28 = vcombine.high %v6003_v43, %v16743_v49  ;;  %v6054_v34 = vcombine.low %v6022_v45, %v6037_v44  ;;  %v6055_v53 = vcombine.high %v6022_v45, %v6037_v44 }
 0x656   :  { %17573 = vst [vmem:[#allocation90_spill] sm:$0xff] %v15487_v9 }
 0x657   :  { %v15491_v35 = vpop.permute.xlu0 %9373  ;;  %9601 = vrot.lane.b32.xlu1 %v6006_v32, %s16947_s18  ;;  %v6053_v32 = vrot.slane %v6039_v6, %v11557_v48  ;;  %v6062_v6 = vrot.slane %v6054_v34, %v11557_v48 }
 0x658   :  { %17574 = vst [vmem:[#allocation99_spill] sm:$0xff] %v15491_v35 }
 0x659   :  { %9605 = vrot.lane.b32.xlu0 %v6003_v43, %s11198_s22  ;;  %v15499_v33 = vpop.permute.xlu1 %9377  ;;  %v6072_v45 = vcombine.high %v6062_v6, %v16743_v49 }
 0x65a   :  { %17575 = vst [vmem:[#allocation41_spill] sm:$0xff] %v15499_v33 }
 0x65b   :  { %v15502_v63 = vpop.permute.xlu0 %9381  ;;  %9609 = vrot.lane.b32.xlu1 %v6007_v28, %s17386_s20  ;;  %v6071_v28 = vcombine.high %v6053_v32, %v16743_v49 }
 0x65c   :  { %17576 = vst [vmem:[#allocation193_spill] sm:$0xff] %v15502_v63 }
 0x65d   :  { %9613 = vrot.lane.b32.xlu0 %v6046_v46, %s16925_s23  ;;  %v15508_v20 = vpop.permute.xlu1 %9385  ;;  %v17582_v46 = vld [vmem:[#allocation64_spill] sm:$0xff] }
 0x65e   :  { %17577 = vst [vmem:[#allocation16_spill] sm:$0xff] %v15508_v20  ;;  %v6081_v22 = vrot.slane %v17582_v46, %v11234_v5 }
 0x65f   :  { %v15511_v62 = vpop.permute.xlu0 %9389  ;;  %9617 = vrot.lane.b32.xlu1 %v6070_v1, %s16888_s24  ;;  %v6089_v1 = vcombine.high %v17579_v24, %v16743_v49 }
 0x660   :  { %17578 = vst [vmem:[#allocation173_spill] sm:$0xff] %v15511_v62  ;;  %v6104_v3 = vcombine.low %v6081_v22, %v6096_v29 }
 0x661   :  { %9621 = vrot.lane.b32.xlu0 %v6053_v32, %s11202_s26  ;;  %v15517_v43 = vpop.permute.xlu1 %9393  ;;  %v6069_v32 = vrot.slane %v6055_v53, %v11557_v48 }
 0x662   :  { %17580 = vst [vmem:[#allocation168_spill] sm:$0xff] %v15517_v43  ;;  %v6105_v43 = vcombine.high %v6081_v22, %v6096_v29  ;;  %v6112_v24 = vrot.slane %v6104_v3, %v11557_v48  ;;  %v17588_v3 = vld [vmem:[#allocation141_spill] sm:$0xff] }
 0x663   :  { %v15521_v12 = vpop.permute.xlu0 %9397  ;;  %9625 = vrot.lane.b32.xlu1 %v6071_v28, %s17365_s25  ;;  %v6103_v28 = vrot.slane %v6089_v1, %v11234_v5  ;;  %v6162_v29 = vrot.slane %v17588_v3, %v11234_v5 }
 0x664   :  { %17581 = vst [vmem:[#allocation93_spill] sm:$0xff] %v15521_v12  ;;  %v6074_v12 = vcombine.high %v17582_v46, %v16743_v49  ;;  %v6119_v46 = vrot.slane %v6105_v43, %v11557_v48  ;;  %v6136_v22 = vcombine.high %v6112_v24, %v16743_v49 }
 0x665   :  { %9629 = vrot.lane.b32.xlu0 %v6062_v6, %s16854_s27  ;;  %v15529_v44 = vpop.permute.xlu1 %9401  ;;  %v6073_v6 = vcombine.high %v6069_v32, %v16743_v49 }
 0x666   :  { %17583 = vst [vmem:[#allocation181_spill] sm:$0xff] %v15529_v44  ;;  %v6088_v53 = vrot.slane %v6074_v12, %v11234_v5  ;;  %v17590_v12 = vld [vmem:[#allocation67_spill] sm:$0xff]  ;;  %v6137_v43 = vcombine.high %v6119_v46, %v16743_v49 }
 0x667   :  { %v15533_v34 = vpop.permute.xlu0 %9405  ;;  %9633 = vrot.lane.b32.xlu1 %v6072_v45, %s11207_s2 }
 0x668   :  { %17584 = vst [vmem:[#allocation11_spill] sm:$0xff] %v15533_v34  ;;  %v6120_v45 = vcombine.low %v6088_v53, %v6103_v28 }
 0x669   :  { %9637 = vrot.lane.b32.xlu0 %v6069_v32, %s16649_s30  ;;  %v15541_v16 = vpop.permute.xlu1 %9409  ;;  %v6147_v32 = vrot.slane %v17590_v12, %v11234_v5 }
 0x66a   :  { %17585 = vst [vmem:[#allocation19_spill] sm:$0xff] %v15541_v16 }
 0x66b   :  { %v15544_v44 = vpop.permute.xlu0 %9413  ;;  %9641 = vrot.lane.b32.xlu1 %v6073_v6, %s17343_s29  ;;  %v6121_v6 = vcombine.high %v6088_v53, %v6103_v28  ;;  %v6170_v16 = vcombine.low %v6147_v32, %v6162_v29 }
 0x66c   :  { %17586 = vst [vmem:[#allocation175_spill] sm:$0xff] %v15544_v44 }
 0x66d   :  { %9645 = vrot.lane.b32.xlu0 %v6112_v24, %s16837_s28  ;;  %v15550_v34 = vpop.permute.xlu1 %9417  ;;  %v6155_v24 = vcombine.high %v17588_v3, %v16743_v49  ;;  %v15579_v3 = vrot.slane %v6170_v16, %v11557_v48 }
 0x66e   :  { %17587 = vst [vmem:[#allocation203_spill] sm:$0xff] %v15550_v34  ;;  %v6128_v34 = vrot.slane %v6120_v45, %v11557_v48 }
 0x66f   :  { %v15555_v1 = vpop.permute.xlu0 %9421  ;;  %9649 = vrot.lane.b32.xlu1 %v6136_v22, %s16647_s6  ;;  %v6140_v22 = vcombine.high %v17590_v12, %v16743_v49  ;;  %v6169_v45 = vrot.slane %v6155_v24, %v11234_v5  ;;  %17592 = vst [vmem:[#allocation207_spill] sm:$0xff] %v15579_v3  ;;  %v6202_v16 = vcombine.high %v15579_v3, %v16743_v49  ;;  %v17593_v24 = vld [vmem:[#allocation140_spill] sm:$0xff] }
 0x670   :  { %17589 = vst [vmem:[#allocation92_spill] sm:$0xff] %v15555_v1  ;;  %v6138_v53 = vcombine.high %v6128_v34, %v16743_v49 }
 0x671   :  { %9653 = vrot.lane.b32.xlu0 %v6119_v46, %s17321_s4  ;;  %v15561_v44 = vpop.permute.xlu1 %9425  ;;  %v6135_v46 = vrot.slane %v6121_v6, %v11557_v48  ;;  %v6154_v12 = vrot.slane %v6140_v22, %v11234_v5  ;;  %v6228_v22 = vrot.slane %v17593_v24, %v11234_v5 }
 0x672   :  { %17591 = vst [vmem:[#allocation25_spill] sm:$0xff] %v15561_v44  ;;  %v6171_v44 = vcombine.high %v6147_v32, %v6162_v29 }
 0x673   :  { %v15567_v62 = vpop.permute.xlu0 %9429  ;;  %9657 = vrot.lane.b32.xlu1 %v6137_v43, %s16821_s3  ;;  %v6186_v31 = vcombine.low %v6154_v12, %v6169_v45 }
 0x674   :  { %v6185_v29 = vrot.slane %v6171_v44, %v11557_v48  ;;  %v17595_v44 = vld [vmem:[#allocation66_spill] sm:$0xff] }
 0x675   :  { %9661 = vrot.lane.b32.xlu0 %v6128_v34, %s17185_s5  ;;  %v15573_v28 = vpop.permute.xlu1 %9433  ;;  %v6139_v34 = vcombine.high %v6135_v46, %v16743_v49  ;;  %v6213_v3 = vrot.slane %v17595_v44, %v11234_v5 }
 0x676   :  { %v6203_v59 = vcombine.high %v6185_v29, %v16743_v49 }
 0x677   :  { %v15581_v1 = vpop.permute.xlu0 %9437  ;;  %9665 = vrot.lane.b32.xlu1 %v6138_v53, %s16644_s10  ;;  %v6187_v53 = vcombine.high %v6154_v12, %v6169_v45  ;;  %s17594_s10 = smov 8   ;;  %v6236_v63 = vcombine.low %v6213_v3, %v6228_v22  ;;  %v6237_v33 = vcombine.high %v6213_v3, %v6228_v22 }
 0x679   :  { %9669 = vrot.lane.b32.xlu0 %v6135_v46, %s16800_s8  ;;  %v15586_v43 = vpop.permute.xlu1 %9441  ;;  %v6194_v46 = vrot.slane %v6186_v31, %v11557_v48  ;;  %v6201_v12 = vrot.slane %v6187_v53, %v11557_v48  ;;  %v6244_v25 = vrot.slane %v6236_v63, %v11557_v48 }
 0x67b   :  { %v15589_v6 = vpop.permute.xlu0 %9445  ;;  %9673 = vrot.lane.b32.xlu1 %v6139_v34, %s17158_s7  ;;  %v6204_v31 = vcombine.high %v6194_v46, %v16743_v49  ;;  %v6205_v53 = vcombine.high %v6201_v12, %v16743_v49  ;;  %v6268_v3 = vcombine.high %v6244_v25, %v16743_v49 }
 0x67d   :  { %9677 = vrot.lane.b32.xlu0 %v6202_v16, %s11187_s11  ;;  %v15596_v32 = vpop.permute.xlu1 %9449  ;;  %v6221_v16 = vcombine.high %v17593_v24, %v16743_v49 }
 0x67f   :  { %v15600_v20 = vpop.permute.xlu0 %9453  ;;  %9681 = vrot.lane.b32.xlu1 %v6185_v29, %s17594_s10  ;;  %v6206_v29 = vcombine.high %v17595_v44, %v16743_v49  ;;  %v6235_v38 = vrot.slane %v6221_v16, %v11234_v5  ;;  %v6251_v16 = vrot.slane %v6237_v33, %v11557_v48  ;;  %v17599_v33 = vld [vmem:[#allocation69_spill] sm:$0xff] }
 0x680   :  { %v6279_v2 = vrot.slane %v17599_v33, %v11234_v5 }
 0x681   :  { %9685 = vrot.lane.b32.xlu0 %v6203_v59, %s17134_s9  ;;  %v15608_v34 = vpop.permute.xlu1 %9457  ;;  %v6269_v9 = vcombine.high %v6251_v16, %v16743_v49 }
 0x683   :  { %v15612_v45 = vpop.permute.xlu0 %9461  ;;  %9689 = vrot.lane.b32.xlu1 %v6194_v46, %s11188_s12  ;;  %v6220_v46 = vrot.slane %v6206_v29, %v11234_v5 }
 0x685   :  { %9693 = vrot.lane.b32.xlu0 %v6204_v31, %s17569_s0  ;;  %v15620_v59 = vpop.permute.xlu1 %9465  ;;  %v6252_v31 = vcombine.low %v6220_v46, %v6235_v38  ;;  %v6253_v22 = vcombine.high %v6220_v46, %v6235_v38 }
 0x687   :  { %v15623_v24 = vpop.permute.xlu0 %9469  ;;  %9697 = vrot.lane.b32.xlu1 %v6201_v12, %s17108_s13  ;;  %v17597_v12 = vld [vmem:[#allocation143_spill] sm:$0xff]  ;;  %v6260_v10 = vrot.slane %v6252_v31, %v11557_v48 }
 0x688   :  { %v6294_v29 = vrot.slane %v17597_v12, %v11234_v5  ;;  %v6287_v38 = vcombine.high %v17597_v12, %v16743_v49 }
 0x689   :  { %9701 = vrot.lane.b32.xlu0 %v6205_v53, %s16999_s14  ;;  %v15630_v44 = vpop.permute.xlu1 %9473  ;;  %v6270_v31 = vcombine.high %v6260_v10, %v16743_v49 }
 0x68a   :  { %v6302_v46 = vcombine.low %v6279_v2, %v6294_v29 }
 0x68b   :  { %v15632_v35 = vpop.permute.xlu0 %9477  ;;  %9705 = vrot.lane.b32.xlu1 %v6244_v25, %s11192_s16 }
 0x68d   :  { %9709 = vrot.lane.b32.xlu0 %v6268_v3, %s17543_s15  ;;  %v15638_v63 = vpop.permute.xlu1 %9481 }
 0x68e   :  { %17596 = vst [vmem:[#allocation18_spill] sm:$0xff] %v15638_v63  ;;  %v6303_v63 = vcombine.high %v6279_v2, %v6294_v29 }
 0x68f   :  { %v15642_v53 = vpop.permute.xlu0 %9485  ;;  %9713 = vrot.lane.b32.xlu1 %v6251_v16, %s16971_s17  ;;  %v6272_v16 = vcombine.high %v17599_v33, %v16743_v49 }
 0x690   :  { %17598 = vst [vmem:[#allocation84_spill] sm:$0xff] %v15642_v53  ;;  %v6267_v53 = vrot.slane %v6253_v22, %v11557_v48 }
 0x691   :  { %9717 = vrot.lane.b32.xlu0 %v6269_v9, %s11197_s21  ;;  %v15650_v25 = vpop.permute.xlu1 %9489 }
 0x692   :  { %17600 = vst [vmem:[#allocation176_spill] sm:$0xff] %v15650_v25  ;;  %v6301_v25 = vrot.slane %v6287_v38, %v11234_v5  ;;  %v6271_v22 = vcombine.high %v6267_v53, %v16743_v49  ;;  %v6317_v38 = vrot.slane %v6303_v63, %v11557_v48  ;;  %v17609_v63 = vld [vmem:[#allocation68_spill] sm:$0xff] }
 0x693   :  { %v15654_v3 = vpop.permute.xlu0 %9493  ;;  %9721 = vrot.lane.b32.xlu1 %v6260_v10, %s17460_s19  ;;  %v6286_v10 = vrot.slane %v6272_v16, %v11234_v5 }
 0x694   :  { %17601 = vst [vmem:[#allocation95_spill] sm:$0xff] %v15654_v3  ;;  %v6310_v3 = vrot.slane %v6302_v46, %v11557_v48 }
 0x695   :  { %9725 = vrot.lane.b32.xlu0 %v6270_v31, %s16947_s18  ;;  %v15662_v9 = vpop.permute.xlu1 %9497  ;;  %v6318_v31 = vcombine.low %v6286_v10, %v6301_v25  ;;  %v6319_v16 = vcombine.high %v6286_v10, %v6301_v25 }
 0x696   :  { %17602 = vst [vmem:[#allocation200_spill] sm:$0xff] %v15662_v9  ;;  %v6334_v2 = vcombine.high %v6310_v3, %v16743_v49 }
 0x697   :  { %v15665_v12 = vpop.permute.xlu0 %9501  ;;  %9729 = vrot.lane.b32.xlu1 %v6267_v53, %s11198_s22  ;;  %v17607_v53 = vld [vmem:[#allocation142_spill] sm:$0xff]  ;;  %v6333_v10 = vrot.slane %v6319_v16, %v11557_v48 }
 0x698   :  { %17603 = vst [vmem:[#allocation10_spill] sm:$0xff] %v15665_v12  ;;  %v6360_v46 = vrot.slane %v17607_v53, %v11234_v5  ;;  %v6345_v12 = vrot.slane %v17609_v63, %v11234_v5 }
 0x699   :  { %9733 = vrot.lane.b32.xlu0 %v6271_v22, %s17386_s20  ;;  %v15672_v33 = vpop.permute.xlu1 %9505  ;;  %v6337_v16 = vcombine.high %v6333_v10, %v16743_v49 }
 0x69a   :  { %17604 = vst [vmem:[#allocation21_spill] sm:$0xff] %v15672_v33  ;;  %v6326_v33 = vrot.slane %v6318_v31, %v11557_v48 }
 0x69b   :  { %v15674_v39 = vpop.permute.xlu0 %9509  ;;  %9737 = vrot.lane.b32.xlu1 %v6310_v3, %s16925_s23 }
 0x69c   :  { %17605 = vst [vmem:[#allocation114_spill] sm:$0xff] %v15674_v39  ;;  %v6335_v39 = vcombine.high %v6317_v38, %v16743_v49  ;;  %v6336_v31 = vcombine.high %v6326_v33, %v16743_v49 }
 0x69d   :  { %9741 = vrot.lane.b32.xlu0 %v6334_v2, %s16888_s24  ;;  %v15680_v29 = vpop.permute.xlu1 %9513  ;;  %v6353_v2 = vcombine.high %v17607_v53, %v16743_v49 }
 0x69e   :  { %17606 = vst [vmem:[#allocation87_spill] sm:$0xff] %v15680_v29  ;;  %v6368_v29 = vcombine.low %v6345_v12, %v6360_v46 }
 0x69f   :  { %v15684_v22 = vpop.permute.xlu0 %9517  ;;  %9745 = vrot.lane.b32.xlu1 %v6317_v38, %s11202_s26  ;;  %v6338_v38 = vcombine.high %v17609_v63, %v16743_v49 }
 0x6a0   :  { %17608 = vst [vmem:[#allocation158_spill] sm:$0xff] %v15684_v22  ;;  %v6369_v22 = vcombine.high %v6345_v12, %v6360_v46  ;;  %v17615_v46 = vld [vmem:[#allocation145_spill] sm:$0xff] }
 0x6a1   :  { %9749 = vrot.lane.b32.xlu0 %v6335_v39, %s17365_s25  ;;  %v15692_v3 = vpop.permute.xlu1 %9521 }
 0x6a2   :  { %17610 = vst [vmem:[#allocation94_spill] sm:$0xff] %v15692_v3  ;;  %v6367_v3 = vrot.slane %v6353_v2, %v11234_v5  ;;  %v6383_v2 = vrot.slane %v6369_v22, %v11557_v48 }
 0x6a3   :  { %v15696_v25 = vpop.permute.xlu0 %9525  ;;  %9753 = vrot.lane.b32.xlu1 %v6326_v33, %s16854_s27  ;;  %v6352_v33 = vrot.slane %v6338_v38, %v11234_v5 }
 0x6a4   :  { %17611 = vst [vmem:[#allocation187_spill] sm:$0xff] %v15696_v25  ;;  %v6376_v25 = vrot.slane %v6368_v29, %v11557_v48 }
 0x6a5   :  { %9757 = vrot.lane.b32.xlu0 %v6336_v31, %s11207_s2  ;;  %v15704_v39 = vpop.permute.xlu1 %9529  ;;  %v6384_v31 = vcombine.low %v6352_v33, %v6367_v3  ;;  %v6385_v29 = vcombine.high %v6352_v33, %v6367_v3  ;;  %v17619_v33 = vld [vmem:[#allocation180_spill] sm:$0xff] }
 0x6a6   :  { %v6400_v12 = vcombine.high %v6376_v25, %v16743_v49 }
 0x6a7   :  { %v15707_v53 = vpop.permute.xlu0 %9533  ;;  %9761 = vrot.lane.b32.xlu1 %v6333_v10, %s16649_s30  ;;  %v6426_v10 = vrot.slane %v17615_v46, %v11234_v5  ;;  %v6392_v22 = vrot.slane %v6384_v31, %v11557_v48 }
 0x6a8   :  { %17612 = vst [vmem:[#allocation40_spill] sm:$0xff] %v15707_v53 }
 0x6a9   :  { %9765 = vrot.lane.b32.xlu0 %v6337_v16, %s17343_s29  ;;  %v15714_v63 = vpop.permute.xlu1 %9537  ;;  %v10730_v16 = vsel %vm10172_vm0, %v14933_v42, %v15400_v36  ;;  %v6419_v42 = vcombine.high %v17615_v46, %v16743_v49 }
 0x6aa   :  { %17613 = vst [vmem:[#allocation13_spill] sm:$0xff] %v15714_v63  ;;  %v10731_v3 = vsel %vm10174_vm1, %v10730_v16, %v15402_v57  ;;  %v10761_v57 = vsel %vm10172_vm0, %v15243_v14, %v15567_v62 }
 0x6ab   :  { %v15716_v9 = vpop.permute.xlu0 %9541  ;;  %9769 = vrot.lane.b32.xlu1 %v6376_v25, %s16837_s28  ;;  %v17618_v25 = vld [vmem:[#allocation71_spill] sm:$0xff] }
 0x6ac   :  { %17614 = vst [vmem:[#allocation20_spill] sm:$0xff] %v15716_v9  ;;  %v6401_v9 = vcombine.high %v6383_v2, %v16743_v49  ;;  %v6411_v53 = vrot.slane %v17618_v25, %v11234_v5  ;;  %v6404_v46 = vcombine.high %v17618_v25, %v16743_v49 }
 0x6ad   :  { %9773 = vrot.lane.b32.xlu0 %v6400_v12, %s16647_s6  ;;  %v15724_v38 = vpop.permute.xlu1 %9545  ;;  %v10699_v12 = vsel %vm10172_vm0, %v17619_v33, %v15229_v61  ;;  %s17620_s6 = smov 116  }
 0x6ae   :  { %17616 = vst [vmem:[#allocation86_spill] sm:$0xff] %v15724_v38  ;;  %v6434_v36 = vcombine.low %v6411_v53, %v6426_v10  ;;  %v10732_v38 = vsel %vm10176_vm2, %v10731_v3, %v15414_v0  ;;  %v10700_v16 = vsel %vm10174_vm1, %v10699_v12, %v15237_v51  ;;  %v6435_v62 = vcombine.high %v6411_v53, %v6426_v10 }
 0x6af   :  { %v15729_v63 = vpop.permute.xlu0 %9549  ;;  %9777 = vrot.lane.b32.xlu1 %v6383_v2, %s17321_s4  ;;  %v10701_v14 = vsel %vm10176_vm2, %v10700_v16, %v15245_v18  ;;  %v10762_v51 = vsel %vm10174_vm1, %v10761_v57, %v15573_v28  ;;  %v6418_v53 = vrot.slane %v6404_v46, %v11234_v5 }
 0x6b0   :  { %17617 = vst [vmem:[#allocation161_spill] sm:$0xff] %v15729_v63  ;;  %v6399_v63 = vrot.slane %v6385_v29, %v11557_v48  ;;  %v10733_v29 = vsel %vm10178_vm3, %v10732_v38, %v15416_v47  ;;  %v15766_v25 = vrot.slane %v6434_v36, %v11557_v48  ;;  %v10763_v38 = vsel %vm10176_vm2, %v10762_v51, %v15581_v1  ;;  %v17636_v51 = vld [vmem:[#allocation70_spill] sm:$0xff] }
 0x6b1   :  { %9781 = vrot.lane.b32.xlu0 %v6401_v9, %s16821_s3  ;;  %v9554_v31 = vpop.permute.xlu1 %9553  ;;  %v6402_v9 = vcombine.high %v6392_v22, %v16743_v49  ;;  %v10734_v47 = vsel %vm17621_vm7, %v10733_v29, %v15423_v13  ;;  %v10702_v10 = vsel %vm10178_vm3, %v10701_v14, %v15250_v40  ;;  %v6449_v12 = vrot.slane %v6435_v62, %v11557_v48 }
 0x6b2   :  { %v10792_v2 = vsel %vm10172_vm0, %v15412_v7, %v9554_v31  ;;  %v6433_v7 = vrot.slane %v6419_v42, %v11234_v5  ;;  %v6403_v33 = vcombine.high %v6399_v63, %v16743_v49  ;;  %v10735_v28 = vsel %vm17622_vm10, %v10734_v47, %v15427_v27  ;;  %vm17629_vm10 = vmmov %vm17627_vm9 }
 0x6b3   :  { %v9558_v61 = vpop.permute.xlu0 %9557  ;;  %9785 = vrot.lane.b32.xlu1 %v6392_v22, %s17185_s5  ;;  %v10703_v1 = vsel %vm17623_vm6, %v10702_v10, %v15253_v23  ;;  %v10764_v36 = vsel %vm10178_vm3, %v10763_v38, %v15586_v43  ;;  %v6466_v40 = vcombine.high %v15766_v25, %v16743_v49  ;;  %v10736_v27 = vsel %vm17624_vm5, %v10735_v28, %v15433_v26  ;;  %vm17631_vm6 = vmmov %vm17624_vm5 }
 0x6b4   :  { %v10793_v0 = vsel %vm10174_vm1, %v10792_v2, %v9558_v61  ;;  %v6450_v42 = vcombine.low %v6418_v53, %v6433_v7  ;;  %v10704_v2 = vsel %vm17627_vm9, %v10703_v1, %v15260_v60  ;;  %vm17628_vm7 = vcmask 261120   ;;  %vm17632_vm5 = vmmov %vm17627_vm9 }
 0x6b5   :  { %9789 = vrot.lane.b32.xlu0 %v6402_v9, %s17620_s6  ;;  %v9562_v3 = vpop.permute.xlu1 %9561  ;;  %v10737_v61 = vsel %vm17628_vm7, %v10736_v27, %v15437_v50  ;;  %v17630_v9 = vld [vmem:[#allocation144_spill] sm:$0xff]  ;;  %v10705_v26 = vsel %vm17631_vm6, %v10704_v2, %v15264_v11  ;;  %v6467_v29 = vcombine.high %v6449_v12, %v16743_v49  ;;  %v6470_v28 = vcombine.high %v17636_v51, %v16743_v49 }
 0x6b6   :  { %v10794_v18 = vsel %vm10176_vm2, %v10793_v0, %v9562_v3  ;;  %v6492_v46 = vrot.slane %v17630_v9, %v11234_v5  ;;  %v6458_v50 = vrot.slane %v6450_v42, %v11557_v48 }
 0x6b7   :  { %v9566_v22 = vpop.permute.xlu0 %9565  ;;  %9793 = vrot.lane.b32.xlu1 %v6399_v63, %s16800_s8  ;;  %v10765_v63 = vsel %vm17625_vm8, %v10764_v36, %v15589_v6  ;;  %v6451_v6 = vcombine.high %v6418_v53, %v6433_v7  ;;  %vm17633_vm8 = vcmask 293888   ;;  %v6477_v7 = vrot.slane %v17636_v51, %v11234_v5  ;;  %v17666_v51 = vld [vmem:[#allocation90_spill] sm:$0xff] }
 0x6b8   :  { %v10795_v13 = vsel %vm10178_vm3, %v10794_v18, %v9566_v22  ;;  %v10766_v16 = vsel %vm17632_vm5, %v10765_v63, %v15596_v32  ;;  %v10738_v0 = vsel %vm17633_vm8, %v10737_v61, %v15445_v54  ;;  %v10706_v32 = vsel %vm17628_vm7, %v10705_v26, %v15272_v56  ;;  %vm17639_vm5 = vmmov %vm17633_vm8 }
 0x6b9   :  { %9797 = vrot.lane.b32.xlu0 %v6403_v33, %s17158_s7  ;;  %v9570_v31 = vpop.permute.xlu1 %9569  ;;  %v6485_v54 = vcombine.high %v17630_v9, %v16743_v49  ;;  %v6500_v38 = vcombine.low %v6477_v7, %v6492_v46  ;;  %v6468_v22 = vcombine.high %v6458_v50, %v16743_v49  ;;  %v6484_v63 = vrot.slane %v6470_v28, %v11234_v5 }
 0x6ba   :  { %v10796_v23 = vsel %vm17626_vm4, %v10795_v13, %v9570_v31  ;;  %vm17634_vm4 = vmmov %vm17631_vm6 }
 0x6bb   :  { %v9574_v57 = vpop.permute.xlu0 %9573  ;;  %9801 = vrot.lane.b32.xlu1 %v6466_v40, %s11187_s11  ;;  %v10767_v14 = vsel %vm17634_vm4, %v10766_v16, %v15600_v20  ;;  %vm17635_vm9 = vmmov %vm17634_vm4  ;;  %v10707_v20 = vsel %vm17639_vm5, %v10706_v32, %v15276_v58  ;;  %vm17641_vm4 = vcmask 359424   ;;  %v6508_v42 = vrot.slane %v6500_v38, %v11557_v48  ;;  %v17668_v32 = vld [vmem:[#allocation84_spill] sm:$0xff] }
 0x6bc   :  { %v10797_v43 = vsel %vm17629_vm10, %v10796_v23, %v9574_v57  ;;  %vm17637_vm10 = vcmask 326656   ;;  %vm17638_vm6 = vmmov %vm17628_vm7 }
 0x6bd   :  { %9805 = vrot.lane.b32.xlu0 %v6449_v12, %s17594_s10  ;;  %v9578_v60 = vpop.permute.xlu1 %9577  ;;  %v10739_v3 = vsel %vm17637_vm10, %v10738_v0, %v15449_v41  ;;  %vm17640_vm8 = vmmov %vm17638_vm6  ;;  %v6465_v41 = vrot.slane %v6451_v6, %v11557_v48  ;;  %v6501_v12 = vcombine.high %v6477_v7, %v6492_v46  ;;  %v17658_v6 = vld [vmem:[#allocation156_spill] sm:$0xff]  ;;  %v17664_v0 = vld [vmem:[#allocation18_spill] sm:$0xff] }
 0x6be   :  { %v10798_v62 = vsel %vm17635_vm9, %v10797_v43, %v9578_v60  ;;  %v10768_v18 = vsel %vm17640_vm8, %v10767_v14, %v15608_v34  ;;  %v10740_v33 = vsel %vm17641_vm4, %v10739_v3, %v15457_v4  ;;  %vm17642_vm9 = vmmov %vm17639_vm5  ;;  %v10708_v34 = vsel %vm17637_vm10, %v10707_v20, %v15284_v8  ;;  %v17671_v20 = vld [vmem:[#allocation73_spill] sm:$0xff] }
 0x6bf   :  { %v9582_v11 = vpop.permute.xlu0 %9581  ;;  %9809 = vrot.lane.b32.xlu1 %v6467_v29, %s17134_s9  ;;  %v10769_v53 = vsel %vm17642_vm9, %v10768_v18, %v15612_v45  ;;  %vm17643_vm7 = vmmov %vm17639_vm5  ;;  %v6499_v4 = vrot.slane %v6485_v54, %v11234_v5  ;;  %vm17648_vm9 = vcmask 424960   ;;  %v17661_v29 = vld [vmem:[#allocation32_spill] sm:$0xff]  ;;  %v6543_v38 = vrot.slane %v17671_v20, %v11234_v5  ;;  %v17672_v18 = vld [vmem:[#allocation109_spill] sm:$0xff] }
 0x6c0   :  { %v10799_v47 = vsel %vm17638_vm6, %v10798_v62, %v9582_v11  ;;  %vm17644_vm6 = vcmask 392192   ;;  %vm17645_vm5 = vmmov %vm17637_vm10 }
 0x6c1   :  { %9813 = vrot.lane.b32.xlu0 %v6458_v50, %s11188_s12  ;;  %v9586_v56 = vpop.permute.xlu1 %9585  ;;  %v10741_v13 = vsel %vm17644_vm6, %v10740_v33, %v15460_v15  ;;  %vm17646_vm8 = vmmov %vm17641_vm4  ;;  %v6469_v15 = vcombine.high %v6465_v41, %v16743_v49  ;;  %v6516_v2 = vcombine.low %v6484_v63, %v6499_v4  ;;  %v6517_v60 = vcombine.high %v6484_v63, %v6499_v4  ;;  %v17686_v63 = vld [vmem:[#allocation193_spill] sm:$0xff] }
 0x6c2   :  { %v10800_v10 = vsel %vm17643_vm7, %v10799_v47, %v9586_v56  ;;  %v10709_v45 = vsel %vm17646_vm8, %v10708_v34, %v15287_v37  ;;  %vm17647_vm4 = vmmov %vm17645_vm5  ;;  %v10742_v31 = vsel %vm17648_vm9, %v10741_v13, %v15466_v55  ;;  %v17678_v34 = vld [vmem:[#allocation176_spill] sm:$0xff] }
 0x6c3   :  { %v9590_v58 = vpop.permute.xlu0 %9589  ;;  %9817 = vrot.lane.b32.xlu1 %v6468_v22, %s17569_s0  ;;  %v10770_v8 = vsel %vm17647_vm4, %v10769_v53, %v15620_v59  ;;  %vm17649_vm7 = vmmov %vm17646_vm8  ;;  %v10710_v23 = vsel %vm17644_vm6, %v10709_v45, %v15294_v19  ;;  %v6532_v19 = vcombine.high %v6508_v42, %v16743_v49  ;;  %v6524_v11 = vrot.slane %v6516_v2, %v11557_v48  ;;  %v17673_v22 = vld [vmem:[#allocation99_spill] sm:$0xff] }
 0x6c4   :  { %v10801_v1 = vsel %vm17645_vm5, %v10800_v10, %v9590_v58  ;;  %v10771_v40 = vsel %vm17649_vm7, %v10770_v8, %v15623_v24  ;;  %vm17650_vm10 = vmmov %vm17649_vm7  ;;  %vm17651_vm5 = vcmask 457728   ;;  %v6515_v24 = vrot.slane %v6501_v12, %v11557_v48  ;;  %v17676_v10 = vld [vmem:[#allocation35_spill] sm:$0xff]  ;;  %v17680_v12 = vld [vmem:[#allocation41_spill] sm:$0xff] }
 0x6c5   :  { %9821 = vrot.lane.b32.xlu0 %v6465_v41, %s17108_s13  ;;  %v9594_v36 = vpop.permute.xlu1 %9593  ;;  %v10743_v59 = vsel %vm17651_vm5, %v10742_v31, %v15469_v52  ;;  %vm17652_vm8 = vmmov %vm17644_vm6  ;;  %vm17655_vm7 = vcmask 490496   ;;  %v6534_v4 = vcombine.high %v6524_v11, %v16743_v49  ;;  %v6531_v45 = vrot.slane %v6517_v60, %v11557_v48  ;;  %v17682_v8 = vld [vmem:[#allocation95_spill] sm:$0xff] }
 0x6c6   :  { %v10802_v27 = vsel %vm17650_vm10, %v10801_v1, %v9594_v36  ;;  %vm17653_vm4 = vmmov %vm17648_vm9  ;;  %v10744_v52 = vsel %vm17655_vm7, %v10743_v59, %v15475_v17  ;;  %v6533_v62 = vcombine.high %v6515_v24, %v16743_v49 }
 0x6c7   :  { %v9598_v37 = vpop.permute.xlu0 %9597  ;;  %9825 = vrot.lane.b32.xlu1 %v6469_v15, %s16999_s14  ;;  %v10711_v55 = vsel %vm17653_vm4, %v10710_v23, %v15296_v21  ;;  %vm17654_vm9 = vmmov %vm17644_vm6 }
 0x6c8   :  { %v10803_v57 = vsel %vm17652_vm8, %v10802_v27, %v9598_v37  ;;  %v10772_v61 = vsel %vm17654_vm9, %v10771_v40, %v15630_v44  ;;  %vm17656_vm10 = vmmov %vm17653_vm4  ;;  %v10712_v26 = vsel %vm17651_vm5, %v10711_v55, %v15302_v30  ;;  %vm17659_vm8 = vcmask 523264   ;;  %v17685_v27 = vld [vmem:[#allocation108_spill] sm:$0xff]  ;;  %v17689_v55 = vld [vmem:[#allocation34_spill] sm:$0xff] }
 0x6c9   :  { %9829 = vrot.lane.b32.xlu0 %v6508_v42, %s11192_s16  ;;  %v9602_v43 = vpop.permute.xlu1 %9601  ;;  %v10773_v9 = vsel %vm17656_vm10, %v10772_v61, %v15632_v35  ;;  %vm17657_vm6 = vmmov %vm17653_vm4  ;;  %v10745_v16 = vsel %vm17659_vm8, %v10744_v52, %v17658_v6  ;;  %v17663_v35 = vld [vmem:[#allocation147_spill] sm:$0xff]  ;;  %vm17667_vm10 = vcmask 556032   ;;  %v6536_v40 = vcombine.high %v17671_v20, %v16743_v49  ;;  %v17708_v20 = vld [vmem:[#allocation114_spill] sm:$0xff] }
 0x6ca   :  { %v10804_v46 = vsel %vm17657_vm6, %v10803_v57, %v9602_v43  ;;  %vm17660_vm4 = vmmov %vm17651_vm5  ;;  %v6558_v50 = vrot.slane %v17663_v35, %v11234_v5  ;;  %v10746_v7 = vsel %vm17667_vm10, %v10745_v16, %v17666_v51  ;;  %v6551_v53 = vcombine.high %v17663_v35, %v16743_v49  ;;  %v17691_v43 = vld [vmem:[#allocation200_spill] sm:$0xff]  ;;  %v17699_v35 = vld [vmem:[#allocation173_spill] sm:$0xff] }
 0x6cb   :  { %v9606_v21 = vpop.permute.xlu0 %9605  ;;  %9833 = vrot.lane.b32.xlu1 %v6532_v19, %s17543_s15  ;;  %vm17662_vm9 = vmmov %vm17655_vm7  ;;  %v6550_v60 = vrot.slane %v6536_v40, %v11234_v5  ;;  %v17704_v51 = vld [vmem:[#allocation21_spill] sm:$0xff] }
 0x6cc   :  { %v10805_v44 = vsel %vm17660_vm4, %v10804_v46, %v9606_v21  ;;  %v10713_v17 = vsel %vm17662_vm9, %v10712_v26, %v17661_v29  ;;  %vm17665_vm7 = vmmov %vm17660_vm4  ;;  %vm17674_vm4 = vcmask 588800   ;;  %v6566_v28 = vcombine.low %v6543_v38, %v6558_v50  ;;  %v17693_v46 = vld [vmem:[#allocation16_spill] sm:$0xff]  ;;  %v17695_v26 = vld [vmem:[#allocation10_spill] sm:$0xff] }
 0x6cd   :  { %9837 = vrot.lane.b32.xlu0 %v6515_v24, %s16971_s17  ;;  %v10774_v14 = vsel %vm17665_vm7, %v10773_v9, %v17664_v0  ;;  %v9610_v30 = vpop.permute.xlu1 %9609  ;;  %vm17669_vm6 = vmmov %vm17662_vm9  ;;  %v10714_v56 = vsel %vm17659_vm8, %v10713_v17, %v17672_v18  ;;  %v10747_v41 = vsel %vm17674_vm4, %v10746_v7, %v17673_v22  ;;  %v6565_v57 = vrot.slane %v6551_v53, %v11234_v5  ;;  %v17698_v29 = vld [vmem:[#allocation111_spill] sm:$0xff]  ;;  %v17711_v22 = vld [vmem:[#allocation110_spill] sm:$0xff] }
 0x6ce   :  { %v10775_v3 = vsel %vm17669_vm6, %v10774_v14, %v17668_v32  ;;  %vm17670_vm5 = vmmov %vm17669_vm6  ;;  %vm17681_vm6 = vcmask 621568   ;;  %v6567_v2 = vcombine.high %v6543_v38, %v6558_v50  ;;  %v6574_v61 = vrot.slane %v6566_v28, %v11557_v48  ;;  %v17702_v14 = vld [vmem:[#allocation37_spill] sm:$0xff] }
 0x6cf   :  { %v10806_v47 = vsel %vm17670_vm5, %v10805_v44, %v9610_v30  ;;  %v9614_v54 = vpop.permute.xlu0 %9613  ;;  %9841 = vrot.lane.b32.xlu1 %v6533_v62, %s11197_s21  ;;  %vm17675_vm9 = vmmov %vm17659_vm8  ;;  %v10748_v42 = vsel %vm17681_vm6, %v10747_v41, %v17680_v12  ;;  %v6535_v9 = vcombine.high %v6531_v45, %v16743_v49 }
 0x6d0   :  { %v10807_v33 = vsel %vm17675_vm9, %v10806_v47, %v9614_v54  ;;  %vm17677_vm7 = vmmov %vm17667_vm10  ;;  %vm17687_vm9 = vcmask 654336   ;;  %v6581_v62 = vrot.slane %v6567_v2, %v11557_v48  ;;  %v17706_v47 = vld [vmem:[#allocation168_spill] sm:$0xff] }
 0x6d1   :  { %v10715_v58 = vsel %vm17677_vm7, %v10714_v56, %v17676_v10  ;;  %9845 = vrot.lane.b32.xlu0 %v6524_v11, %s17460_s19  ;;  %vm17679_vm10 = vmmov %vm17659_vm8  ;;  %v9618_v1 = vpop.permute.xlu1 %9617  ;;  %v10749_v23 = vsel %vm17687_vm9, %v10748_v42, %v17686_v63  ;;  %v6582_v11 = vcombine.low %v6550_v60, %v6565_v57  ;;  %v17725_v63 = vld [vmem:[#allocation72_spill] sm:$0xff] }
 0x6d2   :  { %v10776_v13 = vsel %vm17679_vm10, %v10775_v3, %v17678_v34  ;;  %vm17683_vm5 = vmmov %vm17677_vm7  ;;  %v10716_v37 = vsel %vm17674_vm4, %v10715_v58, %v17685_v27  ;;  %v6598_v3 = vcombine.high %v6574_v61, %v16743_v49  ;;  %v17715_v58 = vld [vmem:[#allocation146_spill] sm:$0xff]  ;;  %v17716_v34 = vld [vmem:[#allocation36_spill] sm:$0xff]  ;;  %v6599_v42 = vcombine.high %v6581_v62, %v16743_v49 }
 0x6d3   :  { %v10777_v36 = vsel %vm17683_vm5, %v10776_v13, %v17682_v8  ;;  %vm17684_vm8 = vmmov %vm17683_vm5  ;;  %v9622_v31 = vpop.permute.xlu0 %9621  ;;  %9849 = vrot.lane.b32.xlu1 %v6534_v4, %s16947_s18  ;;  %vm17694_vm5 = vcmask 687104   ;;  %v6624_v28 = vrot.slane %v17715_v58, %v11234_v5  ;;  %v17718_v4 = vld [vmem:[#allocation87_spill] sm:$0xff]  ;;  %v6590_v8 = vrot.slane %v6582_v11, %v11557_v48 }
 0x6d4   :  { %v10808_v15 = vsel %vm17684_vm8, %v10807_v33, %v9618_v1  ;;  %vm17688_vm7 = vmmov %vm17674_vm4  ;;  %v10750_v21 = vsel %vm17694_vm5, %v10749_v23, %v17693_v46  ;;  %v17712_v33 = vld [vmem:[#allocation93_spill] sm:$0xff]  ;;  %v6583_v1 = vcombine.high %v6550_v60, %v6565_v57  ;;  %v6609_v23 = vrot.slane %v17725_v63, %v11234_v5  ;;  %v17735_v60 = vld [vmem:[#allocation187_spill] sm:$0xff] }
 0x6d5   :  { %v10809_v59 = vsel %vm17688_vm7, %v10808_v15, %v9622_v31  ;;  %vm17690_vm10 = vmmov %vm17681_vm6  ;;  %9853 = vrot.lane.b32.xlu0 %v6531_v45, %s11198_s22  ;;  %v9626_v52 = vpop.permute.xlu1 %9625  ;;  %vm17700_vm7 = vcmask 719872   ;;  %v17722_v31 = vld [vmem:[#allocation158_spill] sm:$0xff] }
 0x6d6   :  { %v10717_v24 = vsel %vm17690_vm10, %v10716_v37, %v17689_v55  ;;  %vm17692_vm6 = vmmov %vm17674_vm4  ;;  %v10751_v50 = vsel %vm17700_vm7, %v10750_v21, %v17699_v35  ;;  %v17727_v55 = vld [vmem:[#allocation11_spill] sm:$0xff] }
 0x6d7   :  { %v10778_v19 = vsel %vm17692_vm6, %v10777_v36, %v17691_v43  ;;  %vm17696_vm8 = vmmov %vm17690_vm10  ;;  %v9630_v44 = vpop.permute.xlu0 %9629  ;;  %v10718_v17 = vsel %vm17687_vm9, %v10717_v24, %v17698_v29  ;;  %9857 = vrot.lane.b32.xlu1 %v6535_v9, %s17386_s20  ;;  %v17720_v36 = vld [vmem:[#allocation181_spill] sm:$0xff]  ;;  %v17729_v43 = vld [vmem:[#allocation39_spill] sm:$0xff] }
 0x6d8   :  { %v10779_v6 = vsel %vm17696_vm8, %v10778_v19, %v17695_v26  ;;  %vm17697_vm4 = vmmov %vm17696_vm8  ;;  %vm17707_vm8 = vcmask 752640   ;;  %v17731_v9 = vld [vmem:[#allocation94_spill] sm:$0xff]  ;;  %v6600_v26 = vcombine.high %v6590_v8, %v16743_v49 }
 0x6d9   :  { %v10810_v16 = vsel %vm17697_vm4, %v10809_v59, %v9626_v52  ;;  %vm17701_vm10 = vmmov %vm17687_vm9  ;;  %9861 = vrot.lane.b32.xlu0 %v6574_v61, %s16925_s23  ;;  %v9634_v32 = vpop.permute.xlu1 %9633  ;;  %v10752_v54 = vsel %vm17707_vm8, %v10751_v50, %v17706_v47  ;;  %v17726_v59 = vld [vmem:[#allocation113_spill] sm:$0xff]  ;;  %v6617_v61 = vcombine.high %v17715_v58, %v16743_v49  ;;  %v6632_v52 = vcombine.low %v6609_v23, %v6624_v28  ;;  %v17746_v58 = vld [vmem:[#allocation38_spill] sm:$0xff] }
 0x6da   :  { %v10811_v0 = vsel %vm17701_vm10, %v10810_v16, %v9630_v44  ;;  %vm17703_vm6 = vmmov %vm17694_vm5  ;;  %vm17713_vm10 = vcmask 785408   ;;  %v17733_v16 = vld [vmem:[#allocation19_spill] sm:$0xff]  ;;  %v6602_v50 = vcombine.high %v17725_v63, %v16743_v49  ;;  %v17752_v63 = vld [vmem:[#allocation20_spill] sm:$0xff] }
 0x6db   :  { %v10719_v30 = vsel %vm17703_vm6, %v10718_v17, %v17702_v14  ;;  %vm17705_vm5 = vmmov %vm17687_vm9  ;;  %v9638_v56 = vpop.permute.xlu0 %9637  ;;  %v10753_v53 = vsel %vm17713_vm10, %v10752_v54, %v17712_v33  ;;  %9865 = vrot.lane.b32.xlu1 %v6598_v3, %s16888_s24  ;;  %v6633_v3 = vcombine.high %v6609_v23, %v6624_v28  ;;  %v6640_v47 = vrot.slane %v6632_v52, %v11557_v48  ;;  %v17756_v52 = vld [vmem:[#allocation115_spill] sm:$0xff] }
 0x6dc   :  { %v10780_v7 = vsel %vm17705_vm5, %v10779_v6, %v17704_v51  ;;  %vm17709_vm4 = vmmov %vm17703_vm6  ;;  %v10720_v41 = vsel %vm17700_vm7, %v10719_v30, %v17711_v22  ;;  %v6597_v6 = vrot.slane %v6583_v1, %v11557_v48  ;;  %v17739_v30 = vld [vmem:[#allocation175_spill] sm:$0xff]  ;;  %v6631_v51 = vrot.slane %v6617_v61, %v11234_v5  ;;  %v17743_v22 = vld [vmem:[#allocation40_spill] sm:$0xff] }
 0x6dd   :  { %v10781_v38 = vsel %vm17709_vm4, %v10780_v7, %v17708_v20  ;;  %vm17710_vm9 = vmmov %vm17709_vm4  ;;  %9869 = vrot.lane.b32.xlu0 %v6581_v62, %s11202_s26  ;;  %v9642_v12 = vpop.permute.xlu1 %9641  ;;  %vm17721_vm4 = vcmask 818176   ;;  %v17740_v7 = vld [vmem:[#allocation112_spill] sm:$0xff]  ;;  %v17748_v1 = vld [vmem:[#allocation17_spill] sm:$0xff] }
 0x6de   :  { %v10812_v18 = vsel %vm17710_vm9, %v10811_v0, %v9634_v32  ;;  %vm17714_vm6 = vmmov %vm17700_vm7  ;;  %v10754_v15 = vsel %vm17721_vm4, %v10753_v53, %v17720_v36  ;;  %v17738_v0 = vld [vmem:[#allocation82_spill] sm:$0xff]  ;;  %v17755_v61 = vld [vmem:[#allocation75_spill] sm:$0xff] }
 0x6df   :  { %v10813_v10 = vsel %vm17714_vm6, %v10812_v18, %v9638_v56  ;;  %vm17717_vm5 = vmmov %vm17707_vm8  ;;  %v9646_v37 = vpop.permute.xlu0 %9645  ;;  %v10755_v24 = vsel %vm10222_vm13, %v10754_v15, %v17727_v55  ;;  %9873 = vrot.lane.b32.xlu1 %v6599_v42, %s17365_s25  ;;  %v17742_v18 = vld [vmem:[#allocation203_spill] sm:$0xff]  ;;  %v17749_v42 = vld [vmem:[#allocation13_spill] sm:$0xff]  ;;  %v6664_v15 = vcombine.high %v6640_v47, %v16743_v49 }
 0x6e0   :  { %v10721_v13 = vsel %vm17717_vm5, %v10720_v41, %v17716_v34  ;;  %vm17719_vm8 = vmmov %vm17714_vm6  ;;  %v17747_v34 = vld [vmem:[#allocation92_spill] sm:$0xff]  ;;  %v17753_v55 = vld [vmem:[#allocation85_spill] sm:$0xff] }
 0x6e1   :  { %v10782_v45 = vsel %vm17719_vm8, %v10781_v38, %v17718_v4  ;;  %vm17723_vm9 = vmmov %vm17717_vm5  ;;  %v10722_v57 = vsel %vm17713_vm10, %v10721_v13, %v17726_v59  ;;  %9877 = vrot.lane.b32.xlu0 %v6590_v8, %s16854_s27  ;;  %v9650_v21 = vpop.permute.xlu1 %9649  ;;  %v6601_v38 = vcombine.high %v6597_v6, %v16743_v49 }
 0x6e2   :  { %v10783_v40 = vsel %vm17723_vm9, %v10782_v45, %v17722_v31  ;;  %vm17724_vm7 = vmmov %vm17717_vm5  ;;  %v6647_v45 = vrot.slane %v6633_v3, %v11557_v48  ;;  %v17750_v31 = vld [vmem:[#allocation149_spill] sm:$0xff] }
 0x6e3   :  { %v10814_v27 = vsel %vm17724_vm7, %v10813_v10, %v9642_v12  ;;  %vm17728_vm6 = vmmov %vm17713_vm10  ;;  %v9654_v35 = vpop.permute.xlu0 %9653  ;;  %9881 = vrot.lane.b32.xlu1 %v6600_v26, %s11207_s2  ;;  %v6616_v10 = vrot.slane %v6602_v50, %v11234_v5 }
 0x6e4   :  { %v10815_v2 = vsel %vm17728_vm6, %v10814_v27, %v9646_v37  ;;  %vm17730_vm5 = vmmov %vm17721_vm4  ;;  %vm17734_vm4 = vcmask 883712   ;;  %v17751_v27 = vld [vmem:[#allocation25_spill] sm:$0xff] }
 0x6e5   :  { %v10723_v19 = vsel %vm17730_vm5, %v10722_v57, %v17729_v43  ;;  %vm17732_vm8 = vmmov %vm17728_vm6  ;;  %v10756_v44 = vsel %vm17734_vm4, %v10755_v24, %v17733_v16  ;;  %9885 = vrot.lane.b32.xlu0 %v6597_v6, %s16649_s30  ;;  %v9658_v20 = vpop.permute.xlu1 %9657  ;;  %v6648_v12 = vcombine.low %v6616_v10, %v6631_v51  ;;  %s17754_s30 = smov 100   ;;  %v6675_v43 = vrot.slane %v17755_v61, %v11234_v5 }
 0x6e6   :  { %v10784_v46 = vsel %vm17732_vm8, %v10783_v40, %v17731_v9  ;;  %vm17736_vm9 = vmmov %vm17730_vm5  ;;  %v10724_v14 = vsel %vm10222_vm13, %v10723_v19, %v17738_v0  ;;  %v10757_v62 = vsel %vm10226_vm15, %v10756_v44, %v17739_v30  ;;  %v6690_v40 = vrot.slane %v17750_v31, %v11234_v5  ;;  %v17759_v30 = vld [vmem:[#allocation207_spill] sm:$0xff] }
 0x6e7   :  { %v10785_v29 = vsel %vm17736_vm9, %v10784_v46, %v17735_v60  ;;  %vm17737_vm7 = vmmov %vm17730_vm5  ;;  %v10758_v56 = vsel %vm10228_vm12, %v10757_v62, %v17742_v18  ;;  %v9662_v53 = vpop.permute.xlu0 %9661  ;;  %9889 = vrot.lane.b32.xlu1 %v6601_v38, %s17343_s29  ;;  %v6649_v19 = vcombine.high %v6616_v10, %v6631_v51  ;;  %v6665_v16 = vcombine.high %v6647_v45, %v16743_v49 }
 0x6e8   :  { %v10816_v17 = vsel %vm17737_vm7, %v10815_v2, %v9650_v21  ;;  %vm17741_vm10 = vmmov %vm17734_vm4  ;;  %v10786_v54 = vsel %vm10222_vm13, %v10785_v29, %v15704_v39  ;;  %v10759_v39 = vsel %vm10230_vm11, %v10758_v56, %v17747_v34  ;;  %v17757_v21 = vld [vmem:[#allocation86_spill] sm:$0xff]  ;;  %v6656_v44 = vrot.slane %v6648_v12, %v11557_v48 }
 0x6e9   :  { %v10817_v11 = vsel %vm10222_vm13, %v10816_v17, %v9654_v35  ;;  %v10725_v32 = vsel %vm17741_vm10, %v10724_v14, %v17740_v7  ;;  %vm17744_vm6 = vmmov %vm17734_vm4  ;;  %9893 = vrot.lane.b32.xlu0 %v6640_v47, %s16837_s28  ;;  %v9666_v36 = vpop.permute.xlu1 %9665  ;;  %v10760_v37 = vsel %vm10232_vm14, %v10759_v39, %v17751_v27  ;;  %v6683_v60 = vcombine.high %v17750_v31, %v16743_v49  ;;  %v17758_v17 = vld [vmem:[#allocation161_spill] sm:$0xff]  ;;  %v17764_v27 = vld [vmem:[#allocation74_spill] sm:$0xff] }
 0x6ea   :  { %v10787_v41 = vsel %vm17744_vm6, %v10786_v54, %v17743_v22  ;;  %vm17745_vm5 = vmmov %vm17734_vm4  ;;  %v10726_v28 = vsel %vm10226_vm15, %v10725_v32, %v17746_v58  ;;  %v6698_v29 = vcombine.low %v6675_v43, %v6690_v40  ;;  %v6666_v3 = vcombine.high %v6656_v44, %v16743_v49 }
 0x6eb   :  { %v10818_v33 = vsel %vm17745_vm5, %v10817_v11, %v9658_v20  ;;  %v10727_v4 = vsel %vm10228_vm12, %v10726_v28, %v17748_v1  ;;  %v10788_v8 = vsel %vm10226_vm15, %v10787_v41, %v17749_v42  ;;  %v9670_v57 = vpop.permute.xlu0 %9669  ;;  %9897 = vrot.lane.b32.xlu1 %v6664_v15, %s17754_s30  ;;  %v6668_v11 = vcombine.high %v17755_v61, %v16743_v49 }
 0x6ec   :  { %v10819_v13 = vsel %vm10226_vm15, %v10818_v33, %v9662_v53  ;;  %v10789_v23 = vsel %vm10228_vm12, %v10788_v8, %v17752_v63  ;;  %v10728_v24 = vsel %vm10230_vm11, %v10727_v4, %v17753_v55  ;;  %v6663_v47 = vrot.slane %v6649_v19, %v11557_v48  ;;  %v17761_v4 = vld [vmem:[#allocation148_spill] sm:$0xff] }
 0x6ed   :  { %v10820_v59 = vsel %vm10228_vm12, %v10819_v13, %v9666_v36  ;;  %v10729_v9 = vsel %vm10232_vm14, %v10728_v24, %v17756_v52  ;;  %9901 = vrot.lane.b32.xlu0 %v6647_v45, %s17321_s4  ;;  %v10790_v26 = vsel %vm10230_vm11, %v10789_v23, %v17757_v21  ;;  %v9674_v6 = vpop.permute.xlu1 %9673  ;;  %v6697_v54 = vrot.slane %v6683_v60, %v11234_v5 }
 0x6ee   :  { %v10821_v2 = vsel %vm10230_vm11, %v10820_v59, %v9670_v57  ;;  %v11039_v46 = vcombine.low %v10729_v9, %v10760_v37  ;;  %v10791_v35 = vsel %vm10232_vm14, %v10790_v26, %v17758_v17  ;;  %v6699_v20 = vcombine.high %v6675_v43, %v6690_v40  ;;  %v17769_v17 = vld [vmem:[#allocation153_spill] sm:$0xff] }
 0x6ef   :  { %v10822_v50 = vsel %vm10232_vm14, %v10821_v2, %v9674_v6  ;;  %v9678_v0 = vpop.permute.xlu0 %9677  ;;  %9905 = vrot.lane.b32.xlu1 %v6665_v16, %s16821_s3  ;;  %v16074_v38 = vrot.slane %v6698_v29, %v11557_v48  ;;  %v6682_v33 = vrot.slane %v6668_v11, %v11234_v5  ;;  %v6667_v10 = vcombine.high %v6663_v47, %v16743_v49  ;;  %v17772_v11 = vld [vmem:[#allocation79_spill] sm:$0xff] }
 0x6f0   :  { %v11040_v14 = vcombine.low %v10791_v35, %v10822_v50  ;;  %v10823_v62 = vsel %vm10172_vm0, %v17759_v30, %v9678_v0  ;;  %v11047_v51 = vrot.slane %v11039_v46, %v11234_v5  ;;  %v6713_v39 = vrot.slane %v6699_v20, %v11557_v48 }
 0x6f1   :  { %9909 = vrot.lane.b32.xlu0 %v6656_v44, %s17185_s5  ;;  %v9682_v32 = vpop.permute.xlu1 %9681  ;;  %v6714_v58 = vcombine.low %v6682_v33, %v6697_v54  ;;  %v6730_v13 = vcombine.high %v16074_v38, %v16743_v49  ;;  %vm17760_vm8 = vcmask 162816   ;;  %v6756_v45 = vrot.slane %v17761_v4, %v11234_v5 }
 0x6f2   :  { %v11054_v7 = vrot.slane %v11040_v14, %v11234_v5  ;;  %v10824_v18 = vsel %vm10174_vm1, %v10823_v62, %v9682_v32  ;;  %v6715_v42 = vcombine.high %v6682_v33, %v6697_v54  ;;  %vm17762_vm4 = vcmask 195584  }
 0x6f3   :  { %v9686_v56 = vpop.permute.xlu0 %9685  ;;  %9913 = vrot.lane.b32.xlu1 %v6666_v3, %s17620_s6  ;;  %v6722_v15 = vrot.slane %v6714_v58, %v11557_v48  ;;  %v6731_v31 = vcombine.high %v6713_v39, %v16743_v49  ;;  %vm17763_vm9 = vcmask 228352   ;;  %v6741_v37 = vrot.slane %v17764_v27, %v11234_v5 }
 0x6f4   :  { %v11055_v22 = vcombine.low %v11047_v51, %v11054_v7  ;;  %v10825_v41 = vsel %vm10176_vm2, %v10824_v18, %v9686_v56  ;;  %v6749_v63 = vcombine.high %v17761_v4, %v16743_v49  ;;  %vm17765_vm7 = vcmask 261120  }
 0x6f5   :  { %9917 = vrot.lane.b32.xlu0 %v6663_v47, %s16800_s8  ;;  %v9690_v53 = vpop.permute.xlu1 %9689  ;;  %v6764_v59 = vcombine.low %v6741_v37, %v6756_v45  ;;  %v6729_v24 = vrot.slane %v6715_v42, %v11557_v48  ;;  %v6732_v2 = vcombine.high %v6722_v15, %v16743_v49  ;;  %v6734_v61 = vcombine.high %v17764_v27, %v16743_v49 }
 0x6f6   :  { %11083 = vst [vmem:[#allocation5 + $0x20] sm:$0xff] %v11055_v22  ;;  %v10826_v28 = vsel %vm10178_vm3, %v10825_v41, %v9690_v53  ;;  %vm17766_vm10 = vcmask 293888   ;;  %v6763_v19 = vrot.slane %v6749_v63, %v11234_v5  ;;  %v6765_v9 = vcombine.high %v6741_v37, %v6756_v45 }
 0x6f7   :  { %v9694_v34 = vpop.permute.xlu0 %9693  ;;  %9921 = vrot.lane.b32.xlu1 %v6667_v10, %s17158_s7  ;;  %vm17767_vm6 = vcmask 326656   ;;  %v6772_v26 = vrot.slane %v6764_v59, %v11557_v48  ;;  %v6733_v6 = vcombine.high %v6729_v24, %v16743_v49  ;;  %v6748_v16 = vrot.slane %v6734_v61, %v11234_v5 }
 0x6f8   :  { %v10827_v1 = vsel %vm17760_vm8, %v10826_v28, %v9694_v34  ;;  %vm17768_vm5 = vcmask 359424   ;;  %v6954_v35 = vrot.slane %v17769_v17, %v11234_v5  ;;  %vm17770_vm8 = vcmask 392192  }
 0x6f9   :  { %9925 = vrot.lane.b32.xlu0 %v6730_v13, %s11187_s11  ;;  %v9698_v12 = vpop.permute.xlu1 %9697  ;;  %v6780_v60 = vcombine.low %v6748_v16, %v6763_v19  ;;  %v6779_v14 = vrot.slane %v6765_v9, %v11557_v48  ;;  %v6796_v30 = vcombine.high %v6772_v26, %v16743_v49  ;;  %v6939_v51 = vrot.slane %v17772_v11, %v11234_v5 }
 0x6fa   :  { %v10828_v8 = vsel %vm17762_vm4, %v10827_v1, %v9698_v12  ;;  %vm17771_vm4 = vcmask 424960   ;;  %v6947_v7 = vcombine.high %v17769_v17, %v16743_v49  ;;  %v6932_v22 = vcombine.high %v17772_v11, %v16743_v49 }
 0x6fb   :  { %v9702_v36 = vpop.permute.xlu0 %9701  ;;  %9929 = vrot.lane.b32.xlu1 %v6713_v39, %s17594_s10  ;;  %v6962_v3 = vcombine.low %v6939_v51, %v6954_v35  ;;  %v6788_v20 = vrot.slane %v6780_v60, %v11557_v48  ;;  %v6797_v18 = vcombine.high %v6779_v14, %v16743_v49  ;;  %v6781_v41 = vcombine.high %v6748_v16, %v6763_v19 }
 0x6fc   :  { %v10829_v40 = vsel %vm17763_vm9, %v10828_v8, %v9702_v36  ;;  %vm17773_vm9 = vcmask 457728   ;;  %v6961_v33 = vrot.slane %v6947_v7, %v11234_v5  ;;  %v6963_v10 = vcombine.high %v6939_v51, %v6954_v35 }
 0x6fd   :  { %9933 = vrot.lane.b32.xlu0 %v6731_v31, %s17134_s9  ;;  %v9706_v23 = vpop.permute.xlu1 %9705  ;;  %v16139_v58 = vrot.slane %v6962_v3, %v11557_v48  ;;  %v6798_v39 = vcombine.high %v6788_v20, %v16743_v49  ;;  %v6946_v1 = vrot.slane %v6932_v22, %v11234_v5  ;;  %v16148_v45 = vrot.slane %v6781_v41, %v11557_v48 }
 0x6fe   :  { %v10830_v57 = vsel %vm17765_vm7, %v10829_v40, %v9706_v23  ;;  %vm17774_vm7 = vcmask 490496   ;;  %v6977_v36 = vrot.slane %v6963_v10, %v11557_v48  ;;  %v17779_v40 = vld [vmem:[#allocation152_spill] sm:$0xff]  ;;  %v17788_v10 = vld [vmem:[#allocation151_spill] sm:$0xff] }
 0x6ff   :  { %v9710_v55 = vpop.permute.xlu0 %9709  ;;  %9937 = vrot.lane.b32.xlu1 %v6722_v15, %s11188_s12  ;;  %v6978_v12 = vcombine.low %v6946_v1, %v6961_v33  ;;  %v6994_v15 = vcombine.high %v16139_v58, %v16743_v49  ;;  %v7020_v27 = vrot.slane %v17779_v40, %v11234_v5  ;;  %v6979_v63 = vcombine.high %v6946_v1, %v6961_v33 }
 0x700   :  { %v10831_v43 = vsel %vm17766_vm10, %v10830_v57, %v9710_v55  ;;  %vm17775_vm10 = vcmask 523264   ;;  %v6995_v55 = vcombine.high %v6977_v36, %v16743_v49 }
 0x701   :  { %9941 = vrot.lane.b32.xlu0 %v6732_v2, %s17569_s0  ;;  %v9714_v52 = vpop.permute.xlu1 %9713  ;;  %v6986_v57 = vrot.slane %v6978_v12, %v11557_v48  ;;  %v17782_v2 = vld [vmem:[#allocation78_spill] sm:$0xff] }
 0x702   :  { %v10832_v46 = vsel %vm17767_vm6, %v10831_v43, %v9714_v52  ;;  %vm17776_vm6 = vcmask 556032   ;;  %v7005_v61 = vrot.slane %v17782_v2, %v11234_v5  ;;  %v7013_v43 = vcombine.high %v17779_v40, %v16743_v49 }
 0x703   :  { %v9718_v21 = vpop.permute.xlu0 %9717  ;;  %9945 = vrot.lane.b32.xlu1 %v6729_v24, %s17108_s13  ;;  %v6998_v16 = vcombine.high %v17782_v2, %v16743_v49 }
 0x704   :  { %v10833_v44 = vsel %vm17768_vm5, %v10832_v46, %v9718_v21  ;;  %vm17777_vm5 = vcmask 588800   ;;  %v7028_v52 = vcombine.low %v7005_v61, %v7020_v27  ;;  %v6993_v21 = vrot.slane %v6979_v63, %v11557_v48  ;;  %v17791_v63 = vld [vmem:[#allocation81_spill] sm:$0xff] }
 0x705   :  { %9949 = vrot.lane.b32.xlu0 %v6733_v6, %s16999_s14  ;;  %v9722_v29 = vpop.permute.xlu1 %9721 }
 0x706   :  { %v10834_v50 = vsel %vm17770_vm8, %v10833_v44, %v9722_v29  ;;  %vm17778_vm8 = vcmask 621568   ;;  %v7027_v44 = vrot.slane %v7013_v43, %v11234_v5  ;;  %v7029_v29 = vcombine.high %v7005_v61, %v7020_v27 }
 0x707   :  { %v9726_v0 = vpop.permute.xlu0 %9725  ;;  %9953 = vrot.lane.b32.xlu1 %v6772_v26, %s11192_s16  ;;  %v6996_v26 = vcombine.high %v6986_v57, %v16743_v49 }
 0x708   :  { %v10835_v62 = vsel %vm17771_vm4, %v10834_v50, %v9726_v0  ;;  %vm17780_vm4 = vcmask 654336   ;;  %v7036_v50 = vrot.slane %v7028_v52, %v11557_v48  ;;  %v6997_v0 = vcombine.high %v6993_v21, %v16743_v49 }
 0x709   :  { %9957 = vrot.lane.b32.xlu0 %v6796_v30, %s17543_s15  ;;  %v9730_v32 = vpop.permute.xlu1 %9729  ;;  %v7012_v30 = vrot.slane %v6998_v16, %v11234_v5  ;;  %v6815_v52 = vcombine.high %v17788_v10, %v16743_v49 }
 0x70a   :  { %v10836_v47 = vsel %vm17773_vm9, %v10835_v62, %v9730_v32  ;;  %vm17781_vm9 = vcmask 687104   ;;  %v7043_v32 = vrot.slane %v7029_v29, %v11557_v48  ;;  %v7060_v3 = vcombine.high %v7036_v50, %v16743_v49 }
 0x70b   :  { %v9734_v54 = vpop.permute.xlu0 %9733  ;;  %9961 = vrot.lane.b32.xlu1 %v6779_v14, %s16971_s17  ;;  %v7044_v11 = vcombine.low %v7012_v30, %v7027_v44  ;;  %v7045_v33 = vcombine.high %v7012_v30, %v7027_v44  ;;  %v7064_v30 = vcombine.high %v17791_v63, %v16743_v49 }
 0x70c   :  { %v10837_v56 = vsel %vm17774_vm7, %v10836_v47, %v9734_v54  ;;  %vm17783_vm7 = vcmask 719872   ;;  %v7061_v22 = vcombine.high %v7043_v32, %v16743_v49 }
 0x70d   :  { %9965 = vrot.lane.b32.xlu0 %v6797_v18, %s11197_s21  ;;  %v9738_v53 = vpop.permute.xlu1 %9737 }
 0x70e   :  { %v10838_v28 = vsel %vm17775_vm10, %v10837_v56, %v9738_v53  ;;  %vm17784_vm10 = vcmask 752640   ;;  %v7052_v56 = vrot.slane %v7044_v11, %v11557_v48 }
 0x70f   :  { %v9742_v34 = vpop.permute.xlu0 %9741  ;;  %9969 = vrot.lane.b32.xlu1 %v6788_v20, %s17460_s19 }
 0x710   :  { %v10839_v13 = vsel %vm17776_vm6, %v10838_v28, %v9742_v34  ;;  %vm17785_vm6 = vcmask 785408   ;;  %v6822_v28 = vrot.slane %v17788_v10, %v11234_v5 }
 0x711   :  { %9973 = vrot.lane.b32.xlu0 %v6798_v39, %s16947_s18  ;;  %v9746_v4 = vpop.permute.xlu1 %9745 }
 0x712   :  { %v10840_v42 = vsel %vm17777_vm5, %v10839_v13, %v9746_v4  ;;  %vm17786_vm5 = vcmask 818176   ;;  %v7062_v13 = vcombine.high %v7052_v56, %v16743_v49  ;;  %v17789_v4 = vld [vmem:[#allocation77_spill] sm:$0xff] }
 0x713   :  { %v9750_v8 = vpop.permute.xlu0 %9749  ;;  %9977 = vrot.lane.b32.xlu1 %v16148_v45, %s11198_s22  ;;  %v6807_v12 = vrot.slane %v17789_v4, %v11234_v5  ;;  %v6800_v16 = vcombine.high %v17789_v4, %v16743_v49 }
 0x714   :  { %v10841_v31 = vsel %vm17778_vm8, %v10840_v42, %v9750_v8  ;;  %vm17787_vm8 = vcmask 883712   ;;  %v17790_v42 = vld [vmem:[#allocation155_spill] sm:$0xff] }
 0x715   :  { %10049 = vrot.lane.b32.xlu0 %v6994_v15, %s11187_s11  ;;  %v9754_v37 = vpop.permute.xlu1 %9753  ;;  %v7086_v8 = vrot.slane %v17790_v42, %v11234_v5  ;;  %v7059_v15 = vrot.slane %v7045_v33, %v11557_v48  ;;  %v7079_v44 = vcombine.high %v17790_v42, %v16743_v49  ;;  %v6814_v11 = vrot.slane %v6800_v16, %v11234_v5  ;;  %s11217_s11 = smov [#allocation5]  }
 0x716   :  { %v10842_v23 = vsel %vm17780_vm4, %v10841_v31, %v9754_v37  ;;  %v6830_v31 = vcombine.low %v6807_v12, %v6822_v28  ;;  %v6799_v37 = vcombine.high %v16148_v45, %v16743_v49  ;;  %vm17792_vm4 = vcmask 162816  }
 0x717   :  { %v9758_v59 = vpop.permute.xlu0 %9757  ;;  %10053 = vrot.lane.b32.xlu1 %v6977_v36, %s17594_s10 }
 0x718   :  { %v10843_v24 = vsel %vm17781_vm9, %v10842_v23, %v9758_v59  ;;  %v7071_v23 = vrot.slane %v17791_v63, %v11234_v5  ;;  %v6838_v61 = vrot.slane %v6830_v31, %v11557_v48  ;;  %vm17793_vm9 = vcmask 195584  }
 0x719   :  { %10057 = vrot.lane.b32.xlu0 %v6995_v55, %s17134_s9  ;;  %v9762_v19 = vpop.permute.xlu1 %9761 }
 0x71a   :  { %v10844_v9 = vsel %vm17783_vm7, %v10843_v24, %v9762_v19  ;;  %v7063_v24 = vcombine.high %v7059_v15, %v16743_v49  ;;  %vm17794_vm7 = vcmask 228352  }
 0x71b   :  { %v9766_v46 = vpop.permute.xlu0 %9765  ;;  %10061 = vrot.lane.b32.xlu1 %v6986_v57, %s11188_s12  ;;  %v7094_v57 = vcombine.low %v7071_v23, %v7086_v8  ;;  %s11091_s12 = sshll.u32 %s11217_s11, 4  ;;  %s11092_s12 = int_to_ptr.vmem [resolvable:$true] %s11091_s12 }
 0x71c   :  { %v10845_v6 = vsel %vm17784_vm10, %v10844_v9, %v9766_v46  ;;  %v6831_v9 = vcombine.high %v6807_v12, %v6822_v28  ;;  %vm17795_vm10 = vcmask 261120   ;;  %p11163_p6 = scmp.lt.s32.totalorder %s11092_s12, %s11092_s12 }
 0x71d   :  { %10065 = vrot.lane.b32.xlu0 %v6996_v26, %s17569_s0  ;;  %v9770_v60 = vpop.permute.xlu1 %9769  ;;  %v7102_v19 = vrot.slane %v7094_v57, %v11557_v48  ;;  %v6862_v26 = vcombine.high %v6838_v61, %v16743_v49  ;;  %s17806_s0 = smov 88  }
 0x71e   :  { %v10846_v17 = vsel %vm17785_vm6, %v10845_v6, %v9770_v60  ;;  %v7095_v60 = vcombine.high %v7071_v23, %v7086_v8  ;;  %vm17796_vm6 = vcmask 293888  }
 0x71f   :  { %v9774_v35 = vpop.permute.xlu0 %9773  ;;  %10069 = vrot.lane.b32.xlu1 %v6993_v21, %s17108_s13  ;;  %s11158_s13 = scalar_lea.vmem %s11092_s12, 768 }
 0x720   :  { %v10847_v14 = vsel %vm17786_vm5, %v10846_v17, %v9774_v35  ;;  %v7126_v17 = vcombine.high %v7102_v19, %v16743_v49  ;;  %v6829_v35 = vrot.slane %v6815_v52, %v11234_v5  ;;  %vm17797_vm5 = vcmask 326656   ;;  %p11159_p5 = scmp.ne.s32.totalorder %s11092_s12, %s11158_s13  ;;  %p11164_p7 = scmp.lt.s32.totalorder %s11158_s13, %s11158_s13 }
 0x721   :  { %10073 = vrot.lane.b32.xlu0 %v6997_v0, %s16999_s14  ;;  %v9778_v62 = vpop.permute.xlu1 %9777 }
 0x722   :  { %v10848_v51 = vsel %vm10222_vm13, %v10847_v14, %v9778_v62  ;;  %v6845_v14 = vrot.slane %v6831_v9, %v11557_v48  ;;  %v6847_v4 = vcombine.high %v6814_v11, %v6829_v35  ;;  %p11165_p8 = por %p11164_p7, %p11163_p6 }
 0x723   :  { %v9782_v7 = vpop.permute.xlu0 %9781  ;;  %10077 = vrot.lane.b32.xlu1 %v7036_v50, %s11192_s16 }
 0x724   :  { %v10849_v47 = vsel %vm17787_vm8, %v10848_v51, %v9782_v7  ;;  %v7093_v51 = vrot.slane %v7079_v44, %v11234_v5  ;;  %vm17798_vm8 = vcmask 359424   ;;  %p11166_p9 = pnand %p11165_p8, %p11159_p5 }
 0x725   :  { %10081 = vrot.lane.b32.xlu0 %v7060_v3, %s17543_s15  ;;  %v9786_v54 = vpop.permute.xlu1 %9785  ;;  %v6846_v3 = vcombine.low %v6814_v11, %v6829_v35 }
 0x726   :  { %v10850_v20 = vsel %vm10226_vm15, %v10849_v47, %v9786_v54 }
 0x727   :  { %v9790_v18 = vpop.permute.xlu0 %9789  ;;  %10085 = vrot.lane.b32.xlu1 %v7043_v32, %s16971_s17  ;;  %v7109_v32 = vrot.slane %v7095_v60, %v11557_v48  ;;  %v6854_v28 = vrot.slane %v6846_v3, %v11557_v48 }
 0x728   :  { %v10851_v41 = vsel %vm10228_vm12, %v10850_v20, %v9790_v18  ;;  %v6863_v20 = vcombine.high %v6845_v14, %v16743_v49  ;;  %v7078_v18 = vrot.slane %v7064_v30, %v11234_v5 }
 0x729   :  { %10089 = vrot.lane.b32.xlu0 %v7061_v22, %s11197_s21  ;;  %v9794_v53 = vpop.permute.xlu1 %9793  ;;  %v7127_v33 = vcombine.high %v7109_v32, %v16743_v49  ;;  %v6864_v8 = vcombine.high %v6854_v28, %v16743_v49 }
 0x72a   :  { %v10852_v34 = vsel %vm10230_vm11, %v10851_v41, %v9794_v53  ;;  %v7110_v22 = vcombine.low %v7078_v18, %v7093_v51 }
 0x72b   :  { %v9798_v39 = vpop.permute.xlu0 %9797  ;;  %10093 = vrot.lane.b32.xlu1 %v7052_v56, %s17460_s19 }
 0x72c   :  { %v16204_v1 = vsel %vm10232_vm14, %v10852_v34, %v9798_v39 }
 0x72d   :  { %10097 = vrot.lane.b32.xlu0 %v7062_v13, %s16947_s18  ;;  %v9802_v36 = vpop.permute.xlu1 %9801  ;;  %v7118_v13 = vrot.slane %v7110_v22, %v11557_v48 }
 0x72e   :  { %v10854_v40 = vsel %vm10172_vm0, %v15766_v25, %v9802_v36 }
 0x72f   :  { %v9806_v27 = vpop.permute.xlu0 %9805  ;;  %10101 = vrot.lane.b32.xlu1 %v7059_v15, %s11198_s22  ;;  %v7111_v15 = vcombine.high %v7078_v18, %v7093_v51 }
 0x730   :  { %v10855_v59 = vsel %vm10174_vm1, %v10854_v40, %v9806_v27  ;;  %v7128_v40 = vcombine.high %v7118_v13, %v16743_v49  ;;  %v17802_v27 = vld [vmem:[#allocation150_spill] sm:$0xff] }
 0x731   :  { %9981 = vrot.lane.b32.xlu0 %v6799_v37, %s17386_s20  ;;  %v9810_v55 = vpop.permute.xlu1 %9809  ;;  %v6888_v37 = vrot.slane %v17802_v27, %v11234_v5 }
 0x732   :  { %v10856_v2 = vsel %vm10176_vm2, %v10855_v59, %v9810_v55  ;;  %v6861_v59 = vrot.slane %v6847_v4, %v11557_v48  ;;  %v17805_v55 = vld [vmem:[#allocation76_spill] sm:$0xff] }
 0x733   :  { %v9814_v25 = vpop.permute.xlu0 %9813  ;;  %10105 = vrot.lane.b32.xlu1 %v7063_v24, %s17386_s20  ;;  %v6873_v24 = vrot.slane %v17805_v55, %v11234_v5 }
 0x734   :  { %v10857_v45 = vsel %vm10178_vm3, %v10856_v2, %v9814_v25  ;;  %v17807_v2 = vld [vmem:[#allocation154_spill] sm:$0xff]  ;;  %v6865_v9 = vcombine.high %v6861_v59, %v16743_v49 }
 0x735   :  { %9985 = vrot.lane.b32.xlu0 %v6838_v61, %s16925_s23  ;;  %v9818_v43 = vpop.permute.xlu1 %9817  ;;  %v7152_v25 = vrot.slane %v17807_v2, %v11234_v5  ;;  %v6897_v30 = vcombine.high %v6873_v24, %v6888_v37  ;;  %v7145_v3 = vcombine.high %v17807_v2, %v16743_v49 }
 0x736   :  { %v10858_v46 = vsel %vm17792_vm4, %v10857_v45, %v9818_v43  ;;  %vm17799_vm4 = vcmask 392192   ;;  %v7125_v45 = vrot.slane %v7111_v15, %v11557_v48  ;;  %v6896_v43 = vcombine.low %v6873_v24, %v6888_v37 }
 0x737   :  { %v9822_v21 = vpop.permute.xlu0 %9821  ;;  %10109 = vrot.lane.b32.xlu1 %v7102_v19, %s16925_s23 }
 0x738   :  { %v10859_v6 = vsel %vm17793_vm9, %v10858_v46, %v9822_v21  ;;  %vm17800_vm9 = vcmask 424960   ;;  %v17809_v46 = vld [vmem:[#allocation80_spill] sm:$0xff]  ;;  %v7129_v44 = vcombine.high %v7125_v45, %v16743_v49 }
 0x739   :  { %9989 = vrot.lane.b32.xlu0 %v6862_v26, %s16888_s24  ;;  %v9826_v29 = vpop.permute.xlu1 %9825  ;;  %v7137_v21 = vrot.slane %v17809_v46, %v11234_v5 }
 0x73a   :  { %v10860_v50 = vsel %vm17794_vm7, %v10859_v6, %v9826_v29  ;;  %vm17801_vm7 = vcmask 457728  }
 0x73b   :  { %v9830_v0 = vpop.permute.xlu0 %9829  ;;  %10113 = vrot.lane.b32.xlu1 %v7126_v17, %s16888_s24  ;;  %v7160_v6 = vcombine.low %v7137_v21, %v7152_v25  ;;  %v6904_v17 = vrot.slane %v6896_v43, %v11557_v48 }
 0x73c   :  { %v10861_v62 = vsel %vm17795_vm10, %v10860_v50, %v9830_v0  ;;  %vm17803_vm10 = vcmask 490496  }
 0x73d   :  { %9993 = vrot.lane.b32.xlu0 %v6845_v14, %s11202_s26  ;;  %v9834_v7 = vpop.permute.xlu1 %9833  ;;  %v7168_v0 = vrot.slane %v7160_v6, %v11557_v48  ;;  %v6881_v14 = vcombine.high %v17802_v27, %v16743_v49  ;;  %v6928_v51 = vcombine.high %v6904_v17, %v16743_v49 }
 0x73e   :  { %v10862_v47 = vsel %vm17796_vm6, %v10861_v62, %v9834_v7  ;;  %vm17804_vm6 = vcmask 523264  }
 0x73f   :  { %v9838_v54 = vpop.permute.xlu0 %9837  ;;  %10117 = vrot.lane.b32.xlu1 %v7109_v32, %s11202_s26  ;;  %v6866_v32 = vcombine.high %v17805_v55, %v16743_v49  ;;  %v6895_v18 = vrot.slane %v6881_v14, %v11234_v5 }
 0x740   :  { %v10863_v56 = vsel %vm17797_vm5, %v10862_v47, %v9838_v54  ;;  %vm17808_vm5 = vcmask 556032   ;;  %v7161_v47 = vcombine.high %v7137_v21, %v7152_v25 }
 0x741   :  { %9997 = vrot.lane.b32.xlu0 %v6863_v20, %s17365_s25  ;;  %v9842_v41 = vpop.permute.xlu1 %9841  ;;  %v7192_v20 = vcombine.high %v7168_v0, %v16743_v49 }
 0x742   :  { %v10864_v53 = vsel %vm17798_vm8, %v10863_v56, %v9842_v41  ;;  %vm17810_vm8 = vcmask 588800   ;;  %v6911_v41 = vrot.slane %v6897_v30, %v11557_v48 }
 0x743   :  { %v9846_v10 = vpop.permute.xlu0 %9845  ;;  %10121 = vrot.lane.b32.xlu1 %v7127_v33, %s17365_s25  ;;  %v7130_v33 = vcombine.high %v17809_v46, %v16743_v49 }
 0x744   :  { %v10865_v34 = vsel %vm17799_vm4, %v10864_v53, %v9846_v10  ;;  %vm17811_vm4 = vcmask 621568   ;;  %v6880_v10 = vrot.slane %v6866_v32, %v11234_v5 }
 0x745   :  { %10001 = vrot.lane.b32.xlu0 %v6854_v28, %s16854_s27  ;;  %v9850_v39 = vpop.permute.xlu1 %9849  ;;  %v7159_v28 = vrot.slane %v7145_v3, %v11234_v5 }
 0x746   :  { %v10866_v12 = vsel %vm17800_vm9, %v10865_v34, %v9850_v39  ;;  %vm17812_vm9 = vcmask 654336   ;;  %v7175_v39 = vrot.slane %v7161_v47, %v11557_v48  ;;  %v6913_v55 = vcombine.high %v6880_v10, %v6895_v18 }
 0x747   :  { %v9854_v42 = vpop.permute.xlu0 %9853  ;;  %10125 = vrot.lane.b32.xlu1 %v7118_v13, %s16854_s27  ;;  %v6912_v13 = vcombine.low %v6880_v10, %v6895_v18 }
 0x748   :  { %v10867_v36 = vsel %vm17801_vm7, %v10866_v12, %v9854_v42  ;;  %vm17813_vm7 = vcmask 687104   ;;  %v6929_v42 = vcombine.high %v6911_v41, %v16743_v49  ;;  %v6927_v46 = vrot.slane %v6913_v55, %v11557_v48 }
 0x749   :  { %10005 = vrot.lane.b32.xlu0 %v6864_v8, %s11207_s2  ;;  %v9858_v31 = vpop.permute.xlu1 %9857  ;;  %v7144_v8 = vrot.slane %v7130_v33, %v11234_v5 }
 0x74a   :  { %v10868_v63 = vsel %vm17803_vm10, %v10867_v36, %v9858_v31  ;;  %vm17814_vm10 = vcmask 719872  }
 0x74b   :  { %v9862_v23 = vpop.permute.xlu0 %9861  ;;  %10129 = vrot.lane.b32.xlu1 %v7128_v40, %s11207_s2  ;;  %v7176_v15 = vcombine.low %v7144_v8, %v7159_v28  ;;  %v7193_v40 = vcombine.high %v7175_v39, %v16743_v49 }
 0x74c   :  { %v10869_v57 = vsel %vm17804_vm6, %v10868_v63, %v9862_v23  ;;  %vm17815_vm6 = vcmask 752640   ;;  %v6920_v63 = vrot.slane %v6912_v13, %v11557_v48 }
 0x74d   :  { %10009 = vrot.lane.b32.xlu0 %v6861_v59, %s17806_s0  ;;  %v9866_v61 = vpop.permute.xlu1 %9865 }
 0x74e   :  { %v10870_v19 = vsel %vm17808_vm5, %v10869_v57, %v9866_v61  ;;  %vm17816_vm5 = vcmask 785408   ;;  %v7184_v57 = vrot.slane %v7176_v15, %v11557_v48  ;;  %v6930_v25 = vcombine.high %v6920_v63, %v16743_v49 }
 0x74f   :  { %v9870_v52 = vpop.permute.xlu0 %9869  ;;  %10133 = vrot.lane.b32.xlu1 %v7125_v45, %s17806_s0  ;;  %v7177_v45 = vcombine.high %v7144_v8, %v7159_v28 }
 0x750   :  { %v10871_v26 = vsel %vm17810_vm8, %v10870_v19, %v9870_v52  ;;  %vm17817_vm8 = vcmask 818176   ;;  %v7194_v19 = vcombine.high %v7184_v57, %v16743_v49 }
 0x751   :  { %10013 = vrot.lane.b32.xlu0 %v6865_v9, %s17343_s29  ;;  %v9874_v16 = vpop.permute.xlu1 %9873 }
 0x752   :  { %v10872_v60 = vsel %vm17811_vm4, %v10871_v26, %v9874_v16  ;;  %vm17818_vm4 = vcmask 883712   ;;  %v7191_v16 = vrot.slane %v7177_v45, %v11557_v48 }
 0x753   :  { %v9878_v29 = vpop.permute.xlu0 %9877  ;;  %10137 = vrot.lane.b32.xlu1 %v7129_v44, %s17343_s29 }
 0x754   :  { %v10873_v35 = vsel %vm17812_vm9, %v10872_v60, %v9878_v29  ;;  %v6931_v29 = vcombine.high %v6927_v46, %v16743_v49  ;;  %vm17819_vm9 = vcmask 162816  }
 0x755   :  { %10017 = vrot.lane.b32.xlu0 %v6904_v17, %s16837_s28  ;;  %v9882_v50 = vpop.permute.xlu1 %9881 }
 0x756   :  { %v10874_v62 = vsel %vm17813_vm7, %v10873_v35, %v9882_v50  ;;  %v7195_v50 = vcombine.high %v7191_v16, %v16743_v49  ;;  %vm17820_vm7 = vcmask 195584  }
 0x757   :  { %v9886_v11 = vpop.permute.xlu0 %9885  ;;  %10141 = vrot.lane.b32.xlu1 %v7168_v0, %s16837_s28 }
 0x758   :  { %v10875_v7 = vsel %vm17814_vm10, %v10874_v62, %v9886_v11  ;;  %vm17821_vm10 = vcmask 228352  }
 0x759   :  { %10021 = vrot.lane.b32.xlu0 %v6928_v51, %s17754_s30  ;;  %v9890_v54 = vpop.permute.xlu1 %9889 }
 0x75a   :  { %v10876_v56 = vsel %vm17815_vm6, %v10875_v7, %v9890_v54  ;;  %vm17822_vm6 = vcmask 261120  }
 0x75b   :  { %v9894_v22 = vpop.permute.xlu0 %9893  ;;  %10145 = vrot.lane.b32.xlu1 %v7192_v20, %s17754_s30 }
 0x75c   :  { %v10877_v53 = vsel %vm17816_vm5, %v10876_v56, %v9894_v22  ;;  %vm17823_vm5 = vcmask 293888  }
 0x75d   :  { %10025 = vrot.lane.b32.xlu0 %v6911_v41, %s17321_s4  ;;  %v9898_v34 = vpop.permute.xlu1 %9897 }
 0x75e   :  { %v10878_v4 = vsel %vm17817_vm8, %v10877_v53, %v9898_v34  ;;  %vm17824_vm8 = vcmask 326656  }
 0x75f   :  { %v9902_v12 = vpop.permute.xlu0 %9901  ;;  %10149 = vrot.lane.b32.xlu1 %v7175_v39, %s17321_s4 }
 0x760   :  { %v10879_v36 = vsel %vm10222_vm13, %v10878_v4, %v9902_v12 }
 0x761   :  { %10029 = vrot.lane.b32.xlu0 %v6929_v42, %s16821_s3  ;;  %v9906_v31 = vpop.permute.xlu1 %9905 }
 0x762   :  { %v10880_v27 = vsel %vm17818_vm4, %v10879_v36, %v9906_v31  ;;  %vm17825_vm4 = vcmask 359424  }
 0x763   :  { %v9910_v37 = vpop.permute.xlu0 %9909  ;;  %10153 = vrot.lane.b32.xlu1 %v7193_v40, %s16821_s3 }
 0x764   :  { %v10881_v23 = vsel %vm10226_vm15, %v10880_v27, %v9910_v37 }
 0x765   :  { %10033 = vrot.lane.b32.xlu0 %v6920_v63, %s17185_s5  ;;  %v9914_v59 = vpop.permute.xlu1 %9913 }
 0x766   :  { %v10882_v24 = vsel %vm10228_vm12, %v10881_v23, %v9914_v59 }
 0x767   :  { %v9918_v2 = vpop.permute.xlu0 %9917  ;;  %10157 = vrot.lane.b32.xlu1 %v7184_v57, %s17185_s5 }
 0x768   :  { %v10883_v61 = vsel %vm10230_vm11, %v10882_v24, %v9918_v2 }
 0x769   :  { %10037 = vrot.lane.b32.xlu0 %v6930_v25, %s17620_s6  ;;  %v9922_v43 = vpop.permute.xlu1 %9921 }
 0x76a   :  { %v16339_v52 = vsel %vm10232_vm14, %v10883_v61, %v9922_v43 }
 0x76b   :  { %v9926_v9 = vpop.permute.xlu0 %9925  ;;  %v11056_v21 = vcombine.low %v16204_v1, %v16339_v52  ;;  %10161 = vrot.lane.b32.xlu1 %v7194_v19, %s17620_s6 }
 0x76c   :  { %v10885_v26 = vsel %vm10172_vm0, %v16074_v38, %v9926_v9 }
 0x76d   :  { %10041 = vrot.lane.b32.xlu0 %v6927_v46, %s16800_s8  ;;  %v9930_v6 = vpop.permute.xlu1 %9929 }
 0x76e   :  { %v10886_v44 = vsel %vm10174_vm1, %v10885_v26, %v9930_v6 }
 0x76f   :  { %v9934_v60 = vpop.permute.xlu0 %9933  ;;  %10165 = vrot.lane.b32.xlu1 %v7191_v16, %s16800_s8 }
 0x770   :  { %v10887_v17 = vsel %vm10176_vm2, %v10886_v44, %v9934_v60 }
 0x771   :  { %10045 = vrot.lane.b32.xlu0 %v6931_v29, %s17158_s7  ;;  %v9938_v35 = vpop.permute.xlu1 %9937 }
 0x772   :  { %v10888_v38 = vsel %vm10178_vm3, %v10887_v17, %v9938_v35 }
 0x773   :  { %v9942_v0 = vpop.permute.xlu0 %9941  ;;  %10169 = vrot.lane.b32.xlu1 %v7195_v50, %s17158_s7 }
 0x774   :  { %v10889_v48 = vsel %vm17819_vm9, %v10888_v38, %v9942_v0  ;;  %vm17826_vm9 = vcmask 392192  }
 0x775   :  { %v9946_v14 = vpop.permute.xlu1 %9945 }
 0x776   :  { %v10890_v30 = vsel %vm17820_vm7, %v10889_v48, %v9946_v14  ;;  %vm17827_vm7 = vcmask 424960  }
 0x777   :  { %v9950_v62 = vpop.permute.xlu0 %9949 }
 0x778   :  { %v10891_v11 = vsel %vm17821_vm10, %v10890_v30, %v9950_v62  ;;  %vm17828_vm10 = vcmask 457728  }
 0x779   :  { %v9954_v51 = vpop.permute.xlu1 %9953 }
 0x77a   :  { %v10892_v7 = vsel %vm17822_vm6, %v10891_v11, %v9954_v51  ;;  %vm17829_vm6 = vcmask 162816  }
 0x77b   :  { %v9958_v32 = vpop.permute.xlu0 %9957 }
 0x77c   :  { %v10893_v3 = vsel %vm17823_vm5, %v10892_v7, %v9958_v32  ;;  %vm17830_vm5 = vcmask 195584  }
 0x77d   :  { %v9962_v49 = vpop.permute.xlu1 %9961 }
 0x77e   :  { %v10894_v47 = vsel %vm17824_vm8, %v10893_v3, %v9962_v49  ;;  %vm17831_vm8 = vcmask 228352  }
 0x77f   :  { %v9966_v54 = vpop.permute.xlu0 %9965 }
 0x780   :  { %v10895_v20 = vsel %vm17825_vm4, %v10894_v47, %v9966_v54 }
 0x781   :  { %v9970_v18 = vpop.permute.xlu1 %9969 }
 0x782   :  { %v10896_v56 = vsel %vm17826_vm9, %v10895_v20, %v9970_v18 }
 0x783   :  { %v9974_v22 = vpop.permute.xlu0 %9973 }
 0x784   :  { %v10897_v41 = vsel %vm17827_vm7, %v10896_v56, %v9974_v22 }
 0x785   :  { %v9978_v33 = vpop.permute.xlu1 %9977 }
 0x786   :  { %v10898_v10 = vsel %vm17828_vm10, %v10897_v41, %v9978_v33 }
 0x787   :  { %v10050_v53 = vpop.permute.xlu0 %10049 }
 0x788   :  { %v10916_v19 = vsel %vm10172_vm0, %v16139_v58, %v10050_v53  ;;  %vm17832_vm0 = vcmask 261120  }
 0x789   :  { %v10054_v28 = vpop.permute.xlu1 %10053 }
 0x78a   :  { %v10917_v46 = vsel %vm10174_vm1, %v10916_v19, %v10054_v28  ;;  %vm17833_vm1 = vcmask 293888  }
 0x78b   :  { %v10058_v34 = vpop.permute.xlu0 %10057 }
 0x78c   :  { %v10918_v6 = vsel %vm10176_vm2, %v10917_v46, %v10058_v34  ;;  %vm17834_vm2 = vcmask 326656  }
 0x78d   :  { %v10062_v39 = vpop.permute.xlu1 %10061 }
 0x78e   :  { %v10919_v44 = vsel %vm10178_vm3, %v10918_v6, %v10062_v39  ;;  %vm17835_vm3 = vmmov %vm17825_vm4 }
 0x78f   :  { %v10066_v13 = vpop.permute.xlu0 %10065  ;;  %vm17836_vm4 = vmmov %vm17826_vm9 }
 0x790   :  { %v10920_v29 = vsel %vm17829_vm6, %v10919_v44, %v10066_v13  ;;  %vm17837_vm9 = vmmov %vm17827_vm7  ;;  %vm17838_vm7 = vcmask 490496   ;;  %vm17839_vm6 = vcmask 523264  }
 0x791   :  { %v10070_v4 = vpop.permute.xlu1 %10069 }
 0x792   :  { %v10921_v35 = vsel %vm17830_vm5, %v10920_v29, %v10070_v4  ;;  %vm17840_vm5 = vmmov %vm17838_vm7 }
 0x793   :  { %v10074_v12 = vpop.permute.xlu0 %10073 }
 0x794   :  { %v10922_v38 = vsel %vm17831_vm8, %v10921_v35, %v10074_v12  ;;  %vm17841_vm8 = vcmask 556032  }
 0x795   :  { %v10078_v42 = vpop.permute.xlu1 %10077 }
 0x796   :  { %v10923_v58 = vsel %vm17832_vm0, %v10922_v38, %v10078_v42  ;;  %vm17842_vm0 = vmmov %vm17839_vm6 }
 0x797   :  { %v10082_v8 = vpop.permute.xlu0 %10081 }
 0x798   :  { %v10924_v14 = vsel %vm17833_vm1, %v10923_v58, %v10082_v8  ;;  %vm17843_vm1 = vcmask 588800  }
 0x799   :  { %v10086_v36 = vpop.permute.xlu1 %10085 }
 0x79a   :  { %v10925_v62 = vsel %vm17834_vm2, %v10924_v14, %v10086_v36  ;;  %vm17844_vm2 = vmmov %vm17841_vm8 }
 0x79b   :  { %v10090_v15 = vpop.permute.xlu0 %10089 }
 0x79c   :  { %v10926_v51 = vsel %vm17835_vm3, %v10925_v62, %v10090_v15  ;;  %vm17845_vm3 = vcmask 621568  }
 0x79d   :  { %v10094_v31 = vpop.permute.xlu1 %10093 }
 0x79e   :  { %v10927_v32 = vsel %vm17836_vm4, %v10926_v51, %v10094_v31  ;;  %vm17846_vm4 = vmmov %vm17843_vm1 }
 0x79f   :  { %v10098_v40 = vpop.permute.xlu0 %10097 }
 0x7a0   :  { %v10928_v49 = vsel %vm17837_vm9, %v10927_v32, %v10098_v40  ;;  %vm17847_vm9 = vcmask 654336  }
 0x7a1   :  { %v10102_v27 = vpop.permute.xlu1 %10101 }
 0x7a2   :  { %v10929_v20 = vsel %vm17828_vm10, %v10928_v49, %v10102_v27  ;;  %vm17849_vm10 = vcmask 687104  }
 0x7a3   :  { %v9982_v37 = vpop.permute.xlu0 %9981 }
 0x7a4   :  { %v10899_v54 = vsel %vm17838_vm7, %v10898_v10, %v9982_v37  ;;  %vm17848_vm7 = vmmov %vm17845_vm3 }
 0x7a5   :  { %v10106_v63 = vpop.permute.xlu1 %10105 }
 0x7a6   :  { %v10930_v22 = vsel %vm17840_vm5, %v10929_v20, %v10106_v63  ;;  %vm17851_vm5 = vcmask 719872  }
 0x7a7   :  { %v9986_v23 = vpop.permute.xlu0 %9985 }
 0x7a8   :  { %v10900_v18 = vsel %vm17839_vm6, %v10899_v54, %v9986_v23  ;;  %vm17850_vm6 = vmmov %vm17847_vm9 }
 0x7a9   :  { %v10110_v59 = vpop.permute.xlu1 %10109 }
 0x7aa   :  { %v10931_v53 = vsel %vm17842_vm0, %v10930_v22, %v10110_v59  ;;  %vm17853_vm0 = vcmask 752640  }
 0x7ab   :  { %v9990_v57 = vpop.permute.xlu0 %9989 }
 0x7ac   :  { %v10901_v41 = vsel %vm17841_vm8, %v10900_v18, %v9990_v57  ;;  %vm17852_vm8 = vmmov %vm17849_vm10 }
 0x7ad   :  { %v10114_v55 = vpop.permute.xlu1 %10113 }
 0x7ae   :  { %v10932_v34 = vsel %vm17844_vm2, %v10931_v53, %v10114_v55  ;;  %vm17855_vm2 = vcmask 785408  }
 0x7af   :  { %v9994_v24 = vpop.permute.xlu0 %9993 }
 0x7b0   :  { %v10902_v28 = vsel %vm17843_vm1, %v10901_v41, %v9994_v24  ;;  %vm17854_vm1 = vmmov %vm17851_vm5 }
 0x7b1   :  { %v10118_v2 = vpop.permute.xlu1 %10117 }
 0x7b2   :  { %v10933_v10 = vsel %vm17846_vm4, %v10932_v34, %v10118_v2  ;;  %vm17857_vm4 = vcmask 818176  }
 0x7b3   :  { %v9998_v25 = vpop.permute.xlu0 %9997 }
 0x7b4   :  { %v10903_v39 = vsel %vm17845_vm3, %v10902_v28, %v9998_v25  ;;  %vm17856_vm3 = vmmov %vm17853_vm0 }
 0x7b5   :  { %v10122_v61 = vpop.permute.xlu1 %10121 }
 0x7b6   :  { %v10934_v12 = vsel %vm17848_vm7, %v10933_v10, %v10122_v61  ;;  %vm17859_vm7 = vmmov %vm17857_vm4 }
 0x7b7   :  { %v10002_v45 = vpop.permute.xlu0 %10001 }
 0x7b8   :  { %v10904_v13 = vsel %vm17847_vm9, %v10903_v39, %v10002_v45  ;;  %vm17858_vm9 = vmmov %vm17855_vm2 }
 0x7b9   :  { %v10126_v43 = vpop.permute.xlu1 %10125 }
 0x7ba   :  { %v10935_v36 = vsel %vm17850_vm6, %v10934_v12, %v10126_v43 }
 0x7bb   :  { %v10006_v9 = vpop.permute.xlu0 %10005 }
 0x7bc   :  { %v10905_v42 = vsel %vm17849_vm10, %v10904_v13, %v10006_v9  ;;  %vm17860_vm10 = vcmask 883712  }
 0x7bd   :  { %v10130_v26 = vpop.permute.xlu1 %10129  ;;  %vm17861_vm6 = vmmov %vm17860_vm10 }
 0x7be   :  { %v10936_v31 = vsel %vm17852_vm8, %v10935_v36, %v10130_v26 }
 0x7bf   :  { %v10010_v16 = vpop.permute.xlu0 %10009 }
 0x7c0   :  { %v10906_v15 = vsel %vm17851_vm5, %v10905_v42, %v10010_v16 }
 0x7c1   :  { %v10134_v60 = vpop.permute.xlu1 %10133 }
 0x7c2   :  { %v10937_v27 = vsel %vm17854_vm1, %v10936_v31, %v10134_v60 }
 0x7c3   :  { %v10014_v17 = vpop.permute.xlu0 %10013 }
 0x7c4   :  { %v10907_v40 = vsel %vm17853_vm0, %v10906_v15, %v10014_v17 }
 0x7c5   :  { %v10138_v50 = vpop.permute.xlu1 %10137 }
 0x7c6   :  { %v10938_v23 = vsel %vm17856_vm3, %v10937_v27, %v10138_v50  ;;  %v11064_v50 = vrot.slane %v11056_v21, %v11234_v5 }
 0x7c7   :  { %v10018_v0 = vpop.permute.xlu0 %10017 }
 0x7c8   :  { %v10908_v37 = vsel %vm17855_vm2, %v10907_v40, %v10018_v0 }
 0x7c9   :  { %v10142_v48 = vpop.permute.xlu1 %10141 }
 0x7ca   :  { %v10939_v55 = vsel %vm17858_vm9, %v10938_v23, %v10142_v48 }
 0x7cb   :  { %v10022_v30 = vpop.permute.xlu0 %10021 }
 0x7cc   :  { %v10909_v59 = vsel %vm17857_vm4, %v10908_v37, %v10022_v30 }
 0x7cd   :  { %v10146_v11 = vpop.permute.xlu1 %10145 }
 0x7ce   :  { %v10940_v2 = vsel %vm17859_vm7, %v10939_v55, %v10146_v11 }
 0x7cf   :  { %v10026_v7 = vpop.permute.xlu0 %10025 }
 0x7d0   :  { %v10910_v24 = vsel %vm10222_vm13, %v10909_v59, %v10026_v7 }
 0x7d1   :  { %v10150_v3 = vpop.permute.xlu1 %10149 }
 0x7d2   :  { %v10941_v61 = vsel %vm10222_vm13, %v10940_v2, %v10150_v3 }
 0x7d3   :  { %v10030_v47 = vpop.permute.xlu0 %10029 }
 0x7d4   :  { %v10911_v25 = vsel %vm17860_vm10, %v10910_v24, %v10030_v47 }
 0x7d5   :  { %v10154_v56 = vpop.permute.xlu1 %10153 }
 0x7d6   :  { %v10942_v19 = vsel %vm17861_vm6, %v10941_v61, %v10154_v56 }
 0x7d7   :  { %v10034_v33 = vpop.permute.xlu0 %10033 }
 0x7d8   :  { %v10912_v45 = vsel %vm10226_vm15, %v10911_v25, %v10034_v33 }
 0x7d9   :  { %v10158_v4 = vpop.permute.xlu1 %10157 }
 0x7da   :  { %v10943_v26 = vsel %vm10226_vm15, %v10942_v19, %v10158_v4 }
 0x7db   :  { %v10038_v8 = vpop.permute.xlu0 %10037 }
 0x7dc   :  { %v10913_v9 = vsel %vm10228_vm12, %v10912_v45, %v10038_v8 }
 0x7dd   :  { %v10162_v63 = vpop.permute.xlu1 %10161 }
 0x7de   :  { %v10944_v16 = vsel %vm10228_vm12, %v10943_v26, %v10162_v63 }
 0x7df   :  { %v10042_v57 = vpop.permute.xlu0 %10041 }
 0x7e0   :  { %v10914_v6 = vsel %vm10230_vm11, %v10913_v9, %v10042_v57 }
 0x7e1   :  { %v10166_v43 = vpop.permute.xlu1 %10165 }
 0x7e2   :  { %v10945_v60 = vsel %vm10230_vm11, %v10944_v16, %v10166_v43 }
 0x7e3   :  { %v10046_v46 = vpop.permute.xlu0 %10045 }
 0x7e4   :  { %v10915_v44 = vsel %vm10232_vm14, %v10914_v6, %v10046_v46 }
 0x7e5   :  { %v10170_v29 = vpop.permute.xlu1 %10169 }
 0x7e6   :  { %v10946_v17 = vsel %vm10232_vm14, %v10945_v60, %v10170_v29 }
 0x7e7   :  { %v11057_v35 = vcombine.low %v10915_v44, %v10946_v17 }
 0x7e9   :  { %v11071_v38 = vrot.slane %v11057_v35, %v11234_v5 }
 0x7eb   :  { %v11072_v0 = vcombine.low %v11064_v50, %v11071_v38 }
 0x7ed   :  { %11084 = vst [vmem:[#allocation5 + $0x28] sm:$0xff] %v11072_v0 }
 0x7ee   :  { %11169 = shalt.err (!%p11166_p9)
}
 0x7ef   :  { %11094 = dma.vmem_to_hbm [thread:$0]  %s11092_s12, 768, %s16425_s1, [#allocation4]  }
 0x7f0   :  { %11180 = dma.done.wait [#allocation4], 768  }
 0x7f1   :  { %11181 = vsyncadd [#allocation4], 4294966528 }
 0x7f2   :  { %11098 = vsyncpa [#allocation3], 1 }
 0x7f3   :  { %11099 = vsyncpa [#allocation4], 1 }

</bundles_post_ra>
